<compile_context>
chip_gen: v6e
topology: v6e:2x2x1
jax: 0.10.0
libtpu: 0.0.40
codegen_flags: <defaults>
</compile_context>

<pallas_src>
import jax
import jax.numpy as jnp
import numpy as np
from jax.experimental import pallas as pl
from jax.experimental.pallas import tpu as pltpu

HIDDEN = 120          # real hidden size
HP = 128              # lane-padded hidden size
TAP = 35              # forward takes lstm_out[35, :, :]
T = TAP + 1           # timesteps that can influence the output
XC = 8                # input_size (1) zero-padded to 8 so the input projection
                      # is an ordinary small-K MXU matmul (no size-1 lane dim)


def _single_lstm_kernel(x_ref, wih_ref, whh_ref, b_ref,
                        w1_ref, b1_ref, w2_ref, b2_ref, out_ref, gin_ref):
    # x_ref:   (T, BT, XC)   f32, channel 0 real, channels 1..7 zero
    # wih_ref: (XC, 4*HP)    row 0 = gate-padded W_ih^T, rows 1..7 zero
    # whh_ref: (HP, 4*HP)    gate-padded W_hh^T
    # b_ref:   (1, 4*HP)     gate-padded (b_ih + b_hh)
    # w1_ref:  (HP, HP)      padded W1^T,   b1_ref: (1, HP)
    # w2_ref:  (1, HP)       padded W2 row, b2_ref: (1, 1)
    # out_ref: (BT, HP)      lane-dense output (result broadcast across lanes)
    # gin_ref: (T, BT, 4*HP) VMEM scratch: hoisted input projection + bias
    t_steps = x_ref.shape[0]
    BT = x_ref.shape[1]
    H = HP

    # Hoist the input contribution + bias out of the serial recurrence as one
    # small-K MXU matmul: (T*BT, 8) @ (8, 4H) + (1, 4H) -> (T, BT, 4H).
    x2d = x_ref[...].reshape(t_steps * BT, XC)
    gin = jnp.dot(x2d, wih_ref[...],
                  preferred_element_type=jnp.float32) + b_ref[...]
    gin_ref[...] = gin.reshape(t_steps, BT, 4 * H)

    def sig(v):
        # sigmoid via tanh: one EUP push per vreg instead of exp + reciprocal.
        return 0.5 * jnp.tanh(0.5 * v) + 0.5

    def step(t, carry):
        h, c = carry
        # TODO(synk): latch W_hh across steps with pltpu.matmul_push_rhs /
        # matmul_acc_lhs / matmul_pop (generation-specific MXU split) instead
        # of re-streaming the 128x512 f32 weight every step.
        gates = gin_ref[t] + jnp.dot(h, whh_ref[...],
                                     preferred_element_type=jnp.float32)
        i = sig(gates[:, 0:H])
        f = sig(gates[:, H:2 * H])
        g = jnp.tanh(gates[:, 2 * H:3 * H])
        o = sig(gates[:, 3 * H:4 * H])
        c_new = f * c + i * g
        h_new = o * jnp.tanh(c_new)
        return h_new, c_new

    h0 = jnp.zeros((BT, H), jnp.float32)
    c0 = jnp.zeros((BT, H), jnp.float32)
    # Static trip count (36) -> fully unroll so the LLO scheduler can overlap
    # step i's gate/elementwise epilogue with step i+1's weight streaming.
    h, _ = jax.lax.fori_loop(0, t_steps, step, (h0, c0), unroll=True)

    # l1: Linear(120, 10) + ReLU (lane-padded to 128 cols; padded cols stay 0)
    y = jnp.maximum(
        jnp.dot(h, w1_ref[...], preferred_element_type=jnp.float32)
        + b1_ref[...], 0.0)
    # l2: Linear(10, 1) as a VPU multiply + lane reduction; store lane-dense.
    z = jnp.sum(y * w2_ref[...], axis=-1, keepdims=True) + b2_ref[...]
    out_ref[...] = jnp.broadcast_to(z, (BT, H))


def _pad_gate_cols(m, H=HIDDEN, Hp=HP):
    """(..., 4H) -> (..., 4Hp): each gate block moved to lane offset g*Hp,
    padded positions zero-filled."""
    parts = []
    for g in range(4):
        blk = m[..., g * H:(g + 1) * H]
        pad = [(0, 0)] * (m.ndim - 1) + [(0, Hp - H)]
        parts.append(jnp.pad(blk, pad))
    return jnp.concatenate(parts, axis=-1)


def single_lstm_forward(x, params):
    """x: (S, B, 1) float32. Returns (B, 1) float32 == SingleLSTM.forward(x)."""
    S, B, _ = x.shape
    assert S >= T, "forward indexes the LSTM output at t=35"

    # Batch tiling: one tile for small batches, 128-row tiles (grid-parallel,
    # megacore-shardable on v7x) for large ones.
    if B <= 128:
        Bp = max(8, ((B + 7) // 8) * 8)
        BT = Bp
    else:
        BT = 128
        Bp = ((B + BT - 1) // BT) * BT

    x36 = x[:T].astype(jnp.float32)                               # (36, B, 1)
    x_p = jnp.pad(x36, ((0, 0), (0, Bp - B), (0, XC - 1)))        # (36, Bp, 8)

    # Gate-padded, pre-transposed weights so all matmuls are (M,K)@(K,N).
    wih_row = _pad_gate_cols(params["w_ih"].T)                    # (1, 512)
    wih_p = jnp.pad(wih_row, ((0, XC - 1), (0, 0)))               # (8, 512)
    b_p = _pad_gate_cols((params["b_ih"] + params["b_hh"])[None])  # (1, 512)
    whh_p = _pad_gate_cols(params["w_hh"].T)                      # (120, 512)
    whh_p = jnp.pad(whh_p, ((0, HP - HIDDEN), (0, 0)))            # (128, 512)

    w1_p = jnp.pad(params["w1"].T, ((0, HP - HIDDEN), (0, HP - 10)))  # (128,128)
    b1_p = jnp.pad(params["b1"][None], ((0, 0), (0, HP - 10)))        # (1,128)
    w2_p = jnp.pad(params["w2"], ((0, 0), (0, HP - 10)))              # (1,128)
    b2_p = params["b2"][None]                                         # (1,1)

    grid = (Bp // BT,)
    in_specs = [
        pl.BlockSpec((T, BT, XC), lambda i: (0, i, 0)),     # x
        pl.BlockSpec((XC, 4 * HP), lambda i: (0, 0)),       # W_ih rows
        pl.BlockSpec((HP, 4 * HP), lambda i: (0, 0)),       # W_hh
        pl.BlockSpec((1, 4 * HP), lambda i: (0, 0)),        # bias
        pl.BlockSpec((HP, HP), lambda i: (0, 0)),           # W1
        pl.BlockSpec((1, HP), lambda i: (0, 0)),            # b1
        pl.BlockSpec((1, HP), lambda i: (0, 0)),            # W2 row
        pl.BlockSpec((1, 1), lambda i: (0, 0)),             # b2
    ]
    out_specs = pl.BlockSpec((BT, HP), lambda i: (i, 0))

    out_p = pl.pallas_call(
        _single_lstm_kernel,
        out_shape=jax.ShapeDtypeStruct((Bp, HP), jnp.float32),
        grid=grid,
        in_specs=in_specs,
        out_specs=out_specs,
        scratch_shapes=[pltpu.VMEM((T, BT, 4 * HP), jnp.float32)],
        compiler_params=pltpu.CompilerParams(
            dimension_semantics=("parallel",)),
    )(x_p, wih_p, whh_p, b_p, w1_p, b1_p, w2_p, b2_p)
    return out_p[:B, :1]


def single_lstm_reference(x, params):
    """Pure-JAX reference of the PyTorch forward (for validation)."""
    S, B, _ = x.shape
    H = HIDDEN
    w_ih, w_hh = params["w_ih"], params["w_hh"]
    b = params["b_ih"] + params["b_hh"]

    def step(carry, x_t):
        h, c = carry
        gates = x_t @ w_ih.T + h @ w_hh.T + b
        i = jax.nn.sigmoid(gates[:, 0:H])
        f = jax.nn.sigmoid(gates[:, H:2 * H])
        g = jnp.tanh(gates[:, 2 * H:3 * H])
        o = jax.nn.sigmoid(gates[:, 3 * H:4 * H])
        c = f * c + i * g
        h = o * jnp.tanh(c)
        return (h, c), h

    init = (jnp.zeros((B, H), jnp.float32), jnp.zeros((B, H), jnp.float32))
    _, hs = jax.lax.scan(step, init, x)          # (S, B, H) == lstm output
    h35 = hs[TAP]                                # x = x[35, :, :]
    y = jnp.maximum(h35 @ params["w1"].T + params["b1"], 0.0)
    return y @ params["w2"].T + params["b2"]


def init_params(key):
    """Deterministic init matching PyTorch default shapes/ranges."""
    H = HIDDEN
    ks = jax.random.split(key, 8)
    k_lstm = 1.0 / np.sqrt(H)
    k_l1 = 1.0 / np.sqrt(H)
    k_l2 = 1.0 / np.sqrt(10)
    u = lambda k, shape, lim: jax.random.uniform(
        k, shape, jnp.float32, minval=-lim, maxval=lim)
    return {
        "w_ih": u(ks[0], (4 * H, 1), k_lstm),
        "w_hh": u(ks[1], (4 * H, H), k_lstm),
        "b_ih": u(ks[2], (4 * H,), k_lstm),
        "b_hh": u(ks[3], (4 * H,), k_lstm),
        "w1":   u(ks[4], (10, H), k_l1),
        "b1":   u(ks[5], (10,), k_l1),
        "w2":   u(ks[6], (1, 10), k_l2),
        "b2":   u(ks[7], (1,), k_l2),
    }


if __name__ == "__main__":
    key = jax.random.PRNGKey(0)
    k_x, k_p = jax.random.split(key)

    SEQ, BATCH = 40, 2          # seq must be >= 36 because forward takes x[35]
    x = jax.random.normal(k_x, (SEQ, BATCH, 1), jnp.float32)
    params = init_params(k_p)

    out = single_lstm_forward(x, params)
    out = jax.block_until_ready(out)

    ref = jax.block_until_ready(single_lstm_reference(x, params))
    np.testing.assert_allclose(np.asarray(out), np.asarray(ref),
                               rtol=1e-4, atol=1e-5)
    print("KERNEL_OK")
</pallas_src>

<mosaic_0001>
module attributes {stable_mosaic.version = 11 : i64} {
  func.func @_single_lstm_kernel(%arg0: i32, %arg1: memref<36x8x8xf32, #tpu.memory_space<vmem>>, %arg2: memref<8x512xf32, #tpu.memory_space<vmem>>, %arg3: memref<128x512xf32, #tpu.memory_space<vmem>>, %arg4: memref<1x512xf32, #tpu.memory_space<vmem>>, %arg5: memref<128x128xf32, #tpu.memory_space<vmem>>, %arg6: memref<1x128xf32, #tpu.memory_space<vmem>>, %arg7: memref<1x128xf32, #tpu.memory_space<vmem>>, %arg8: memref<1x1xf32, #tpu.memory_space<vmem>>, %arg9: memref<8x128xf32, #tpu.memory_space<vmem>>, %arg10: memref<36x8x512xf32, #tpu.memory_space<vmem>>) attributes {dimension_semantics = [#tpu.dimension_semantics<parallel>], iteration_bounds = array<i64: 1>, scalar_prefetch = 0 : i64, scratch_operands = 1 : i64, tpu.core_type = #tpu.core_type<tc>, window_params = [{transform_indices = @transform_0, window_bounds = array<i64: 36, 8, 8>}, {pipeline_mode = #tpu.pipeline_mode<synchronous>, transform_indices = @transform_1, window_bounds = array<i64: 8, 512>}, {pipeline_mode = #tpu.pipeline_mode<synchronous>, transform_indices = @transform_2, window_bounds = array<i64: 128, 512>}, {pipeline_mode = #tpu.pipeline_mode<synchronous>, transform_indices = @transform_3, window_bounds = array<i64: 1, 512>}, {pipeline_mode = #tpu.pipeline_mode<synchronous>, transform_indices = @transform_4, window_bounds = array<i64: 128, 128>}, {pipeline_mode = #tpu.pipeline_mode<synchronous>, transform_indices = @transform_5, window_bounds = array<i64: 1, 128>}, {pipeline_mode = #tpu.pipeline_mode<synchronous>, transform_indices = @transform_6, window_bounds = array<i64: 1, 128>}, {pipeline_mode = #tpu.pipeline_mode<synchronous>, transform_indices = @transform_7, window_bounds = array<i64: 1, 1>}, {transform_indices = @transform_8, window_bounds = array<i64: 8, 128>}]} {
    %c0 = arith.constant 0 : index
    %c0_0 = arith.constant 0 : index
    %c0_1 = arith.constant 0 : index
    %0 = vector.load %arg1[%c0, %c0_0, %c0_1] : memref<36x8x8xf32, #tpu.memory_space<vmem>>, vector<36x8x8xf32>
    %1 = vector.shape_cast %0 : vector<36x8x8xf32> to vector<288x8xf32>
    %c0_2 = arith.constant 0 : index
    %c0_3 = arith.constant 0 : index
    %2 = vector.load %arg2[%c0_2, %c0_3] : memref<8x512xf32, #tpu.memory_space<vmem>>, vector<8x512xf32>
    %cst = arith.constant dense<0.000000e+00> : vector<288x512xf32>
    %3 = tpu.matmul %1, %2, %cst {dimension_numbers = #tpu.dot_dimension_numbers<[1], [0], [0], [1], [0, 0, 1, 1], [], []>} : vector<288x8xf32>, vector<8x512xf32>, vector<288x512xf32> -> vector<288x512xf32>
    %c0_4 = arith.constant 0 : index
    %c0_5 = arith.constant 0 : index
    %4 = vector.load %arg4[%c0_4, %c0_5] : memref<1x512xf32, #tpu.memory_space<vmem>>, vector<1x512xf32>
    %5 = vector.broadcast %4 : vector<1x512xf32> to vector<288x512xf32>
    %6 = arith.addf %3, %5 : vector<288x512xf32>
    %7 = vector.shape_cast %6 : vector<288x512xf32> to vector<36x8x512xf32>
    %c0_6 = arith.constant 0 : index
    %c0_7 = arith.constant 0 : index
    %c0_8 = arith.constant 0 : index
    %8 = vector.load %arg10[%c0_6, %c0_7, %c0_8] : memref<36x8x512xf32, #tpu.memory_space<vmem>>, vector<36x8x512xf32>
    tpu.vector_store %arg10[%c0_6, %c0_7, %c0_8], %7 {strides = array<i32>} : memref<36x8x512xf32, #tpu.memory_space<vmem>>, vector<36x8x512xf32>,
    %cst_9 = arith.constant 0.000000e+00 : f32
    %9 = vector.broadcast %cst_9 : f32 to vector<8x128xf32>
    %cst_10 = arith.constant 0.000000e+00 : f32
    %10 = vector.broadcast %cst_10 : f32 to vector<8x128xf32>
    %c0_i32 = arith.constant 0 : i32
    %11 = arith.index_cast %c0_i32 : i32 to index
    %c0_11 = arith.constant 0 : index
    %c0_12 = arith.constant 0 : index
    %12 = vector.load %arg10[%11, %c0_11, %c0_12] : memref<36x8x512xf32, #tpu.memory_space<vmem>>, vector<1x8x512xf32>
    %13 = vector.shape_cast %12 : vector<1x8x512xf32> to vector<8x512xf32>
    %c0_13 = arith.constant 0 : index
    %c0_14 = arith.constant 0 : index
    %14 = vector.load %arg3[%c0_13, %c0_14] : memref<128x512xf32, #tpu.memory_space<vmem>>, vector<128x512xf32>
    %cst_15 = arith.constant dense<0.000000e+00> : vector<8x512xf32>
    %15 = tpu.matmul %9, %14, %cst_15 {dimension_numbers = #tpu.dot_dimension_numbers<[1], [0], [0], [1], [0, 0, 1, 1], [], []>} : vector<8x128xf32>, vector<128x512xf32>, vector<8x512xf32> -> vector<8x512xf32>
    %16 = arith.addf %13, %15 : vector<8x512xf32>
    %17 = vector.extract_strided_slice %16 {offsets = [0, 0], sizes = [8, 128], strides = [1, 1]} : vector<8x512xf32> to vector<8x128xf32>
    %cst_16 = arith.constant 5.000000e-01 : f32
    %18 = vector.broadcast %cst_16 : f32 to vector<8x128xf32>
    %19 = arith.mulf %18, %17 : vector<8x128xf32>
    %20 = math.tanh %19 : vector<8x128xf32>
    %cst_17 = arith.constant 5.000000e-01 : f32
    %21 = vector.broadcast %cst_17 : f32 to vector<8x128xf32>
    %22 = arith.mulf %21, %20 : vector<8x128xf32>
    %cst_18 = arith.constant 5.000000e-01 : f32
    %23 = vector.broadcast %cst_18 : f32 to vector<8x128xf32>
    %24 = arith.addf %22, %23 : vector<8x128xf32>
    %25 = vector.extract_strided_slice %16 {offsets = [0, 128], sizes = [8, 128], strides = [1, 1]} : vector<8x512xf32> to vector<8x128xf32>
    %cst_19 = arith.constant 5.000000e-01 : f32
    %26 = vector.broadcast %cst_19 : f32 to vector<8x128xf32>
    %27 = arith.mulf %26, %25 : vector<8x128xf32>
    %28 = math.tanh %27 : vector<8x128xf32>
    %cst_20 = arith.constant 5.000000e-01 : f32
    %29 = vector.broadcast %cst_20 : f32 to vector<8x128xf32>
    %30 = arith.mulf %29, %28 : vector<8x128xf32>
    %cst_21 = arith.constant 5.000000e-01 : f32
    %31 = vector.broadcast %cst_21 : f32 to vector<8x128xf32>
    %32 = arith.addf %30, %31 : vector<8x128xf32>
    %33 = vector.extract_strided_slice %16 {offsets = [0, 256], sizes = [8, 128], strides = [1, 1]} : vector<8x512xf32> to vector<8x128xf32>
    %34 = math.tanh %33 : vector<8x128xf32>
    %35 = vector.extract_strided_slice %16 {offsets = [0, 384], sizes = [8, 128], strides = [1, 1]} : vector<8x512xf32> to vector<8x128xf32>
    %cst_22 = arith.constant 5.000000e-01 : f32
    %36 = vector.broadcast %cst_22 : f32 to vector<8x128xf32>
    %37 = arith.mulf %36, %35 : vector<8x128xf32>
    %38 = math.tanh %37 : vector<8x128xf32>
    %cst_23 = arith.constant 5.000000e-01 : f32
    %39 = vector.broadcast %cst_23 : f32 to vector<8x128xf32>
    %40 = arith.mulf %39, %38 : vector<8x128xf32>
    %cst_24 = arith.constant 5.000000e-01 : f32
    %41 = vector.broadcast %cst_24 : f32 to vector<8x128xf32>
    %42 = arith.addf %40, %41 : vector<8x128xf32>
    %43 = arith.mulf %32, %10 : vector<8x128xf32>
    %44 = arith.mulf %24, %34 : vector<8x128xf32>
    %45 = arith.addf %43, %44 : vector<8x128xf32>
    %46 = math.tanh %45 : vector<8x128xf32>
    %47 = arith.mulf %42, %46 : vector<8x128xf32>
    %c1_i32 = arith.constant 1 : i32
    %48 = arith.index_cast %c1_i32 : i32 to index
    %c0_25 = arith.constant 0 : index
    %c0_26 = arith.constant 0 : index
    %49 = vector.load %arg10[%48, %c0_25, %c0_26] : memref<36x8x512xf32, #tpu.memory_space<vmem>>, vector<1x8x512xf32>
    %50 = vector.shape_cast %49 : vector<1x8x512xf32> to vector<8x512xf32>
    %c0_27 = arith.constant 0 : index
    %c0_28 = arith.constant 0 : index
    %51 = vector.load %arg3[%c0_27, %c0_28] : memref<128x512xf32, #tpu.memory_space<vmem>>, vector<128x512xf32>
    %cst_29 = arith.constant dense<0.000000e+00> : vector<8x512xf32>
    %52 = tpu.matmul %47, %51, %cst_29 {dimension_numbers = #tpu.dot_dimension_numbers<[1], [0], [0], [1], [0, 0, 1, 1], [], []>} : vector<8x128xf32>, vector<128x512xf32>, vector<8x512xf32> -> vector<8x512xf32>
    %53 = arith.addf %50, %52 : vector<8x512xf32>
    %54 = vector.extract_strided_slice %53 {offsets = [0, 0], sizes = [8, 128], strides = [1, 1]} : vector<8x512xf32> to vector<8x128xf32>
    %cst_30 = arith.constant 5.000000e-01 : f32
    %55 = vector.broadcast %cst_30 : f32 to vector<8x128xf32>
    %56 = arith.mulf %55, %54 : vector<8x128xf32>
    %57 = math.tanh %56 : vector<8x128xf32>
    %cst_31 = arith.constant 5.000000e-01 : f32
    %58 = vector.broadcast %cst_31 : f32 to vector<8x128xf32>
    %59 = arith.mulf %58, %57 : vector<8x128xf32>
    %cst_32 = arith.constant 5.000000e-01 : f32
    %60 = vector.broadcast %cst_32 : f32 to vector<8x128xf32>
    %61 = arith.addf %59, %60 : vector<8x128xf32>
    %62 = vector.extract_strided_slice %53 {offsets = [0, 128], sizes = [8, 128], strides = [1, 1]} : vector<8x512xf32> to vector<8x128xf32>
    %cst_33 = arith.constant 5.000000e-01 : f32
    %63 = vector.broadcast %cst_33 : f32 to vector<8x128xf32>
    %64 = arith.mulf %63, %62 : vector<8x128xf32>
    %65 = math.tanh %64 : vector<8x128xf32>
    %cst_34 = arith.constant 5.000000e-01 : f32
    %66 = vector.broadcast %cst_34 : f32 to vector<8x128xf32>
    %67 = arith.mulf %66, %65 : vector<8x128xf32>
    %cst_35 = arith.constant 5.000000e-01 : f32
    %68 = vector.broadcast %cst_35 : f32 to vector<8x128xf32>
    %69 = arith.addf %67, %68 : vector<8x128xf32>
    %70 = vector.extract_strided_slice %53 {offsets = [0, 256], sizes = [8, 128], strides = [1, 1]} : vector<8x512xf32> to vector<8x128xf32>
    %71 = math.tanh %70 : vector<8x128xf32>
    %72 = vector.extract_strided_slice %53 {offsets = [0, 384], sizes = [8, 128], strides = [1, 1]} : vector<8x512xf32> to vector<8x128xf32>
    %cst_36 = arith.constant 5.000000e-01 : f32
    %73 = vector.broadcast %cst_36 : f32 to vector<8x128xf32>
    %74 = arith.mulf %73, %72 : vector<8x128xf32>
    %75 = math.tanh %74 : vector<8x128xf32>
    %cst_37 = arith.constant 5.000000e-01 : f32
    %76 = vector.broadcast %cst_37 : f32 to vector<8x128xf32>
    %77 = arith.mulf %76, %75 : vector<8x128xf32>
    %cst_38 = arith.constant 5.000000e-01 : f32
    %78 = vector.broadcast %cst_38 : f32 to vector<8x128xf32>
    %79 = arith.addf %77, %78 : vector<8x128xf32>
    %80 = arith.mulf %69, %45 : vector<8x128xf32>
    %81 = arith.mulf %61, %71 : vector<8x128xf32>
    %82 = arith.addf %80, %81 : vector<8x128xf32>
    %83 = math.tanh %82 : vector<8x128xf32>
    %84 = arith.mulf %79, %83 : vector<8x128xf32>
    %c2_i32 = arith.constant 2 : i32
    %85 = arith.index_cast %c2_i32 : i32 to index
    %c0_39 = arith.constant 0 : index
    %c0_40 = arith.constant 0 : index
    %86 = vector.load %arg10[%85, %c0_39, %c0_40] : memref<36x8x512xf32, #tpu.memory_space<vmem>>, vector<1x8x512xf32>
    %87 = vector.shape_cast %86 : vector<1x8x512xf32> to vector<8x512xf32>
    %c0_41 = arith.constant 0 : index
    %c0_42 = arith.constant 0 : index
    %88 = vector.load %arg3[%c0_41, %c0_42] : memref<128x512xf32, #tpu.memory_space<vmem>>, vector<128x512xf32>
    %cst_43 = arith.constant dense<0.000000e+00> : vector<8x512xf32>
    %89 = tpu.matmul %84, %88, %cst_43 {dimension_numbers = #tpu.dot_dimension_numbers<[1], [0], [0], [1], [0, 0, 1, 1], [], []>} : vector<8x128xf32>, vector<128x512xf32>, vector<8x512xf32> -> vector<8x512xf32>
    %90 = arith.addf %87, %89 : vector<8x512xf32>
    %91 = vector.extract_strided_slice %90 {offsets = [0, 0], sizes = [8, 128], strides = [1, 1]} : vector<8x512xf32> to vector<8x128xf32>
    %cst_44 = arith.constant 5.000000e-01 : f32
    %92 = vector.broadcast %cst_44 : f32 to vector<8x128xf32>
    %93 = arith.mulf %92, %91 : vector<8x128xf32>
    %94 = math.tanh %93 : vector<8x128xf32>
    %cst_45 = arith.constant 5.000000e-01 : f32
    %95 = vector.broadcast %cst_45 : f32 to vector<8x128xf32>
    %96 = arith.mulf %95, %94 : vector<8x128xf32>
    %cst_46 = arith.constant 5.000000e-01 : f32
    %97 = vector.broadcast %cst_46 : f32 to vector<8x128xf32>
    %98 = arith.addf %96, %97 : vector<8x128xf32>
    %99 = vector.extract_strided_slice %90 {offsets = [0, 128], sizes = [8, 128], strides = [1, 1]} : vector<8x512xf32> to vector<8x128xf32>
    %cst_47 = arith.constant 5.000000e-01 : f32
    %100 = vector.broadcast %cst_47 : f32 to vector<8x128xf32>
    %101 = arith.mulf %100, %99 : vector<8x128xf32>
    %102 = math.tanh %101 : vector<8x128xf32>
    %cst_48 = arith.constant 5.000000e-01 : f32
    %103 = vector.broadcast %cst_48 : f32 to vector<8x128xf32>
    %104 = arith.mulf %103, %102 : vector<8x128xf32>
    %cst_49 = arith.constant 5.000000e-01 : f32
    %105 = vector.broadcast %cst_49 : f32 to vector<8x128xf32>
    %106 = arith.addf %104, %105 : vector<8x128xf32>
    %107 = vector.extract_strided_slice %90 {offsets = [0, 256], sizes = [8, 128], strides = [1, 1]} : vector<8x512xf32> to vector<8x128xf32>
    %108 = math.tanh %107 : vector<8x128xf32>
    %109 = vector.extract_strided_slice %90 {offsets = [0, 384], sizes = [8, 128], strides = [1, 1]} : vector<8x512xf32> to vector<8x128xf32>
    %cst_50 = arith.constant 5.000000e-01 : f32
    %110 = vector.broadcast %cst_50 : f32 to vector<8x128xf32>
    %111 = arith.mulf %110, %109 : vector<8x128xf32>
    %112 = math.tanh %111 : vector<8x128xf32>
    %cst_51 = arith.constant 5.000000e-01 : f32
    %113 = vector.broadcast %cst_51 : f32 to vector<8x128xf32>
    %114 = arith.mulf %113, %112 : vector<8x128xf32>
    %cst_52 = arith.constant 5.000000e-01 : f32
    %115 = vector.broadcast %cst_52 : f32 to vector<8x128xf32>
    %116 = arith.addf %114, %115 : vector<8x128xf32>
    %117 = arith.mulf %106, %82 : vector<8x128xf32>
    %118 = arith.mulf %98, %108 : vector<8x128xf32>
    %119 = arith.addf %117, %118 : vector<8x128xf32>
    %120 = math.tanh %119 : vector<8x128xf32>
    %121 = arith.mulf %116, %120 : vector<8x128xf32>
    %c3_i32 = arith.constant 3 : i32
    %122 = arith.index_cast %c3_i32 : i32 to index
    %c0_53 = arith.constant 0 : index
    %c0_54 = arith.constant 0 : index
    %123 = vector.load %arg10[%122, %c0_53, %c0_54] : memref<36x8x512xf32, #tpu.memory_space<vmem>>, vector<1x8x512xf32>
    %124 = vector.shape_cast %123 : vector<1x8x512xf32> to vector<8x512xf32>
    %c0_55 = arith.constant 0 : index
    %c0_56 = arith.constant 0 : index
    %125 = vector.load %arg3[%c0_55, %c0_56] : memref<128x512xf32, #tpu.memory_space<vmem>>, vector<128x512xf32>
    %cst_57 = arith.constant dense<0.000000e+00> : vector<8x512xf32>
    %126 = tpu.matmul %121, %125, %cst_57 {dimension_numbers = #tpu.dot_dimension_numbers<[1], [0], [0], [1], [0, 0, 1, 1], [], []>} : vector<8x128xf32>, vector<128x512xf32>, vector<8x512xf32> -> vector<8x512xf32>
    %127 = arith.addf %124, %126 : vector<8x512xf32>
    %128 = vector.extract_strided_slice %127 {offsets = [0, 0], sizes = [8, 128], strides = [1, 1]} : vector<8x512xf32> to vector<8x128xf32>
    %cst_58 = arith.constant 5.000000e-01 : f32
    %129 = vector.broadcast %cst_58 : f32 to vector<8x128xf32>
    %130 = arith.mulf %129, %128 : vector<8x128xf32>
    %131 = math.tanh %130 : vector<8x128xf32>
    %cst_59 = arith.constant 5.000000e-01 : f32
    %132 = vector.broadcast %cst_59 : f32 to vector<8x128xf32>
    %133 = arith.mulf %132, %131 : vector<8x128xf32>
    %cst_60 = arith.constant 5.000000e-01 : f32
    %134 = vector.broadcast %cst_60 : f32 to vector<8x128xf32>
    %135 = arith.addf %133, %134 : vector<8x128xf32>
    %136 = vector.extract_strided_slice %127 {offsets = [0, 128], sizes = [8, 128], strides = [1, 1]} : vector<8x512xf32> to vector<8x128xf32>
    %cst_61 = arith.constant 5.000000e-01 : f32
    %137 = vector.broadcast %cst_61 : f32 to vector<8x128xf32>
    %138 = arith.mulf %137, %136 : vector<8x128xf32>
    %139 = math.tanh %138 : vector<8x128xf32>
    %cst_62 = arith.constant 5.000000e-01 : f32
    %140 = vector.broadcast %cst_62 : f32 to vector<8x128xf32>
    %141 = arith.mulf %140, %139 : vector<8x128xf32>
    %cst_63 = arith.constant 5.000000e-01 : f32
    %142 = vector.broadcast %cst_63 : f32 to vector<8x128xf32>
    %143 = arith.addf %141, %142 : vector<8x128xf32>
    %144 = vector.extract_strided_slice %127 {offsets = [0, 256], sizes = [8, 128], strides = [1, 1]} : vector<8x512xf32> to vector<8x128xf32>
    %145 = math.tanh %144 : vector<8x128xf32>
    %146 = vector.extract_strided_slice %127 {offsets = [0, 384], sizes = [8, 128], strides = [1, 1]} : vector<8x512xf32> to vector<8x128xf32>
    %cst_64 = arith.constant 5.000000e-01 : f32
    %147 = vector.broadcast %cst_64 : f32 to vector<8x128xf32>
    %148 = arith.mulf %147, %146 : vector<8x128xf32>
    %149 = math.tanh %148 : vector<8x128xf32>
    %cst_65 = arith.constant 5.000000e-01 : f32
    %150 = vector.broadcast %cst_65 : f32 to vector<8x128xf32>
    %151 = arith.mulf %150, %149 : vector<8x128xf32>
    %cst_66 = arith.constant 5.000000e-01 : f32
    %152 = vector.broadcast %cst_66 : f32 to vector<8x128xf32>
    %153 = arith.addf %151, %152 : vector<8x128xf32>
    %154 = arith.mulf %143, %119 : vector<8x128xf32>
    %155 = arith.mulf %135, %145 : vector<8x128xf32>
    %156 = arith.addf %154, %155 : vector<8x128xf32>
    %157 = math.tanh %156 : vector<8x128xf32>
    %158 = arith.mulf %153, %157 : vector<8x128xf32>
    %c4_i32 = arith.constant 4 : i32
    %159 = arith.index_cast %c4_i32 : i32 to index
    %c0_67 = arith.constant 0 : index
    %c0_68 = arith.constant 0 : index
    %160 = vector.load %arg10[%159, %c0_67, %c0_68] : memref<36x8x512xf32, #tpu.memory_space<vmem>>, vector<1x8x512xf32>
    %161 = vector.shape_cast %160 : vector<1x8x512xf32> to vector<8x512xf32>
    %c0_69 = arith.constant 0 : index
    %c0_70 = arith.constant 0 : index
    %162 = vector.load %arg3[%c0_69, %c0_70] : memref<128x512xf32, #tpu.memory_space<vmem>>, vector<128x512xf32>
    %cst_71 = arith.constant dense<0.000000e+00> : vector<8x512xf32>
    %163 = tpu.matmul %158, %162, %cst_71 {dimension_numbers = #tpu.dot_dimension_numbers<[1], [0], [0], [1], [0, 0, 1, 1], [], []>} : vector<8x128xf32>, vector<128x512xf32>, vector<8x512xf32> -> vector<8x512xf32>
    %164 = arith.addf %161, %163 : vector<8x512xf32>
    %165 = vector.extract_strided_slice %164 {offsets = [0, 0], sizes = [8, 128], strides = [1, 1]} : vector<8x512xf32> to vector<8x128xf32>
    %cst_72 = arith.constant 5.000000e-01 : f32
    %166 = vector.broadcast %cst_72 : f32 to vector<8x128xf32>
    %167 = arith.mulf %166, %165 : vector<8x128xf32>
    %168 = math.tanh %167 : vector<8x128xf32>
    %cst_73 = arith.constant 5.000000e-01 : f32
    %169 = vector.broadcast %cst_73 : f32 to vector<8x128xf32>
    %170 = arith.mulf %169, %168 : vector<8x128xf32>
    %cst_74 = arith.constant 5.000000e-01 : f32
    %171 = vector.broadcast %cst_74 : f32 to vector<8x128xf32>
    %172 = arith.addf %170, %171 : vector<8x128xf32>
    %173 = vector.extract_strided_slice %164 {offsets = [0, 128], sizes = [8, 128], strides = [1, 1]} : vector<8x512xf32> to vector<8x128xf32>
    %cst_75 = arith.constant 5.000000e-01 : f32
    %174 = vector.broadcast %cst_75 : f32 to vector<8x128xf32>
    %175 = arith.mulf %174, %173 : vector<8x128xf32>
    %176 = math.tanh %175 : vector<8x128xf32>
    %cst_76 = arith.constant 5.000000e-01 : f32
    %177 = vector.broadcast %cst_76 : f32 to vector<8x128xf32>
    %178 = arith.mulf %177, %176 : vector<8x128xf32>
    %cst_77 = arith.constant 5.000000e-01 : f32
    %179 = vector.broadcast %cst_77 : f32 to vector<8x128xf32>
    %180 = arith.addf %178, %179 : vector<8x128xf32>
    %181 = vector.extract_strided_slice %164 {offsets = [0, 256], sizes = [8, 128], strides = [1, 1]} : vector<8x512xf32> to vector<8x128xf32>
    %182 = math.tanh %181 : vector<8x128xf32>
    %183 = vector.extract_strided_slice %164 {offsets = [0, 384], sizes = [8, 128], strides = [1, 1]} : vector<8x512xf32> to vector<8x128xf32>
    %cst_78 = arith.constant 5.000000e-01 : f32
    %184 = vector.broadcast %cst_78 : f32 to vector<8x128xf32>
    %185 = arith.mulf %184, %183 : vector<8x128xf32>
    %186 = math.tanh %185 : vector<8x128xf32>
    %cst_79 = arith.constant 5.000000e-01 : f32
    %187 = vector.broadcast %cst_79 : f32 to vector<8x128xf32>
    %188 = arith.mulf %187, %186 : vector<8x128xf32>
    %cst_80 = arith.constant 5.000000e-01 : f32
    %189 = vector.broadcast %cst_80 : f32 to vector<8x128xf32>
    %190 = arith.addf %188, %189 : vector<8x128xf32>
    %191 = arith.mulf %180, %156 : vector<8x128xf32>
    %192 = arith.mulf %172, %182 : vector<8x128xf32>
    %193 = arith.addf %191, %192 : vector<8x128xf32>
    %194 = math.tanh %193 : vector<8x128xf32>
    %195 = arith.mulf %190, %194 : vector<8x128xf32>
    %c5_i32 = arith.constant 5 : i32
    %196 = arith.index_cast %c5_i32 : i32 to index
    %c0_81 = arith.constant 0 : index
    %c0_82 = arith.constant 0 : index
    %197 = vector.load %arg10[%196, %c0_81, %c0_82] : memref<36x8x512xf32, #tpu.memory_space<vmem>>, vector<1x8x512xf32>
    %198 = vector.shape_cast %197 : vector<1x8x512xf32> to vector<8x512xf32>
    %c0_83 = arith.constant 0 : index
    %c0_84 = arith.constant 0 : index
    %199 = vector.load %arg3[%c0_83, %c0_84] : memref<128x512xf32, #tpu.memory_space<vmem>>, vector<128x512xf32>
    %cst_85 = arith.constant dense<0.000000e+00> : vector<8x512xf32>
    %200 = tpu.matmul %195, %199, %cst_85 {dimension_numbers = #tpu.dot_dimension_numbers<[1], [0], [0], [1], [0, 0, 1, 1], [], []>} : vector<8x128xf32>, vector<128x512xf32>, vector<8x512xf32> -> vector<8x512xf32>
    %201 = arith.addf %198, %200 : vector<8x512xf32>
    %202 = vector.extract_strided_slice %201 {offsets = [0, 0], sizes = [8, 128], strides = [1, 1]} : vector<8x512xf32> to vector<8x128xf32>
    %cst_86 = arith.constant 5.000000e-01 : f32
    %203 = vector.broadcast %cst_86 : f32 to vector<8x128xf32>
    %204 = arith.mulf %203, %202 : vector<8x128xf32>
    %205 = math.tanh %204 : vector<8x128xf32>
    %cst_87 = arith.constant 5.000000e-01 : f32
    %206 = vector.broadcast %cst_87 : f32 to vector<8x128xf32>
    %207 = arith.mulf %206, %205 : vector<8x128xf32>
    %cst_88 = arith.constant 5.000000e-01 : f32
    %208 = vector.broadcast %cst_88 : f32 to vector<8x128xf32>
    %209 = arith.addf %207, %208 : vector<8x128xf32>
    %210 = vector.extract_strided_slice %201 {offsets = [0, 128], sizes = [8, 128], strides = [1, 1]} : vector<8x512xf32> to vector<8x128xf32>
    %cst_89 = arith.constant 5.000000e-01 : f32
    %211 = vector.broadcast %cst_89 : f32 to vector<8x128xf32>
    %212 = arith.mulf %211, %210 : vector<8x128xf32>
    %213 = math.tanh %212 : vector<8x128xf32>
    %cst_90 = arith.constant 5.000000e-01 : f32
    %214 = vector.broadcast %cst_90 : f32 to vector<8x128xf32>
    %215 = arith.mulf %214, %213 : vector<8x128xf32>
    %cst_91 = arith.constant 5.000000e-01 : f32
    %216 = vector.broadcast %cst_91 : f32 to vector<8x128xf32>
    %217 = arith.addf %215, %216 : vector<8x128xf32>
    %218 = vector.extract_strided_slice %201 {offsets = [0, 256], sizes = [8, 128], strides = [1, 1]} : vector<8x512xf32> to vector<8x128xf32>
    %219 = math.tanh %218 : vector<8x128xf32>
    %220 = vector.extract_strided_slice %201 {offsets = [0, 384], sizes = [8, 128], strides = [1, 1]} : vector<8x512xf32> to vector<8x128xf32>
    %cst_92 = arith.constant 5.000000e-01 : f32
    %221 = vector.broadcast %cst_92 : f32 to vector<8x128xf32>
    %222 = arith.mulf %221, %220 : vector<8x128xf32>
    %223 = math.tanh %222 : vector<8x128xf32>
    %cst_93 = arith.constant 5.000000e-01 : f32
    %224 = vector.broadcast %cst_93 : f32 to vector<8x128xf32>
    %225 = arith.mulf %224, %223 : vector<8x128xf32>
    %cst_94 = arith.constant 5.000000e-01 : f32
    %226 = vector.broadcast %cst_94 : f32 to vector<8x128xf32>
    %227 = arith.addf %225, %226 : vector<8x128xf32>
    %228 = arith.mulf %217, %193 : vector<8x128xf32>
    %229 = arith.mulf %209, %219 : vector<8x128xf32>
    %230 = arith.addf %228, %229 : vector<8x128xf32>
    %231 = math.tanh %230 : vector<8x128xf32>
    %232 = arith.mulf %227, %231 : vector<8x128xf32>
    %c6_i32 = arith.constant 6 : i32
    %233 = arith.index_cast %c6_i32 : i32 to index
    %c0_95 = arith.constant 0 : index
    %c0_96 = arith.constant 0 : index
    %234 = vector.load %arg10[%233, %c0_95, %c0_96] : memref<36x8x512xf32, #tpu.memory_space<vmem>>, vector<1x8x512xf32>
    %235 = vector.shape_cast %234 : vector<1x8x512xf32> to vector<8x512xf32>
    %c0_97 = arith.constant 0 : index
    %c0_98 = arith.constant 0 : index
    %236 = vector.load %arg3[%c0_97, %c0_98] : memref<128x512xf32, #tpu.memory_space<vmem>>, vector<128x512xf32>
    %cst_99 = arith.constant dense<0.000000e+00> : vector<8x512xf32>
    %237 = tpu.matmul %232, %236, %cst_99 {dimension_numbers = #tpu.dot_dimension_numbers<[1], [0], [0], [1], [0, 0, 1, 1], [], []>} : vector<8x128xf32>, vector<128x512xf32>, vector<8x512xf32> -> vector<8x512xf32>
    %238 = arith.addf %235, %237 : vector<8x512xf32>
    %239 = vector.extract_strided_slice %238 {offsets = [0, 0], sizes = [8, 128], strides = [1, 1]} : vector<8x512xf32> to vector<8x128xf32>
    %cst_100 = arith.constant 5.000000e-01 : f32
    %240 = vector.broadcast %cst_100 : f32 to vector<8x128xf32>
    %241 = arith.mulf %240, %239 : vector<8x128xf32>
    %242 = math.tanh %241 : vector<8x128xf32>
    %cst_101 = arith.constant 5.000000e-01 : f32
    %243 = vector.broadcast %cst_101 : f32 to vector<8x128xf32>
    %244 = arith.mulf %243, %242 : vector<8x128xf32>
    %cst_102 = arith.constant 5.000000e-01 : f32
    %245 = vector.broadcast %cst_102 : f32 to vector<8x128xf32>
    %246 = arith.addf %244, %245 : vector<8x128xf32>
    %247 = vector.extract_strided_slice %238 {offsets = [0, 128], sizes = [8, 128], strides = [1, 1]} : vector<8x512xf32> to vector<8x128xf32>
    %cst_103 = arith.constant 5.000000e-01 : f32
    %248 = vector.broadcast %cst_103 : f32 to vector<8x128xf32>
    %249 = arith.mulf %248, %247 : vector<8x128xf32>
    %250 = math.tanh %249 : vector<8x128xf32>
    %cst_104 = arith.constant 5.000000e-01 : f32
    %251 = vector.broadcast %cst_104 : f32 to vector<8x128xf32>
    %252 = arith.mulf %251, %250 : vector<8x128xf32>
    %cst_105 = arith.constant 5.000000e-01 : f32
    %253 = vector.broadcast %cst_105 : f32 to vector<8x128xf32>
    %254 = arith.addf %252, %253 : vector<8x128xf32>
    %255 = vector.extract_strided_slice %238 {offsets = [0, 256], sizes = [8, 128], strides = [1, 1]} : vector<8x512xf32> to vector<8x128xf32>
    %256 = math.tanh %255 : vector<8x128xf32>
    %257 = vector.extract_strided_slice %238 {offsets = [0, 384], sizes = [8, 128], strides = [1, 1]} : vector<8x512xf32> to vector<8x128xf32>
    %cst_106 = arith.constant 5.000000e-01 : f32
    %258 = vector.broadcast %cst_106 : f32 to vector<8x128xf32>
    %259 = arith.mulf %258, %257 : vector<8x128xf32>
    %260 = math.tanh %259 : vector<8x128xf32>
    %cst_107 = arith.constant 5.000000e-01 : f32
    %261 = vector.broadcast %cst_107 : f32 to vector<8x128xf32>
    %262 = arith.mulf %261, %260 : vector<8x128xf32>
    %cst_108 = arith.constant 5.000000e-01 : f32
    %263 = vector.broadcast %cst_108 : f32 to vector<8x128xf32>
    %264 = arith.addf %262, %263 : vector<8x128xf32>
    %265 = arith.mulf %254, %230 : vector<8x128xf32>
    %266 = arith.mulf %246, %256 : vector<8x128xf32>
    %267 = arith.addf %265, %266 : vector<8x128xf32>
    %268 = math.tanh %267 : vector<8x128xf32>
    %269 = arith.mulf %264, %268 : vector<8x128xf32>
    %c7_i32 = arith.constant 7 : i32
    %270 = arith.index_cast %c7_i32 : i32 to index
    %c0_109 = arith.constant 0 : index
    %c0_110 = arith.constant 0 : index
    %271 = vector.load %arg10[%270, %c0_109, %c0_110] : memref<36x8x512xf32, #tpu.memory_space<vmem>>, vector<1x8x512xf32>
    %272 = vector.shape_cast %271 : vector<1x8x512xf32> to vector<8x512xf32>
    %c0_111 = arith.constant 0 : index
    %c0_112 = arith.constant 0 : index
    %273 = vector.load %arg3[%c0_111, %c0_112] : memref<128x512xf32, #tpu.memory_space<vmem>>, vector<128x512xf32>
    %cst_113 = arith.constant dense<0.000000e+00> : vector<8x512xf32>
    %274 = tpu.matmul %269, %273, %cst_113 {dimension_numbers = #tpu.dot_dimension_numbers<[1], [0], [0], [1], [0, 0, 1, 1], [], []>} : vector<8x128xf32>, vector<128x512xf32>, vector<8x512xf32> -> vector<8x512xf32>
    %275 = arith.addf %272, %274 : vector<8x512xf32>
    %276 = vector.extract_strided_slice %275 {offsets = [0, 0], sizes = [8, 128], strides = [1, 1]} : vector<8x512xf32> to vector<8x128xf32>
    %cst_114 = arith.constant 5.000000e-01 : f32
    %277 = vector.broadcast %cst_114 : f32 to vector<8x128xf32>
    %278 = arith.mulf %277, %276 : vector<8x128xf32>
    %279 = math.tanh %278 : vector<8x128xf32>
    %cst_115 = arith.constant 5.000000e-01 : f32
    %280 = vector.broadcast %cst_115 : f32 to vector<8x128xf32>
    %281 = arith.mulf %280, %279 : vector<8x128xf32>
    %cst_116 = arith.constant 5.000000e-01 : f32
    %282 = vector.broadcast %cst_116 : f32 to vector<8x128xf32>
    %283 = arith.addf %281, %282 : vector<8x128xf32>
    %284 = vector.extract_strided_slice %275 {offsets = [0, 128], sizes = [8, 128], strides = [1, 1]} : vector<8x512xf32> to vector<8x128xf32>
    %cst_117 = arith.constant 5.000000e-01 : f32
    %285 = vector.broadcast %cst_117 : f32 to vector<8x128xf32>
    %286 = arith.mulf %285, %284 : vector<8x128xf32>
    %287 = math.tanh %286 : vector<8x128xf32>
    %cst_118 = arith.constant 5.000000e-01 : f32
    %288 = vector.broadcast %cst_118 : f32 to vector<8x128xf32>
    %289 = arith.mulf %288, %287 : vector<8x128xf32>
    %cst_119 = arith.constant 5.000000e-01 : f32
    %290 = vector.broadcast %cst_119 : f32 to vector<8x128xf32>
    %291 = arith.addf %289, %290 : vector<8x128xf32>
    %292 = vector.extract_strided_slice %275 {offsets = [0, 256], sizes = [8, 128], strides = [1, 1]} : vector<8x512xf32> to vector<8x128xf32>
    %293 = math.tanh %292 : vector<8x128xf32>
    %294 = vector.extract_strided_slice %275 {offsets = [0, 384], sizes = [8, 128], strides = [1, 1]} : vector<8x512xf32> to vector<8x128xf32>
    %cst_120 = arith.constant 5.000000e-01 : f32
    %295 = vector.broadcast %cst_120 : f32 to vector<8x128xf32>
    %296 = arith.mulf %295, %294 : vector<8x128xf32>
    %297 = math.tanh %296 : vector<8x128xf32>
    %cst_121 = arith.constant 5.000000e-01 : f32
    %298 = vector.broadcast %cst_121 : f32 to vector<8x128xf32>
    %299 = arith.mulf %298, %297 : vector<8x128xf32>
    %cst_122 = arith.constant 5.000000e-01 : f32
    %300 = vector.broadcast %cst_122 : f32 to vector<8x128xf32>
    %301 = arith.addf %299, %300 : vector<8x128xf32>
    %302 = arith.mulf %291, %267 : vector<8x128xf32>
    %303 = arith.mulf %283, %293 : vector<8x128xf32>
    %304 = arith.addf %302, %303 : vector<8x128xf32>
    %305 = math.tanh %304 : vector<8x128xf32>
    %306 = arith.mulf %301, %305 : vector<8x128xf32>
    %c8_i32 = arith.constant 8 : i32
    %307 = arith.index_cast %c8_i32 : i32 to index
    %c0_123 = arith.constant 0 : index
    %c0_124 = arith.constant 0 : index
    %308 = vector.load %arg10[%307, %c0_123, %c0_124] : memref<36x8x512xf32, #tpu.memory_space<vmem>>, vector<1x8x512xf32>
    %309 = vector.shape_cast %308 : vector<1x8x512xf32> to vector<8x512xf32>
    %c0_125 = arith.constant 0 : index
    %c0_126 = arith.constant 0 : index
    %310 = vector.load %arg3[%c0_125, %c0_126] : memref<128x512xf32, #tpu.memory_space<vmem>>, vector<128x512xf32>
    %cst_127 = arith.constant dense<0.000000e+00> : vector<8x512xf32>
    %311 = tpu.matmul %306, %310, %cst_127 {dimension_numbers = #tpu.dot_dimension_numbers<[1], [0], [0], [1], [0, 0, 1, 1], [], []>} : vector<8x128xf32>, vector<128x512xf32>, vector<8x512xf32> -> vector<8x512xf32>
    %312 = arith.addf %309, %311 : vector<8x512xf32>
    %313 = vector.extract_strided_slice %312 {offsets = [0, 0], sizes = [8, 128], strides = [1, 1]} : vector<8x512xf32> to vector<8x128xf32>
    %cst_128 = arith.constant 5.000000e-01 : f32
    %314 = vector.broadcast %cst_128 : f32 to vector<8x128xf32>
    %315 = arith.mulf %314, %313 : vector<8x128xf32>
    %316 = math.tanh %315 : vector<8x128xf32>
    %cst_129 = arith.constant 5.000000e-01 : f32
    %317 = vector.broadcast %cst_129 : f32 to vector<8x128xf32>
    %318 = arith.mulf %317, %316 : vector<8x128xf32>
    %cst_130 = arith.constant 5.000000e-01 : f32
    %319 = vector.broadcast %cst_130 : f32 to vector<8x128xf32>
    %320 = arith.addf %318, %319 : vector<8x128xf32>
    %321 = vector.extract_strided_slice %312 {offsets = [0, 128], sizes = [8, 128], strides = [1, 1]} : vector<8x512xf32> to vector<8x128xf32>
    %cst_131 = arith.constant 5.000000e-01 : f32
    %322 = vector.broadcast %cst_131 : f32 to vector<8x128xf32>
    %323 = arith.mulf %322, %321 : vector<8x128xf32>
    %324 = math.tanh %323 : vector<8x128xf32>
    %cst_132 = arith.constant 5.000000e-01 : f32
    %325 = vector.broadcast %cst_132 : f32 to vector<8x128xf32>
    %326 = arith.mulf %325, %324 : vector<8x128xf32>
    %cst_133 = arith.constant 5.000000e-01 : f32
    %327 = vector.broadcast %cst_133 : f32 to vector<8x128xf32>
    %328 = arith.addf %326, %327 : vector<8x128xf32>
    %329 = vector.extract_strided_slice %312 {offsets = [0, 256], sizes = [8, 128], strides = [1, 1]} : vector<8x512xf32> to vector<8x128xf32>
    %330 = math.tanh %329 : vector<8x128xf32>
    %331 = vector.extract_strided_slice %312 {offsets = [0, 384], sizes = [8, 128], strides = [1, 1]} : vector<8x512xf32> to vector<8x128xf32>
    %cst_134 = arith.constant 5.000000e-01 : f32
    %332 = vector.broadcast %cst_134 : f32 to vector<8x128xf32>
    %333 = arith.mulf %332, %331 : vector<8x128xf32>
    %334 = math.tanh %333 : vector<8x128xf32>
    %cst_135 = arith.constant 5.000000e-01 : f32
    %335 = vector.broadcast %cst_135 : f32 to vector<8x128xf32>
    %336 = arith.mulf %335, %334 : vector<8x128xf32>
    %cst_136 = arith.constant 5.000000e-01 : f32
    %337 = vector.broadcast %cst_136 : f32 to vector<8x128xf32>
    %338 = arith.addf %336, %337 : vector<8x128xf32>
    %339 = arith.mulf %328, %304 : vector<8x128xf32>
    %340 = arith.mulf %320, %330 : vector<8x128xf32>
    %341 = arith.addf %339, %340 : vector<8x128xf32>
    %342 = math.tanh %341 : vector<8x128xf32>
    %343 = arith.mulf %338, %342 : vector<8x128xf32>
    %c9_i32 = arith.constant 9 : i32
    %344 = arith.index_cast %c9_i32 : i32 to index
    %c0_137 = arith.constant 0 : index
    %c0_138 = arith.constant 0 : index
    %345 = vector.load %arg10[%344, %c0_137, %c0_138] : memref<36x8x512xf32, #tpu.memory_space<vmem>>, vector<1x8x512xf32>
    %346 = vector.shape_cast %345 : vector<1x8x512xf32> to vector<8x512xf32>
    %c0_139 = arith.constant 0 : index
    %c0_140 = arith.constant 0 : index
    %347 = vector.load %arg3[%c0_139, %c0_140] : memref<128x512xf32, #tpu.memory_space<vmem>>, vector<128x512xf32>
    %cst_141 = arith.constant dense<0.000000e+00> : vector<8x512xf32>
    %348 = tpu.matmul %343, %347, %cst_141 {dimension_numbers = #tpu.dot_dimension_numbers<[1], [0], [0], [1], [0, 0, 1, 1], [], []>} : vector<8x128xf32>, vector<128x512xf32>, vector<8x512xf32> -> vector<8x512xf32>
    %349 = arith.addf %346, %348 : vector<8x512xf32>
    %350 = vector.extract_strided_slice %349 {offsets = [0, 0], sizes = [8, 128], strides = [1, 1]} : vector<8x512xf32> to vector<8x128xf32>
    %cst_142 = arith.constant 5.000000e-01 : f32
    %351 = vector.broadcast %cst_142 : f32 to vector<8x128xf32>
    %352 = arith.mulf %351, %350 : vector<8x128xf32>
    %353 = math.tanh %352 : vector<8x128xf32>
    %cst_143 = arith.constant 5.000000e-01 : f32
    %354 = vector.broadcast %cst_143 : f32 to vector<8x128xf32>
    %355 = arith.mulf %354, %353 : vector<8x128xf32>
    %cst_144 = arith.constant 5.000000e-01 : f32
    %356 = vector.broadcast %cst_144 : f32 to vector<8x128xf32>
    %357 = arith.addf %355, %356 : vector<8x128xf32>
    %358 = vector.extract_strided_slice %349 {offsets = [0, 128], sizes = [8, 128], strides = [1, 1]} : vector<8x512xf32> to vector<8x128xf32>
    %cst_145 = arith.constant 5.000000e-01 : f32
    %359 = vector.broadcast %cst_145 : f32 to vector<8x128xf32>
    %360 = arith.mulf %359, %358 : vector<8x128xf32>
    %361 = math.tanh %360 : vector<8x128xf32>
    %cst_146 = arith.constant 5.000000e-01 : f32
    %362 = vector.broadcast %cst_146 : f32 to vector<8x128xf32>
    %363 = arith.mulf %362, %361 : vector<8x128xf32>
    %cst_147 = arith.constant 5.000000e-01 : f32
    %364 = vector.broadcast %cst_147 : f32 to vector<8x128xf32>
    %365 = arith.addf %363, %364 : vector<8x128xf32>
    %366 = vector.extract_strided_slice %349 {offsets = [0, 256], sizes = [8, 128], strides = [1, 1]} : vector<8x512xf32> to vector<8x128xf32>
    %367 = math.tanh %366 : vector<8x128xf32>
    %368 = vector.extract_strided_slice %349 {offsets = [0, 384], sizes = [8, 128], strides = [1, 1]} : vector<8x512xf32> to vector<8x128xf32>
    %cst_148 = arith.constant 5.000000e-01 : f32
    %369 = vector.broadcast %cst_148 : f32 to vector<8x128xf32>
    %370 = arith.mulf %369, %368 : vector<8x128xf32>
    %371 = math.tanh %370 : vector<8x128xf32>
    %cst_149 = arith.constant 5.000000e-01 : f32
    %372 = vector.broadcast %cst_149 : f32 to vector<8x128xf32>
    %373 = arith.mulf %372, %371 : vector<8x128xf32>
    %cst_150 = arith.constant 5.000000e-01 : f32
    %374 = vector.broadcast %cst_150 : f32 to vector<8x128xf32>
    %375 = arith.addf %373, %374 : vector<8x128xf32>
    %376 = arith.mulf %365, %341 : vector<8x128xf32>
    %377 = arith.mulf %357, %367 : vector<8x128xf32>
    %378 = arith.addf %376, %377 : vector<8x128xf32>
    %379 = math.tanh %378 : vector<8x128xf32>
    %380 = arith.mulf %375, %379 : vector<8x128xf32>
    %c10_i32 = arith.constant 10 : i32
    %381 = arith.index_cast %c10_i32 : i32 to index
    %c0_151 = arith.constant 0 : index
    %c0_152 = arith.constant 0 : index
    %382 = vector.load %arg10[%381, %c0_151, %c0_152] : memref<36x8x512xf32, #tpu.memory_space<vmem>>, vector<1x8x512xf32>
    %383 = vector.shape_cast %382 : vector<1x8x512xf32> to vector<8x512xf32>
    %c0_153 = arith.constant 0 : index
    %c0_154 = arith.constant 0 : index
    %384 = vector.load %arg3[%c0_153, %c0_154] : memref<128x512xf32, #tpu.memory_space<vmem>>, vector<128x512xf32>
    %cst_155 = arith.constant dense<0.000000e+00> : vector<8x512xf32>
    %385 = tpu.matmul %380, %384, %cst_155 {dimension_numbers = #tpu.dot_dimension_numbers<[1], [0], [0], [1], [0, 0, 1, 1], [], []>} : vector<8x128xf32>, vector<128x512xf32>, vector<8x512xf32> -> vector<8x512xf32>
    %386 = arith.addf %383, %385 : vector<8x512xf32>
    %387 = vector.extract_strided_slice %386 {offsets = [0, 0], sizes = [8, 128], strides = [1, 1]} : vector<8x512xf32> to vector<8x128xf32>
    %cst_156 = arith.constant 5.000000e-01 : f32
    %388 = vector.broadcast %cst_156 : f32 to vector<8x128xf32>
    %389 = arith.mulf %388, %387 : vector<8x128xf32>
    %390 = math.tanh %389 : vector<8x128xf32>
    %cst_157 = arith.constant 5.000000e-01 : f32
    %391 = vector.broadcast %cst_157 : f32 to vector<8x128xf32>
    %392 = arith.mulf %391, %390 : vector<8x128xf32>
    %cst_158 = arith.constant 5.000000e-01 : f32
    %393 = vector.broadcast %cst_158 : f32 to vector<8x128xf32>
    %394 = arith.addf %392, %393 : vector<8x128xf32>
    %395 = vector.extract_strided_slice %386 {offsets = [0, 128], sizes = [8, 128], strides = [1, 1]} : vector<8x512xf32> to vector<8x128xf32>
    %cst_159 = arith.constant 5.000000e-01 : f32
    %396 = vector.broadcast %cst_159 : f32 to vector<8x128xf32>
    %397 = arith.mulf %396, %395 : vector<8x128xf32>
    %398 = math.tanh %397 : vector<8x128xf32>
    %cst_160 = arith.constant 5.000000e-01 : f32
    %399 = vector.broadcast %cst_160 : f32 to vector<8x128xf32>
    %400 = arith.mulf %399, %398 : vector<8x128xf32>
    %cst_161 = arith.constant 5.000000e-01 : f32
    %401 = vector.broadcast %cst_161 : f32 to vector<8x128xf32>
    %402 = arith.addf %400, %401 : vector<8x128xf32>
    %403 = vector.extract_strided_slice %386 {offsets = [0, 256], sizes = [8, 128], strides = [1, 1]} : vector<8x512xf32> to vector<8x128xf32>
    %404 = math.tanh %403 : vector<8x128xf32>
    %405 = vector.extract_strided_slice %386 {offsets = [0, 384], sizes = [8, 128], strides = [1, 1]} : vector<8x512xf32> to vector<8x128xf32>
    %cst_162 = arith.constant 5.000000e-01 : f32
    %406 = vector.broadcast %cst_162 : f32 to vector<8x128xf32>
    %407 = arith.mulf %406, %405 : vector<8x128xf32>
    %408 = math.tanh %407 : vector<8x128xf32>
    %cst_163 = arith.constant 5.000000e-01 : f32
    %409 = vector.broadcast %cst_163 : f32 to vector<8x128xf32>
    %410 = arith.mulf %409, %408 : vector<8x128xf32>
    %cst_164 = arith.constant 5.000000e-01 : f32
    %411 = vector.broadcast %cst_164 : f32 to vector<8x128xf32>
    %412 = arith.addf %410, %411 : vector<8x128xf32>
    %413 = arith.mulf %402, %378 : vector<8x128xf32>
    %414 = arith.mulf %394, %404 : vector<8x128xf32>
    %415 = arith.addf %413, %414 : vector<8x128xf32>
    %416 = math.tanh %415 : vector<8x128xf32>
    %417 = arith.mulf %412, %416 : vector<8x128xf32>
    %c11_i32 = arith.constant 11 : i32
    %418 = arith.index_cast %c11_i32 : i32 to index
    %c0_165 = arith.constant 0 : index
    %c0_166 = arith.constant 0 : index
    %419 = vector.load %arg10[%418, %c0_165, %c0_166] : memref<36x8x512xf32, #tpu.memory_space<vmem>>, vector<1x8x512xf32>
    %420 = vector.shape_cast %419 : vector<1x8x512xf32> to vector<8x512xf32>
    %c0_167 = arith.constant 0 : index
    %c0_168 = arith.constant 0 : index
    %421 = vector.load %arg3[%c0_167, %c0_168] : memref<128x512xf32, #tpu.memory_space<vmem>>, vector<128x512xf32>
    %cst_169 = arith.constant dense<0.000000e+00> : vector<8x512xf32>
    %422 = tpu.matmul %417, %421, %cst_169 {dimension_numbers = #tpu.dot_dimension_numbers<[1], [0], [0], [1], [0, 0, 1, 1], [], []>} : vector<8x128xf32>, vector<128x512xf32>, vector<8x512xf32> -> vector<8x512xf32>
    %423 = arith.addf %420, %422 : vector<8x512xf32>
    %424 = vector.extract_strided_slice %423 {offsets = [0, 0], sizes = [8, 128], strides = [1, 1]} : vector<8x512xf32> to vector<8x128xf32>
    %cst_170 = arith.constant 5.000000e-01 : f32
    %425 = vector.broadcast %cst_170 : f32 to vector<8x128xf32>
    %426 = arith.mulf %425, %424 : vector<8x128xf32>
    %427 = math.tanh %426 : vector<8x128xf32>
    %cst_171 = arith.constant 5.000000e-01 : f32
    %428 = vector.broadcast %cst_171 : f32 to vector<8x128xf32>
    %429 = arith.mulf %428, %427 : vector<8x128xf32>
    %cst_172 = arith.constant 5.000000e-01 : f32
    %430 = vector.broadcast %cst_172 : f32 to vector<8x128xf32>
    %431 = arith.addf %429, %430 : vector<8x128xf32>
    %432 = vector.extract_strided_slice %423 {offsets = [0, 128], sizes = [8, 128], strides = [1, 1]} : vector<8x512xf32> to vector<8x128xf32>
    %cst_173 = arith.constant 5.000000e-01 : f32
    %433 = vector.broadcast %cst_173 : f32 to vector<8x128xf32>
    %434 = arith.mulf %433, %432 : vector<8x128xf32>
    %435 = math.tanh %434 : vector<8x128xf32>
    %cst_174 = arith.constant 5.000000e-01 : f32
    %436 = vector.broadcast %cst_174 : f32 to vector<8x128xf32>
    %437 = arith.mulf %436, %435 : vector<8x128xf32>
    %cst_175 = arith.constant 5.000000e-01 : f32
    %438 = vector.broadcast %cst_175 : f32 to vector<8x128xf32>
    %439 = arith.addf %437, %438 : vector<8x128xf32>
    %440 = vector.extract_strided_slice %423 {offsets = [0, 256], sizes = [8, 128], strides = [1, 1]} : vector<8x512xf32> to vector<8x128xf32>
    %441 = math.tanh %440 : vector<8x128xf32>
    %442 = vector.extract_strided_slice %423 {offsets = [0, 384], sizes = [8, 128], strides = [1, 1]} : vector<8x512xf32> to vector<8x128xf32>
    %cst_176 = arith.constant 5.000000e-01 : f32
    %443 = vector.broadcast %cst_176 : f32 to vector<8x128xf32>
    %444 = arith.mulf %443, %442 : vector<8x128xf32>
    %445 = math.tanh %444 : vector<8x128xf32>
    %cst_177 = arith.constant 5.000000e-01 : f32
    %446 = vector.broadcast %cst_177 : f32 to vector<8x128xf32>
    %447 = arith.mulf %446, %445 : vector<8x128xf32>
    %cst_178 = arith.constant 5.000000e-01 : f32
    %448 = vector.broadcast %cst_178 : f32 to vector<8x128xf32>
    %449 = arith.addf %447, %448 : vector<8x128xf32>
    %450 = arith.mulf %439, %415 : vector<8x128xf32>
    %451 = arith.mulf %431, %441 : vector<8x128xf32>
    %452 = arith.addf %450, %451 : vector<8x128xf32>
    %453 = math.tanh %452 : vector<8x128xf32>
    %454 = arith.mulf %449, %453 : vector<8x128xf32>
    %c12_i32 = arith.constant 12 : i32
    %455 = arith.index_cast %c12_i32 : i32 to index
    %c0_179 = arith.constant 0 : index
    %c0_180 = arith.constant 0 : index
    %456 = vector.load %arg10[%455, %c0_179, %c0_180] : memref<36x8x512xf32, #tpu.memory_space<vmem>>, vector<1x8x512xf32>
    %457 = vector.shape_cast %456 : vector<1x8x512xf32> to vector<8x512xf32>
    %c0_181 = arith.constant 0 : index
    %c0_182 = arith.constant 0 : index
    %458 = vector.load %arg3[%c0_181, %c0_182] : memref<128x512xf32, #tpu.memory_space<vmem>>, vector<128x512xf32>
    %cst_183 = arith.constant dense<0.000000e+00> : vector<8x512xf32>
    %459 = tpu.matmul %454, %458, %cst_183 {dimension_numbers = #tpu.dot_dimension_numbers<[1], [0], [0], [1], [0, 0, 1, 1], [], []>} : vector<8x128xf32>, vector<128x512xf32>, vector<8x512xf32> -> vector<8x512xf32>
    %460 = arith.addf %457, %459 : vector<8x512xf32>
    %461 = vector.extract_strided_slice %460 {offsets = [0, 0], sizes = [8, 128], strides = [1, 1]} : vector<8x512xf32> to vector<8x128xf32>
    %cst_184 = arith.constant 5.000000e-01 : f32
    %462 = vector.broadcast %cst_184 : f32 to vector<8x128xf32>
    %463 = arith.mulf %462, %461 : vector<8x128xf32>
    %464 = math.tanh %463 : vector<8x128xf32>
    %cst_185 = arith.constant 5.000000e-01 : f32
    %465 = vector.broadcast %cst_185 : f32 to vector<8x128xf32>
    %466 = arith.mulf %465, %464 : vector<8x128xf32>
    %cst_186 = arith.constant 5.000000e-01 : f32
    %467 = vector.broadcast %cst_186 : f32 to vector<8x128xf32>
    %468 = arith.addf %466, %467 : vector<8x128xf32>
    %469 = vector.extract_strided_slice %460 {offsets = [0, 128], sizes = [8, 128], strides = [1, 1]} : vector<8x512xf32> to vector<8x128xf32>
    %cst_187 = arith.constant 5.000000e-01 : f32
    %470 = vector.broadcast %cst_187 : f32 to vector<8x128xf32>
    %471 = arith.mulf %470, %469 : vector<8x128xf32>
    %472 = math.tanh %471 : vector<8x128xf32>
    %cst_188 = arith.constant 5.000000e-01 : f32
    %473 = vector.broadcast %cst_188 : f32 to vector<8x128xf32>
    %474 = arith.mulf %473, %472 : vector<8x128xf32>
    %cst_189 = arith.constant 5.000000e-01 : f32
    %475 = vector.broadcast %cst_189 : f32 to vector<8x128xf32>
    %476 = arith.addf %474, %475 : vector<8x128xf32>
    %477 = vector.extract_strided_slice %460 {offsets = [0, 256], sizes = [8, 128], strides = [1, 1]} : vector<8x512xf32> to vector<8x128xf32>
    %478 = math.tanh %477 : vector<8x128xf32>
    %479 = vector.extract_strided_slice %460 {offsets = [0, 384], sizes = [8, 128], strides = [1, 1]} : vector<8x512xf32> to vector<8x128xf32>
    %cst_190 = arith.constant 5.000000e-01 : f32
    %480 = vector.broadcast %cst_190 : f32 to vector<8x128xf32>
    %481 = arith.mulf %480, %479 : vector<8x128xf32>
    %482 = math.tanh %481 : vector<8x128xf32>
    %cst_191 = arith.constant 5.000000e-01 : f32
    %483 = vector.broadcast %cst_191 : f32 to vector<8x128xf32>
    %484 = arith.mulf %483, %482 : vector<8x128xf32>
    %cst_192 = arith.constant 5.000000e-01 : f32
    %485 = vector.broadcast %cst_192 : f32 to vector<8x128xf32>
    %486 = arith.addf %484, %485 : vector<8x128xf32>
    %487 = arith.mulf %476, %452 : vector<8x128xf32>
    %488 = arith.mulf %468, %478 : vector<8x128xf32>
    %489 = arith.addf %487, %488 : vector<8x128xf32>
    %490 = math.tanh %489 : vector<8x128xf32>
    %491 = arith.mulf %486, %490 : vector<8x128xf32>
    %c13_i32 = arith.constant 13 : i32
    %492 = arith.index_cast %c13_i32 : i32 to index
    %c0_193 = arith.constant 0 : index
    %c0_194 = arith.constant 0 : index
    %493 = vector.load %arg10[%492, %c0_193, %c0_194] : memref<36x8x512xf32, #tpu.memory_space<vmem>>, vector<1x8x512xf32>
    %494 = vector.shape_cast %493 : vector<1x8x512xf32> to vector<8x512xf32>
    %c0_195 = arith.constant 0 : index
    %c0_196 = arith.constant 0 : index
    %495 = vector.load %arg3[%c0_195, %c0_196] : memref<128x512xf32, #tpu.memory_space<vmem>>, vector<128x512xf32>
    %cst_197 = arith.constant dense<0.000000e+00> : vector<8x512xf32>
    %496 = tpu.matmul %491, %495, %cst_197 {dimension_numbers = #tpu.dot_dimension_numbers<[1], [0], [0], [1], [0, 0, 1, 1], [], []>} : vector<8x128xf32>, vector<128x512xf32>, vector<8x512xf32> -> vector<8x512xf32>
    %497 = arith.addf %494, %496 : vector<8x512xf32>
    %498 = vector.extract_strided_slice %497 {offsets = [0, 0], sizes = [8, 128], strides = [1, 1]} : vector<8x512xf32> to vector<8x128xf32>
    %cst_198 = arith.constant 5.000000e-01 : f32
    %499 = vector.broadcast %cst_198 : f32 to vector<8x128xf32>
    %500 = arith.mulf %499, %498 : vector<8x128xf32>
    %501 = math.tanh %500 : vector<8x128xf32>
    %cst_199 = arith.constant 5.000000e-01 : f32
    %502 = vector.broadcast %cst_199 : f32 to vector<8x128xf32>
    %503 = arith.mulf %502, %501 : vector<8x128xf32>
    %cst_200 = arith.constant 5.000000e-01 : f32
    %504 = vector.broadcast %cst_200 : f32 to vector<8x128xf32>
    %505 = arith.addf %503, %504 : vector<8x128xf32>
    %506 = vector.extract_strided_slice %497 {offsets = [0, 128], sizes = [8, 128], strides = [1, 1]} : vector<8x512xf32> to vector<8x128xf32>
    %cst_201 = arith.constant 5.000000e-01 : f32
    %507 = vector.broadcast %cst_201 : f32 to vector<8x128xf32>
    %508 = arith.mulf %507, %506 : vector<8x128xf32>
    %509 = math.tanh %508 : vector<8x128xf32>
    %cst_202 = arith.constant 5.000000e-01 : f32
    %510 = vector.broadcast %cst_202 : f32 to vector<8x128xf32>
    %511 = arith.mulf %510, %509 : vector<8x128xf32>
    %cst_203 = arith.constant 5.000000e-01 : f32
    %512 = vector.broadcast %cst_203 : f32 to vector<8x128xf32>
    %513 = arith.addf %511, %512 : vector<8x128xf32>
    %514 = vector.extract_strided_slice %497 {offsets = [0, 256], sizes = [8, 128], strides = [1, 1]} : vector<8x512xf32> to vector<8x128xf32>
    %515 = math.tanh %514 : vector<8x128xf32>
    %516 = vector.extract_strided_slice %497 {offsets = [0, 384], sizes = [8, 128], strides = [1, 1]} : vector<8x512xf32> to vector<8x128xf32>
    %cst_204 = arith.constant 5.000000e-01 : f32
    %517 = vector.broadcast %cst_204 : f32 to vector<8x128xf32>
    %518 = arith.mulf %517, %516 : vector<8x128xf32>
    %519 = math.tanh %518 : vector<8x128xf32>
    %cst_205 = arith.constant 5.000000e-01 : f32
    %520 = vector.broadcast %cst_205 : f32 to vector<8x128xf32>
    %521 = arith.mulf %520, %519 : vector<8x128xf32>
    %cst_206 = arith.constant 5.000000e-01 : f32
    %522 = vector.broadcast %cst_206 : f32 to vector<8x128xf32>
    %523 = arith.addf %521, %522 : vector<8x128xf32>
    %524 = arith.mulf %513, %489 : vector<8x128xf32>
    %525 = arith.mulf %505, %515 : vector<8x128xf32>
    %526 = arith.addf %524, %525 : vector<8x128xf32>
    %527 = math.tanh %526 : vector<8x128xf32>
    %528 = arith.mulf %523, %527 : vector<8x128xf32>
    %c14_i32 = arith.constant 14 : i32
    %529 = arith.index_cast %c14_i32 : i32 to index
    %c0_207 = arith.constant 0 : index
    %c0_208 = arith.constant 0 : index
    %530 = vector.load %arg10[%529, %c0_207, %c0_208] : memref<36x8x512xf32, #tpu.memory_space<vmem>>, vector<1x8x512xf32>
    %531 = vector.shape_cast %530 : vector<1x8x512xf32> to vector<8x512xf32>
    %c0_209 = arith.constant 0 : index
    %c0_210 = arith.constant 0 : index
    %532 = vector.load %arg3[%c0_209, %c0_210] : memref<128x512xf32, #tpu.memory_space<vmem>>, vector<128x512xf32>
    %cst_211 = arith.constant dense<0.000000e+00> : vector<8x512xf32>
    %533 = tpu.matmul %528, %532, %cst_211 {dimension_numbers = #tpu.dot_dimension_numbers<[1], [0], [0], [1], [0, 0, 1, 1], [], []>} : vector<8x128xf32>, vector<128x512xf32>, vector<8x512xf32> -> vector<8x512xf32>
    %534 = arith.addf %531, %533 : vector<8x512xf32>
    %535 = vector.extract_strided_slice %534 {offsets = [0, 0], sizes = [8, 128], strides = [1, 1]} : vector<8x512xf32> to vector<8x128xf32>
    %cst_212 = arith.constant 5.000000e-01 : f32
    %536 = vector.broadcast %cst_212 : f32 to vector<8x128xf32>
    %537 = arith.mulf %536, %535 : vector<8x128xf32>
    %538 = math.tanh %537 : vector<8x128xf32>
    %cst_213 = arith.constant 5.000000e-01 : f32
    %539 = vector.broadcast %cst_213 : f32 to vector<8x128xf32>
    %540 = arith.mulf %539, %538 : vector<8x128xf32>
    %cst_214 = arith.constant 5.000000e-01 : f32
    %541 = vector.broadcast %cst_214 : f32 to vector<8x128xf32>
    %542 = arith.addf %540, %541 : vector<8x128xf32>
    %543 = vector.extract_strided_slice %534 {offsets = [0, 128], sizes = [8, 128], strides = [1, 1]} : vector<8x512xf32> to vector<8x128xf32>
    %cst_215 = arith.constant 5.000000e-01 : f32
    %544 = vector.broadcast %cst_215 : f32 to vector<8x128xf32>
    %545 = arith.mulf %544, %543 : vector<8x128xf32>
    %546 = math.tanh %545 : vector<8x128xf32>
    %cst_216 = arith.constant 5.000000e-01 : f32
    %547 = vector.broadcast %cst_216 : f32 to vector<8x128xf32>
    %548 = arith.mulf %547, %546 : vector<8x128xf32>
    %cst_217 = arith.constant 5.000000e-01 : f32
    %549 = vector.broadcast %cst_217 : f32 to vector<8x128xf32>
    %550 = arith.addf %548, %549 : vector<8x128xf32>
    %551 = vector.extract_strided_slice %534 {offsets = [0, 256], sizes = [8, 128], strides = [1, 1]} : vector<8x512xf32> to vector<8x128xf32>
    %552 = math.tanh %551 : vector<8x128xf32>
    %553 = vector.extract_strided_slice %534 {offsets = [0, 384], sizes = [8, 128], strides = [1, 1]} : vector<8x512xf32> to vector<8x128xf32>
    %cst_218 = arith.constant 5.000000e-01 : f32
    %554 = vector.broadcast %cst_218 : f32 to vector<8x128xf32>
    %555 = arith.mulf %554, %553 : vector<8x128xf32>
    %556 = math.tanh %555 : vector<8x128xf32>
    %cst_219 = arith.constant 5.000000e-01 : f32
    %557 = vector.broadcast %cst_219 : f32 to vector<8x128xf32>
    %558 = arith.mulf %557, %556 : vector<8x128xf32>
    %cst_220 = arith.constant 5.000000e-01 : f32
    %559 = vector.broadcast %cst_220 : f32 to vector<8x128xf32>
    %560 = arith.addf %558, %559 : vector<8x128xf32>
    %561 = arith.mulf %550, %526 : vector<8x128xf32>
    %562 = arith.mulf %542, %552 : vector<8x128xf32>
    %563 = arith.addf %561, %562 : vector<8x128xf32>
    %564 = math.tanh %563 : vector<8x128xf32>
    %565 = arith.mulf %560, %564 : vector<8x128xf32>
    %c15_i32 = arith.constant 15 : i32
    %566 = arith.index_cast %c15_i32 : i32 to index
    %c0_221 = arith.constant 0 : index
    %c0_222 = arith.constant 0 : index
    %567 = vector.load %arg10[%566, %c0_221, %c0_222] : memref<36x8x512xf32, #tpu.memory_space<vmem>>, vector<1x8x512xf32>
    %568 = vector.shape_cast %567 : vector<1x8x512xf32> to vector<8x512xf32>
    %c0_223 = arith.constant 0 : index
    %c0_224 = arith.constant 0 : index
    %569 = vector.load %arg3[%c0_223, %c0_224] : memref<128x512xf32, #tpu.memory_space<vmem>>, vector<128x512xf32>
    %cst_225 = arith.constant dense<0.000000e+00> : vector<8x512xf32>
    %570 = tpu.matmul %565, %569, %cst_225 {dimension_numbers = #tpu.dot_dimension_numbers<[1], [0], [0], [1], [0, 0, 1, 1], [], []>} : vector<8x128xf32>, vector<128x512xf32>, vector<8x512xf32> -> vector<8x512xf32>
    %571 = arith.addf %568, %570 : vector<8x512xf32>
    %572 = vector.extract_strided_slice %571 {offsets = [0, 0], sizes = [8, 128], strides = [1, 1]} : vector<8x512xf32> to vector<8x128xf32>
    %cst_226 = arith.constant 5.000000e-01 : f32
    %573 = vector.broadcast %cst_226 : f32 to vector<8x128xf32>
    %574 = arith.mulf %573, %572 : vector<8x128xf32>
    %575 = math.tanh %574 : vector<8x128xf32>
    %cst_227 = arith.constant 5.000000e-01 : f32
    %576 = vector.broadcast %cst_227 : f32 to vector<8x128xf32>
    %577 = arith.mulf %576, %575 : vector<8x128xf32>
    %cst_228 = arith.constant 5.000000e-01 : f32
    %578 = vector.broadcast %cst_228 : f32 to vector<8x128xf32>
    %579 = arith.addf %577, %578 : vector<8x128xf32>
    %580 = vector.extract_strided_slice %571 {offsets = [0, 128], sizes = [8, 128], strides = [1, 1]} : vector<8x512xf32> to vector<8x128xf32>
    %cst_229 = arith.constant 5.000000e-01 : f32
    %581 = vector.broadcast %cst_229 : f32 to vector<8x128xf32>
    %582 = arith.mulf %581, %580 : vector<8x128xf32>
    %583 = math.tanh %582 : vector<8x128xf32>
    %cst_230 = arith.constant 5.000000e-01 : f32
    %584 = vector.broadcast %cst_230 : f32 to vector<8x128xf32>
    %585 = arith.mulf %584, %583 : vector<8x128xf32>
    %cst_231 = arith.constant 5.000000e-01 : f32
    %586 = vector.broadcast %cst_231 : f32 to vector<8x128xf32>
    %587 = arith.addf %585, %586 : vector<8x128xf32>
    %588 = vector.extract_strided_slice %571 {offsets = [0, 256], sizes = [8, 128], strides = [1, 1]} : vector<8x512xf32> to vector<8x128xf32>
    %589 = math.tanh %588 : vector<8x128xf32>
    %590 = vector.extract_strided_slice %571 {offsets = [0, 384], sizes = [8, 128], strides = [1, 1]} : vector<8x512xf32> to vector<8x128xf32>
    %cst_232 = arith.constant 5.000000e-01 : f32
    %591 = vector.broadcast %cst_232 : f32 to vector<8x128xf32>
    %592 = arith.mulf %591, %590 : vector<8x128xf32>
    %593 = math.tanh %592 : vector<8x128xf32>
    %cst_233 = arith.constant 5.000000e-01 : f32
    %594 = vector.broadcast %cst_233 : f32 to vector<8x128xf32>
    %595 = arith.mulf %594, %593 : vector<8x128xf32>
    %cst_234 = arith.constant 5.000000e-01 : f32
    %596 = vector.broadcast %cst_234 : f32 to vector<8x128xf32>
    %597 = arith.addf %595, %596 : vector<8x128xf32>
    %598 = arith.mulf %587, %563 : vector<8x128xf32>
    %599 = arith.mulf %579, %589 : vector<8x128xf32>
    %600 = arith.addf %598, %599 : vector<8x128xf32>
    %601 = math.tanh %600 : vector<8x128xf32>
    %602 = arith.mulf %597, %601 : vector<8x128xf32>
    %c16_i32 = arith.constant 16 : i32
    %603 = arith.index_cast %c16_i32 : i32 to index
    %c0_235 = arith.constant 0 : index
    %c0_236 = arith.constant 0 : index
    %604 = vector.load %arg10[%603, %c0_235, %c0_236] : memref<36x8x512xf32, #tpu.memory_space<vmem>>, vector<1x8x512xf32>
    %605 = vector.shape_cast %604 : vector<1x8x512xf32> to vector<8x512xf32>
    %c0_237 = arith.constant 0 : index
    %c0_238 = arith.constant 0 : index
    %606 = vector.load %arg3[%c0_237, %c0_238] : memref<128x512xf32, #tpu.memory_space<vmem>>, vector<128x512xf32>
    %cst_239 = arith.constant dense<0.000000e+00> : vector<8x512xf32>
    %607 = tpu.matmul %602, %606, %cst_239 {dimension_numbers = #tpu.dot_dimension_numbers<[1], [0], [0], [1], [0, 0, 1, 1], [], []>} : vector<8x128xf32>, vector<128x512xf32>, vector<8x512xf32> -> vector<8x512xf32>
    %608 = arith.addf %605, %607 : vector<8x512xf32>
    %609 = vector.extract_strided_slice %608 {offsets = [0, 0], sizes = [8, 128], strides = [1, 1]} : vector<8x512xf32> to vector<8x128xf32>
    %cst_240 = arith.constant 5.000000e-01 : f32
    %610 = vector.broadcast %cst_240 : f32 to vector<8x128xf32>
    %611 = arith.mulf %610, %609 : vector<8x128xf32>
    %612 = math.tanh %611 : vector<8x128xf32>
    %cst_241 = arith.constant 5.000000e-01 : f32
    %613 = vector.broadcast %cst_241 : f32 to vector<8x128xf32>
    %614 = arith.mulf %613, %612 : vector<8x128xf32>
    %cst_242 = arith.constant 5.000000e-01 : f32
    %615 = vector.broadcast %cst_242 : f32 to vector<8x128xf32>
    %616 = arith.addf %614, %615 : vector<8x128xf32>
    %617 = vector.extract_strided_slice %608 {offsets = [0, 128], sizes = [8, 128], strides = [1, 1]} : vector<8x512xf32> to vector<8x128xf32>
    %cst_243 = arith.constant 5.000000e-01 : f32
    %618 = vector.broadcast %cst_243 : f32 to vector<8x128xf32>
    %619 = arith.mulf %618, %617 : vector<8x128xf32>
    %620 = math.tanh %619 : vector<8x128xf32>
    %cst_244 = arith.constant 5.000000e-01 : f32
    %621 = vector.broadcast %cst_244 : f32 to vector<8x128xf32>
    %622 = arith.mulf %621, %620 : vector<8x128xf32>
    %cst_245 = arith.constant 5.000000e-01 : f32
    %623 = vector.broadcast %cst_245 : f32 to vector<8x128xf32>
    %624 = arith.addf %622, %623 : vector<8x128xf32>
    %625 = vector.extract_strided_slice %608 {offsets = [0, 256], sizes = [8, 128], strides = [1, 1]} : vector<8x512xf32> to vector<8x128xf32>
    %626 = math.tanh %625 : vector<8x128xf32>
    %627 = vector.extract_strided_slice %608 {offsets = [0, 384], sizes = [8, 128], strides = [1, 1]} : vector<8x512xf32> to vector<8x128xf32>
    %cst_246 = arith.constant 5.000000e-01 : f32
    %628 = vector.broadcast %cst_246 : f32 to vector<8x128xf32>
    %629 = arith.mulf %628, %627 : vector<8x128xf32>
    %630 = math.tanh %629 : vector<8x128xf32>
    %cst_247 = arith.constant 5.000000e-01 : f32
    %631 = vector.broadcast %cst_247 : f32 to vector<8x128xf32>
    %632 = arith.mulf %631, %630 : vector<8x128xf32>
    %cst_248 = arith.constant 5.000000e-01 : f32
    %633 = vector.broadcast %cst_248 : f32 to vector<8x128xf32>
    %634 = arith.addf %632, %633 : vector<8x128xf32>
    %635 = arith.mulf %624, %600 : vector<8x128xf32>
    %636 = arith.mulf %616, %626 : vector<8x128xf32>
    %637 = arith.addf %635, %636 : vector<8x128xf32>
    %638 = math.tanh %637 : vector<8x128xf32>
    %639 = arith.mulf %634, %638 : vector<8x128xf32>
    %c17_i32 = arith.constant 17 : i32
    %640 = arith.index_cast %c17_i32 : i32 to index
    %c0_249 = arith.constant 0 : index
    %c0_250 = arith.constant 0 : index
    %641 = vector.load %arg10[%640, %c0_249, %c0_250] : memref<36x8x512xf32, #tpu.memory_space<vmem>>, vector<1x8x512xf32>
    %642 = vector.shape_cast %641 : vector<1x8x512xf32> to vector<8x512xf32>
    %c0_251 = arith.constant 0 : index
    %c0_252 = arith.constant 0 : index
    %643 = vector.load %arg3[%c0_251, %c0_252] : memref<128x512xf32, #tpu.memory_space<vmem>>, vector<128x512xf32>
    %cst_253 = arith.constant dense<0.000000e+00> : vector<8x512xf32>
    %644 = tpu.matmul %639, %643, %cst_253 {dimension_numbers = #tpu.dot_dimension_numbers<[1], [0], [0], [1], [0, 0, 1, 1], [], []>} : vector<8x128xf32>, vector<128x512xf32>, vector<8x512xf32> -> vector<8x512xf32>
    %645 = arith.addf %642, %644 : vector<8x512xf32>
    %646 = vector.extract_strided_slice %645 {offsets = [0, 0], sizes = [8, 128], strides = [1, 1]} : vector<8x512xf32> to vector<8x128xf32>
    %cst_254 = arith.constant 5.000000e-01 : f32
    %647 = vector.broadcast %cst_254 : f32 to vector<8x128xf32>
    %648 = arith.mulf %647, %646 : vector<8x128xf32>
    %649 = math.tanh %648 : vector<8x128xf32>
    %cst_255 = arith.constant 5.000000e-01 : f32
    %650 = vector.broadcast %cst_255 : f32 to vector<8x128xf32>
    %651 = arith.mulf %650, %649 : vector<8x128xf32>
    %cst_256 = arith.constant 5.000000e-01 : f32
    %652 = vector.broadcast %cst_256 : f32 to vector<8x128xf32>
    %653 = arith.addf %651, %652 : vector<8x128xf32>
    %654 = vector.extract_strided_slice %645 {offsets = [0, 128], sizes = [8, 128], strides = [1, 1]} : vector<8x512xf32> to vector<8x128xf32>
    %cst_257 = arith.constant 5.000000e-01 : f32
    %655 = vector.broadcast %cst_257 : f32 to vector<8x128xf32>
    %656 = arith.mulf %655, %654 : vector<8x128xf32>
    %657 = math.tanh %656 : vector<8x128xf32>
    %cst_258 = arith.constant 5.000000e-01 : f32
    %658 = vector.broadcast %cst_258 : f32 to vector<8x128xf32>
    %659 = arith.mulf %658, %657 : vector<8x128xf32>
    %cst_259 = arith.constant 5.000000e-01 : f32
    %660 = vector.broadcast %cst_259 : f32 to vector<8x128xf32>
    %661 = arith.addf %659, %660 : vector<8x128xf32>
    %662 = vector.extract_strided_slice %645 {offsets = [0, 256], sizes = [8, 128], strides = [1, 1]} : vector<8x512xf32> to vector<8x128xf32>
    %663 = math.tanh %662 : vector<8x128xf32>
    %664 = vector.extract_strided_slice %645 {offsets = [0, 384], sizes = [8, 128], strides = [1, 1]} : vector<8x512xf32> to vector<8x128xf32>
    %cst_260 = arith.constant 5.000000e-01 : f32
    %665 = vector.broadcast %cst_260 : f32 to vector<8x128xf32>
    %666 = arith.mulf %665, %664 : vector<8x128xf32>
    %667 = math.tanh %666 : vector<8x128xf32>
    %cst_261 = arith.constant 5.000000e-01 : f32
    %668 = vector.broadcast %cst_261 : f32 to vector<8x128xf32>
    %669 = arith.mulf %668, %667 : vector<8x128xf32>
    %cst_262 = arith.constant 5.000000e-01 : f32
    %670 = vector.broadcast %cst_262 : f32 to vector<8x128xf32>
    %671 = arith.addf %669, %670 : vector<8x128xf32>
    %672 = arith.mulf %661, %637 : vector<8x128xf32>
    %673 = arith.mulf %653, %663 : vector<8x128xf32>
    %674 = arith.addf %672, %673 : vector<8x128xf32>
    %675 = math.tanh %674 : vector<8x128xf32>
    %676 = arith.mulf %671, %675 : vector<8x128xf32>
    %c18_i32 = arith.constant 18 : i32
    %677 = arith.index_cast %c18_i32 : i32 to index
    %c0_263 = arith.constant 0 : index
    %c0_264 = arith.constant 0 : index
    %678 = vector.load %arg10[%677, %c0_263, %c0_264] : memref<36x8x512xf32, #tpu.memory_space<vmem>>, vector<1x8x512xf32>
    %679 = vector.shape_cast %678 : vector<1x8x512xf32> to vector<8x512xf32>
    %c0_265 = arith.constant 0 : index
    %c0_266 = arith.constant 0 : index
    %680 = vector.load %arg3[%c0_265, %c0_266] : memref<128x512xf32, #tpu.memory_space<vmem>>, vector<128x512xf32>
    %cst_267 = arith.constant dense<0.000000e+00> : vector<8x512xf32>
    %681 = tpu.matmul %676, %680, %cst_267 {dimension_numbers = #tpu.dot_dimension_numbers<[1], [0], [0], [1], [0, 0, 1, 1], [], []>} : vector<8x128xf32>, vector<128x512xf32>, vector<8x512xf32> -> vector<8x512xf32>
    %682 = arith.addf %679, %681 : vector<8x512xf32>
    %683 = vector.extract_strided_slice %682 {offsets = [0, 0], sizes = [8, 128], strides = [1, 1]} : vector<8x512xf32> to vector<8x128xf32>
    %cst_268 = arith.constant 5.000000e-01 : f32
    %684 = vector.broadcast %cst_268 : f32 to vector<8x128xf32>
    %685 = arith.mulf %684, %683 : vector<8x128xf32>
    %686 = math.tanh %685 : vector<8x128xf32>
    %cst_269 = arith.constant 5.000000e-01 : f32
    %687 = vector.broadcast %cst_269 : f32 to vector<8x128xf32>
    %688 = arith.mulf %687, %686 : vector<8x128xf32>
    %cst_270 = arith.constant 5.000000e-01 : f32
    %689 = vector.broadcast %cst_270 : f32 to vector<8x128xf32>
    %690 = arith.addf %688, %689 : vector<8x128xf32>
    %691 = vector.extract_strided_slice %682 {offsets = [0, 128], sizes = [8, 128], strides = [1, 1]} : vector<8x512xf32> to vector<8x128xf32>
    %cst_271 = arith.constant 5.000000e-01 : f32
    %692 = vector.broadcast %cst_271 : f32 to vector<8x128xf32>
    %693 = arith.mulf %692, %691 : vector<8x128xf32>
    %694 = math.tanh %693 : vector<8x128xf32>
    %cst_272 = arith.constant 5.000000e-01 : f32
    %695 = vector.broadcast %cst_272 : f32 to vector<8x128xf32>
    %696 = arith.mulf %695, %694 : vector<8x128xf32>
    %cst_273 = arith.constant 5.000000e-01 : f32
    %697 = vector.broadcast %cst_273 : f32 to vector<8x128xf32>
    %698 = arith.addf %696, %697 : vector<8x128xf32>
    %699 = vector.extract_strided_slice %682 {offsets = [0, 256], sizes = [8, 128], strides = [1, 1]} : vector<8x512xf32> to vector<8x128xf32>
    %700 = math.tanh %699 : vector<8x128xf32>
    %701 = vector.extract_strided_slice %682 {offsets = [0, 384], sizes = [8, 128], strides = [1, 1]} : vector<8x512xf32> to vector<8x128xf32>
    %cst_274 = arith.constant 5.000000e-01 : f32
    %702 = vector.broadcast %cst_274 : f32 to vector<8x128xf32>
    %703 = arith.mulf %702, %701 : vector<8x128xf32>
    %704 = math.tanh %703 : vector<8x128xf32>
    %cst_275 = arith.constant 5.000000e-01 : f32
    %705 = vector.broadcast %cst_275 : f32 to vector<8x128xf32>
    %706 = arith.mulf %705, %704 : vector<8x128xf32>
    %cst_276 = arith.constant 5.000000e-01 : f32
    %707 = vector.broadcast %cst_276 : f32 to vector<8x128xf32>
    %708 = arith.addf %706, %707 : vector<8x128xf32>
    %709 = arith.mulf %698, %674 : vector<8x128xf32>
    %710 = arith.mulf %690, %700 : vector<8x128xf32>
    %711 = arith.addf %709, %710 : vector<8x128xf32>
    %712 = math.tanh %711 : vector<8x128xf32>
    %713 = arith.mulf %708, %712 : vector<8x128xf32>
    %c19_i32 = arith.constant 19 : i32
    %714 = arith.index_cast %c19_i32 : i32 to index
    %c0_277 = arith.constant 0 : index
    %c0_278 = arith.constant 0 : index
    %715 = vector.load %arg10[%714, %c0_277, %c0_278] : memref<36x8x512xf32, #tpu.memory_space<vmem>>, vector<1x8x512xf32>
    %716 = vector.shape_cast %715 : vector<1x8x512xf32> to vector<8x512xf32>
    %c0_279 = arith.constant 0 : index
    %c0_280 = arith.constant 0 : index
    %717 = vector.load %arg3[%c0_279, %c0_280] : memref<128x512xf32, #tpu.memory_space<vmem>>, vector<128x512xf32>
    %cst_281 = arith.constant dense<0.000000e+00> : vector<8x512xf32>
    %718 = tpu.matmul %713, %717, %cst_281 {dimension_numbers = #tpu.dot_dimension_numbers<[1], [0], [0], [1], [0, 0, 1, 1], [], []>} : vector<8x128xf32>, vector<128x512xf32>, vector<8x512xf32> -> vector<8x512xf32>
    %719 = arith.addf %716, %718 : vector<8x512xf32>
    %720 = vector.extract_strided_slice %719 {offsets = [0, 0], sizes = [8, 128], strides = [1, 1]} : vector<8x512xf32> to vector<8x128xf32>
    %cst_282 = arith.constant 5.000000e-01 : f32
    %721 = vector.broadcast %cst_282 : f32 to vector<8x128xf32>
    %722 = arith.mulf %721, %720 : vector<8x128xf32>
    %723 = math.tanh %722 : vector<8x128xf32>
    %cst_283 = arith.constant 5.000000e-01 : f32
    %724 = vector.broadcast %cst_283 : f32 to vector<8x128xf32>
    %725 = arith.mulf %724, %723 : vector<8x128xf32>
    %cst_284 = arith.constant 5.000000e-01 : f32
    %726 = vector.broadcast %cst_284 : f32 to vector<8x128xf32>
    %727 = arith.addf %725, %726 : vector<8x128xf32>
    %728 = vector.extract_strided_slice %719 {offsets = [0, 128], sizes = [8, 128], strides = [1, 1]} : vector<8x512xf32> to vector<8x128xf32>
    %cst_285 = arith.constant 5.000000e-01 : f32
    %729 = vector.broadcast %cst_285 : f32 to vector<8x128xf32>
    %730 = arith.mulf %729, %728 : vector<8x128xf32>
    %731 = math.tanh %730 : vector<8x128xf32>
    %cst_286 = arith.constant 5.000000e-01 : f32
    %732 = vector.broadcast %cst_286 : f32 to vector<8x128xf32>
    %733 = arith.mulf %732, %731 : vector<8x128xf32>
    %cst_287 = arith.constant 5.000000e-01 : f32
    %734 = vector.broadcast %cst_287 : f32 to vector<8x128xf32>
    %735 = arith.addf %733, %734 : vector<8x128xf32>
    %736 = vector.extract_strided_slice %719 {offsets = [0, 256], sizes = [8, 128], strides = [1, 1]} : vector<8x512xf32> to vector<8x128xf32>
    %737 = math.tanh %736 : vector<8x128xf32>
    %738 = vector.extract_strided_slice %719 {offsets = [0, 384], sizes = [8, 128], strides = [1, 1]} : vector<8x512xf32> to vector<8x128xf32>
    %cst_288 = arith.constant 5.000000e-01 : f32
    %739 = vector.broadcast %cst_288 : f32 to vector<8x128xf32>
    %740 = arith.mulf %739, %738 : vector<8x128xf32>
    %741 = math.tanh %740 : vector<8x128xf32>
    %cst_289 = arith.constant 5.000000e-01 : f32
    %742 = vector.broadcast %cst_289 : f32 to vector<8x128xf32>
    %743 = arith.mulf %742, %741 : vector<8x128xf32>
    %cst_290 = arith.constant 5.000000e-01 : f32
    %744 = vector.broadcast %cst_290 : f32 to vector<8x128xf32>
    %745 = arith.addf %743, %744 : vector<8x128xf32>
    %746 = arith.mulf %735, %711 : vector<8x128xf32>
    %747 = arith.mulf %727, %737 : vector<8x128xf32>
    %748 = arith.addf %746, %747 : vector<8x128xf32>
    %749 = math.tanh %748 : vector<8x128xf32>
    %750 = arith.mulf %745, %749 : vector<8x128xf32>
    %c20_i32 = arith.constant 20 : i32
    %751 = arith.index_cast %c20_i32 : i32 to index
    %c0_291 = arith.constant 0 : index
    %c0_292 = arith.constant 0 : index
    %752 = vector.load %arg10[%751, %c0_291, %c0_292] : memref<36x8x512xf32, #tpu.memory_space<vmem>>, vector<1x8x512xf32>
    %753 = vector.shape_cast %752 : vector<1x8x512xf32> to vector<8x512xf32>
    %c0_293 = arith.constant 0 : index
    %c0_294 = arith.constant 0 : index
    %754 = vector.load %arg3[%c0_293, %c0_294] : memref<128x512xf32, #tpu.memory_space<vmem>>, vector<128x512xf32>
    %cst_295 = arith.constant dense<0.000000e+00> : vector<8x512xf32>
    %755 = tpu.matmul %750, %754, %cst_295 {dimension_numbers = #tpu.dot_dimension_numbers<[1], [0], [0], [1], [0, 0, 1, 1], [], []>} : vector<8x128xf32>, vector<128x512xf32>, vector<8x512xf32> -> vector<8x512xf32>
    %756 = arith.addf %753, %755 : vector<8x512xf32>
    %757 = vector.extract_strided_slice %756 {offsets = [0, 0], sizes = [8, 128], strides = [1, 1]} : vector<8x512xf32> to vector<8x128xf32>
    %cst_296 = arith.constant 5.000000e-01 : f32
    %758 = vector.broadcast %cst_296 : f32 to vector<8x128xf32>
    %759 = arith.mulf %758, %757 : vector<8x128xf32>
    %760 = math.tanh %759 : vector<8x128xf32>
    %cst_297 = arith.constant 5.000000e-01 : f32
    %761 = vector.broadcast %cst_297 : f32 to vector<8x128xf32>
    %762 = arith.mulf %761, %760 : vector<8x128xf32>
    %cst_298 = arith.constant 5.000000e-01 : f32
    %763 = vector.broadcast %cst_298 : f32 to vector<8x128xf32>
    %764 = arith.addf %762, %763 : vector<8x128xf32>
    %765 = vector.extract_strided_slice %756 {offsets = [0, 128], sizes = [8, 128], strides = [1, 1]} : vector<8x512xf32> to vector<8x128xf32>
    %cst_299 = arith.constant 5.000000e-01 : f32
    %766 = vector.broadcast %cst_299 : f32 to vector<8x128xf32>
    %767 = arith.mulf %766, %765 : vector<8x128xf32>
    %768 = math.tanh %767 : vector<8x128xf32>
    %cst_300 = arith.constant 5.000000e-01 : f32
    %769 = vector.broadcast %cst_300 : f32 to vector<8x128xf32>
    %770 = arith.mulf %769, %768 : vector<8x128xf32>
    %cst_301 = arith.constant 5.000000e-01 : f32
    %771 = vector.broadcast %cst_301 : f32 to vector<8x128xf32>
    %772 = arith.addf %770, %771 : vector<8x128xf32>
    %773 = vector.extract_strided_slice %756 {offsets = [0, 256], sizes = [8, 128], strides = [1, 1]} : vector<8x512xf32> to vector<8x128xf32>
    %774 = math.tanh %773 : vector<8x128xf32>
    %775 = vector.extract_strided_slice %756 {offsets = [0, 384], sizes = [8, 128], strides = [1, 1]} : vector<8x512xf32> to vector<8x128xf32>
    %cst_302 = arith.constant 5.000000e-01 : f32
    %776 = vector.broadcast %cst_302 : f32 to vector<8x128xf32>
    %777 = arith.mulf %776, %775 : vector<8x128xf32>
    %778 = math.tanh %777 : vector<8x128xf32>
    %cst_303 = arith.constant 5.000000e-01 : f32
    %779 = vector.broadcast %cst_303 : f32 to vector<8x128xf32>
    %780 = arith.mulf %779, %778 : vector<8x128xf32>
    %cst_304 = arith.constant 5.000000e-01 : f32
    %781 = vector.broadcast %cst_304 : f32 to vector<8x128xf32>
    %782 = arith.addf %780, %781 : vector<8x128xf32>
    %783 = arith.mulf %772, %748 : vector<8x128xf32>
    %784 = arith.mulf %764, %774 : vector<8x128xf32>
    %785 = arith.addf %783, %784 : vector<8x128xf32>
    %786 = math.tanh %785 : vector<8x128xf32>
    %787 = arith.mulf %782, %786 : vector<8x128xf32>
    %c21_i32 = arith.constant 21 : i32
    %788 = arith.index_cast %c21_i32 : i32 to index
    %c0_305 = arith.constant 0 : index
    %c0_306 = arith.constant 0 : index
    %789 = vector.load %arg10[%788, %c0_305, %c0_306] : memref<36x8x512xf32, #tpu.memory_space<vmem>>, vector<1x8x512xf32>
    %790 = vector.shape_cast %789 : vector<1x8x512xf32> to vector<8x512xf32>
    %c0_307 = arith.constant 0 : index
    %c0_308 = arith.constant 0 : index
    %791 = vector.load %arg3[%c0_307, %c0_308] : memref<128x512xf32, #tpu.memory_space<vmem>>, vector<128x512xf32>
    %cst_309 = arith.constant dense<0.000000e+00> : vector<8x512xf32>
    %792 = tpu.matmul %787, %791, %cst_309 {dimension_numbers = #tpu.dot_dimension_numbers<[1], [0], [0], [1], [0, 0, 1, 1], [], []>} : vector<8x128xf32>, vector<128x512xf32>, vector<8x512xf32> -> vector<8x512xf32>
    %793 = arith.addf %790, %792 : vector<8x512xf32>
    %794 = vector.extract_strided_slice %793 {offsets = [0, 0], sizes = [8, 128], strides = [1, 1]} : vector<8x512xf32> to vector<8x128xf32>
    %cst_310 = arith.constant 5.000000e-01 : f32
    %795 = vector.broadcast %cst_310 : f32 to vector<8x128xf32>
    %796 = arith.mulf %795, %794 : vector<8x128xf32>
    %797 = math.tanh %796 : vector<8x128xf32>
    %cst_311 = arith.constant 5.000000e-01 : f32
    %798 = vector.broadcast %cst_311 : f32 to vector<8x128xf32>
    %799 = arith.mulf %798, %797 : vector<8x128xf32>
    %cst_312 = arith.constant 5.000000e-01 : f32
    %800 = vector.broadcast %cst_312 : f32 to vector<8x128xf32>
    %801 = arith.addf %799, %800 : vector<8x128xf32>
    %802 = vector.extract_strided_slice %793 {offsets = [0, 128], sizes = [8, 128], strides = [1, 1]} : vector<8x512xf32> to vector<8x128xf32>
    %cst_313 = arith.constant 5.000000e-01 : f32
    %803 = vector.broadcast %cst_313 : f32 to vector<8x128xf32>
    %804 = arith.mulf %803, %802 : vector<8x128xf32>
    %805 = math.tanh %804 : vector<8x128xf32>
    %cst_314 = arith.constant 5.000000e-01 : f32
    %806 = vector.broadcast %cst_314 : f32 to vector<8x128xf32>
    %807 = arith.mulf %806, %805 : vector<8x128xf32>
    %cst_315 = arith.constant 5.000000e-01 : f32
    %808 = vector.broadcast %cst_315 : f32 to vector<8x128xf32>
    %809 = arith.addf %807, %808 : vector<8x128xf32>
    %810 = vector.extract_strided_slice %793 {offsets = [0, 256], sizes = [8, 128], strides = [1, 1]} : vector<8x512xf32> to vector<8x128xf32>
    %811 = math.tanh %810 : vector<8x128xf32>
    %812 = vector.extract_strided_slice %793 {offsets = [0, 384], sizes = [8, 128], strides = [1, 1]} : vector<8x512xf32> to vector<8x128xf32>
    %cst_316 = arith.constant 5.000000e-01 : f32
    %813 = vector.broadcast %cst_316 : f32 to vector<8x128xf32>
    %814 = arith.mulf %813, %812 : vector<8x128xf32>
    %815 = math.tanh %814 : vector<8x128xf32>
    %cst_317 = arith.constant 5.000000e-01 : f32
    %816 = vector.broadcast %cst_317 : f32 to vector<8x128xf32>
    %817 = arith.mulf %816, %815 : vector<8x128xf32>
    %cst_318 = arith.constant 5.000000e-01 : f32
    %818 = vector.broadcast %cst_318 : f32 to vector<8x128xf32>
    %819 = arith.addf %817, %818 : vector<8x128xf32>
    %820 = arith.mulf %809, %785 : vector<8x128xf32>
    %821 = arith.mulf %801, %811 : vector<8x128xf32>
    %822 = arith.addf %820, %821 : vector<8x128xf32>
    %823 = math.tanh %822 : vector<8x128xf32>
    %824 = arith.mulf %819, %823 : vector<8x128xf32>
    %c22_i32 = arith.constant 22 : i32
    %825 = arith.index_cast %c22_i32 : i32 to index
    %c0_319 = arith.constant 0 : index
    %c0_320 = arith.constant 0 : index
    %826 = vector.load %arg10[%825, %c0_319, %c0_320] : memref<36x8x512xf32, #tpu.memory_space<vmem>>, vector<1x8x512xf32>
    %827 = vector.shape_cast %826 : vector<1x8x512xf32> to vector<8x512xf32>
    %c0_321 = arith.constant 0 : index
    %c0_322 = arith.constant 0 : index
    %828 = vector.load %arg3[%c0_321, %c0_322] : memref<128x512xf32, #tpu.memory_space<vmem>>, vector<128x512xf32>
    %cst_323 = arith.constant dense<0.000000e+00> : vector<8x512xf32>
    %829 = tpu.matmul %824, %828, %cst_323 {dimension_numbers = #tpu.dot_dimension_numbers<[1], [0], [0], [1], [0, 0, 1, 1], [], []>} : vector<8x128xf32>, vector<128x512xf32>, vector<8x512xf32> -> vector<8x512xf32>
    %830 = arith.addf %827, %829 : vector<8x512xf32>
    %831 = vector.extract_strided_slice %830 {offsets = [0, 0], sizes = [8, 128], strides = [1, 1]} : vector<8x512xf32> to vector<8x128xf32>
    %cst_324 = arith.constant 5.000000e-01 : f32
    %832 = vector.broadcast %cst_324 : f32 to vector<8x128xf32>
    %833 = arith.mulf %832, %831 : vector<8x128xf32>
    %834 = math.tanh %833 : vector<8x128xf32>
    %cst_325 = arith.constant 5.000000e-01 : f32
    %835 = vector.broadcast %cst_325 : f32 to vector<8x128xf32>
    %836 = arith.mulf %835, %834 : vector<8x128xf32>
    %cst_326 = arith.constant 5.000000e-01 : f32
    %837 = vector.broadcast %cst_326 : f32 to vector<8x128xf32>
    %838 = arith.addf %836, %837 : vector<8x128xf32>
    %839 = vector.extract_strided_slice %830 {offsets = [0, 128], sizes = [8, 128], strides = [1, 1]} : vector<8x512xf32> to vector<8x128xf32>
    %cst_327 = arith.constant 5.000000e-01 : f32
    %840 = vector.broadcast %cst_327 : f32 to vector<8x128xf32>
    %841 = arith.mulf %840, %839 : vector<8x128xf32>
    %842 = math.tanh %841 : vector<8x128xf32>
    %cst_328 = arith.constant 5.000000e-01 : f32
    %843 = vector.broadcast %cst_328 : f32 to vector<8x128xf32>
    %844 = arith.mulf %843, %842 : vector<8x128xf32>
    %cst_329 = arith.constant 5.000000e-01 : f32
    %845 = vector.broadcast %cst_329 : f32 to vector<8x128xf32>
    %846 = arith.addf %844, %845 : vector<8x128xf32>
    %847 = vector.extract_strided_slice %830 {offsets = [0, 256], sizes = [8, 128], strides = [1, 1]} : vector<8x512xf32> to vector<8x128xf32>
    %848 = math.tanh %847 : vector<8x128xf32>
    %849 = vector.extract_strided_slice %830 {offsets = [0, 384], sizes = [8, 128], strides = [1, 1]} : vector<8x512xf32> to vector<8x128xf32>
    %cst_330 = arith.constant 5.000000e-01 : f32
    %850 = vector.broadcast %cst_330 : f32 to vector<8x128xf32>
    %851 = arith.mulf %850, %849 : vector<8x128xf32>
    %852 = math.tanh %851 : vector<8x128xf32>
    %cst_331 = arith.constant 5.000000e-01 : f32
    %853 = vector.broadcast %cst_331 : f32 to vector<8x128xf32>
    %854 = arith.mulf %853, %852 : vector<8x128xf32>
    %cst_332 = arith.constant 5.000000e-01 : f32
    %855 = vector.broadcast %cst_332 : f32 to vector<8x128xf32>
    %856 = arith.addf %854, %855 : vector<8x128xf32>
    %857 = arith.mulf %846, %822 : vector<8x128xf32>
    %858 = arith.mulf %838, %848 : vector<8x128xf32>
    %859 = arith.addf %857, %858 : vector<8x128xf32>
    %860 = math.tanh %859 : vector<8x128xf32>
    %861 = arith.mulf %856, %860 : vector<8x128xf32>
    %c23_i32 = arith.constant 23 : i32
    %862 = arith.index_cast %c23_i32 : i32 to index
    %c0_333 = arith.constant 0 : index
    %c0_334 = arith.constant 0 : index
    %863 = vector.load %arg10[%862, %c0_333, %c0_334] : memref<36x8x512xf32, #tpu.memory_space<vmem>>, vector<1x8x512xf32>
    %864 = vector.shape_cast %863 : vector<1x8x512xf32> to vector<8x512xf32>
    %c0_335 = arith.constant 0 : index
    %c0_336 = arith.constant 0 : index
    %865 = vector.load %arg3[%c0_335, %c0_336] : memref<128x512xf32, #tpu.memory_space<vmem>>, vector<128x512xf32>
    %cst_337 = arith.constant dense<0.000000e+00> : vector<8x512xf32>
    %866 = tpu.matmul %861, %865, %cst_337 {dimension_numbers = #tpu.dot_dimension_numbers<[1], [0], [0], [1], [0, 0, 1, 1], [], []>} : vector<8x128xf32>, vector<128x512xf32>, vector<8x512xf32> -> vector<8x512xf32>
    %867 = arith.addf %864, %866 : vector<8x512xf32>
    %868 = vector.extract_strided_slice %867 {offsets = [0, 0], sizes = [8, 128], strides = [1, 1]} : vector<8x512xf32> to vector<8x128xf32>
    %cst_338 = arith.constant 5.000000e-01 : f32
    %869 = vector.broadcast %cst_338 : f32 to vector<8x128xf32>
    %870 = arith.mulf %869, %868 : vector<8x128xf32>
    %871 = math.tanh %870 : vector<8x128xf32>
    %cst_339 = arith.constant 5.000000e-01 : f32
    %872 = vector.broadcast %cst_339 : f32 to vector<8x128xf32>
    %873 = arith.mulf %872, %871 : vector<8x128xf32>
    %cst_340 = arith.constant 5.000000e-01 : f32
    %874 = vector.broadcast %cst_340 : f32 to vector<8x128xf32>
    %875 = arith.addf %873, %874 : vector<8x128xf32>
    %876 = vector.extract_strided_slice %867 {offsets = [0, 128], sizes = [8, 128], strides = [1, 1]} : vector<8x512xf32> to vector<8x128xf32>
    %cst_341 = arith.constant 5.000000e-01 : f32
    %877 = vector.broadcast %cst_341 : f32 to vector<8x128xf32>
    %878 = arith.mulf %877, %876 : vector<8x128xf32>
    %879 = math.tanh %878 : vector<8x128xf32>
    %cst_342 = arith.constant 5.000000e-01 : f32
    %880 = vector.broadcast %cst_342 : f32 to vector<8x128xf32>
    %881 = arith.mulf %880, %879 : vector<8x128xf32>
    %cst_343 = arith.constant 5.000000e-01 : f32
    %882 = vector.broadcast %cst_343 : f32 to vector<8x128xf32>
    %883 = arith.addf %881, %882 : vector<8x128xf32>
    %884 = vector.extract_strided_slice %867 {offsets = [0, 256], sizes = [8, 128], strides = [1, 1]} : vector<8x512xf32> to vector<8x128xf32>
    %885 = math.tanh %884 : vector<8x128xf32>
    %886 = vector.extract_strided_slice %867 {offsets = [0, 384], sizes = [8, 128], strides = [1, 1]} : vector<8x512xf32> to vector<8x128xf32>
    %cst_344 = arith.constant 5.000000e-01 : f32
    %887 = vector.broadcast %cst_344 : f32 to vector<8x128xf32>
    %888 = arith.mulf %887, %886 : vector<8x128xf32>
    %889 = math.tanh %888 : vector<8x128xf32>
    %cst_345 = arith.constant 5.000000e-01 : f32
    %890 = vector.broadcast %cst_345 : f32 to vector<8x128xf32>
    %891 = arith.mulf %890, %889 : vector<8x128xf32>
    %cst_346 = arith.constant 5.000000e-01 : f32
    %892 = vector.broadcast %cst_346 : f32 to vector<8x128xf32>
    %893 = arith.addf %891, %892 : vector<8x128xf32>
    %894 = arith.mulf %883, %859 : vector<8x128xf32>
    %895 = arith.mulf %875, %885 : vector<8x128xf32>
    %896 = arith.addf %894, %895 : vector<8x128xf32>
    %897 = math.tanh %896 : vector<8x128xf32>
    %898 = arith.mulf %893, %897 : vector<8x128xf32>
    %c24_i32 = arith.constant 24 : i32
    %899 = arith.index_cast %c24_i32 : i32 to index
    %c0_347 = arith.constant 0 : index
    %c0_348 = arith.constant 0 : index
    %900 = vector.load %arg10[%899, %c0_347, %c0_348] : memref<36x8x512xf32, #tpu.memory_space<vmem>>, vector<1x8x512xf32>
    %901 = vector.shape_cast %900 : vector<1x8x512xf32> to vector<8x512xf32>
    %c0_349 = arith.constant 0 : index
    %c0_350 = arith.constant 0 : index
    %902 = vector.load %arg3[%c0_349, %c0_350] : memref<128x512xf32, #tpu.memory_space<vmem>>, vector<128x512xf32>
    %cst_351 = arith.constant dense<0.000000e+00> : vector<8x512xf32>
    %903 = tpu.matmul %898, %902, %cst_351 {dimension_numbers = #tpu.dot_dimension_numbers<[1], [0], [0], [1], [0, 0, 1, 1], [], []>} : vector<8x128xf32>, vector<128x512xf32>, vector<8x512xf32> -> vector<8x512xf32>
    %904 = arith.addf %901, %903 : vector<8x512xf32>
    %905 = vector.extract_strided_slice %904 {offsets = [0, 0], sizes = [8, 128], strides = [1, 1]} : vector<8x512xf32> to vector<8x128xf32>
    %cst_352 = arith.constant 5.000000e-01 : f32
    %906 = vector.broadcast %cst_352 : f32 to vector<8x128xf32>
    %907 = arith.mulf %906, %905 : vector<8x128xf32>
    %908 = math.tanh %907 : vector<8x128xf32>
    %cst_353 = arith.constant 5.000000e-01 : f32
    %909 = vector.broadcast %cst_353 : f32 to vector<8x128xf32>
    %910 = arith.mulf %909, %908 : vector<8x128xf32>
    %cst_354 = arith.constant 5.000000e-01 : f32
    %911 = vector.broadcast %cst_354 : f32 to vector<8x128xf32>
    %912 = arith.addf %910, %911 : vector<8x128xf32>
    %913 = vector.extract_strided_slice %904 {offsets = [0, 128], sizes = [8, 128], strides = [1, 1]} : vector<8x512xf32> to vector<8x128xf32>
    %cst_355 = arith.constant 5.000000e-01 : f32
    %914 = vector.broadcast %cst_355 : f32 to vector<8x128xf32>
    %915 = arith.mulf %914, %913 : vector<8x128xf32>
    %916 = math.tanh %915 : vector<8x128xf32>
    %cst_356 = arith.constant 5.000000e-01 : f32
    %917 = vector.broadcast %cst_356 : f32 to vector<8x128xf32>
    %918 = arith.mulf %917, %916 : vector<8x128xf32>
    %cst_357 = arith.constant 5.000000e-01 : f32
    %919 = vector.broadcast %cst_357 : f32 to vector<8x128xf32>
    %920 = arith.addf %918, %919 : vector<8x128xf32>
    %921 = vector.extract_strided_slice %904 {offsets = [0, 256], sizes = [8, 128], strides = [1, 1]} : vector<8x512xf32> to vector<8x128xf32>
    %922 = math.tanh %921 : vector<8x128xf32>
    %923 = vector.extract_strided_slice %904 {offsets = [0, 384], sizes = [8, 128], strides = [1, 1]} : vector<8x512xf32> to vector<8x128xf32>
    %cst_358 = arith.constant 5.000000e-01 : f32
    %924 = vector.broadcast %cst_358 : f32 to vector<8x128xf32>
    %925 = arith.mulf %924, %923 : vector<8x128xf32>
    %926 = math.tanh %925 : vector<8x128xf32>
    %cst_359 = arith.constant 5.000000e-01 : f32
    %927 = vector.broadcast %cst_359 : f32 to vector<8x128xf32>
    %928 = arith.mulf %927, %926 : vector<8x128xf32>
    %cst_360 = arith.constant 5.000000e-01 : f32
    %929 = vector.broadcast %cst_360 : f32 to vector<8x128xf32>
    %930 = arith.addf %928, %929 : vector<8x128xf32>
    %931 = arith.mulf %920, %896 : vector<8x128xf32>
    %932 = arith.mulf %912, %922 : vector<8x128xf32>
    %933 = arith.addf %931, %932 : vector<8x128xf32>
    %934 = math.tanh %933 : vector<8x128xf32>
    %935 = arith.mulf %930, %934 : vector<8x128xf32>
    %c25_i32 = arith.constant 25 : i32
    %936 = arith.index_cast %c25_i32 : i32 to index
    %c0_361 = arith.constant 0 : index
    %c0_362 = arith.constant 0 : index
    %937 = vector.load %arg10[%936, %c0_361, %c0_362] : memref<36x8x512xf32, #tpu.memory_space<vmem>>, vector<1x8x512xf32>
    %938 = vector.shape_cast %937 : vector<1x8x512xf32> to vector<8x512xf32>
    %c0_363 = arith.constant 0 : index
    %c0_364 = arith.constant 0 : index
    %939 = vector.load %arg3[%c0_363, %c0_364] : memref<128x512xf32, #tpu.memory_space<vmem>>, vector<128x512xf32>
    %cst_365 = arith.constant dense<0.000000e+00> : vector<8x512xf32>
    %940 = tpu.matmul %935, %939, %cst_365 {dimension_numbers = #tpu.dot_dimension_numbers<[1], [0], [0], [1], [0, 0, 1, 1], [], []>} : vector<8x128xf32>, vector<128x512xf32>, vector<8x512xf32> -> vector<8x512xf32>
    %941 = arith.addf %938, %940 : vector<8x512xf32>
    %942 = vector.extract_strided_slice %941 {offsets = [0, 0], sizes = [8, 128], strides = [1, 1]} : vector<8x512xf32> to vector<8x128xf32>
    %cst_366 = arith.constant 5.000000e-01 : f32
    %943 = vector.broadcast %cst_366 : f32 to vector<8x128xf32>
    %944 = arith.mulf %943, %942 : vector<8x128xf32>
    %945 = math.tanh %944 : vector<8x128xf32>
    %cst_367 = arith.constant 5.000000e-01 : f32
    %946 = vector.broadcast %cst_367 : f32 to vector<8x128xf32>
    %947 = arith.mulf %946, %945 : vector<8x128xf32>
    %cst_368 = arith.constant 5.000000e-01 : f32
    %948 = vector.broadcast %cst_368 : f32 to vector<8x128xf32>
    %949 = arith.addf %947, %948 : vector<8x128xf32>
    %950 = vector.extract_strided_slice %941 {offsets = [0, 128], sizes = [8, 128], strides = [1, 1]} : vector<8x512xf32> to vector<8x128xf32>
    %cst_369 = arith.constant 5.000000e-01 : f32
    %951 = vector.broadcast %cst_369 : f32 to vector<8x128xf32>
    %952 = arith.mulf %951, %950 : vector<8x128xf32>
    %953 = math.tanh %952 : vector<8x128xf32>
    %cst_370 = arith.constant 5.000000e-01 : f32
    %954 = vector.broadcast %cst_370 : f32 to vector<8x128xf32>
    %955 = arith.mulf %954, %953 : vector<8x128xf32>
    %cst_371 = arith.constant 5.000000e-01 : f32
    %956 = vector.broadcast %cst_371 : f32 to vector<8x128xf32>
    %957 = arith.addf %955, %956 : vector<8x128xf32>
    %958 = vector.extract_strided_slice %941 {offsets = [0, 256], sizes = [8, 128], strides = [1, 1]} : vector<8x512xf32> to vector<8x128xf32>
    %959 = math.tanh %958 : vector<8x128xf32>
    %960 = vector.extract_strided_slice %941 {offsets = [0, 384], sizes = [8, 128], strides = [1, 1]} : vector<8x512xf32> to vector<8x128xf32>
    %cst_372 = arith.constant 5.000000e-01 : f32
    %961 = vector.broadcast %cst_372 : f32 to vector<8x128xf32>
    %962 = arith.mulf %961, %960 : vector<8x128xf32>
    %963 = math.tanh %962 : vector<8x128xf32>
    %cst_373 = arith.constant 5.000000e-01 : f32
    %964 = vector.broadcast %cst_373 : f32 to vector<8x128xf32>
    %965 = arith.mulf %964, %963 : vector<8x128xf32>
    %cst_374 = arith.constant 5.000000e-01 : f32
    %966 = vector.broadcast %cst_374 : f32 to vector<8x128xf32>
    %967 = arith.addf %965, %966 : vector<8x128xf32>
    %968 = arith.mulf %957, %933 : vector<8x128xf32>
    %969 = arith.mulf %949, %959 : vector<8x128xf32>
    %970 = arith.addf %968, %969 : vector<8x128xf32>
    %971 = math.tanh %970 : vector<8x128xf32>
    %972 = arith.mulf %967, %971 : vector<8x128xf32>
    %c26_i32 = arith.constant 26 : i32
    %973 = arith.index_cast %c26_i32 : i32 to index
    %c0_375 = arith.constant 0 : index
    %c0_376 = arith.constant 0 : index
    %974 = vector.load %arg10[%973, %c0_375, %c0_376] : memref<36x8x512xf32, #tpu.memory_space<vmem>>, vector<1x8x512xf32>
    %975 = vector.shape_cast %974 : vector<1x8x512xf32> to vector<8x512xf32>
    %c0_377 = arith.constant 0 : index
    %c0_378 = arith.constant 0 : index
    %976 = vector.load %arg3[%c0_377, %c0_378] : memref<128x512xf32, #tpu.memory_space<vmem>>, vector<128x512xf32>
    %cst_379 = arith.constant dense<0.000000e+00> : vector<8x512xf32>
    %977 = tpu.matmul %972, %976, %cst_379 {dimension_numbers = #tpu.dot_dimension_numbers<[1], [0], [0], [1], [0, 0, 1, 1], [], []>} : vector<8x128xf32>, vector<128x512xf32>, vector<8x512xf32> -> vector<8x512xf32>
    %978 = arith.addf %975, %977 : vector<8x512xf32>
    %979 = vector.extract_strided_slice %978 {offsets = [0, 0], sizes = [8, 128], strides = [1, 1]} : vector<8x512xf32> to vector<8x128xf32>
    %cst_380 = arith.constant 5.000000e-01 : f32
    %980 = vector.broadcast %cst_380 : f32 to vector<8x128xf32>
    %981 = arith.mulf %980, %979 : vector<8x128xf32>
    %982 = math.tanh %981 : vector<8x128xf32>
    %cst_381 = arith.constant 5.000000e-01 : f32
    %983 = vector.broadcast %cst_381 : f32 to vector<8x128xf32>
    %984 = arith.mulf %983, %982 : vector<8x128xf32>
    %cst_382 = arith.constant 5.000000e-01 : f32
    %985 = vector.broadcast %cst_382 : f32 to vector<8x128xf32>
    %986 = arith.addf %984, %985 : vector<8x128xf32>
    %987 = vector.extract_strided_slice %978 {offsets = [0, 128], sizes = [8, 128], strides = [1, 1]} : vector<8x512xf32> to vector<8x128xf32>
    %cst_383 = arith.constant 5.000000e-01 : f32
    %988 = vector.broadcast %cst_383 : f32 to vector<8x128xf32>
    %989 = arith.mulf %988, %987 : vector<8x128xf32>
    %990 = math.tanh %989 : vector<8x128xf32>
    %cst_384 = arith.constant 5.000000e-01 : f32
    %991 = vector.broadcast %cst_384 : f32 to vector<8x128xf32>
    %992 = arith.mulf %991, %990 : vector<8x128xf32>
    %cst_385 = arith.constant 5.000000e-01 : f32
    %993 = vector.broadcast %cst_385 : f32 to vector<8x128xf32>
    %994 = arith.addf %992, %993 : vector<8x128xf32>
    %995 = vector.extract_strided_slice %978 {offsets = [0, 256], sizes = [8, 128], strides = [1, 1]} : vector<8x512xf32> to vector<8x128xf32>
    %996 = math.tanh %995 : vector<8x128xf32>
    %997 = vector.extract_strided_slice %978 {offsets = [0, 384], sizes = [8, 128], strides = [1, 1]} : vector<8x512xf32> to vector<8x128xf32>
    %cst_386 = arith.constant 5.000000e-01 : f32
    %998 = vector.broadcast %cst_386 : f32 to vector<8x128xf32>
    %999 = arith.mulf %998, %997 : vector<8x128xf32>
    %1000 = math.tanh %999 : vector<8x128xf32>
    %cst_387 = arith.constant 5.000000e-01 : f32
    %1001 = vector.broadcast %cst_387 : f32 to vector<8x128xf32>
    %1002 = arith.mulf %1001, %1000 : vector<8x128xf32>
    %cst_388 = arith.constant 5.000000e-01 : f32
    %1003 = vector.broadcast %cst_388 : f32 to vector<8x128xf32>
    %1004 = arith.addf %1002, %1003 : vector<8x128xf32>
    %1005 = arith.mulf %994, %970 : vector<8x128xf32>
    %1006 = arith.mulf %986, %996 : vector<8x128xf32>
    %1007 = arith.addf %1005, %1006 : vector<8x128xf32>
    %1008 = math.tanh %1007 : vector<8x128xf32>
    %1009 = arith.mulf %1004, %1008 : vector<8x128xf32>
    %c27_i32 = arith.constant 27 : i32
    %1010 = arith.index_cast %c27_i32 : i32 to index
    %c0_389 = arith.constant 0 : index
    %c0_390 = arith.constant 0 : index
    %1011 = vector.load %arg10[%1010, %c0_389, %c0_390] : memref<36x8x512xf32, #tpu.memory_space<vmem>>, vector<1x8x512xf32>
    %1012 = vector.shape_cast %1011 : vector<1x8x512xf32> to vector<8x512xf32>
    %c0_391 = arith.constant 0 : index
    %c0_392 = arith.constant 0 : index
    %1013 = vector.load %arg3[%c0_391, %c0_392] : memref<128x512xf32, #tpu.memory_space<vmem>>, vector<128x512xf32>
    %cst_393 = arith.constant dense<0.000000e+00> : vector<8x512xf32>
    %1014 = tpu.matmul %1009, %1013, %cst_393 {dimension_numbers = #tpu.dot_dimension_numbers<[1], [0], [0], [1], [0, 0, 1, 1], [], []>} : vector<8x128xf32>, vector<128x512xf32>, vector<8x512xf32> -> vector<8x512xf32>
    %1015 = arith.addf %1012, %1014 : vector<8x512xf32>
    %1016 = vector.extract_strided_slice %1015 {offsets = [0, 0], sizes = [8, 128], strides = [1, 1]} : vector<8x512xf32> to vector<8x128xf32>
    %cst_394 = arith.constant 5.000000e-01 : f32
    %1017 = vector.broadcast %cst_394 : f32 to vector<8x128xf32>
    %1018 = arith.mulf %1017, %1016 : vector<8x128xf32>
    %1019 = math.tanh %1018 : vector<8x128xf32>
    %cst_395 = arith.constant 5.000000e-01 : f32
    %1020 = vector.broadcast %cst_395 : f32 to vector<8x128xf32>
    %1021 = arith.mulf %1020, %1019 : vector<8x128xf32>
    %cst_396 = arith.constant 5.000000e-01 : f32
    %1022 = vector.broadcast %cst_396 : f32 to vector<8x128xf32>
    %1023 = arith.addf %1021, %1022 : vector<8x128xf32>
    %1024 = vector.extract_strided_slice %1015 {offsets = [0, 128], sizes = [8, 128], strides = [1, 1]} : vector<8x512xf32> to vector<8x128xf32>
    %cst_397 = arith.constant 5.000000e-01 : f32
    %1025 = vector.broadcast %cst_397 : f32 to vector<8x128xf32>
    %1026 = arith.mulf %1025, %1024 : vector<8x128xf32>
    %1027 = math.tanh %1026 : vector<8x128xf32>
    %cst_398 = arith.constant 5.000000e-01 : f32
    %1028 = vector.broadcast %cst_398 : f32 to vector<8x128xf32>
    %1029 = arith.mulf %1028, %1027 : vector<8x128xf32>
    %cst_399 = arith.constant 5.000000e-01 : f32
    %1030 = vector.broadcast %cst_399 : f32 to vector<8x128xf32>
    %1031 = arith.addf %1029, %1030 : vector<8x128xf32>
    %1032 = vector.extract_strided_slice %1015 {offsets = [0, 256], sizes = [8, 128], strides = [1, 1]} : vector<8x512xf32> to vector<8x128xf32>
    %1033 = math.tanh %1032 : vector<8x128xf32>
    %1034 = vector.extract_strided_slice %1015 {offsets = [0, 384], sizes = [8, 128], strides = [1, 1]} : vector<8x512xf32> to vector<8x128xf32>
    %cst_400 = arith.constant 5.000000e-01 : f32
    %1035 = vector.broadcast %cst_400 : f32 to vector<8x128xf32>
    %1036 = arith.mulf %1035, %1034 : vector<8x128xf32>
    %1037 = math.tanh %1036 : vector<8x128xf32>
    %cst_401 = arith.constant 5.000000e-01 : f32
    %1038 = vector.broadcast %cst_401 : f32 to vector<8x128xf32>
    %1039 = arith.mulf %1038, %1037 : vector<8x128xf32>
    %cst_402 = arith.constant 5.000000e-01 : f32
    %1040 = vector.broadcast %cst_402 : f32 to vector<8x128xf32>
    %1041 = arith.addf %1039, %1040 : vector<8x128xf32>
    %1042 = arith.mulf %1031, %1007 : vector<8x128xf32>
    %1043 = arith.mulf %1023, %1033 : vector<8x128xf32>
    %1044 = arith.addf %1042, %1043 : vector<8x128xf32>
    %1045 = math.tanh %1044 : vector<8x128xf32>
    %1046 = arith.mulf %1041, %1045 : vector<8x128xf32>
    %c28_i32 = arith.constant 28 : i32
    %1047 = arith.index_cast %c28_i32 : i32 to index
    %c0_403 = arith.constant 0 : index
    %c0_404 = arith.constant 0 : index
    %1048 = vector.load %arg10[%1047, %c0_403, %c0_404] : memref<36x8x512xf32, #tpu.memory_space<vmem>>, vector<1x8x512xf32>
    %1049 = vector.shape_cast %1048 : vector<1x8x512xf32> to vector<8x512xf32>
    %c0_405 = arith.constant 0 : index
    %c0_406 = arith.constant 0 : index
    %1050 = vector.load %arg3[%c0_405, %c0_406] : memref<128x512xf32, #tpu.memory_space<vmem>>, vector<128x512xf32>
    %cst_407 = arith.constant dense<0.000000e+00> : vector<8x512xf32>
    %1051 = tpu.matmul %1046, %1050, %cst_407 {dimension_numbers = #tpu.dot_dimension_numbers<[1], [0], [0], [1], [0, 0, 1, 1], [], []>} : vector<8x128xf32>, vector<128x512xf32>, vector<8x512xf32> -> vector<8x512xf32>
    %1052 = arith.addf %1049, %1051 : vector<8x512xf32>
    %1053 = vector.extract_strided_slice %1052 {offsets = [0, 0], sizes = [8, 128], strides = [1, 1]} : vector<8x512xf32> to vector<8x128xf32>
    %cst_408 = arith.constant 5.000000e-01 : f32
    %1054 = vector.broadcast %cst_408 : f32 to vector<8x128xf32>
    %1055 = arith.mulf %1054, %1053 : vector<8x128xf32>
    %1056 = math.tanh %1055 : vector<8x128xf32>
    %cst_409 = arith.constant 5.000000e-01 : f32
    %1057 = vector.broadcast %cst_409 : f32 to vector<8x128xf32>
    %1058 = arith.mulf %1057, %1056 : vector<8x128xf32>
    %cst_410 = arith.constant 5.000000e-01 : f32
    %1059 = vector.broadcast %cst_410 : f32 to vector<8x128xf32>
    %1060 = arith.addf %1058, %1059 : vector<8x128xf32>
    %1061 = vector.extract_strided_slice %1052 {offsets = [0, 128], sizes = [8, 128], strides = [1, 1]} : vector<8x512xf32> to vector<8x128xf32>
    %cst_411 = arith.constant 5.000000e-01 : f32
    %1062 = vector.broadcast %cst_411 : f32 to vector<8x128xf32>
    %1063 = arith.mulf %1062, %1061 : vector<8x128xf32>
    %1064 = math.tanh %1063 : vector<8x128xf32>
    %cst_412 = arith.constant 5.000000e-01 : f32
    %1065 = vector.broadcast %cst_412 : f32 to vector<8x128xf32>
    %1066 = arith.mulf %1065, %1064 : vector<8x128xf32>
    %cst_413 = arith.constant 5.000000e-01 : f32
    %1067 = vector.broadcast %cst_413 : f32 to vector<8x128xf32>
    %1068 = arith.addf %1066, %1067 : vector<8x128xf32>
    %1069 = vector.extract_strided_slice %1052 {offsets = [0, 256], sizes = [8, 128], strides = [1, 1]} : vector<8x512xf32> to vector<8x128xf32>
    %1070 = math.tanh %1069 : vector<8x128xf32>
    %1071 = vector.extract_strided_slice %1052 {offsets = [0, 384], sizes = [8, 128], strides = [1, 1]} : vector<8x512xf32> to vector<8x128xf32>
    %cst_414 = arith.constant 5.000000e-01 : f32
    %1072 = vector.broadcast %cst_414 : f32 to vector<8x128xf32>
    %1073 = arith.mulf %1072, %1071 : vector<8x128xf32>
    %1074 = math.tanh %1073 : vector<8x128xf32>
    %cst_415 = arith.constant 5.000000e-01 : f32
    %1075 = vector.broadcast %cst_415 : f32 to vector<8x128xf32>
    %1076 = arith.mulf %1075, %1074 : vector<8x128xf32>
    %cst_416 = arith.constant 5.000000e-01 : f32
    %1077 = vector.broadcast %cst_416 : f32 to vector<8x128xf32>
    %1078 = arith.addf %1076, %1077 : vector<8x128xf32>
    %1079 = arith.mulf %1068, %1044 : vector<8x128xf32>
    %1080 = arith.mulf %1060, %1070 : vector<8x128xf32>
    %1081 = arith.addf %1079, %1080 : vector<8x128xf32>
    %1082 = math.tanh %1081 : vector<8x128xf32>
    %1083 = arith.mulf %1078, %1082 : vector<8x128xf32>
    %c29_i32 = arith.constant 29 : i32
    %1084 = arith.index_cast %c29_i32 : i32 to index
    %c0_417 = arith.constant 0 : index
    %c0_418 = arith.constant 0 : index
    %1085 = vector.load %arg10[%1084, %c0_417, %c0_418] : memref<36x8x512xf32, #tpu.memory_space<vmem>>, vector<1x8x512xf32>
    %1086 = vector.shape_cast %1085 : vector<1x8x512xf32> to vector<8x512xf32>
    %c0_419 = arith.constant 0 : index
    %c0_420 = arith.constant 0 : index
    %1087 = vector.load %arg3[%c0_419, %c0_420] : memref<128x512xf32, #tpu.memory_space<vmem>>, vector<128x512xf32>
    %cst_421 = arith.constant dense<0.000000e+00> : vector<8x512xf32>
    %1088 = tpu.matmul %1083, %1087, %cst_421 {dimension_numbers = #tpu.dot_dimension_numbers<[1], [0], [0], [1], [0, 0, 1, 1], [], []>} : vector<8x128xf32>, vector<128x512xf32>, vector<8x512xf32> -> vector<8x512xf32>
    %1089 = arith.addf %1086, %1088 : vector<8x512xf32>
    %1090 = vector.extract_strided_slice %1089 {offsets = [0, 0], sizes = [8, 128], strides = [1, 1]} : vector<8x512xf32> to vector<8x128xf32>
    %cst_422 = arith.constant 5.000000e-01 : f32
    %1091 = vector.broadcast %cst_422 : f32 to vector<8x128xf32>
    %1092 = arith.mulf %1091, %1090 : vector<8x128xf32>
    %1093 = math.tanh %1092 : vector<8x128xf32>
    %cst_423 = arith.constant 5.000000e-01 : f32
    %1094 = vector.broadcast %cst_423 : f32 to vector<8x128xf32>
    %1095 = arith.mulf %1094, %1093 : vector<8x128xf32>
    %cst_424 = arith.constant 5.000000e-01 : f32
    %1096 = vector.broadcast %cst_424 : f32 to vector<8x128xf32>
    %1097 = arith.addf %1095, %1096 : vector<8x128xf32>
    %1098 = vector.extract_strided_slice %1089 {offsets = [0, 128], sizes = [8, 128], strides = [1, 1]} : vector<8x512xf32> to vector<8x128xf32>
    %cst_425 = arith.constant 5.000000e-01 : f32
    %1099 = vector.broadcast %cst_425 : f32 to vector<8x128xf32>
    %1100 = arith.mulf %1099, %1098 : vector<8x128xf32>
    %1101 = math.tanh %1100 : vector<8x128xf32>
    %cst_426 = arith.constant 5.000000e-01 : f32
    %1102 = vector.broadcast %cst_426 : f32 to vector<8x128xf32>
    %1103 = arith.mulf %1102, %1101 : vector<8x128xf32>
    %cst_427 = arith.constant 5.000000e-01 : f32
    %1104 = vector.broadcast %cst_427 : f32 to vector<8x128xf32>
    %1105 = arith.addf %1103, %1104 : vector<8x128xf32>
    %1106 = vector.extract_strided_slice %1089 {offsets = [0, 256], sizes = [8, 128], strides = [1, 1]} : vector<8x512xf32> to vector<8x128xf32>
    %1107 = math.tanh %1106 : vector<8x128xf32>
    %1108 = vector.extract_strided_slice %1089 {offsets = [0, 384], sizes = [8, 128], strides = [1, 1]} : vector<8x512xf32> to vector<8x128xf32>
    %cst_428 = arith.constant 5.000000e-01 : f32
    %1109 = vector.broadcast %cst_428 : f32 to vector<8x128xf32>
    %1110 = arith.mulf %1109, %1108 : vector<8x128xf32>
    %1111 = math.tanh %1110 : vector<8x128xf32>
    %cst_429 = arith.constant 5.000000e-01 : f32
    %1112 = vector.broadcast %cst_429 : f32 to vector<8x128xf32>
    %1113 = arith.mulf %1112, %1111 : vector<8x128xf32>
    %cst_430 = arith.constant 5.000000e-01 : f32
    %1114 = vector.broadcast %cst_430 : f32 to vector<8x128xf32>
    %1115 = arith.addf %1113, %1114 : vector<8x128xf32>
    %1116 = arith.mulf %1105, %1081 : vector<8x128xf32>
    %1117 = arith.mulf %1097, %1107 : vector<8x128xf32>
    %1118 = arith.addf %1116, %1117 : vector<8x128xf32>
    %1119 = math.tanh %1118 : vector<8x128xf32>
    %1120 = arith.mulf %1115, %1119 : vector<8x128xf32>
    %c30_i32 = arith.constant 30 : i32
    %1121 = arith.index_cast %c30_i32 : i32 to index
    %c0_431 = arith.constant 0 : index
    %c0_432 = arith.constant 0 : index
    %1122 = vector.load %arg10[%1121, %c0_431, %c0_432] : memref<36x8x512xf32, #tpu.memory_space<vmem>>, vector<1x8x512xf32>
    %1123 = vector.shape_cast %1122 : vector<1x8x512xf32> to vector<8x512xf32>
    %c0_433 = arith.constant 0 : index
    %c0_434 = arith.constant 0 : index
    %1124 = vector.load %arg3[%c0_433, %c0_434] : memref<128x512xf32, #tpu.memory_space<vmem>>, vector<128x512xf32>
    %cst_435 = arith.constant dense<0.000000e+00> : vector<8x512xf32>
    %1125 = tpu.matmul %1120, %1124, %cst_435 {dimension_numbers = #tpu.dot_dimension_numbers<[1], [0], [0], [1], [0, 0, 1, 1], [], []>} : vector<8x128xf32>, vector<128x512xf32>, vector<8x512xf32> -> vector<8x512xf32>
    %1126 = arith.addf %1123, %1125 : vector<8x512xf32>
    %1127 = vector.extract_strided_slice %1126 {offsets = [0, 0], sizes = [8, 128], strides = [1, 1]} : vector<8x512xf32> to vector<8x128xf32>
    %cst_436 = arith.constant 5.000000e-01 : f32
    %1128 = vector.broadcast %cst_436 : f32 to vector<8x128xf32>
    %1129 = arith.mulf %1128, %1127 : vector<8x128xf32>
    %1130 = math.tanh %1129 : vector<8x128xf32>
    %cst_437 = arith.constant 5.000000e-01 : f32
    %1131 = vector.broadcast %cst_437 : f32 to vector<8x128xf32>
    %1132 = arith.mulf %1131, %1130 : vector<8x128xf32>
    %cst_438 = arith.constant 5.000000e-01 : f32
    %1133 = vector.broadcast %cst_438 : f32 to vector<8x128xf32>
    %1134 = arith.addf %1132, %1133 : vector<8x128xf32>
    %1135 = vector.extract_strided_slice %1126 {offsets = [0, 128], sizes = [8, 128], strides = [1, 1]} : vector<8x512xf32> to vector<8x128xf32>
    %cst_439 = arith.constant 5.000000e-01 : f32
    %1136 = vector.broadcast %cst_439 : f32 to vector<8x128xf32>
    %1137 = arith.mulf %1136, %1135 : vector<8x128xf32>
    %1138 = math.tanh %1137 : vector<8x128xf32>
    %cst_440 = arith.constant 5.000000e-01 : f32
    %1139 = vector.broadcast %cst_440 : f32 to vector<8x128xf32>
    %1140 = arith.mulf %1139, %1138 : vector<8x128xf32>
    %cst_441 = arith.constant 5.000000e-01 : f32
    %1141 = vector.broadcast %cst_441 : f32 to vector<8x128xf32>
    %1142 = arith.addf %1140, %1141 : vector<8x128xf32>
    %1143 = vector.extract_strided_slice %1126 {offsets = [0, 256], sizes = [8, 128], strides = [1, 1]} : vector<8x512xf32> to vector<8x128xf32>
    %1144 = math.tanh %1143 : vector<8x128xf32>
    %1145 = vector.extract_strided_slice %1126 {offsets = [0, 384], sizes = [8, 128], strides = [1, 1]} : vector<8x512xf32> to vector<8x128xf32>
    %cst_442 = arith.constant 5.000000e-01 : f32
    %1146 = vector.broadcast %cst_442 : f32 to vector<8x128xf32>
    %1147 = arith.mulf %1146, %1145 : vector<8x128xf32>
    %1148 = math.tanh %1147 : vector<8x128xf32>
    %cst_443 = arith.constant 5.000000e-01 : f32
    %1149 = vector.broadcast %cst_443 : f32 to vector<8x128xf32>
    %1150 = arith.mulf %1149, %1148 : vector<8x128xf32>
    %cst_444 = arith.constant 5.000000e-01 : f32
    %1151 = vector.broadcast %cst_444 : f32 to vector<8x128xf32>
    %1152 = arith.addf %1150, %1151 : vector<8x128xf32>
    %1153 = arith.mulf %1142, %1118 : vector<8x128xf32>
    %1154 = arith.mulf %1134, %1144 : vector<8x128xf32>
    %1155 = arith.addf %1153, %1154 : vector<8x128xf32>
    %1156 = math.tanh %1155 : vector<8x128xf32>
    %1157 = arith.mulf %1152, %1156 : vector<8x128xf32>
    %c31_i32 = arith.constant 31 : i32
    %1158 = arith.index_cast %c31_i32 : i32 to index
    %c0_445 = arith.constant 0 : index
    %c0_446 = arith.constant 0 : index
    %1159 = vector.load %arg10[%1158, %c0_445, %c0_446] : memref<36x8x512xf32, #tpu.memory_space<vmem>>, vector<1x8x512xf32>
    %1160 = vector.shape_cast %1159 : vector<1x8x512xf32> to vector<8x512xf32>
    %c0_447 = arith.constant 0 : index
    %c0_448 = arith.constant 0 : index
    %1161 = vector.load %arg3[%c0_447, %c0_448] : memref<128x512xf32, #tpu.memory_space<vmem>>, vector<128x512xf32>
    %cst_449 = arith.constant dense<0.000000e+00> : vector<8x512xf32>
    %1162 = tpu.matmul %1157, %1161, %cst_449 {dimension_numbers = #tpu.dot_dimension_numbers<[1], [0], [0], [1], [0, 0, 1, 1], [], []>} : vector<8x128xf32>, vector<128x512xf32>, vector<8x512xf32> -> vector<8x512xf32>
    %1163 = arith.addf %1160, %1162 : vector<8x512xf32>
    %1164 = vector.extract_strided_slice %1163 {offsets = [0, 0], sizes = [8, 128], strides = [1, 1]} : vector<8x512xf32> to vector<8x128xf32>
    %cst_450 = arith.constant 5.000000e-01 : f32
    %1165 = vector.broadcast %cst_450 : f32 to vector<8x128xf32>
    %1166 = arith.mulf %1165, %1164 : vector<8x128xf32>
    %1167 = math.tanh %1166 : vector<8x128xf32>
    %cst_451 = arith.constant 5.000000e-01 : f32
    %1168 = vector.broadcast %cst_451 : f32 to vector<8x128xf32>
    %1169 = arith.mulf %1168, %1167 : vector<8x128xf32>
    %cst_452 = arith.constant 5.000000e-01 : f32
    %1170 = vector.broadcast %cst_452 : f32 to vector<8x128xf32>
    %1171 = arith.addf %1169, %1170 : vector<8x128xf32>
    %1172 = vector.extract_strided_slice %1163 {offsets = [0, 128], sizes = [8, 128], strides = [1, 1]} : vector<8x512xf32> to vector<8x128xf32>
    %cst_453 = arith.constant 5.000000e-01 : f32
    %1173 = vector.broadcast %cst_453 : f32 to vector<8x128xf32>
    %1174 = arith.mulf %1173, %1172 : vector<8x128xf32>
    %1175 = math.tanh %1174 : vector<8x128xf32>
    %cst_454 = arith.constant 5.000000e-01 : f32
    %1176 = vector.broadcast %cst_454 : f32 to vector<8x128xf32>
    %1177 = arith.mulf %1176, %1175 : vector<8x128xf32>
    %cst_455 = arith.constant 5.000000e-01 : f32
    %1178 = vector.broadcast %cst_455 : f32 to vector<8x128xf32>
    %1179 = arith.addf %1177, %1178 : vector<8x128xf32>
    %1180 = vector.extract_strided_slice %1163 {offsets = [0, 256], sizes = [8, 128], strides = [1, 1]} : vector<8x512xf32> to vector<8x128xf32>
    %1181 = math.tanh %1180 : vector<8x128xf32>
    %1182 = vector.extract_strided_slice %1163 {offsets = [0, 384], sizes = [8, 128], strides = [1, 1]} : vector<8x512xf32> to vector<8x128xf32>
    %cst_456 = arith.constant 5.000000e-01 : f32
    %1183 = vector.broadcast %cst_456 : f32 to vector<8x128xf32>
    %1184 = arith.mulf %1183, %1182 : vector<8x128xf32>
    %1185 = math.tanh %1184 : vector<8x128xf32>
    %cst_457 = arith.constant 5.000000e-01 : f32
    %1186 = vector.broadcast %cst_457 : f32 to vector<8x128xf32>
    %1187 = arith.mulf %1186, %1185 : vector<8x128xf32>
    %cst_458 = arith.constant 5.000000e-01 : f32
    %1188 = vector.broadcast %cst_458 : f32 to vector<8x128xf32>
    %1189 = arith.addf %1187, %1188 : vector<8x128xf32>
    %1190 = arith.mulf %1179, %1155 : vector<8x128xf32>
    %1191 = arith.mulf %1171, %1181 : vector<8x128xf32>
    %1192 = arith.addf %1190, %1191 : vector<8x128xf32>
    %1193 = math.tanh %1192 : vector<8x128xf32>
    %1194 = arith.mulf %1189, %1193 : vector<8x128xf32>
    %c32_i32 = arith.constant 32 : i32
    %1195 = arith.index_cast %c32_i32 : i32 to index
    %c0_459 = arith.constant 0 : index
    %c0_460 = arith.constant 0 : index
    %1196 = vector.load %arg10[%1195, %c0_459, %c0_460] : memref<36x8x512xf32, #tpu.memory_space<vmem>>, vector<1x8x512xf32>
    %1197 = vector.shape_cast %1196 : vector<1x8x512xf32> to vector<8x512xf32>
    %c0_461 = arith.constant 0 : index
    %c0_462 = arith.constant 0 : index
    %1198 = vector.load %arg3[%c0_461, %c0_462] : memref<128x512xf32, #tpu.memory_space<vmem>>, vector<128x512xf32>
    %cst_463 = arith.constant dense<0.000000e+00> : vector<8x512xf32>
    %1199 = tpu.matmul %1194, %1198, %cst_463 {dimension_numbers = #tpu.dot_dimension_numbers<[1], [0], [0], [1], [0, 0, 1, 1], [], []>} : vector<8x128xf32>, vector<128x512xf32>, vector<8x512xf32> -> vector<8x512xf32>
    %1200 = arith.addf %1197, %1199 : vector<8x512xf32>
    %1201 = vector.extract_strided_slice %1200 {offsets = [0, 0], sizes = [8, 128], strides = [1, 1]} : vector<8x512xf32> to vector<8x128xf32>
    %cst_464 = arith.constant 5.000000e-01 : f32
    %1202 = vector.broadcast %cst_464 : f32 to vector<8x128xf32>
    %1203 = arith.mulf %1202, %1201 : vector<8x128xf32>
    %1204 = math.tanh %1203 : vector<8x128xf32>
    %cst_465 = arith.constant 5.000000e-01 : f32
    %1205 = vector.broadcast %cst_465 : f32 to vector<8x128xf32>
    %1206 = arith.mulf %1205, %1204 : vector<8x128xf32>
    %cst_466 = arith.constant 5.000000e-01 : f32
    %1207 = vector.broadcast %cst_466 : f32 to vector<8x128xf32>
    %1208 = arith.addf %1206, %1207 : vector<8x128xf32>
    %1209 = vector.extract_strided_slice %1200 {offsets = [0, 128], sizes = [8, 128], strides = [1, 1]} : vector<8x512xf32> to vector<8x128xf32>
    %cst_467 = arith.constant 5.000000e-01 : f32
    %1210 = vector.broadcast %cst_467 : f32 to vector<8x128xf32>
    %1211 = arith.mulf %1210, %1209 : vector<8x128xf32>
    %1212 = math.tanh %1211 : vector<8x128xf32>
    %cst_468 = arith.constant 5.000000e-01 : f32
    %1213 = vector.broadcast %cst_468 : f32 to vector<8x128xf32>
    %1214 = arith.mulf %1213, %1212 : vector<8x128xf32>
    %cst_469 = arith.constant 5.000000e-01 : f32
    %1215 = vector.broadcast %cst_469 : f32 to vector<8x128xf32>
    %1216 = arith.addf %1214, %1215 : vector<8x128xf32>
    %1217 = vector.extract_strided_slice %1200 {offsets = [0, 256], sizes = [8, 128], strides = [1, 1]} : vector<8x512xf32> to vector<8x128xf32>
    %1218 = math.tanh %1217 : vector<8x128xf32>
    %1219 = vector.extract_strided_slice %1200 {offsets = [0, 384], sizes = [8, 128], strides = [1, 1]} : vector<8x512xf32> to vector<8x128xf32>
    %cst_470 = arith.constant 5.000000e-01 : f32
    %1220 = vector.broadcast %cst_470 : f32 to vector<8x128xf32>
    %1221 = arith.mulf %1220, %1219 : vector<8x128xf32>
    %1222 = math.tanh %1221 : vector<8x128xf32>
    %cst_471 = arith.constant 5.000000e-01 : f32
    %1223 = vector.broadcast %cst_471 : f32 to vector<8x128xf32>
    %1224 = arith.mulf %1223, %1222 : vector<8x128xf32>
    %cst_472 = arith.constant 5.000000e-01 : f32
    %1225 = vector.broadcast %cst_472 : f32 to vector<8x128xf32>
    %1226 = arith.addf %1224, %1225 : vector<8x128xf32>
    %1227 = arith.mulf %1216, %1192 : vector<8x128xf32>
    %1228 = arith.mulf %1208, %1218 : vector<8x128xf32>
    %1229 = arith.addf %1227, %1228 : vector<8x128xf32>
    %1230 = math.tanh %1229 : vector<8x128xf32>
    %1231 = arith.mulf %1226, %1230 : vector<8x128xf32>
    %c33_i32 = arith.constant 33 : i32
    %1232 = arith.index_cast %c33_i32 : i32 to index
    %c0_473 = arith.constant 0 : index
    %c0_474 = arith.constant 0 : index
    %1233 = vector.load %arg10[%1232, %c0_473, %c0_474] : memref<36x8x512xf32, #tpu.memory_space<vmem>>, vector<1x8x512xf32>
    %1234 = vector.shape_cast %1233 : vector<1x8x512xf32> to vector<8x512xf32>
    %c0_475 = arith.constant 0 : index
    %c0_476 = arith.constant 0 : index
    %1235 = vector.load %arg3[%c0_475, %c0_476] : memref<128x512xf32, #tpu.memory_space<vmem>>, vector<128x512xf32>
    %cst_477 = arith.constant dense<0.000000e+00> : vector<8x512xf32>
    %1236 = tpu.matmul %1231, %1235, %cst_477 {dimension_numbers = #tpu.dot_dimension_numbers<[1], [0], [0], [1], [0, 0, 1, 1], [], []>} : vector<8x128xf32>, vector<128x512xf32>, vector<8x512xf32> -> vector<8x512xf32>
    %1237 = arith.addf %1234, %1236 : vector<8x512xf32>
    %1238 = vector.extract_strided_slice %1237 {offsets = [0, 0], sizes = [8, 128], strides = [1, 1]} : vector<8x512xf32> to vector<8x128xf32>
    %cst_478 = arith.constant 5.000000e-01 : f32
    %1239 = vector.broadcast %cst_478 : f32 to vector<8x128xf32>
    %1240 = arith.mulf %1239, %1238 : vector<8x128xf32>
    %1241 = math.tanh %1240 : vector<8x128xf32>
    %cst_479 = arith.constant 5.000000e-01 : f32
    %1242 = vector.broadcast %cst_479 : f32 to vector<8x128xf32>
    %1243 = arith.mulf %1242, %1241 : vector<8x128xf32>
    %cst_480 = arith.constant 5.000000e-01 : f32
    %1244 = vector.broadcast %cst_480 : f32 to vector<8x128xf32>
    %1245 = arith.addf %1243, %1244 : vector<8x128xf32>
    %1246 = vector.extract_strided_slice %1237 {offsets = [0, 128], sizes = [8, 128], strides = [1, 1]} : vector<8x512xf32> to vector<8x128xf32>
    %cst_481 = arith.constant 5.000000e-01 : f32
    %1247 = vector.broadcast %cst_481 : f32 to vector<8x128xf32>
    %1248 = arith.mulf %1247, %1246 : vector<8x128xf32>
    %1249 = math.tanh %1248 : vector<8x128xf32>
    %cst_482 = arith.constant 5.000000e-01 : f32
    %1250 = vector.broadcast %cst_482 : f32 to vector<8x128xf32>
    %1251 = arith.mulf %1250, %1249 : vector<8x128xf32>
    %cst_483 = arith.constant 5.000000e-01 : f32
    %1252 = vector.broadcast %cst_483 : f32 to vector<8x128xf32>
    %1253 = arith.addf %1251, %1252 : vector<8x128xf32>
    %1254 = vector.extract_strided_slice %1237 {offsets = [0, 256], sizes = [8, 128], strides = [1, 1]} : vector<8x512xf32> to vector<8x128xf32>
    %1255 = math.tanh %1254 : vector<8x128xf32>
    %1256 = vector.extract_strided_slice %1237 {offsets = [0, 384], sizes = [8, 128], strides = [1, 1]} : vector<8x512xf32> to vector<8x128xf32>
    %cst_484 = arith.constant 5.000000e-01 : f32
    %1257 = vector.broadcast %cst_484 : f32 to vector<8x128xf32>
    %1258 = arith.mulf %1257, %1256 : vector<8x128xf32>
    %1259 = math.tanh %1258 : vector<8x128xf32>
    %cst_485 = arith.constant 5.000000e-01 : f32
    %1260 = vector.broadcast %cst_485 : f32 to vector<8x128xf32>
    %1261 = arith.mulf %1260, %1259 : vector<8x128xf32>
    %cst_486 = arith.constant 5.000000e-01 : f32
    %1262 = vector.broadcast %cst_486 : f32 to vector<8x128xf32>
    %1263 = arith.addf %1261, %1262 : vector<8x128xf32>
    %1264 = arith.mulf %1253, %1229 : vector<8x128xf32>
    %1265 = arith.mulf %1245, %1255 : vector<8x128xf32>
    %1266 = arith.addf %1264, %1265 : vector<8x128xf32>
    %1267 = math.tanh %1266 : vector<8x128xf32>
    %1268 = arith.mulf %1263, %1267 : vector<8x128xf32>
    %c34_i32 = arith.constant 34 : i32
    %1269 = arith.index_cast %c34_i32 : i32 to index
    %c0_487 = arith.constant 0 : index
    %c0_488 = arith.constant 0 : index
    %1270 = vector.load %arg10[%1269, %c0_487, %c0_488] : memref<36x8x512xf32, #tpu.memory_space<vmem>>, vector<1x8x512xf32>
    %1271 = vector.shape_cast %1270 : vector<1x8x512xf32> to vector<8x512xf32>
    %c0_489 = arith.constant 0 : index
    %c0_490 = arith.constant 0 : index
    %1272 = vector.load %arg3[%c0_489, %c0_490] : memref<128x512xf32, #tpu.memory_space<vmem>>, vector<128x512xf32>
    %cst_491 = arith.constant dense<0.000000e+00> : vector<8x512xf32>
    %1273 = tpu.matmul %1268, %1272, %cst_491 {dimension_numbers = #tpu.dot_dimension_numbers<[1], [0], [0], [1], [0, 0, 1, 1], [], []>} : vector<8x128xf32>, vector<128x512xf32>, vector<8x512xf32> -> vector<8x512xf32>
    %1274 = arith.addf %1271, %1273 : vector<8x512xf32>
    %1275 = vector.extract_strided_slice %1274 {offsets = [0, 0], sizes = [8, 128], strides = [1, 1]} : vector<8x512xf32> to vector<8x128xf32>
    %cst_492 = arith.constant 5.000000e-01 : f32
    %1276 = vector.broadcast %cst_492 : f32 to vector<8x128xf32>
    %1277 = arith.mulf %1276, %1275 : vector<8x128xf32>
    %1278 = math.tanh %1277 : vector<8x128xf32>
    %cst_493 = arith.constant 5.000000e-01 : f32
    %1279 = vector.broadcast %cst_493 : f32 to vector<8x128xf32>
    %1280 = arith.mulf %1279, %1278 : vector<8x128xf32>
    %cst_494 = arith.constant 5.000000e-01 : f32
    %1281 = vector.broadcast %cst_494 : f32 to vector<8x128xf32>
    %1282 = arith.addf %1280, %1281 : vector<8x128xf32>
    %1283 = vector.extract_strided_slice %1274 {offsets = [0, 128], sizes = [8, 128], strides = [1, 1]} : vector<8x512xf32> to vector<8x128xf32>
    %cst_495 = arith.constant 5.000000e-01 : f32
    %1284 = vector.broadcast %cst_495 : f32 to vector<8x128xf32>
    %1285 = arith.mulf %1284, %1283 : vector<8x128xf32>
    %1286 = math.tanh %1285 : vector<8x128xf32>
    %cst_496 = arith.constant 5.000000e-01 : f32
    %1287 = vector.broadcast %cst_496 : f32 to vector<8x128xf32>
    %1288 = arith.mulf %1287, %1286 : vector<8x128xf32>
    %cst_497 = arith.constant 5.000000e-01 : f32
    %1289 = vector.broadcast %cst_497 : f32 to vector<8x128xf32>
    %1290 = arith.addf %1288, %1289 : vector<8x128xf32>
    %1291 = vector.extract_strided_slice %1274 {offsets = [0, 256], sizes = [8, 128], strides = [1, 1]} : vector<8x512xf32> to vector<8x128xf32>
    %1292 = math.tanh %1291 : vector<8x128xf32>
    %1293 = vector.extract_strided_slice %1274 {offsets = [0, 384], sizes = [8, 128], strides = [1, 1]} : vector<8x512xf32> to vector<8x128xf32>
    %cst_498 = arith.constant 5.000000e-01 : f32
    %1294 = vector.broadcast %cst_498 : f32 to vector<8x128xf32>
    %1295 = arith.mulf %1294, %1293 : vector<8x128xf32>
    %1296 = math.tanh %1295 : vector<8x128xf32>
    %cst_499 = arith.constant 5.000000e-01 : f32
    %1297 = vector.broadcast %cst_499 : f32 to vector<8x128xf32>
    %1298 = arith.mulf %1297, %1296 : vector<8x128xf32>
    %cst_500 = arith.constant 5.000000e-01 : f32
    %1299 = vector.broadcast %cst_500 : f32 to vector<8x128xf32>
    %1300 = arith.addf %1298, %1299 : vector<8x128xf32>
    %1301 = arith.mulf %1290, %1266 : vector<8x128xf32>
    %1302 = arith.mulf %1282, %1292 : vector<8x128xf32>
    %1303 = arith.addf %1301, %1302 : vector<8x128xf32>
    %1304 = math.tanh %1303 : vector<8x128xf32>
    %1305 = arith.mulf %1300, %1304 : vector<8x128xf32>
    %c35_i32 = arith.constant 35 : i32
    %1306 = arith.index_cast %c35_i32 : i32 to index
    %c0_501 = arith.constant 0 : index
    %c0_502 = arith.constant 0 : index
    %1307 = vector.load %arg10[%1306, %c0_501, %c0_502] : memref<36x8x512xf32, #tpu.memory_space<vmem>>, vector<1x8x512xf32>
    %1308 = vector.shape_cast %1307 : vector<1x8x512xf32> to vector<8x512xf32>
    %c0_503 = arith.constant 0 : index
    %c0_504 = arith.constant 0 : index
    %1309 = vector.load %arg3[%c0_503, %c0_504] : memref<128x512xf32, #tpu.memory_space<vmem>>, vector<128x512xf32>
    %cst_505 = arith.constant dense<0.000000e+00> : vector<8x512xf32>
    %1310 = tpu.matmul %1305, %1309, %cst_505 {dimension_numbers = #tpu.dot_dimension_numbers<[1], [0], [0], [1], [0, 0, 1, 1], [], []>} : vector<8x128xf32>, vector<128x512xf32>, vector<8x512xf32> -> vector<8x512xf32>
    %1311 = arith.addf %1308, %1310 : vector<8x512xf32>
    %1312 = vector.extract_strided_slice %1311 {offsets = [0, 0], sizes = [8, 128], strides = [1, 1]} : vector<8x512xf32> to vector<8x128xf32>
    %cst_506 = arith.constant 5.000000e-01 : f32
    %1313 = vector.broadcast %cst_506 : f32 to vector<8x128xf32>
    %1314 = arith.mulf %1313, %1312 : vector<8x128xf32>
    %1315 = math.tanh %1314 : vector<8x128xf32>
    %cst_507 = arith.constant 5.000000e-01 : f32
    %1316 = vector.broadcast %cst_507 : f32 to vector<8x128xf32>
    %1317 = arith.mulf %1316, %1315 : vector<8x128xf32>
    %cst_508 = arith.constant 5.000000e-01 : f32
    %1318 = vector.broadcast %cst_508 : f32 to vector<8x128xf32>
    %1319 = arith.addf %1317, %1318 : vector<8x128xf32>
    %1320 = vector.extract_strided_slice %1311 {offsets = [0, 128], sizes = [8, 128], strides = [1, 1]} : vector<8x512xf32> to vector<8x128xf32>
    %cst_509 = arith.constant 5.000000e-01 : f32
    %1321 = vector.broadcast %cst_509 : f32 to vector<8x128xf32>
    %1322 = arith.mulf %1321, %1320 : vector<8x128xf32>
    %1323 = math.tanh %1322 : vector<8x128xf32>
    %cst_510 = arith.constant 5.000000e-01 : f32
    %1324 = vector.broadcast %cst_510 : f32 to vector<8x128xf32>
    %1325 = arith.mulf %1324, %1323 : vector<8x128xf32>
    %cst_511 = arith.constant 5.000000e-01 : f32
    %1326 = vector.broadcast %cst_511 : f32 to vector<8x128xf32>
    %1327 = arith.addf %1325, %1326 : vector<8x128xf32>
    %1328 = vector.extract_strided_slice %1311 {offsets = [0, 256], sizes = [8, 128], strides = [1, 1]} : vector<8x512xf32> to vector<8x128xf32>
    %1329 = math.tanh %1328 : vector<8x128xf32>
    %1330 = vector.extract_strided_slice %1311 {offsets = [0, 384], sizes = [8, 128], strides = [1, 1]} : vector<8x512xf32> to vector<8x128xf32>
    %cst_512 = arith.constant 5.000000e-01 : f32
    %1331 = vector.broadcast %cst_512 : f32 to vector<8x128xf32>
    %1332 = arith.mulf %1331, %1330 : vector<8x128xf32>
    %1333 = math.tanh %1332 : vector<8x128xf32>
    %cst_513 = arith.constant 5.000000e-01 : f32
    %1334 = vector.broadcast %cst_513 : f32 to vector<8x128xf32>
    %1335 = arith.mulf %1334, %1333 : vector<8x128xf32>
    %cst_514 = arith.constant 5.000000e-01 : f32
    %1336 = vector.broadcast %cst_514 : f32 to vector<8x128xf32>
    %1337 = arith.addf %1335, %1336 : vector<8x128xf32>
    %1338 = arith.mulf %1327, %1303 : vector<8x128xf32>
    %1339 = arith.mulf %1319, %1329 : vector<8x128xf32>
    %1340 = arith.addf %1338, %1339 : vector<8x128xf32>
    %1341 = math.tanh %1340 : vector<8x128xf32>
    %1342 = arith.mulf %1337, %1341 : vector<8x128xf32>
    %c36_i32 = arith.constant 36 : i32
    %c0_515 = arith.constant 0 : index
    %c0_516 = arith.constant 0 : index
    %1343 = vector.load %arg5[%c0_515, %c0_516] : memref<128x128xf32, #tpu.memory_space<vmem>>, vector<128x128xf32>
    %cst_517 = arith.constant dense<0.000000e+00> : vector<8x128xf32>
    %1344 = tpu.matmul %1342, %1343, %cst_517 {dimension_numbers = #tpu.dot_dimension_numbers<[1], [0], [0], [1], [0, 0, 1, 1], [], []>} : vector<8x128xf32>, vector<128x128xf32>, vector<8x128xf32> -> vector<8x128xf32>
    %c0_518 = arith.constant 0 : index
    %c0_519 = arith.constant 0 : index
    %1345 = vector.load %arg6[%c0_518, %c0_519] : memref<1x128xf32, #tpu.memory_space<vmem>>, vector<1x128xf32>
    %1346 = vector.broadcast %1345 : vector<1x128xf32> to vector<8x128xf32>
    %1347 = arith.addf %1344, %1346 : vector<8x128xf32>
    %cst_520 = arith.constant 0.000000e+00 : f32
    %1348 = vector.broadcast %cst_520 : f32 to vector<8x128xf32>
    %1349 = arith.maximumf %1347, %1348 : vector<8x128xf32>
    %c0_521 = arith.constant 0 : index
    %c0_522 = arith.constant 0 : index
    %1350 = vector.load %arg7[%c0_521, %c0_522] : memref<1x128xf32, #tpu.memory_space<vmem>>, vector<1x128xf32>
    %1351 = vector.broadcast %1350 : vector<1x128xf32> to vector<8x128xf32>
    %1352 = arith.mulf %1349, %1351 : vector<8x128xf32>
    %cst_523 = arith.constant dense<0.000000e+00> : vector<8xf32>
    %1353 = vector.multi_reduction <add>, %1352, %cst_523 [1] : vector<8x128xf32> to vector<8xf32>
    %1354 = vector.shape_cast %1353 : vector<8xf32> to vector<8x1xf32>
    %c0_524 = arith.constant 0 : index
    %c0_525 = arith.constant 0 : index
    %1355 = vector.load %arg8[%c0_524, %c0_525] : memref<1x1xf32, #tpu.memory_space<vmem>>, vector<1x1xf32>
    %1356 = vector.broadcast %1355 : vector<1x1xf32> to vector<8x1xf32>
    %1357 = arith.addf %1354, %1356 : vector<8x1xf32>
    %1358 = vector.shape_cast %1357 : vector<8x1xf32> to vector<8x1xf32>
    %1359 = vector.broadcast %1358 : vector<8x1xf32> to vector<8x128xf32>
    %c0_526 = arith.constant 0 : index
    %c0_527 = arith.constant 0 : index
    %1360 = vector.load %arg9[%c0_526, %c0_527] : memref<8x128xf32, #tpu.memory_space<vmem>>, vector<8x128xf32>
    tpu.vector_store %arg9[%c0_526, %c0_527], %1359 {strides = array<i32>} : memref<8x128xf32, #tpu.memory_space<vmem>>, vector<8x128xf32>,
    return
  }
  func.func @transform_0(%arg0: i32) -> (i32, i32, i32) {
    %c0_i32 = arith.constant 0 : i32
    %c0_i32_0 = arith.constant 0 : i32
    %c0_i32_1 = arith.constant 0 : i32
    return %c0_i32, %arg0, %c0_i32_0 : i32, i32, i32
  }
  func.func @transform_1(%arg0: i32) -> (i32, i32) {
    %c0_i32 = arith.constant 0 : i32
    %c0_i32_0 = arith.constant 0 : i32
    %c0_i32_1 = arith.constant 0 : i32
    return %c0_i32, %c0_i32_0 : i32, i32
  }
  func.func @transform_2(%arg0: i32) -> (i32, i32) {
    %c0_i32 = arith.constant 0 : i32
    %c0_i32_0 = arith.constant 0 : i32
    %c0_i32_1 = arith.constant 0 : i32
    return %c0_i32, %c0_i32_0 : i32, i32
  }
  func.func @transform_3(%arg0: i32) -> (i32, i32) {
    %c0_i32 = arith.constant 0 : i32
    %c0_i32_0 = arith.constant 0 : i32
    %c0_i32_1 = arith.constant 0 : i32
    return %c0_i32, %c0_i32_0 : i32, i32
  }
  func.func @transform_4(%arg0: i32) -> (i32, i32) {
    %c0_i32 = arith.constant 0 : i32
    %c0_i32_0 = arith.constant 0 : i32
    %c0_i32_1 = arith.constant 0 : i32
    return %c0_i32, %c0_i32_0 : i32, i32
  }
  func.func @transform_5(%arg0: i32) -> (i32, i32) {
    %c0_i32 = arith.constant 0 : i32
    %c0_i32_0 = arith.constant 0 : i32
    %c0_i32_1 = arith.constant 0 : i32
    return %c0_i32, %c0_i32_0 : i32, i32
  }
  func.func @transform_6(%arg0: i32) -> (i32, i32) {
    %c0_i32 = arith.constant 0 : i32
    %c0_i32_0 = arith.constant 0 : i32
    %c0_i32_1 = arith.constant 0 : i32
    return %c0_i32, %c0_i32_0 : i32, i32
  }
  func.func @transform_7(%arg0: i32) -> (i32, i32) {
    %c0_i32 = arith.constant 0 : i32
    %c0_i32_0 = arith.constant 0 : i32
    %c0_i32_1 = arith.constant 0 : i32
    return %c0_i32, %c0_i32_0 : i32, i32
  }
  func.func @transform_8(%arg0: i32) -> (i32, i32) {
    %c0_i32 = arith.constant 0 : i32
    %c0_i32_0 = arith.constant 0 : i32
    return %arg0, %c0_i32 : i32, i32
  }
}

</mosaic_0001>

<bundles_post_ra>
// kernel: tpu_custom_call.1
= control target key start
LH: loop header
LB: loop body
LE: loop exit
PB: predicated region body
PF: predicated region fallthrough
CT: control target
= control target key end

     0   :  { %s12733_s0 = inlined_call_operand.vmem [shape: f32[36,8,8], index: 0, kind: input, shape index: {}]   ;;  %s12734_s1 = inlined_call_operand.vmem [shape: f32[8,512], index: 1, kind: input, shape index: {}]   ;;  %s12735_s2 = inlined_call_operand.hbm [shape: f32[128,512], index: 2, kind: input, shape index: {}]   ;;  %s12736_s3 = inlined_call_operand.vmem [shape: f32[1,512], index: 3, kind: input, shape index: {}]   ;;  %s12737_s4 = inlined_call_operand.vmem [shape: f32[128,128], index: 4, kind: input, shape index: {}]   ;;  %s12738_s5 = inlined_call_operand.vmem [shape: f32[1,128], index: 5, kind: input, shape index: {}]   ;;  %s12739_s6 = inlined_call_operand.vmem [shape: f32[1,128], index: 6, kind: input, shape index: {}]   ;;  %s12740_s7 = inlined_call_operand.<no memory space> [shape: f32[1,1], index: 7, kind: input, shape index: {}]   ;;  %s12741_s8 = inlined_call_operand.hbm [shape: f32[8,128], index: 8, kind: output, shape index: {}]  }
   0x1   :  { %v13_v0 = vstv %s12740_s7 }
   0x2   :  { %14 = vst [vmem:[#allocation3] sm:$0x1] %v13_v0 }
   0x3   :  { %15 = vsyncpa [#allocation5], 0 }
   0x4   :  { %16 = vsyncpa [#allocation6], 0  ;;  %s8192_s29 = smov [#allocation4]  }
   0x5   :  { %s26_s30 = sshll.u32 %s8192_s29, 4  ;;  %s27_s30 = int_to_ptr.vmem [resolvable:$true] %s26_s30 }
   0x6   :  { %s8156_s9 = scalar_lea.vmem %s27_s30, 8192  ;;  %p8161_p1 = scmp.lt.s32.totalorder %s27_s30, %s27_s30 }
   0x7   :  { %p8157_p0 = scmp.ne.s32.totalorder %s27_s30, %s8156_s9  ;;  %p8162_p2 = scmp.lt.s32.totalorder %s8156_s9, %s8156_s9 }
   0x9   :  { %p8163_p3 = por %p8162_p2, %p8161_p1 }
   0xb   :  { %p8164_p4 = pnand %p8163_p3, %p8157_p0 }
   0xd   :  { %8167 = shalt.err (!%p8164_p4)
}
   0xe   :  { %s8193_s10 = smov 512   ;;  %s8194_s11 = smov 32  }
   0xf   :  { %32 = dma.hbm_to_vmem [thread:$0]  %s12735_s2, 8192, %s27_s30, [#allocation5], %s8193_s10, %s8193_s10, %s8194_s11  }
  0x10   :  { %8188 = dma.done.wait [#allocation5], 8192  }
  0x11   :  { %8189 = vsyncadd [#allocation5], 4294959104  ;;  %v12742_v1 = vmov 0.0   ;;  %v83_v2 = vld [vmem:[%s12734_s1 + $0x8] sm:$0xff]  ;;  %v82_v3 = vld [vmem:[%s12734_s1] sm:$0xff]  ;;  %vm108_vm0 = vcmask 64512  }
  0x12   :  { %281 = vmatprep.mubr.f32.mxu0 %v12742_v1  ;;  %473 = vmatprep.mubr.f32.mxu1 %v12742_v1  ;;  %v46_v4 = vld [vmem:[%s12733_s0] sm:$0xff]  ;;  %v85_v6 = vld [vmem:[%s12734_s1 + $0x18] sm:$0xff]  ;;  %v84_v7 = vld [vmem:[%s12734_s1 + $0x10] sm:$0xff]  ;;  %vm8196_vm1 = vmmov 0   ;;  %s8198_s25 = smov [#allocation7]  }
  0x13   :  { %247 = vmatprep.subr.mxu0 %v83_v2  ;;  %7330 = vmatprep.subr.mxu1 %v83_v2  ;;  %v8264_v5 = vld [vmem:[%s12733_s0 + $0x100] sm:$0xff]  ;;  %v47_v8 = vld [vmem:[%s12733_s0 + $0x8] sm:$0xff]  ;;  %v48_v14 = vld [vmem:[%s12733_s0 + $0x10] sm:$0xff]  ;;  %s7194_s26 = sshll.u32 %s8198_s25, 4  ;;  %s7195_s26 = int_to_ptr.vmem [resolvable:$true] %s7194_s26 }
  0x14   :  { %248 = vmatpush1.msra.mxu0 %v82_v3  ;;  %7331 = vmatpush1.msra.mxu1 %v82_v3  ;;  %v8282_v9 = vld [vmem:[%s12733_s0 + $0x108] sm:$0xff]  ;;  %v8284_v10 = vld [vmem:[#allocation4 + $0x1f8] sm:$0xff]  ;;  %v8306_v15 = vld [vmem:[%s12733_s0 + $0x110] sm:$0xff]  ;;  %p8173_p6 = scmp.lt.s32.totalorder %s7195_s26, %s7195_s26 }
  0x15   :  { %7203 = vmatmul.mubr.msk.f32.vlgmr.msra.gmra.mxu0 %vm108_vm0, %v46_v4  ;;  %7235 = vmatmul.mubr.msk.f32.vlgmr.msra.gmra.mxu1 %vm108_vm0, %v8264_v5  ;;  %v8287_v11 = vld [vmem:[#allocation4 + $0x1e8] sm:$0xff]  ;;  %v8291_v12 = vld [vmem:[#allocation4 + $0x1e0] sm:$0xff]  ;;  %v49_v18 = vld [vmem:[%s12733_s0 + $0x18] sm:$0xff] }
  0x16   :  { %528 = vmatprep.subr.mxu1 %v85_v6  ;;  %287 = vmatprep.mubr.f32.mxu0 %v12742_v1  ;;  %v8296_v13 = vld [vmem:[#allocation4 + $0x1c8] sm:$0xff]  ;;  %v8310_v16 = vld [vmem:[#allocation4 + $0x1c0] sm:$0xff]  ;;  %v8325_v19 = vld [vmem:[%s12733_s0 + $0x118] sm:$0xff] }
  0x17   :  { %529 = vmatpush1.msra.mxu1 %v84_v7  ;;  %479 = vmatprep.mubr.f32.mxu1 %v12742_v1  ;;  %v8315_v17 = vld [vmem:[#allocation4 + $0x1a8] sm:$0xff]  ;;  %v8329_v20 = vld [vmem:[#allocation4 + $0x1a0] sm:$0xff]  ;;  %v8341_v23 = vld [vmem:[#allocation4 + $0x1f0] sm:$0xff] }
  0x18   :  { %1062 = vmatprep.subr.mxu1 %v8284_v10  ;;  %991 = vmatprep.subr.mxu0 %v8287_v11  ;;  %v8334_v21 = vld [vmem:[#allocation4 + $0x188] sm:$0xff]  ;;  %v50_v22 = vld [vmem:[%s12733_s0 + $0x20] sm:$0xff]  ;;  %v8349_v25 = vld [vmem:[#allocation4 + $0x1d0] sm:$0xff] }
  0x19   :  { %7204 = vmatmul.mubr.msk.f32.gmra.mxu0 %vm108_vm0, %v47_v8  ;;  %7236 = vmatmul.mubr.msk.f32.gmra.mxu1 %vm108_vm0, %v8282_v9  ;;  %v8344_v24 = vld [vmem:[#allocation4 + $0x1d8] sm:$0xff]  ;;  %v8351_v26 = vld [vmem:[#allocation4 + $0x180] sm:$0xff]  ;;  %v8364_v29 = vld [vmem:[#allocation4 + $0x168] sm:$0xff] }
  0x1a   :  { %293 = vmatprep.mubr.f32.mxu0 %v12742_v1  ;;  %485 = vmatprep.mubr.f32.mxu1 %v12742_v1  ;;  %v51_v27 = vld [vmem:[%s12733_s0 + $0x28] sm:$0xff]  ;;  %v8361_v28 = vld [vmem:[#allocation4 + $0x1b8] sm:$0xff]  ;;  %v8368_v30 = vld [vmem:[#allocation4 + $0x1b0] sm:$0xff] }
  0x1b   :  { %992 = vmatpush1.msra.mxu0 %v8291_v12  ;;  %v8370_v31 = vld [vmem:[#allocation4 + $0x160] sm:$0xff]  ;;  %v52_v32 = vld [vmem:[%s12733_s0 + $0x30] sm:$0xff]  ;;  %v8380_v33 = vld [vmem:[#allocation4 + $0x198] sm:$0xff] }
  0x1c   :  { %993 = vmatprep.subr.mxu0 %v8296_v13  ;;  %v8383_v34 = vld [vmem:[#allocation4 + $0x148] sm:$0xff]  ;;  %v8387_v35 = vld [vmem:[#allocation4 + $0x190] sm:$0xff]  ;;  %v8389_v36 = vld [vmem:[#allocation4 + $0x140] sm:$0xff] }
  0x1d   :  { %7205 = vmatmul.mubr.msk.f32.gmra.mxu0 %vm108_vm0, %v48_v14  ;;  %7237 = vmatmul.mubr.msk.f32.gmra.mxu1 %vm108_vm0, %v8306_v15  ;;  %v53_v37 = vld [vmem:[%s12733_s0 + $0x38] sm:$0xff]  ;;  %v8402_v39 = vld [vmem:[#allocation4 + $0x128] sm:$0xff]  ;;  %v8408_v41 = vld [vmem:[#allocation4 + $0x120] sm:$0xff] }
  0x1e   :  { %299 = vmatprep.mubr.f32.mxu0 %v12742_v1  ;;  %491 = vmatprep.mubr.f32.mxu1 %v12742_v1  ;;  %v8399_v38 = vld [vmem:[#allocation4 + $0x178] sm:$0xff]  ;;  %v8406_v40 = vld [vmem:[#allocation4 + $0x170] sm:$0xff]  ;;  %v8421_v44 = vld [vmem:[#allocation4 + $0x108] sm:$0xff] }
  0x1f   :  { %994 = vmatpush1.msra.mxu0 %v8310_v16  ;;  %v54_v42 = vld [vmem:[%s12733_s0 + $0x40] sm:$0xff]  ;;  %v8425_v45 = vld [vmem:[#allocation4 + $0x150] sm:$0xff]  ;;  %v55_v47 = vld [vmem:[%s12733_s0 + $0x48] sm:$0xff] }
  0x20   :  { %995 = vmatprep.subr.mxu0 %v8315_v17  ;;  %v8418_v43 = vld [vmem:[#allocation4 + $0x158] sm:$0xff]  ;;  %v8427_v46 = vld [vmem:[#allocation4 + $0x100] sm:$0xff]  ;;  %v8440_v49 = vld [vmem:[#allocation4 + $0xe8] sm:$0xff] }
  0x21   :  { %7206 = vmatmul.mubr.msk.f32.gmra.mxu0 %vm108_vm0, %v49_v18  ;;  %7238 = vmatmul.mubr.msk.f32.gmra.mxu1 %vm108_vm0, %v8325_v19  ;;  %v8437_v48 = vld [vmem:[#allocation4 + $0x138] sm:$0xff]  ;;  %v8444_v50 = vld [vmem:[#allocation4 + $0x130] sm:$0xff]  ;;  %v8446_v51 = vld [vmem:[#allocation4 + $0xe0] sm:$0xff] }
  0x22   :  { %305 = vmatprep.mubr.f32.mxu0 %v12742_v1  ;;  %562 = vmatprep.mubr.f32.mxu1 %v12742_v1  ;;  %v56_v52 = vld [vmem:[%s12733_s0 + $0x50] sm:$0xff]  ;;  %v8456_v53 = vld [vmem:[#allocation4 + $0x118] sm:$0xff]  ;;  %v8465_v56 = vld [vmem:[#allocation4 + $0xc0] sm:$0xff] }
  0x23   :  { %996 = vmatpush1.msra.mxu0 %v8329_v20  ;;  %v8459_v54 = vld [vmem:[#allocation4 + $0xc8] sm:$0xff]  ;;  %v8463_v55 = vld [vmem:[#allocation4 + $0x110] sm:$0xff]  ;;  %v8475_v58 = vld [vmem:[#allocation4 + $0xf8] sm:$0xff] }
  0x24   :  { %997 = vmatprep.subr.mxu0 %v8334_v21  ;;  %v57_v57 = vld [vmem:[%s12733_s0 + $0x58] sm:$0xff]  ;;  %v8478_v59 = vld [vmem:[#allocation4 + $0xa8] sm:$0xff]  ;;  %v8484_v61 = vld [vmem:[#allocation4 + $0xa0] sm:$0xff] }
  0x25   :  { %7207 = vmatmul.mubr.msk.f32.gmra.mxu0 %vm108_vm0, %v50_v22  ;;  %7239 = vmatmul.mubr.msk.f32.vlgmr.msra.gmra.mxu1 %vm108_vm0, %v46_v4  ;;  %v8482_v60 = vld [vmem:[#allocation4 + $0xf0] sm:$0xff]  ;;  %v58_v62 = vld [vmem:[%s12733_s0 + $0x60] sm:$0xff]  ;;  %v8497_v0 = vld [vmem:[#allocation4 + $0x88] sm:$0xff] }
  0x26   :  { %1063 = vmatpush1.msra.mxu1 %v8341_v23  ;;  %311 = vmatprep.mubr.f32.mxu0 %v12742_v1  ;;  %v8494_v63 = vld [vmem:[#allocation4 + $0xd8] sm:$0xff]  ;;  %v8501_v2 = vld [vmem:[#allocation4 + $0xd0] sm:$0xff]  ;;  %v8503_v3 = vld [vmem:[#allocation4 + $0x80] sm:$0xff] }
  0x27   :  { %568 = vmatprep.mubr.f32.mxu1 %v12742_v1  ;;  %1064 = vmatprep.subr.mxu1 %v8344_v24  ;;  %13132 = vst [vmem:[#allocation10_spill] sm:$0xff] %v8494_v63  ;;  %13133 = vst [vmem:[#allocation11_spill] sm:$0xff] %v8501_v2  ;;  %v59_v4 = vld [vmem:[%s12733_s0 + $0x68] sm:$0xff]  ;;  %v8513_v6 = vld [vmem:[#allocation4 + $0xb8] sm:$0xff] }
  0x28   :  { %1065 = vmatpush1.msra.mxu1 %v8349_v25  ;;  %998 = vmatpush1.msra.mxu0 %v8351_v26  ;;  %13134 = vst [vmem:[#allocation12_spill] sm:$0xff] %v8513_v6  ;;  %v8516_v7 = vld [vmem:[#allocation4 + $0x68] sm:$0xff] }
  0x29   :  { %7208 = vmatmul.mubr.msk.f32.gmra.mxu0 %vm108_vm0, %v51_v27  ;;  %7240 = vmatmul.mubr.msk.f32.gmra.mxu1 %vm108_vm0, %v47_v8  ;;  %v8520_v8 = vld [vmem:[#allocation4 + $0xb0] sm:$0xff] }
  0x2a   :  { %317 = vmatprep.mubr.f32.mxu0 %v12742_v1  ;;  %574 = vmatprep.mubr.f32.mxu1 %v12742_v1  ;;  %13135 = vst [vmem:[#allocation13_spill] sm:$0xff] %v8520_v8 }
  0x2b   :  { %1066 = vmatprep.subr.mxu1 %v8361_v28  ;;  %999 = vmatprep.subr.mxu0 %v8364_v29 }
  0x2c   :  { %1067 = vmatpush1.msra.mxu1 %v8368_v30  ;;  %1000 = vmatpush1.msra.mxu0 %v8370_v31 }
  0x2d   :  { %7209 = vmatmul.mubr.msk.f32.gmra.mxu0 %vm108_vm0, %v52_v32  ;;  %7241 = vmatmul.mubr.msk.f32.gmra.mxu1 %vm108_vm0, %v48_v14  ;;  %v8522_v14 = vld [vmem:[#allocation4 + $0x60] sm:$0xff] }
  0x2e   :  { %323 = vmatprep.mubr.f32.mxu0 %v12742_v1  ;;  %580 = vmatprep.mubr.f32.mxu1 %v12742_v1 }
  0x2f   :  { %1068 = vmatprep.subr.mxu1 %v8380_v33  ;;  %1001 = vmatprep.subr.mxu0 %v8383_v34 }
  0x30   :  { %1069 = vmatpush1.msra.mxu1 %v8387_v35  ;;  %1002 = vmatpush1.msra.mxu0 %v8389_v36 }
  0x31   :  { %7210 = vmatmul.mubr.msk.f32.gmra.mxu0 %vm108_vm0, %v53_v37  ;;  %7242 = vmatmul.mubr.msk.f32.gmra.mxu1 %vm108_vm0, %v49_v18  ;;  %v60_v18 = vld [vmem:[%s12733_s0 + $0x70] sm:$0xff] }
  0x32   :  { %329 = vmatprep.mubr.f32.mxu0 %v12742_v1  ;;  %586 = vmatprep.mubr.f32.mxu1 %v12742_v1 }
  0x33   :  { %1070 = vmatprep.subr.mxu1 %v8399_v38  ;;  %1003 = vmatprep.subr.mxu0 %v8402_v39 }
  0x34   :  { %1071 = vmatpush1.msra.mxu1 %v8406_v40  ;;  %1004 = vmatpush1.msra.mxu0 %v8408_v41 }
  0x35   :  { %7211 = vmatmul.mubr.msk.f32.gmra.mxu0 %vm108_vm0, %v54_v42  ;;  %7243 = vmatmul.mubr.msk.f32.gmra.mxu1 %vm108_vm0, %v50_v22  ;;  %v8532_v22 = vld [vmem:[#allocation4 + $0x98] sm:$0xff] }
  0x36   :  { %335 = vmatprep.mubr.f32.mxu0 %v12742_v1  ;;  %592 = vmatprep.mubr.f32.mxu1 %v12742_v1  ;;  %13136 = vst [vmem:[#allocation14_spill] sm:$0xff] %v8532_v22 }
  0x37   :  { %1072 = vmatprep.subr.mxu1 %v8418_v43  ;;  %1005 = vmatprep.subr.mxu0 %v8421_v44 }
  0x38   :  { %1073 = vmatpush1.msra.mxu1 %v8425_v45  ;;  %1006 = vmatpush1.msra.mxu0 %v8427_v46 }
  0x39   :  { %7212 = vmatmul.mubr.msk.f32.gmra.mxu0 %vm108_vm0, %v55_v47  ;;  %7244 = vmatmul.mubr.msk.f32.gmra.mxu1 %vm108_vm0, %v51_v27  ;;  %v8535_v27 = vld [vmem:[#allocation4 + $0x48] sm:$0xff] }
  0x3a   :  { %341 = vmatprep.mubr.f32.mxu0 %v12742_v1  ;;  %598 = vmatprep.mubr.f32.mxu1 %v12742_v1 }
  0x3b   :  { %1074 = vmatprep.subr.mxu1 %v8437_v48  ;;  %1007 = vmatprep.subr.mxu0 %v8440_v49 }
  0x3c   :  { %1075 = vmatpush1.msra.mxu1 %v8444_v50  ;;  %1008 = vmatpush1.msra.mxu0 %v8446_v51 }
  0x3d   :  { %7213 = vmatmul.mubr.msk.f32.gmra.mxu0 %vm108_vm0, %v56_v52  ;;  %7245 = vmatmul.mubr.msk.f32.gmra.mxu1 %vm108_vm0, %v52_v32  ;;  %v8539_v32 = vld [vmem:[#allocation4 + $0x90] sm:$0xff] }
  0x3e   :  { %347 = vmatprep.mubr.f32.mxu0 %v12742_v1  ;;  %604 = vmatprep.mubr.f32.mxu1 %v12742_v1  ;;  %13137 = vst [vmem:[#allocation15_spill] sm:$0xff] %v8539_v32 }
  0x3f   :  { %1076 = vmatprep.subr.mxu1 %v8456_v53  ;;  %1009 = vmatprep.subr.mxu0 %v8459_v54 }
  0x40   :  { %1077 = vmatpush1.msra.mxu1 %v8463_v55  ;;  %1010 = vmatpush1.msra.mxu0 %v8465_v56 }
  0x41   :  { %7214 = vmatmul.mubr.msk.f32.gmra.mxu0 %vm108_vm0, %v57_v57  ;;  %7246 = vmatmul.mubr.msk.f32.gmra.mxu1 %vm108_vm0, %v53_v37  ;;  %v8541_v37 = vld [vmem:[#allocation4 + $0x40] sm:$0xff] }
  0x42   :  { %353 = vmatprep.mubr.f32.mxu0 %v12742_v1  ;;  %610 = vmatprep.mubr.f32.mxu1 %v12742_v1 }
  0x43   :  { %1078 = vmatprep.subr.mxu1 %v8475_v58  ;;  %1011 = vmatprep.subr.mxu0 %v8478_v59 }
  0x44   :  { %1079 = vmatpush1.msra.mxu1 %v8482_v60  ;;  %1012 = vmatpush1.msra.mxu0 %v8484_v61 }
  0x45   :  { %7215 = vmatmul.mubr.msk.f32.gmra.mxu0 %vm108_vm0, %v58_v62  ;;  %7247 = vmatmul.mubr.msk.f32.gmra.mxu1 %vm108_vm0, %v54_v42  ;;  %v61_v42 = vld [vmem:[%s12733_s0 + $0x78] sm:$0xff] }
  0x46   :  { %359 = vmatprep.mubr.f32.mxu0 %v12742_v1  ;;  %616 = vmatprep.mubr.f32.mxu1 %v12742_v1 }
  0x47   :  { %1080 = vmatprep.subr.mxu1 %v8494_v63  ;;  %1013 = vmatprep.subr.mxu0 %v8497_v0  ;;  %v8579_v63 = vld [vmem:[#allocation4 + $0x50] sm:$0xff] }
  0x48   :  { %1081 = vmatpush1.msra.mxu1 %v8501_v2  ;;  %1014 = vmatpush1.msra.mxu0 %v8503_v3  ;;  %v8577_v2 = vld [vmem:[#allocation4] sm:$0xff]  ;;  %13143 = vst [vmem:[#allocation20_spill] sm:$0xff] %v8579_v63 }
  0x49   :  { %7216 = vmatmul.mubr.msk.f32.gmra.mxu0 %vm108_vm0, %v59_v4  ;;  %7248 = vmatmul.mubr.msk.f32.gmra.mxu1 %vm108_vm0, %v55_v47  ;;  %v8552_v47 = vld [vmem:[#allocation4 + $0x28] sm:$0xff]  ;;  %13142 = vst [vmem:[#allocation19_spill] sm:$0xff] %v8577_v2 }
  0x4a   :  { %365 = vmatprep.mubr.f32.mxu0 %v12742_v1  ;;  %622 = vmatprep.mubr.f32.mxu1 %v12742_v1 }
  0x4b   :  { %1082 = vmatprep.subr.mxu1 %v8513_v6  ;;  %1015 = vmatprep.subr.mxu0 %v8516_v7  ;;  %v13140_v6 = vmov 0.0  }
  0x4c   :  { %1083 = vmatpush1.msra.mxu1 %v8520_v8  ;;  %1016 = vmatpush1.msra.mxu0 %v8522_v14  ;;  %v8560_v8 = vld [vmem:[#allocation4 + $0x70] sm:$0xff] }
  0x4d   :  { %7217 = vmatmul.mubr.msk.f32.gmra.mxu0 %vm108_vm0, %v60_v18  ;;  %7249 = vmatmul.mubr.msk.f32.gmra.mxu1 %vm108_vm0, %v56_v52  ;;  %v8554_v52 = vld [vmem:[#allocation4 + $0x78] sm:$0xff]  ;;  %13139 = vst [vmem:[#allocation17_spill] sm:$0xff] %v8560_v8 }
  0x4e   :  { %371 = vmatprep.mubr.f32.mxu0 %v12742_v1  ;;  %628 = vmatprep.mubr.f32.mxu1 %v12742_v1  ;;  %13138 = vst [vmem:[#allocation16_spill] sm:$0xff] %v8554_v52  ;;  %v8558_v1 = vld [vmem:[#allocation4 + $0x20] sm:$0xff] }
  0x4f   :  { %1084 = vmatprep.subr.mxu1 %v8532_v22  ;;  %1017 = vmatprep.subr.mxu0 %v8535_v27  ;;  %v8573_v22 = vld [vmem:[#allocation4 + $0x58] sm:$0xff] }
  0x50   :  { %1085 = vmatpush1.msra.mxu1 %v8539_v32  ;;  %1018 = vmatpush1.msra.mxu0 %v8541_v37  ;;  %v62_v32 = vld [vmem:[%s12733_s0 + $0x80] sm:$0xff]  ;;  %13141 = vst [vmem:[#allocation18_spill] sm:$0xff] %v8573_v22 }
  0x51   :  { %7218 = vmatmul.mubr.msk.f32.gmra.mxu0 %vm108_vm0, %v61_v42  ;;  %7250 = vmatmul.mubr.msk.f32.gmra.mxu1 %vm108_vm0, %v57_v57  ;;  %v8571_v57 = vld [vmem:[#allocation4 + $0x8] sm:$0xff] }
  0x52   :  { %377 = vmatprep.mubr.f32.mxu0 %v13140_v6  ;;  %634 = vmatprep.mubr.f32.mxu1 %v13140_v6 }
  0x53   :  { %1019 = vmatprep.subr.mxu0 %v8552_v47  ;;  %1086 = vmatprep.subr.mxu1 %v8554_v52  ;;  %v8594_v52 = vld [vmem:[#allocation4 + $0x30] sm:$0xff] }
  0x54   :  { %1020 = vmatpush1.msra.mxu0 %v8558_v1  ;;  %1087 = vmatpush1.msra.mxu1 %v8560_v8  ;;  %v63_v8 = vld [vmem:[%s12733_s0 + $0x88] sm:$0xff] }
  0x55   :  { %7219 = vmatmul.mubr.msk.f32.gmra.mxu0 %vm108_vm0, %v62_v32  ;;  %7251 = vmatmul.mubr.msk.f32.gmra.mxu1 %vm108_vm0, %v58_v62  ;;  %v8590_v62 = vld [vmem:[#allocation4 + $0x38] sm:$0xff] }
  0x56   :  { %383 = vmatprep.mubr.f32.mxu0 %v13140_v6  ;;  %640 = vmatprep.mubr.f32.mxu1 %v13140_v6  ;;  %13144 = vst [vmem:[#allocation21_spill] sm:$0xff] %v8590_v62 }
  0x57   :  { %1021 = vmatprep.subr.mxu0 %v8571_v57  ;;  %1088 = vmatprep.subr.mxu1 %v8573_v22  ;;  %v64_v22 = vld [vmem:[%s12733_s0 + $0x90] sm:$0xff] }
  0x58   :  { %1022 = vmatpush1.msra.mxu0 %v8577_v2  ;;  %1089 = vmatpush1.msra.mxu1 %v8579_v63  ;;  %v8604_v63 = vld [vmem:[#allocation4 + $0x18] sm:$0xff] }
  0x59   :  { %7220 = vmatmul.mubr.msk.f32.gmra.mxu0 %vm108_vm0, %v63_v8  ;;  %7252 = vmatmul.mubr.msk.f32.gmra.mxu1 %vm108_vm0, %v59_v4  ;;  %v8608_v4 = vld [vmem:[#allocation4 + $0x10] sm:$0xff] }
  0x5a   :  { %389 = vmatprep.mubr.f32.mxu0 %v13140_v6  ;;  %646 = vmatprep.mubr.f32.mxu1 %v13140_v6  ;;  %13145 = vst [vmem:[#allocation22_spill] sm:$0xff] %v8608_v4 }
  0x5b   :  { %1090 = vmatprep.subr.mxu1 %v8590_v62  ;;  %1160 = vmatprep.subr.mxu0 %v8287_v11  ;;  %v65_v62 = vld [vmem:[%s12733_s0 + $0x98] sm:$0xff] }
  0x5c   :  { %1091 = vmatpush1.msra.mxu1 %v8594_v52 }
  0x5d   :  { %7221 = vmatmul.mubr.msk.f32.gmra.mxu0 %vm108_vm0, %v64_v22  ;;  %7253 = vmatmul.mubr.msk.f32.gmra.mxu1 %vm108_vm0, %v60_v18  ;;  %v66_v18 = vld [vmem:[%s12733_s0 + $0xa0] sm:$0xff] }
  0x5e   :  { %395 = vmatprep.mubr.f32.mxu0 %v13140_v6  ;;  %652 = vmatprep.mubr.f32.mxu1 %v13140_v6 }
  0x5f   :  { %1092 = vmatprep.subr.mxu1 %v8604_v63 }
  0x60   :  { %1093 = vmatpush1.msra.mxu1 %v8608_v4 }
  0x61   :  { %7222 = vmatmul.mubr.msk.f32.gmra.mxu0 %vm108_vm0, %v65_v62  ;;  %7254 = vmatmul.mubr.msk.f32.gmra.mxu1 %vm108_vm0, %v61_v42  ;;  %v67_v42 = vld [vmem:[%s12733_s0 + $0xa8] sm:$0xff] }
  0x62   :  { %401 = vmatprep.mubr.f32.mxu0 %v13140_v6  ;;  %658 = vmatprep.mubr.f32.mxu1 %v13140_v6 }
  0x63   :  { %1231 = vmatprep.subr.mxu1 %v8284_v10 }
  0x65   :  { %7223 = vmatmul.mubr.msk.f32.gmra.mxu0 %vm108_vm0, %v66_v18  ;;  %7255 = vmatmul.mubr.msk.f32.gmra.mxu1 %vm108_vm0, %v62_v32  ;;  %v68_v32 = vld [vmem:[%s12733_s0 + $0xb0] sm:$0xff] }
  0x66   :  { %407 = vmatprep.mubr.f32.mxu0 %v13140_v6  ;;  %664 = vmatprep.mubr.f32.mxu1 %v13140_v6 }
  0x69   :  { %7224 = vmatmul.mubr.msk.f32.gmra.mxu0 %vm108_vm0, %v67_v42  ;;  %7256 = vmatmul.mubr.msk.f32.gmra.mxu1 %vm108_vm0, %v63_v8  ;;  %v69_v8 = vld [vmem:[%s12733_s0 + $0xb8] sm:$0xff] }
  0x6a   :  { %413 = vmatprep.mubr.f32.mxu0 %v13140_v6  ;;  %670 = vmatprep.mubr.f32.mxu1 %v13140_v6 }
  0x6d   :  { %7225 = vmatmul.mubr.msk.f32.gmra.mxu0 %vm108_vm0, %v68_v32  ;;  %7257 = vmatmul.mubr.msk.f32.gmra.mxu1 %vm108_vm0, %v64_v22  ;;  %v70_v22 = vld [vmem:[%s12733_s0 + $0xc0] sm:$0xff] }
  0x6e   :  { %419 = vmatprep.mubr.f32.mxu0 %v13140_v6  ;;  %676 = vmatprep.mubr.f32.mxu1 %v13140_v6 }
  0x71   :  { %7226 = vmatmul.mubr.msk.f32.gmra.mxu0 %vm108_vm0, %v69_v8  ;;  %7258 = vmatmul.mubr.msk.f32.gmra.mxu1 %vm108_vm0, %v65_v62  ;;  %v71_v62 = vld [vmem:[%s12733_s0 + $0xc8] sm:$0xff] }
  0x72   :  { %425 = vmatprep.mubr.f32.mxu0 %v13140_v6  ;;  %682 = vmatprep.mubr.f32.mxu1 %v13140_v6 }
  0x75   :  { %7227 = vmatmul.mubr.msk.f32.gmra.mxu0 %vm108_vm0, %v70_v22  ;;  %7259 = vmatmul.mubr.msk.f32.gmra.mxu1 %vm108_vm0, %v66_v18  ;;  %v72_v18 = vld [vmem:[%s12733_s0 + $0xd0] sm:$0xff] }
  0x76   :  { %431 = vmatprep.mubr.f32.mxu0 %v13140_v6  ;;  %688 = vmatprep.mubr.f32.mxu1 %v13140_v6 }
  0x79   :  { %7228 = vmatmul.mubr.msk.f32.gmra.mxu0 %vm108_vm0, %v71_v62  ;;  %7260 = vmatmul.mubr.msk.f32.gmra.mxu1 %vm108_vm0, %v67_v42  ;;  %v73_v42 = vld [vmem:[%s12733_s0 + $0xd8] sm:$0xff] }
  0x7a   :  { %437 = vmatprep.mubr.f32.mxu0 %v13140_v6  ;;  %694 = vmatprep.mubr.f32.mxu1 %v13140_v6 }
  0x7d   :  { %7229 = vmatmul.mubr.msk.f32.gmra.mxu0 %vm108_vm0, %v72_v18  ;;  %7261 = vmatmul.mubr.msk.f32.gmra.mxu1 %vm108_vm0, %v68_v32  ;;  %v74_v32 = vld [vmem:[%s12733_s0 + $0xe0] sm:$0xff] }
  0x7e   :  { %443 = vmatprep.mubr.f32.mxu0 %v13140_v6  ;;  %700 = vmatprep.mubr.f32.mxu1 %v13140_v6 }
  0x81   :  { %7230 = vmatmul.mubr.msk.f32.gmra.mxu0 %vm108_vm0, %v73_v42  ;;  %7262 = vmatmul.mubr.msk.f32.gmra.mxu1 %vm108_vm0, %v69_v8  ;;  %v75_v8 = vld [vmem:[%s12733_s0 + $0xe8] sm:$0xff] }
  0x82   :  { %449 = vmatprep.mubr.f32.mxu0 %v13140_v6  ;;  %706 = vmatprep.mubr.f32.mxu1 %v13140_v6 }
  0x85   :  { %7231 = vmatmul.mubr.msk.f32.gmra.mxu0 %vm108_vm0, %v74_v32  ;;  %7263 = vmatmul.mubr.msk.f32.gmra.mxu1 %vm108_vm0, %v70_v22  ;;  %v76_v22 = vld [vmem:[%s12733_s0 + $0xf0] sm:$0xff] }
  0x86   :  { %455 = vmatprep.mubr.f32.mxu0 %v13140_v6  ;;  %712 = vmatprep.mubr.f32.mxu1 %v13140_v6 }
  0x89   :  { %7232 = vmatmul.mubr.msk.f32.gmra.mxu0 %vm108_vm0, %v75_v8  ;;  %7264 = vmatmul.mubr.msk.f32.gmra.mxu1 %vm108_vm0, %v71_v62  ;;  %v77_v62 = vld [vmem:[%s12733_s0 + $0xf8] sm:$0xff] }
  0x8a   :  { %461 = vmatprep.mubr.f32.mxu0 %v13140_v6  ;;  %718 = vmatprep.mubr.f32.mxu1 %v13140_v6 }
  0x8d   :  { %7233 = vmatmul.mubr.msk.f32.gmra.mxu0 %vm108_vm0, %v76_v22  ;;  %7265 = vmatmul.mubr.msk.f32.gmra.mxu1 %vm108_vm0, %v72_v18 }
  0x8e   :  { %467 = vmatprep.mubr.f32.mxu0 %v13140_v6  ;;  %724 = vmatprep.mubr.f32.mxu1 %v13140_v6 }
  0x91   :  { %7234 = vmatmul.mubr.msk.f32.gmra.mxu0 %vm108_vm0, %v77_v62  ;;  %7266 = vmatmul.mubr.msk.f32.gmra.mxu1 %vm108_vm0, %v73_v42 }
  0x92   :  { %730 = vmatprep.mubr.f32.mxu1 %v13140_v6  ;;  %1055 = vmatprep.mubr.f32.mxu0 %v13140_v6 }
  0x95   :  { %7267 = vmatmul.mubr.msk.f32.gmra.mxu1 %vm108_vm0, %v74_v32  ;;  %1056 = vmatmul.mubr.f32.vlgmr.msra.gmra.mxu0 %v13140_v6 }
  0x96   :  { %736 = vmatprep.mubr.f32.mxu1 %v13140_v6  ;;  %1161 = vmatpush1.msra.mxu0 %v8291_v12  ;;  %v13149_v12 = vld [vmem:[#allocation13_spill] sm:$0xff] }
  0x97   :  { %1162 = vmatprep.subr.mxu0 %v8296_v13  ;;  %1224 = vmatprep.mubr.f32.mxu0 %v13140_v6  ;;  %v13150_v13 = vld [vmem:[#allocation14_spill] sm:$0xff] }
  0x98   :  { %1163 = vmatpush1.msra.mxu0 %v8310_v16  ;;  %v13152_v16 = vld [vmem:[#allocation16_spill] sm:$0xff] }
  0x99   :  { %7268 = vmatmul.mubr.msk.f32.gmra.mxu1 %vm108_vm0, %v75_v8  ;;  %1164 = vmatprep.subr.mxu0 %v8315_v17  ;;  %v13153_v17 = vld [vmem:[#allocation17_spill] sm:$0xff] }
  0x9a   :  { %742 = vmatprep.mubr.f32.mxu1 %v13140_v6  ;;  %1165 = vmatpush1.msra.mxu0 %v8329_v20  ;;  %v13155_v20 = vld [vmem:[#allocation20_spill] sm:$0xff] }
  0x9b   :  { %1166 = vmatprep.subr.mxu0 %v8334_v21  ;;  %v13156_v21 = vld [vmem:[#allocation21_spill] sm:$0xff] }
  0x9c   :  { %1167 = vmatpush1.msra.mxu0 %v8351_v26 }
  0x9d   :  { %7269 = vmatmul.mubr.msk.f32.gmra.mxu1 %vm108_vm0, %v76_v22  ;;  %1168 = vmatprep.subr.mxu0 %v8364_v29 }
  0x9e   :  { %748 = vmatprep.mubr.f32.mxu1 %v13140_v6  ;;  %1169 = vmatpush1.msra.mxu0 %v8370_v31 }
  0x9f   :  { %1170 = vmatprep.subr.mxu0 %v8383_v34 }
  0xa0   :  { %1171 = vmatpush1.msra.mxu0 %v8389_v36 }
  0xa1   :  { %7270 = vmatmul.mubr.msk.f32.gmra.mxu1 %vm108_vm0, %v77_v62  ;;  %1172 = vmatprep.subr.mxu0 %v8402_v39 }
  0xa2   :  { %754 = vmatprep.mubr.f32.mxu1 %v13140_v6  ;;  %1173 = vmatpush1.msra.mxu0 %v8408_v41 }
  0xa3   :  { %1174 = vmatprep.subr.mxu0 %v8421_v44 }
  0xa4   :  { %1175 = vmatpush1.msra.mxu0 %v8427_v46 }
  0xa5   :  { %7271 = vmatmul.mubr.msk.f32.gmra.mxu1 %vm108_vm0, %v8264_v5  ;;  %1176 = vmatprep.subr.mxu0 %v8440_v49  ;;  %v13146_v5 = vld [vmem:[#allocation10_spill] sm:$0xff] }
  0xa6   :  { %760 = vmatprep.mubr.f32.mxu1 %v13140_v6  ;;  %1177 = vmatpush1.msra.mxu0 %v8446_v51 }
  0xa7   :  { %1178 = vmatprep.subr.mxu0 %v8459_v54 }
  0xa8   :  { %1179 = vmatpush1.msra.mxu0 %v8465_v56 }
  0xa9   :  { %7272 = vmatmul.mubr.msk.f32.gmra.mxu1 %vm108_vm0, %v8282_v9  ;;  %1180 = vmatprep.subr.mxu0 %v8478_v59  ;;  %v13147_v9 = vld [vmem:[#allocation11_spill] sm:$0xff] }
  0xaa   :  { %766 = vmatprep.mubr.f32.mxu1 %v13140_v6  ;;  %1181 = vmatpush1.msra.mxu0 %v8484_v61 }
  0xab   :  { %1182 = vmatprep.subr.mxu0 %v8497_v0 }
  0xac   :  { %1183 = vmatpush1.msra.mxu0 %v8503_v3 }
  0xad   :  { %7273 = vmatmul.mubr.msk.f32.gmra.mxu1 %vm108_vm0, %v8306_v15  ;;  %1184 = vmatprep.subr.mxu0 %v8516_v7  ;;  %v13151_v15 = vld [vmem:[#allocation15_spill] sm:$0xff] }
  0xae   :  { %772 = vmatprep.mubr.f32.mxu1 %v13140_v6  ;;  %1185 = vmatpush1.msra.mxu0 %v8522_v14 }
  0xaf   :  { %1186 = vmatprep.subr.mxu0 %v8535_v27 }
  0xb0   :  { %1187 = vmatpush1.msra.mxu0 %v8541_v37 }
  0xb1   :  { %7274 = vmatmul.mubr.msk.f32.gmra.mxu1 %vm108_vm0, %v8325_v19  ;;  %1188 = vmatprep.subr.mxu0 %v8552_v47  ;;  %v13154_v19 = vld [vmem:[#allocation18_spill] sm:$0xff] }
  0xb2   :  { %1126 = vmatprep.mubr.f32.mxu1 %v13140_v6  ;;  %1189 = vmatpush1.msra.mxu0 %v8558_v1 }
  0xb3   :  { %1190 = vmatprep.subr.mxu0 %v8571_v57 }
  0xb4   :  { %1191 = vmatpush1.msra.mxu0 %v8577_v2 }
  0xb5   :  { %1127 = vmatmul.mubr.f32.vlgmr.msra.gmra.mxu1 %v13140_v6  ;;  %1329 = vmatprep.subr.mxu0 %v8287_v11  ;;  %v13148_v11 = vld [vmem:[#allocation12_spill] sm:$0xff] }
  0xb6   :  { %1232 = vmatpush1.msra.mxu1 %v8341_v23  ;;  %1295 = vmatprep.mubr.f32.mxu1 %v13140_v6 }
  0xb7   :  { %1233 = vmatprep.subr.mxu1 %v8344_v24 }
  0xb8   :  { %1234 = vmatpush1.msra.mxu1 %v8349_v25 }
  0xb9   :  { %1235 = vmatprep.subr.mxu1 %v8361_v28 }
  0xba   :  { %1236 = vmatpush1.msra.mxu1 %v8368_v30 }
  0xbb   :  { %1237 = vmatprep.subr.mxu1 %v8380_v33 }
  0xbc   :  { %1238 = vmatpush1.msra.mxu1 %v8387_v35 }
  0xbd   :  { %1239 = vmatprep.subr.mxu1 %v8399_v38 }
  0xbe   :  { %1240 = vmatpush1.msra.mxu1 %v8406_v40 }
  0xbf   :  { %1241 = vmatprep.subr.mxu1 %v8418_v43 }
  0xc0   :  { %1242 = vmatpush1.msra.mxu1 %v8425_v45 }
  0xc1   :  { %1243 = vmatprep.subr.mxu1 %v8437_v48 }
  0xc2   :  { %1244 = vmatpush1.msra.mxu1 %v8444_v50 }
  0xc3   :  { %1245 = vmatprep.subr.mxu1 %v8456_v53 }
  0xc4   :  { %1246 = vmatpush1.msra.mxu1 %v8463_v55 }
  0xc5   :  { %1247 = vmatprep.subr.mxu1 %v8475_v58 }
  0xc6   :  { %1248 = vmatpush1.msra.mxu1 %v8482_v60 }
  0xc7   :  { %1249 = vmatprep.subr.mxu1 %v13146_v5 }
  0xc8   :  { %1250 = vmatpush1.msra.mxu1 %v13147_v9 }
  0xc9   :  { %1251 = vmatprep.subr.mxu1 %v13148_v11 }
  0xca   :  { %1252 = vmatpush1.msra.mxu1 %v13149_v12 }
  0xcb   :  { %1253 = vmatprep.subr.mxu1 %v13150_v13 }
  0xcc   :  { %1254 = vmatpush1.msra.mxu1 %v13151_v15 }
  0xcd   :  { %1255 = vmatprep.subr.mxu1 %v13152_v16 }
  0xce   :  { %1256 = vmatpush1.msra.mxu1 %v13153_v17 }
  0xcf   :  { %1257 = vmatprep.subr.mxu1 %v13154_v19 }
  0xd0   :  { %1258 = vmatpush1.msra.mxu1 %v13155_v20 }
  0xd1   :  { %1259 = vmatprep.subr.mxu1 %v13156_v21 }
  0xd2   :  { %1260 = vmatpush1.msra.mxu1 %v8594_v52 }
  0xd3   :  { %1261 = vmatprep.subr.mxu1 %v8604_v63 }
  0xd4   :  { %1262 = vmatpush1.msra.mxu1 %v8608_v4 }
  0xd5   :  { %v8793_v23 = vpop.f32.mrf.mxu0  ;;  %v8795_v24 = vpop.f32.mrf.mxu1  ;;  %1400 = vmatprep.subr.mxu1 %v8284_v10 }
  0xd6   :  { %13157 = vst [vmem:[#allocation10_spill] sm:$0xff] %v8795_v24 }
  0xd7   :  { %v8798_v25 = vpop.f32.mrf.mxu0  ;;  %v8800_v26 = vpop.f32.mrf.mxu1 }
  0xd8   :  { %13158 = vst [vmem:[#allocation11_spill] sm:$0xff] %v8800_v26 }
  0xd9   :  { %v8802_v28 = vpop.f32.mrf.mxu0  ;;  %v8804_v29 = vpop.f32.mrf.mxu1 }
  0xda   :  { %13159 = vst [vmem:[#allocation12_spill] sm:$0xff] %v8802_v28  ;;  %13160 = vst [vmem:[#allocation13_spill] sm:$0xff] %v8804_v29 }
  0xdb   :  { %v8806_v30 = vpop.f32.mrf.mxu0  ;;  %v8808_v31 = vpop.f32.mrf.mxu1 }
  0xdc   :  { %13161 = vst [vmem:[#allocation14_spill] sm:$0xff] %v8806_v30  ;;  %13162 = vst [vmem:[#allocation15_spill] sm:$0xff] %v8808_v31 }
  0xdd   :  { %v8810_v33 = vpop.f32.mrf.mxu0  ;;  %v8812_v34 = vpop.f32.mrf.mxu1 }
  0xde   :  { %13163 = vst [vmem:[#allocation16_spill] sm:$0xff] %v8810_v33  ;;  %13164 = vst [vmem:[#allocation17_spill] sm:$0xff] %v8812_v34 }
  0xdf   :  { %v8814_v35 = vpop.f32.mrf.mxu0  ;;  %v8816_v36 = vpop.f32.mrf.mxu1 }
  0xe0   :  { %13165 = vst [vmem:[#allocation18_spill] sm:$0xff] %v8814_v35  ;;  %13166 = vst [vmem:[#allocation20_spill] sm:$0xff] %v8816_v36 }
  0xe1   :  { %v8818_v10 = vpop.f32.mrf.mxu0  ;;  %v8820_v18 = vpop.f32.mrf.mxu1 }
  0xe2   :  { %13167 = vst [vmem:[#allocation21_spill] sm:$0xff] %v8818_v10  ;;  %13168 = vst [vmem:[#allocation23_spill] sm:$0xff] %v8820_v18 }
  0xe3   :  { %v8822_v42 = vpop.f32.mrf.mxu0  ;;  %v8824_v32 = vpop.f32.mrf.mxu1 }
  0xe4   :  { %13169 = vst [vmem:[#allocation24_spill] sm:$0xff] %v8822_v42  ;;  %13170 = vst [vmem:[#allocation25_spill] sm:$0xff] %v8824_v32 }
  0xe5   :  { %v8826_v8 = vpop.f32.mrf.mxu0  ;;  %v8828_v22 = vpop.f32.mrf.mxu1 }
  0xe6   :  { %13171 = vst [vmem:[#allocation26_spill] sm:$0xff] %v8826_v8 }
  0xe7   :  { %v8830_v62 = vpop.f32.mrf.mxu0  ;;  %v8832_v31 = vpop.f32.mrf.mxu1 }
  0xe8   :  { %13172 = vst [vmem:[#allocation27_spill] sm:$0xff] %v8830_v62 }
  0xe9   :  { %v8834_v34 = vpop.f32.mrf.mxu0  ;;  %v8836_v29 = vpop.f32.mrf.mxu1 }
  0xea   :  { %13173 = vst [vmem:[#allocation28_spill] sm:$0xff] %v8834_v34  ;;  %13174 = vst [vmem:[#allocation29_spill] sm:$0xff] %v8836_v29 }
  0xeb   :  { %v8838_v36 = vpop.f32.mrf.mxu0  ;;  %v8840_v26 = vpop.f32.mrf.mxu1 }
  0xec   :  { %13175 = vst [vmem:[#allocation30_spill] sm:$0xff] %v8838_v36  ;;  %13176 = vst [vmem:[#allocation31_spill] sm:$0xff] %v8840_v26 }
  0xed   :  { %v8842_v18 = vpop.f32.mrf.mxu0  ;;  %v8844_v24 = vpop.f32.mrf.mxu1 }
  0xee   :  { %13177 = vst [vmem:[#allocation32_spill] sm:$0xff] %v8842_v18  ;;  %13178 = vst [vmem:[#allocation33_spill] sm:$0xff] %v8844_v24 }
  0xef   :  { %v8846_v32 = vpop.f32.mrf.mxu0  ;;  %v8848_v8 = vpop.f32.mrf.mxu1 }
  0xf0   :  { %13179 = vst [vmem:[#allocation34_spill] sm:$0xff] %v8846_v32  ;;  %13180 = vst [vmem:[#allocation35_spill] sm:$0xff] %v8848_v8 }
  0xf1   :  { %v8850_v42 = vpop.f32.mrf.mxu0  ;;  %v8852_v62 = vpop.f32.mrf.mxu1 }
  0xf2   :  { %13181 = vst [vmem:[#allocation36_spill] sm:$0xff] %v8850_v42  ;;  %13182 = vst [vmem:[#allocation37_spill] sm:$0xff] %v8852_v62 }
  0xf3   :  { %v8854_v10 = vpop.f32.mrf.mxu0  ;;  %v8856_v34 = vpop.f32.mrf.mxu1 }
  0xf4   :  { %13183 = vst [vmem:[#allocation38_spill] sm:$0xff] %v8854_v10  ;;  %13184 = vst [vmem:[#allocation39_spill] sm:$0xff] %v8856_v34 }
  0xf5   :  { %v8858_v35 = vpop.f32.mrf.mxu0  ;;  %v8860_v36 = vpop.f32.mrf.mxu1 }
  0xf6   :  { %13185 = vst [vmem:[#allocation40_spill] sm:$0xff] %v8858_v35  ;;  %13186 = vst [vmem:[#allocation41_spill] sm:$0xff] %v8860_v36 }
  0xf7   :  { %v8862_v33 = vpop.f32.mrf.mxu0  ;;  %v8864_v18 = vpop.f32.mrf.mxu1 }
  0xf8   :  { %13187 = vst [vmem:[#allocation42_spill] sm:$0xff] %v8862_v33  ;;  %13188 = vst [vmem:[#allocation43_spill] sm:$0xff] %v8864_v18 }
  0xf9   :  { %v8866_v24 = vpop.f32.mrf.mxu0  ;;  %v8868_v32 = vpop.f32.mrf.mxu1 }
  0xfa   :  { %13189 = vst [vmem:[#allocation44_spill] sm:$0xff] %v8866_v24  ;;  %13190 = vst [vmem:[#allocation45_spill] sm:$0xff] %v8868_v32 }
  0xfb   :  { %v8870_v8 = vpop.f32.mrf.mxu0  ;;  %v8872_v42 = vpop.f32.mrf.mxu1 }
  0xfc   :  { %13191 = vst [vmem:[#allocation46_spill] sm:$0xff] %v8870_v8  ;;  %13192 = vst [vmem:[#allocation47_spill] sm:$0xff] %v8872_v42 }
  0xfd   :  { %v8874_v62 = vpop.f32.mrf.mxu0  ;;  %v8876_v10 = vpop.f32.mrf.mxu1 }
  0xfe   :  { %13193 = vst [vmem:[#allocation48_spill] sm:$0xff] %v8874_v62  ;;  %13194 = vst [vmem:[#allocation49_spill] sm:$0xff] %v8876_v10 }
  0xff   :  { %v8878_v34 = vpop.f32.mrf.mxu0  ;;  %v8880_v35 = vpop.f32.mrf.mxu1 }
 0x100   :  { %13195 = vst [vmem:[#allocation50_spill] sm:$0xff] %v8878_v34  ;;  %13196 = vst [vmem:[#allocation51_spill] sm:$0xff] %v8880_v35 }
 0x101   :  { %v8882_v36 = vpop.f32.mrf.mxu0  ;;  %v8884_v33 = vpop.f32.mrf.mxu1 }
 0x102   :  { %13197 = vst [vmem:[#allocation52_spill] sm:$0xff] %v8882_v36  ;;  %13198 = vst [vmem:[#allocation53_spill] sm:$0xff] %v8884_v33 }
 0x103   :  { %v8886_v18 = vpop.f32.mrf.mxu0  ;;  %v8888_v24 = vpop.f32.mrf.mxu1 }
 0x104   :  { %13199 = vst [vmem:[#allocation54_spill] sm:$0xff] %v8886_v18  ;;  %13200 = vst [vmem:[#allocation55_spill] sm:$0xff] %v8888_v24 }
 0x105   :  { %v8890_v32 = vpop.f32.mrf.mxu0  ;;  %v8892_v8 = vpop.f32.mrf.mxu1 }
 0x106   :  { %13201 = vst [vmem:[#allocation56_spill] sm:$0xff] %v8890_v32  ;;  %13202 = vst [vmem:[#allocation57_spill] sm:$0xff] %v8892_v8 }
 0x107   :  { %v8894_v42 = vpop.f32.mrf.mxu0  ;;  %v8896_v62 = vpop.f32.mrf.mxu1 }
 0x108   :  { %13203 = vst [vmem:[#allocation58_spill] sm:$0xff] %v8894_v42  ;;  %13204 = vst [vmem:[#allocation59_spill] sm:$0xff] %v8896_v62 }
 0x109   :  { %v8898_v10 = vpop.f32.mrf.mxu0  ;;  %v8900_v34 = vpop.f32.mrf.mxu1 }
 0x10a   :  { %13205 = vst [vmem:[#allocation60_spill] sm:$0xff] %v8898_v10  ;;  %13206 = vst [vmem:[#allocation61_spill] sm:$0xff] %v8900_v34 }
 0x10b   :  { %v8902_v35 = vpop.f32.mrf.mxu0  ;;  %v8904_v36 = vpop.f32.mrf.mxu1 }
 0x10c   :  { %13207 = vst [vmem:[#allocation62_spill] sm:$0xff] %v8902_v35  ;;  %13208 = vst [vmem:[#allocation63_spill] sm:$0xff] %v8904_v36 }
 0x10d   :  { %v8906_v33 = vpop.f32.mrf.mxu0  ;;  %v8908_v18 = vpop.f32.mrf.mxu1 }
 0x10e   :  { %13209 = vst [vmem:[#allocation64_spill] sm:$0xff] %v8906_v33  ;;  %13210 = vst [vmem:[#allocation65_spill] sm:$0xff] %v8908_v18 }
 0x10f   :  { %v8910_v24 = vpop.f32.mrf.mxu0  ;;  %v8912_v32 = vpop.f32.mrf.mxu1 }
 0x110   :  { %13211 = vst [vmem:[#allocation66_spill] sm:$0xff] %v8910_v24  ;;  %13212 = vst [vmem:[#allocation67_spill] sm:$0xff] %v8912_v32 }
 0x111   :  { %v8914_v8 = vpop.f32.mrf.mxu0  ;;  %v8916_v42 = vpop.f32.mrf.mxu1 }
 0x112   :  { %13213 = vst [vmem:[#allocation68_spill] sm:$0xff] %v8914_v8  ;;  %13214 = vst [vmem:[#allocation69_spill] sm:$0xff] %v8916_v42 }
 0x113   :  { %v8918_v62 = vpop.f32.mrf.mxu0  ;;  %v8920_v10 = vpop.f32.mrf.mxu1 }
 0x114   :  { %13215 = vst [vmem:[#allocation70_spill] sm:$0xff] %v8918_v62  ;;  %13216 = vst [vmem:[#allocation71_spill] sm:$0xff] %v8920_v10 }
 0x115   :  { %v8922_v34 = vpop.f32.mrf.mxu0  ;;  %v8924_v35 = vpop.f32.mrf.mxu1 }
 0x116   :  { %13217 = vst [vmem:[#allocation72_spill] sm:$0xff] %v8922_v34  ;;  %13218 = vst [vmem:[#allocation73_spill] sm:$0xff] %v8924_v35 }
 0x117   :  { %v8926_v36 = vpop.f32.mrf.mxu0  ;;  %v8928_v33 = vpop.f32.mrf.mxu1 }
 0x118   :  { %13219 = vst [vmem:[#allocation74_spill] sm:$0xff] %v8926_v36  ;;  %13220 = vst [vmem:[#allocation75_spill] sm:$0xff] %v8928_v33 }
 0x119   :  { %v8930_v18 = vpop.f32.mrf.mxu0  ;;  %v8932_v24 = vpop.f32.mrf.mxu1 }
 0x11a   :  { %13221 = vst [vmem:[#allocation76_spill] sm:$0xff] %v8930_v18  ;;  %13222 = vst [vmem:[#allocation77_spill] sm:$0xff] %v8932_v24 }
 0x11b   :  { %v8934_v32 = vpop.f32.mrf.mxu0  ;;  %v8936_v8 = vpop.f32.mrf.mxu1 }
 0x11c   :  { %13223 = vst [vmem:[#allocation78_spill] sm:$0xff] %v8934_v32  ;;  %13224 = vst [vmem:[#allocation79_spill] sm:$0xff] %v8936_v8 }
 0x11d   :  { %v8938_v42 = vpop.f32.mrf.mxu0  ;;  %v8940_v62 = vpop.f32.mrf.mxu1 }
 0x11e   :  { %13225 = vst [vmem:[#allocation80_spill] sm:$0xff] %v8938_v42  ;;  %13226 = vst [vmem:[#allocation81_spill] sm:$0xff] %v8940_v62 }
 0x11f   :  { %v8942_v10 = vpop.f32.mrf.mxu0  ;;  %v8944_v34 = vpop.f32.mrf.mxu1 }
 0x120   :  { %13227 = vst [vmem:[#allocation82_spill] sm:$0xff] %v8942_v10  ;;  %13228 = vst [vmem:[#allocation83_spill] sm:$0xff] %v8944_v34 }
 0x121   :  { %v8946_v35 = vpop.f32.mrf.mxu0  ;;  %v8948_v36 = vpop.f32.mrf.mxu1 }
 0x122   :  { %13229 = vst [vmem:[#allocation84_spill] sm:$0xff] %v8946_v35  ;;  %13230 = vst [vmem:[#allocation85_spill] sm:$0xff] %v8948_v36 }
 0x123   :  { %v8950_v33 = vpop.f32.mrf.mxu0  ;;  %v8952_v18 = vpop.f32.mrf.mxu1 }
 0x124   :  { %13231 = vst [vmem:[#allocation86_spill] sm:$0xff] %v8950_v33  ;;  %13232 = vst [vmem:[#allocation87_spill] sm:$0xff] %v8952_v18 }
 0x125   :  { %v8954_v24 = vpop.f32.mrf.mxu0  ;;  %v8956_v32 = vpop.f32.mrf.mxu1 }
 0x126   :  { %13233 = vst [vmem:[#allocation88_spill] sm:$0xff] %v8954_v24  ;;  %13234 = vst [vmem:[#allocation89_spill] sm:$0xff] %v8956_v32 }
 0x127   :  { %v8958_v8 = vpop.f32.mrf.mxu0  ;;  %v8960_v42 = vpop.f32.mrf.mxu1 }
 0x128   :  { %13235 = vst [vmem:[#allocation90_spill] sm:$0xff] %v8958_v8  ;;  %13236 = vst [vmem:[#allocation91_spill] sm:$0xff] %v8960_v42 }
 0x129   :  { %v8962_v62 = vpop.f32.mrf.mxu0  ;;  %v8964_v10 = vpop.f32.mrf.mxu1 }
 0x12a   :  { %13237 = vst [vmem:[#allocation92_spill] sm:$0xff] %v8962_v62  ;;  %13238 = vst [vmem:[#allocation93_spill] sm:$0xff] %v8964_v10 }
 0x12b   :  { %v8966_v34 = vpop.f32.mrf.mxu0  ;;  %v8968_v35 = vpop.f32.mrf.mxu1 }
 0x12c   :  { %13239 = vst [vmem:[#allocation94_spill] sm:$0xff] %v8966_v34  ;;  %13240 = vst [vmem:[#allocation95_spill] sm:$0xff] %v8968_v35 }
 0x12d   :  { %v8970_v36 = vpop.f32.mrf.mxu0  ;;  %v8972_v33 = vpop.f32.mrf.mxu1 }
 0x12e   :  { %13241 = vst [vmem:[#allocation96_spill] sm:$0xff] %v8970_v36  ;;  %13242 = vst [vmem:[#allocation97_spill] sm:$0xff] %v8972_v33 }
 0x12f   :  { %v8974_v18 = vpop.f32.mrf.mxu0  ;;  %v8976_v24 = vpop.f32.mrf.mxu1 }
 0x130   :  { %13243 = vst [vmem:[#allocation98_spill] sm:$0xff] %v8974_v18  ;;  %13244 = vst [vmem:[#allocation99_spill] sm:$0xff] %v8976_v24 }
 0x131   :  { %v8978_v32 = vpop.f32.mrf.mxu0  ;;  %v8980_v8 = vpop.f32.mrf.mxu1 }
 0x132   :  { %13245 = vst [vmem:[#allocation100_spill] sm:$0xff] %v8978_v32  ;;  %13246 = vst [vmem:[#allocation101_spill] sm:$0xff] %v8980_v8 }
 0x133   :  { %v8982_v42 = vpop.f32.mrf.mxu0  ;;  %v8984_v62 = vpop.f32.mrf.mxu1 }
 0x134   :  { %13247 = vst [vmem:[#allocation102_spill] sm:$0xff] %v8982_v42  ;;  %13248 = vst [vmem:[#allocation103_spill] sm:$0xff] %v8984_v62 }
 0x135   :  { %v8986_v10 = vpop.f32.mrf.mxu0  ;;  %v8988_v34 = vpop.f32.mrf.mxu1 }
 0x136   :  { %13249 = vst [vmem:[#allocation104_spill] sm:$0xff] %v8986_v10  ;;  %13250 = vst [vmem:[#allocation105_spill] sm:$0xff] %v8988_v34 }
 0x137   :  { %v8990_v35 = vpop.f32.mrf.mxu0  ;;  %v8992_v36 = vpop.f32.mrf.mxu1 }
 0x138   :  { %13251 = vst [vmem:[#allocation106_spill] sm:$0xff] %v8990_v35  ;;  %13252 = vst [vmem:[#allocation107_spill] sm:$0xff] %v8992_v36 }
 0x139   :  { %v8994_v33 = vpop.f32.mrf.mxu0  ;;  %v8996_v18 = vpop.f32.mrf.mxu1 }
 0x13a   :  { %13253 = vst [vmem:[#allocation108_spill] sm:$0xff] %v8994_v33  ;;  %13254 = vst [vmem:[#allocation109_spill] sm:$0xff] %v8996_v18 }
 0x13b   :  { %v8998_v24 = vpop.f32.mrf.mxu0  ;;  %v9000_v32 = vpop.f32.mrf.mxu1 }
 0x13c   :  { %13255 = vst [vmem:[#allocation110_spill] sm:$0xff] %v8998_v24  ;;  %13256 = vst [vmem:[#allocation111_spill] sm:$0xff] %v9000_v32 }
 0x13d   :  { %v9002_v8 = vpop.f32.mrf.mxu0  ;;  %v9004_v42 = vpop.f32.mrf.mxu1 }
 0x13e   :  { %13257 = vst [vmem:[#allocation112_spill] sm:$0xff] %v9002_v8  ;;  %13258 = vst [vmem:[#allocation113_spill] sm:$0xff] %v9004_v42 }
 0x13f   :  { %v9006_v62 = vpop.f32.mrf.mxu0  ;;  %v9008_v10 = vpop.f32.mrf.mxu1 }
 0x140   :  { %13259 = vst [vmem:[#allocation114_spill] sm:$0xff] %v9006_v62  ;;  %13260 = vst [vmem:[#allocation115_spill] sm:$0xff] %v9008_v10 }
 0x141   :  { %v9010_v34 = vpop.f32.mrf.mxu0  ;;  %v9012_v35 = vpop.f32.mrf.mxu1 }
 0x142   :  { %13261 = vst [vmem:[#allocation116_spill] sm:$0xff] %v9010_v34  ;;  %13262 = vst [vmem:[#allocation117_spill] sm:$0xff] %v9012_v35 }
 0x143   :  { %v9014_v36 = vpop.f32.mrf.mxu0  ;;  %v9016_v33 = vpop.f32.mrf.mxu1 }
 0x144   :  { %13263 = vst [vmem:[#allocation118_spill] sm:$0xff] %v9014_v36  ;;  %13264 = vst [vmem:[#allocation119_spill] sm:$0xff] %v9016_v33 }
 0x145   :  { %v9018_v18 = vpop.f32.mrf.mxu0  ;;  %v9020_v24 = vpop.f32.mrf.mxu1 }
 0x146   :  { %13265 = vst [vmem:[#allocation120_spill] sm:$0xff] %v9018_v18  ;;  %13266 = vst [vmem:[#allocation121_spill] sm:$0xff] %v9020_v24 }
 0x147   :  { %v9022_v32 = vpop.f32.mrf.mxu0  ;;  %v9024_v8 = vpop.f32.mrf.mxu1 }
 0x148   :  { %13267 = vst [vmem:[#allocation122_spill] sm:$0xff] %v9022_v32  ;;  %13268 = vst [vmem:[#allocation123_spill] sm:$0xff] %v9024_v8 }
 0x149   :  { %v9026_v42 = vpop.f32.mrf.mxu0  ;;  %v9028_v62 = vpop.f32.mrf.mxu1 }
 0x14a   :  { %13269 = vst [vmem:[#allocation124_spill] sm:$0xff] %v9026_v42  ;;  %13270 = vst [vmem:[#allocation125_spill] sm:$0xff] %v9028_v62 }
 0x14b   :  { %v9030_v10 = vpop.f32.mrf.mxu0  ;;  %v9032_v34 = vpop.f32.mrf.mxu1 }
 0x14c   :  { %13271 = vst [vmem:[#allocation126_spill] sm:$0xff] %v9030_v10  ;;  %13272 = vst [vmem:[#allocation127_spill] sm:$0xff] %v9032_v34  ;;  %v88_v10 = vlaneseq }
 0x14d   :  { %v9034_v35 = vpop.f32.mrf.mxu1  ;;  %v9036_v36 = vpop.f32.mrf.mxu0 }
 0x14e   :  { %13273 = vst [vmem:[#allocation128_spill] sm:$0xff] %v9034_v35  ;;  %13274 = vst [vmem:[#allocation129_spill] sm:$0xff] %v9036_v36 }
 0x14f   :  { %v9038_v33 = vpop.f32.mrf.mxu1  ;;  %v9042_v24 = vpop.f32.mrf.mxu0 }
 0x150   :  { %13275 = vst [vmem:[#allocation130_spill] sm:$0xff] %v9038_v33  ;;  %13277 = vst [vmem:[#allocation132_spill] sm:$0xff] %v9042_v24  ;;  %v89_v33 = vshrl.u32 %v88_v10, 7 }
 0x151   :  { %v9040_v18 = vpop.f32.mrf.mxu1  ;;  %v9048_v42 = vpop.f32.mrf.mxu0 }
 0x152   :  { %13276 = vst [vmem:[#allocation131_spill] sm:$0xff] %v9040_v18  ;;  %13280 = vst [vmem:[#allocation135_spill] sm:$0xff] %v9048_v42  ;;  %v94_v18 = vsub.s32 1, %v89_v33  ;;  %v86_v42 = vld [vmem:[%s12736_s3] sm:$0xf] }
 0x153   :  { %v9044_v32 = vpop.f32.mrf.mxu1  ;;  %v9054_v35 = vpop.f32.mrf.mxu0 }
 0x154   :  { %13278 = vst [vmem:[#allocation133_spill] sm:$0xff] %v9044_v32  ;;  %13283 = vst [vmem:[#allocation138_spill] sm:$0xff] %v9054_v35  ;;  %v90_v32 = vsub.s32 0, %v89_v33 }
 0x155   :  { %v9046_v8 = vpop.f32.mrf.mxu1  ;;  %v1057_v24 = vpop.f32.mrf.mxu0 }
 0x156   :  { %13279 = vst [vmem:[#allocation134_spill] sm:$0xff] %v9046_v8  ;;  %v9067_v8 = vrot.slane %v86_v42, %v94_v18 }
 0x157   :  { %v9050_v62 = vpop.f32.mrf.mxu1 }
 0x158   :  { %13281 = vst [vmem:[#allocation136_spill] sm:$0xff] %v9050_v62  ;;  %13288 = vst [vmem:[#allocation143_spill] sm:$0xff] %v9067_v8  ;;  %v286_v10 = vadd.f32 %v8798_v25, %v9067_v8  ;;  %v102_v8 = vsub.s32 3, %v89_v33 }
 0x159   :  { %v9052_v34 = vpop.f32.mrf.mxu1 }
 0x15a   :  { %13282 = vst [vmem:[#allocation137_spill] sm:$0xff] %v9052_v34  ;;  %v1059_v34 = vpop.f32.mrf.mxu0 }
 0x15b   :  { %v9056_v36 = vpop.f32.mrf.mxu1  ;;  %v1134_v30 = vadd.f32 %v1059_v34, %v286_v10 }
 0x15c   :  { %13284 = vst [vmem:[#allocation139_spill] sm:$0xff] %v9056_v36  ;;  %v9071_v36 = vrot.slane %v86_v42, %v90_v32 }
 0x15d   :  { %v9058_v26 = vpop.f32.mrf.mxu1  ;;  %v1141_v18 = vmul.f32 0.5, %v1134_v30 }
 0x15e   :  { %13285 = vst [vmem:[#allocation140_spill] sm:$0xff] %v9058_v26  ;;  %13290 = vst [vmem:[#allocation145_spill] sm:$0xff] %v9071_v36 }
 0x15f   :  { %v9060_v29 = vpop.f32.mrf.mxu1  ;;  %7340 = vtanh.f32 %v1141_v18 }
 0x160   :  { %13286 = vst [vmem:[#allocation141_spill] sm:$0xff] %v9060_v29  ;;  %v284_v29 = vadd.f32 %v8793_v23, %v9071_v36 }
 0x161   :  { %v9065_v62 = vpop.f32.mrf.mxu1 }
 0x162   :  { %13287 = vst [vmem:[#allocation142_spill] sm:$0xff] %v9065_v62  ;;  %v1133_v4 = vadd.f32 %v1057_v24, %v284_v29  ;;  %v9097_v29 = vrot.slane %v86_v42, %v102_v8 }
 0x163   :  { %v9069_v35 = vpop.f32.mrf.mxu1 }
 0x164   :  { %13289 = vst [vmem:[#allocation144_spill] sm:$0xff] %v9069_v35  ;;  %v98_v35 = vsub.s32 2, %v89_v33  ;;  %v1137_v32 = vmul.f32 0.5, %v1133_v4  ;;  %v567_v18 = vadd.f32 %v8832_v31, %v9097_v29 }
 0x165   :  { %v9075_v26 = vpop.f32.mrf.mxu1 }
 0x166   :  { %13291 = vst [vmem:[#allocation146_spill] sm:$0xff] %v9075_v26  ;;  %v9089_v26 = vrot.slane %v86_v42, %v98_v35  ;;  %7342 = vtanh.f32 %v1137_v32 }
 0x167   :  { %v9079_v28 = vpop.f32.mrf.mxu1 }
 0x168   :  { %13292 = vst [vmem:[#allocation147_spill] sm:$0xff] %v9079_v28  ;;  %v565_v24 = vadd.f32 %v8828_v22, %v9089_v26  ;;  %v9158_v28 = vld [vmem:[#allocation4 + $0x140] sm:$0xff] }
 0x169   :  { %v9081_v62 = vpop.f32.mrf.mxu1 }
 0x16a   :  { %13293 = vst [vmem:[#allocation148_spill] sm:$0xff] %v9081_v62 }
 0x16b   :  { %v9083_v6 = vpop.f32.mrf.mxu1 }
 0x16c   :  { %13294 = vst [vmem:[#allocation149_spill] sm:$0xff] %v9083_v6 }
 0x16d   :  { %v9085_v2 = vpop.f32.mrf.mxu1 }
 0x16e   :  { %13295 = vst [vmem:[#allocation150_spill] sm:$0xff] %v9085_v2 }
 0x16f   :  { %v9087_v25 = vpop.f32.mrf.mxu1 }
 0x170   :  { %13296 = vst [vmem:[#allocation151_spill] sm:$0xff] %v9087_v25  ;;  %v7341_v25 = vpop.eup %7340 }
 0x171   :  { %v9091_v23 = vpop.f32.mrf.mxu1  ;;  %v1143_v32 = vmul.f32 0.5, %v7341_v25  ;;  %v9104_v25 = vld [vmem:[#allocation4 + $0x1e0] sm:$0xff] }
 0x172   :  { %13297 = vst [vmem:[#allocation152_spill] sm:$0xff] %v9091_v23 }
 0x173   :  { %v9093_v34 = vpop.f32.mrf.mxu1  ;;  %v7343_v33 = vpop.eup %7342  ;;  %v1144_v6 = vadd.f32 0.5, %v1143_v32  ;;  %v9131_v32 = vld [vmem:[#allocation4 + $0x1b0] sm:$0xff] }
 0x174   :  { %13298 = vst [vmem:[#allocation153_spill] sm:$0xff] %v9093_v34  ;;  %v1139_v23 = vmul.f32 0.5, %v7343_v33  ;;  %v9128_v33 = vld [vmem:[#allocation4 + $0x1a0] sm:$0xff] }
 0x175   :  { %v1128_v30 = vpop.f32.mrf.mxu1  ;;  %v1150_v22 = vmul.f32 0.0, %v1144_v6  ;;  %v9110_v6 = vld [vmem:[#allocation4 + $0x1c8] sm:$0xff] }
 0x176   :  { %v1135_v4 = vadd.f32 %v1128_v30, %v565_v24  ;;  %v1140_v34 = vadd.f32 0.5, %v1139_v23  ;;  %v9116_v23 = vld [vmem:[#allocation4 + $0x1c0] sm:$0xff] }
 0x177   :  { %v1130_v10 = vpop.f32.mrf.mxu1 }
 0x178   :  { %7344 = vtanh.f32 %v1135_v4  ;;  %v1136_v35 = vadd.f32 %v1130_v10, %v567_v18  ;;  %v9122_v18 = vld [vmem:[#allocation4 + $0x1a8] sm:$0xff] }
 0x17a   :  { %v1146_v2 = vmul.f32 0.5, %v1136_v35  ;;  %v9125_v35 = vld [vmem:[#allocation4 + $0x1b8] sm:$0xff] }
 0x17c   :  { %7346 = vtanh.f32 %v1146_v2  ;;  %v9107_v2 = vld [vmem:[#allocation4 + $0x1f0] sm:$0xff] }
 0x185   :  { %v7345_v62 = vpop.eup %7344 }
 0x186   :  { %v1151_v42 = vmul.f32 %v7345_v62, %v1140_v34  ;;  %v9113_v62 = vld [vmem:[#allocation4 + $0x1d8] sm:$0xff]  ;;  %v9119_v34 = vld [vmem:[#allocation4 + $0x1d0] sm:$0xff] }
 0x188   :  { %v9101_v8 = vadd.f32 %v1151_v42, %v1150_v22  ;;  %v9134_v22 = vld [vmem:[#allocation4 + $0x188] sm:$0xff]  ;;  %v9137_v42 = vld [vmem:[#allocation4 + $0x198] sm:$0xff] }
 0x189   :  { %v7347_v24 = vpop.eup %7346 }
 0x18a   :  { %7348 = vtanh.f32 %v9101_v8  ;;  %v1148_v30 = vmul.f32 0.5, %v7347_v24  ;;  %v9140_v24 = vld [vmem:[#allocation4 + $0x180] sm:$0xff] }
 0x18c   :  { %v1149_v31 = vadd.f32 0.5, %v1148_v30  ;;  %v9143_v30 = vld [vmem:[#allocation4 + $0x190] sm:$0xff] }
 0x197   :  { %v7349_v4 = vpop.eup %7348 }
 0x198   :  { %v1154_v10 = vmul.f32 %v7349_v4, %v1149_v31  ;;  %v9146_v31 = vld [vmem:[#allocation4 + $0x168] sm:$0xff]  ;;  %v9150_v4 = vld [vmem:[#allocation4 + $0x160] sm:$0xff] }
 0x19a   :  { %1225 = vmatmul.mubr.f32.vlgmr.msra.gmra.mxu0 %v1154_v10  ;;  %1296 = vmatmul.mubr.f32.vlgmr.msra.gmra.mxu1 %v1154_v10  ;;  %v9154_v10 = vld [vmem:[#allocation4 + $0x148] sm:$0xff] }
 0x19b   :  { %1330 = vmatpush1.msra.mxu0 %v9104_v25  ;;  %1401 = vmatpush1.msra.mxu1 %v9107_v2 }
 0x19c   :  { %1331 = vmatprep.subr.mxu0 %v9110_v6  ;;  %1402 = vmatprep.subr.mxu1 %v9113_v62 }
 0x19d   :  { %1332 = vmatpush1.msra.mxu0 %v9116_v23  ;;  %1403 = vmatpush1.msra.mxu1 %v9119_v34 }
 0x19e   :  { %1333 = vmatprep.subr.mxu0 %v9122_v18  ;;  %1404 = vmatprep.subr.mxu1 %v9125_v35 }
 0x19f   :  { %1334 = vmatpush1.msra.mxu0 %v9128_v33  ;;  %1405 = vmatpush1.msra.mxu1 %v9131_v32 }
 0x1a0   :  { %1335 = vmatprep.subr.mxu0 %v9134_v22  ;;  %1406 = vmatprep.subr.mxu1 %v9137_v42 }
 0x1a1   :  { %1336 = vmatpush1.msra.mxu0 %v9140_v24  ;;  %1407 = vmatpush1.msra.mxu1 %v9143_v30 }
 0x1a2   :  { %1337 = vmatprep.subr.mxu0 %v9146_v31  ;;  %1408 = vmatprep.subr.mxu1 %v8399_v38  ;;  %v13299_v38 = vld [vmem:[#allocation19_spill] sm:$0xff] }
 0x1a3   :  { %1338 = vmatpush1.msra.mxu0 %v9150_v4  ;;  %1409 = vmatpush1.msra.mxu1 %v8406_v40  ;;  %v13301_v40 = vld [vmem:[#allocation22_spill] sm:$0xff] }
 0x1a4   :  { %1339 = vmatprep.subr.mxu0 %v9154_v10  ;;  %1410 = vmatprep.subr.mxu1 %v8418_v43  ;;  %v9207_v43 = vld [vmem:[#allocation4 + $0x1f8] sm:$0xff] }
 0x1a5   :  { %1340 = vmatpush1.msra.mxu0 %v9158_v28  ;;  %1411 = vmatpush1.msra.mxu1 %v8425_v45  ;;  %13303 = vst [vmem:[#allocation22_spill] sm:$0xff] %v9207_v43 }
 0x1a6   :  { %1341 = vmatprep.subr.mxu0 %v8402_v39  ;;  %1412 = vmatprep.subr.mxu1 %v8437_v48  ;;  %v13300_v39 = vmov 0.0   ;;  %v13306_v48 = vld [vmem:[#allocation14_spill] sm:$0xff] }
 0x1a7   :  { %1342 = vmatpush1.msra.mxu0 %v8408_v41  ;;  %1413 = vmatpush1.msra.mxu1 %v8444_v50  ;;  %v9204_v41 = vld [vmem:[#allocation4 + $0x1e8] sm:$0xff] }
 0x1a8   :  { %1343 = vmatprep.subr.mxu0 %v8421_v44  ;;  %1414 = vmatprep.subr.mxu1 %v8456_v53  ;;  %13302 = vst [vmem:[#allocation19_spill] sm:$0xff] %v9204_v41 }
 0x1a9   :  { %1344 = vmatpush1.msra.mxu0 %v8427_v46  ;;  %1415 = vmatpush1.msra.mxu1 %v8463_v55  ;;  %v13305_v46 = vld [vmem:[#allocation143_spill] sm:$0xff] }
 0x1aa   :  { %1345 = vmatprep.subr.mxu0 %v8440_v49  ;;  %1416 = vmatprep.subr.mxu1 %v8475_v58  ;;  %v292_v49 = vadd.f32 %v13306_v48, %v13305_v46  ;;  %v9264_v48 = vld [vmem:[#allocation4 + $0x108] sm:$0xff] }
 0x1ab   :  { %1346 = vmatpush1.msra.mxu0 %v8446_v51  ;;  %1417 = vmatpush1.msra.mxu1 %v8482_v60 }
 0x1ac   :  { %1347 = vmatprep.subr.mxu0 %v8459_v54  ;;  %1418 = vmatprep.subr.mxu1 %v13146_v5  ;;  %v13307_v54 = vld [vmem:[#allocation29_spill] sm:$0xff] }
 0x1ad   :  { %1348 = vmatpush1.msra.mxu0 %v8465_v56  ;;  %1419 = vmatpush1.msra.mxu1 %v13147_v9  ;;  %v571_v55 = vadd.f32 %v13307_v54, %v9089_v26  ;;  %v9279_v54 = vld [vmem:[#allocation4 + $0xf8] sm:$0xff] }
 0x1ae   :  { %1349 = vmatprep.subr.mxu0 %v8478_v59  ;;  %1420 = vmatprep.subr.mxu1 %v13148_v11 }
 0x1af   :  { %1350 = vmatpush1.msra.mxu0 %v8484_v61  ;;  %1421 = vmatpush1.msra.mxu1 %v13149_v12 }
 0x1b0   :  { %1351 = vmatprep.subr.mxu0 %v8497_v0  ;;  %1422 = vmatprep.subr.mxu1 %v13150_v13 }
 0x1b1   :  { %1352 = vmatpush1.msra.mxu0 %v8503_v3  ;;  %1423 = vmatpush1.msra.mxu1 %v13151_v15 }
 0x1b2   :  { %1353 = vmatprep.subr.mxu0 %v8516_v7  ;;  %1424 = vmatprep.subr.mxu1 %v13152_v16 }
 0x1b3   :  { %1354 = vmatpush1.msra.mxu0 %v8522_v14  ;;  %1425 = vmatpush1.msra.mxu1 %v13153_v17 }
 0x1b4   :  { %1355 = vmatprep.subr.mxu0 %v8535_v27  ;;  %1426 = vmatprep.subr.mxu1 %v13154_v19 }
 0x1b5   :  { %1356 = vmatpush1.msra.mxu0 %v8541_v37  ;;  %1427 = vmatpush1.msra.mxu1 %v13155_v20  ;;  %v9237_v20 = vld [vmem:[#allocation4 + $0x178] sm:$0xff] }
 0x1b6   :  { %1357 = vmatprep.subr.mxu0 %v8552_v47  ;;  %1428 = vmatprep.subr.mxu1 %v13156_v21  ;;  %v9241_v21 = vld [vmem:[#allocation4 + $0x170] sm:$0xff] }
 0x1b7   :  { %1358 = vmatpush1.msra.mxu0 %v8558_v1  ;;  %1429 = vmatpush1.msra.mxu1 %v8594_v52  ;;  %v13304_v1 = vld [vmem:[#allocation12_spill] sm:$0xff] }
 0x1b8   :  { %1359 = vmatprep.subr.mxu0 %v8571_v57  ;;  %1430 = vmatprep.subr.mxu1 %v8604_v63  ;;  %v290_v44 = vadd.f32 %v13304_v1, %v9071_v36  ;;  %v13308_v63 = vld [vmem:[#allocation31_spill] sm:$0xff]  ;;  %v9255_v1 = vld [vmem:[#allocation4 + $0x138] sm:$0xff] }
 0x1b9   :  { %1360 = vmatpush1.msra.mxu0 %v13299_v38  ;;  %1393 = vmatprep.mubr.f32.mxu0 %v13300_v39  ;;  %v573_v0 = vadd.f32 %v13308_v63, %v9097_v29  ;;  %v9249_v38 = vld [vmem:[#allocation4 + $0x150] sm:$0xff]  ;;  %v9300_v63 = vld [vmem:[#allocation4 + $0xa8] sm:$0xff] }
 0x1ba   :  { %1431 = vmatpush1.msra.mxu1 %v13301_v40  ;;  %1464 = vmatprep.mubr.f32.mxu1 %v13300_v39  ;;  %v9252_v40 = vld [vmem:[#allocation4 + $0x128] sm:$0xff] }
 0x1bb   :  { %1498 = vmatprep.subr.mxu0 %v9204_v41  ;;  %1569 = vmatprep.subr.mxu1 %v9207_v43 }
 0x25a   :  { %v1226_v45 = vpop.f32.mrf.mxu0  ;;  %v1297_v51 = vpop.f32.mrf.mxu1 }
 0x25b   :  { %v1302_v50 = vadd.f32 %v1226_v45, %v290_v44  ;;  %v1304_v59 = vadd.f32 %v1297_v51, %v571_v55  ;;  %v9258_v44 = vld [vmem:[#allocation4 + $0x120] sm:$0xff]  ;;  %v9261_v45 = vld [vmem:[#allocation4 + $0x130] sm:$0xff] }
 0x25c   :  { %v1228_v53 = vpop.f32.mrf.mxu0  ;;  %v1299_v61 = vpop.f32.mrf.mxu1  ;;  %v9273_v51 = vld [vmem:[#allocation4 + $0x110] sm:$0xff]  ;;  %v9282_v55 = vld [vmem:[#allocation4 + $0xe0] sm:$0xff] }
 0x25d   :  { %v1306_v56 = vmul.f32 0.5, %v1302_v50  ;;  %v1303_v58 = vadd.f32 %v1228_v53, %v292_v49  ;;  %v1305_v3 = vadd.f32 %v1299_v61, %v573_v0  ;;  %v9267_v49 = vld [vmem:[#allocation4 + $0x118] sm:$0xff]  ;;  %v9270_v50 = vld [vmem:[#allocation4 + $0x100] sm:$0xff]  ;;  %v9276_v53 = vld [vmem:[#allocation4 + $0xe8] sm:$0xff] }
 0x25e   :  { %v9297_v61 = vld [vmem:[#allocation4 + $0xd0] sm:$0xff]  ;;  %v9303_v0 = vld [vmem:[#allocation4 + $0xb8] sm:$0xff] }
 0x25f   :  { %7350 = vtanh.f32 %v1306_v56  ;;  %v1310_v60 = vmul.f32 0.5, %v1303_v58  ;;  %v1315_v7 = vmul.f32 0.5, %v1305_v3  ;;  %v9285_v56 = vld [vmem:[#allocation4 + $0xf0] sm:$0xff]  ;;  %v9288_v58 = vld [vmem:[#allocation4 + $0xc8] sm:$0xff]  ;;  %v9306_v3 = vld [vmem:[#allocation4 + $0xa0] sm:$0xff] }
 0x261   :  { %7352 = vtanh.f32 %v1310_v60  ;;  %v9294_v60 = vld [vmem:[#allocation4 + $0xc0] sm:$0xff] }
 0x262   :  { %7354 = vtanh.f32 %v1304_v59  ;;  %v9291_v59 = vld [vmem:[#allocation4 + $0xd8] sm:$0xff] }
 0x263   :  { %7356 = vtanh.f32 %v1315_v7  ;;  %v9309_v7 = vld [vmem:[#allocation4 + $0xb0] sm:$0xff] }
 0x264   :  { %13309 = vst [vmem:[#allocation12_spill] sm:$0xff] %v9309_v7 }
 0x26c   :  { %v7351_v14 = vpop.eup %7350 }
 0x26d   :  { %v1308_v27 = vmul.f32 0.5, %v7351_v14  ;;  %v9312_v14 = vld [vmem:[#allocation4 + $0x88] sm:$0xff] }
 0x26e   :  { %v7353_v37 = vpop.eup %7352  ;;  %13310 = vst [vmem:[#allocation14_spill] sm:$0xff] %v9312_v14 }
 0x26f   :  { %v1309_v47 = vadd.f32 0.5, %v1308_v27  ;;  %v1312_v52 = vmul.f32 0.5, %v7353_v37  ;;  %v7355_v57 = vpop.eup %7354  ;;  %v9315_v27 = vld [vmem:[#allocation4 + $0x98] sm:$0xff]  ;;  %v9318_v37 = vld [vmem:[#allocation4 + $0x80] sm:$0xff] }
 0x270   :  { %v7357_v13 = vpop.eup %7356  ;;  %13311 = vst [vmem:[#allocation29_spill] sm:$0xff] %v9315_v27  ;;  %13312 = vst [vmem:[#allocation31_spill] sm:$0xff] %v9318_v37 }
 0x271   :  { %v1313_v5 = vadd.f32 0.5, %v1312_v52  ;;  %v1320_v9 = vmul.f32 %v7355_v57, %v1309_v47  ;;  %v1317_v15 = vmul.f32 0.5, %v7357_v13  ;;  %v9321_v47 = vld [vmem:[#allocation4 + $0x90] sm:$0xff]  ;;  %v9324_v52 = vld [vmem:[#allocation4 + $0x68] sm:$0xff]  ;;  %v9327_v57 = vld [vmem:[#allocation4 + $0x78] sm:$0xff] }
 0x272   :  { %13313 = vst [vmem:[#allocation154_spill] sm:$0xff] %v9321_v47  ;;  %13314 = vst [vmem:[#allocation155_spill] sm:$0xff] %v9324_v52  ;;  %v9339_v13 = vld [vmem:[#allocation4 + $0x58] sm:$0xff] }
 0x273   :  { %v1319_v11 = vmul.f32 %v1313_v5, %v9101_v8  ;;  %v1318_v16 = vadd.f32 0.5, %v1317_v15  ;;  %v9245_v8 = vld [vmem:[#allocation4 + $0x158] sm:$0xff]  ;;  %13315 = vst [vmem:[#allocation156_spill] sm:$0xff] %v9327_v57  ;;  %v9330_v5 = vld [vmem:[#allocation4 + $0x60] sm:$0xff]  ;;  %13319 = vst [vmem:[#allocation160_spill] sm:$0xff] %v9339_v13 }
 0x274   :  { %13316 = vst [vmem:[#allocation157_spill] sm:$0xff] %v9330_v5  ;;  %v9342_v15 = vld [vmem:[#allocation4 + $0x40] sm:$0xff] }
 0x275   :  { %v9219_v12 = vadd.f32 %v1320_v9, %v1319_v11  ;;  %v9333_v9 = vld [vmem:[#allocation4 + $0x70] sm:$0xff]  ;;  %v9336_v11 = vld [vmem:[#allocation4 + $0x48] sm:$0xff]  ;;  %13320 = vst [vmem:[#allocation161_spill] sm:$0xff] %v9342_v15 }
 0x276   :  { %13317 = vst [vmem:[#allocation158_spill] sm:$0xff] %v9333_v9  ;;  %13318 = vst [vmem:[#allocation159_spill] sm:$0xff] %v9336_v11 }
 0x277   :  { %7358 = vtanh.f32 %v9219_v12 }
 0x284   :  { %v7359_v17 = vpop.eup %7358 }
 0x285   :  { %v1323_v19 = vmul.f32 %v7359_v17, %v1318_v16  ;;  %v9345_v16 = vld [vmem:[#allocation4 + $0x50] sm:$0xff]  ;;  %v9348_v17 = vld [vmem:[#allocation4 + $0x28] sm:$0xff] }
 0x286   :  { %13321 = vst [vmem:[#allocation162_spill] sm:$0xff] %v9345_v16  ;;  %13322 = vst [vmem:[#allocation163_spill] sm:$0xff] %v9348_v17 }
 0x287   :  { %1394 = vmatmul.mubr.f32.vlgmr.msra.gmra.mxu0 %v1323_v19  ;;  %1465 = vmatmul.mubr.f32.vlgmr.msra.gmra.mxu1 %v1323_v19  ;;  %v9351_v19 = vld [vmem:[#allocation4 + $0x38] sm:$0xff] }
 0x288   :  { %1499 = vmatpush1.msra.mxu0 %v9104_v25  ;;  %1570 = vmatpush1.msra.mxu1 %v9107_v2  ;;  %13323 = vst [vmem:[#allocation164_spill] sm:$0xff] %v9351_v19 }
 0x289   :  { %1500 = vmatprep.subr.mxu0 %v9110_v6  ;;  %1571 = vmatprep.subr.mxu1 %v9113_v62 }
 0x28a   :  { %1501 = vmatpush1.msra.mxu0 %v9116_v23  ;;  %1572 = vmatpush1.msra.mxu1 %v9119_v34 }
 0x28b   :  { %1502 = vmatprep.subr.mxu0 %v9122_v18  ;;  %1573 = vmatprep.subr.mxu1 %v9125_v35 }
 0x28c   :  { %1503 = vmatpush1.msra.mxu0 %v9128_v33  ;;  %1574 = vmatpush1.msra.mxu1 %v9131_v32 }
 0x28d   :  { %1504 = vmatprep.subr.mxu0 %v9134_v22  ;;  %1575 = vmatprep.subr.mxu1 %v9137_v42 }
 0x28e   :  { %1505 = vmatpush1.msra.mxu0 %v9140_v24  ;;  %1576 = vmatpush1.msra.mxu1 %v9143_v30 }
 0x28f   :  { %1506 = vmatprep.subr.mxu0 %v9146_v31  ;;  %1577 = vmatprep.subr.mxu1 %v9237_v20 }
 0x290   :  { %1507 = vmatpush1.msra.mxu0 %v9150_v4  ;;  %1578 = vmatpush1.msra.mxu1 %v9241_v21 }
 0x291   :  { %1508 = vmatprep.subr.mxu0 %v9154_v10  ;;  %1579 = vmatprep.subr.mxu1 %v9245_v8 }
 0x292   :  { %1509 = vmatpush1.msra.mxu0 %v9158_v28  ;;  %1580 = vmatpush1.msra.mxu1 %v9249_v38 }
 0x293   :  { %1510 = vmatprep.subr.mxu0 %v9252_v40  ;;  %1581 = vmatprep.subr.mxu1 %v9255_v1 }
 0x294   :  { %1511 = vmatpush1.msra.mxu0 %v9258_v44  ;;  %1582 = vmatpush1.msra.mxu1 %v9261_v45 }
 0x295   :  { %1512 = vmatprep.subr.mxu0 %v9264_v48  ;;  %1583 = vmatprep.subr.mxu1 %v9267_v49 }
 0x296   :  { %1513 = vmatpush1.msra.mxu0 %v9270_v50  ;;  %1584 = vmatpush1.msra.mxu1 %v9273_v51 }
 0x297   :  { %1514 = vmatprep.subr.mxu0 %v9276_v53  ;;  %1585 = vmatprep.subr.mxu1 %v9279_v54 }
 0x298   :  { %1515 = vmatpush1.msra.mxu0 %v9282_v55  ;;  %1586 = vmatpush1.msra.mxu1 %v9285_v56 }
 0x299   :  { %1516 = vmatprep.subr.mxu0 %v9288_v58  ;;  %1587 = vmatprep.subr.mxu1 %v9291_v59 }
 0x29a   :  { %1517 = vmatpush1.msra.mxu0 %v9294_v60  ;;  %1588 = vmatpush1.msra.mxu1 %v9297_v61 }
 0x29b   :  { %1518 = vmatprep.subr.mxu0 %v9300_v63  ;;  %1589 = vmatprep.subr.mxu1 %v9303_v0 }
 0x29c   :  { %1519 = vmatpush1.msra.mxu0 %v9306_v3  ;;  %1590 = vmatpush1.msra.mxu1 %v9309_v7 }
 0x29d   :  { %1520 = vmatprep.subr.mxu0 %v9312_v14  ;;  %1591 = vmatprep.subr.mxu1 %v9315_v27 }
 0x29e   :  { %1521 = vmatpush1.msra.mxu0 %v9318_v37  ;;  %1592 = vmatpush1.msra.mxu1 %v9321_v47 }
 0x29f   :  { %1522 = vmatprep.subr.mxu0 %v9324_v52  ;;  %1593 = vmatprep.subr.mxu1 %v9327_v57  ;;  %v13332_v52 = vld [vmem:[#allocation33_spill] sm:$0xff] }
 0x2a0   :  { %1523 = vmatpush1.msra.mxu0 %v9330_v5  ;;  %1594 = vmatpush1.msra.mxu1 %v9333_v9  ;;  %v577_v47 = vadd.f32 %v13332_v52, %v9089_v26 }
 0x2a1   :  { %1524 = vmatprep.subr.mxu0 %v9336_v11  ;;  %1595 = vmatprep.subr.mxu1 %v9339_v13  ;;  %v9354_v11 = vld [vmem:[#allocation4 + $0x20] sm:$0xff]  ;;  %v9357_v13 = vld [vmem:[#allocation4 + $0x30] sm:$0xff] }
 0x2a2   :  { %1525 = vmatpush1.msra.mxu0 %v9342_v15  ;;  %1596 = vmatpush1.msra.mxu1 %v9345_v16  ;;  %13324 = vst [vmem:[#allocation165_spill] sm:$0xff] %v9354_v11  ;;  %13325 = vst [vmem:[#allocation166_spill] sm:$0xff] %v9357_v13  ;;  %v9360_v15 = vld [vmem:[#allocation4 + $0x8] sm:$0xff]  ;;  %v9363_v16 = vld [vmem:[#allocation4 + $0x18] sm:$0xff] }
 0x2a3   :  { %1526 = vmatprep.subr.mxu0 %v9348_v17  ;;  %1597 = vmatprep.subr.mxu1 %v9351_v19  ;;  %13326 = vst [vmem:[#allocation167_spill] sm:$0xff] %v9360_v15  ;;  %13327 = vst [vmem:[#allocation168_spill] sm:$0xff] %v9363_v16  ;;  %v9366_v17 = vld [vmem:[#allocation4] sm:$0xff]  ;;  %v9370_v19 = vld [vmem:[#allocation4 + $0x10] sm:$0xff] }
 0x2a4   :  { %1527 = vmatpush1.msra.mxu0 %v9354_v11  ;;  %1598 = vmatpush1.msra.mxu1 %v9357_v13  ;;  %13328 = vst [vmem:[#allocation169_spill] sm:$0xff] %v9366_v17  ;;  %13329 = vst [vmem:[#allocation170_spill] sm:$0xff] %v9370_v19  ;;  %v13331_v11 = vld [vmem:[#allocation18_spill] sm:$0xff] }
 0x2a5   :  { %1528 = vmatprep.subr.mxu0 %v9360_v15  ;;  %1599 = vmatprep.subr.mxu1 %v9363_v16  ;;  %v13330_v15 = vld [vmem:[#allocation16_spill] sm:$0xff]  ;;  %v298_v9 = vadd.f32 %v13331_v11, %v13305_v46 }
 0x2a6   :  { %1529 = vmatpush1.msra.mxu0 %v9366_v17  ;;  %1562 = vmatprep.mubr.f32.mxu0 %v13300_v39  ;;  %v296_v13 = vadd.f32 %v13330_v15, %v9071_v36  ;;  %v13333_v15 = vld [vmem:[#allocation35_spill] sm:$0xff] }
 0x2a7   :  { %1600 = vmatpush1.msra.mxu1 %v9370_v19  ;;  %1633 = vmatprep.mubr.f32.mxu1 %v13300_v39  ;;  %v579_v36 = vadd.f32 %v13333_v15, %v9097_v29  ;;  %v13341_v15 = vld [vmem:[#allocation157_spill] sm:$0xff] }
 0x2a8   :  { %1667 = vmatprep.subr.mxu0 %v9204_v41  ;;  %1738 = vmatprep.subr.mxu1 %v9207_v43 }
 0x347   :  { %v1395_v16 = vpop.f32.mrf.mxu0  ;;  %v1466_v5 = vpop.f32.mrf.mxu1 }
 0x348   :  { %v1471_v17 = vadd.f32 %v1395_v16, %v296_v13  ;;  %v1473_v39 = vadd.f32 %v1466_v5, %v577_v47 }
 0x349   :  { %v1397_v57 = vpop.f32.mrf.mxu0  ;;  %v1468_v43 = vpop.f32.mrf.mxu1 }
 0x34a   :  { %v1475_v19 = vmul.f32 0.5, %v1471_v17  ;;  %v1472_v37 = vadd.f32 %v1397_v57, %v298_v9  ;;  %v1474_v27 = vadd.f32 %v1468_v43, %v579_v36  ;;  %v13339_v9 = vld [vmem:[#allocation155_spill] sm:$0xff] }
 0x34c   :  { %7360 = vtanh.f32 %v1475_v19  ;;  %v1479_v41 = vmul.f32 0.5, %v1472_v37  ;;  %v1484_v14 = vmul.f32 0.5, %v1474_v27  ;;  %v13338_v27 = vld [vmem:[#allocation154_spill] sm:$0xff]  ;;  %v13340_v19 = vld [vmem:[#allocation156_spill] sm:$0xff] }
 0x34e   :  { %7362 = vtanh.f32 %v1479_v41 }
 0x34f   :  { %7364 = vtanh.f32 %v1473_v39 }
 0x350   :  { %7366 = vtanh.f32 %v1484_v14  ;;  %v13337_v14 = vld [vmem:[#allocation31_spill] sm:$0xff] }
 0x359   :  { %v7361_v11 = vpop.eup %7360 }
 0x35a   :  { %v1477_v13 = vmul.f32 0.5, %v7361_v11  ;;  %v13342_v11 = vld [vmem:[#allocation158_spill] sm:$0xff] }
 0x35b   :  { %v7363_v16 = vpop.eup %7362 }
 0x35c   :  { %v1478_v46 = vadd.f32 0.5, %v1477_v13  ;;  %v1481_v7 = vmul.f32 0.5, %v7363_v16  ;;  %v7365_v52 = vpop.eup %7364  ;;  %v13343_v13 = vld [vmem:[#allocation159_spill] sm:$0xff]  ;;  %v13344_v16 = vld [vmem:[#allocation160_spill] sm:$0xff] }
 0x35d   :  { %v7367_v39 = vpop.eup %7366 }
 0x35e   :  { %v1482_v17 = vadd.f32 0.5, %v1481_v7  ;;  %v1489_v57 = vmul.f32 %v7365_v52, %v1478_v46  ;;  %v1486_v41 = vmul.f32 0.5, %v7367_v39  ;;  %v13334_v46 = vld [vmem:[#allocation12_spill] sm:$0xff]  ;;  %v13336_v7 = vld [vmem:[#allocation29_spill] sm:$0xff] }
 0x35f   :  { %v13345_v52 = vld [vmem:[#allocation161_spill] sm:$0xff] }
 0x360   :  { %v1488_v47 = vmul.f32 %v1482_v17, %v9219_v12  ;;  %v1487_v5 = vadd.f32 0.5, %v1486_v41  ;;  %v13335_v12 = vld [vmem:[#allocation14_spill] sm:$0xff]  ;;  %v13349_v39 = vld [vmem:[#allocation165_spill] sm:$0xff] }
 0x361   :  { %v13346_v17 = vld [vmem:[#allocation162_spill] sm:$0xff] }
 0x362   :  { %v9385_v37 = vadd.f32 %v1489_v57, %v1488_v47  ;;  %v13347_v57 = vld [vmem:[#allocation163_spill] sm:$0xff]  ;;  %v13348_v47 = vld [vmem:[#allocation164_spill] sm:$0xff]  ;;  %v13350_v41 = vld [vmem:[#allocation166_spill] sm:$0xff] }
 0x364   :  { %7368 = vtanh.f32 %v9385_v37 }
 0x371   :  { %v7369_v36 = vpop.eup %7368 }
 0x372   :  { %v1492_v43 = vmul.f32 %v7369_v36, %v1487_v5  ;;  %v13351_v5 = vld [vmem:[#allocation167_spill] sm:$0xff]  ;;  %v13352_v36 = vld [vmem:[#allocation168_spill] sm:$0xff] }
 0x374   :  { %1563 = vmatmul.mubr.f32.vlgmr.msra.gmra.mxu0 %v1492_v43  ;;  %1634 = vmatmul.mubr.f32.vlgmr.msra.gmra.mxu1 %v1492_v43  ;;  %v13353_v43 = vld [vmem:[#allocation169_spill] sm:$0xff] }
 0x375   :  { %1668 = vmatpush1.msra.mxu0 %v9104_v25  ;;  %1739 = vmatpush1.msra.mxu1 %v9107_v2 }
 0x376   :  { %1669 = vmatprep.subr.mxu0 %v9110_v6  ;;  %1740 = vmatprep.subr.mxu1 %v9113_v62 }
 0x377   :  { %1670 = vmatpush1.msra.mxu0 %v9116_v23  ;;  %1741 = vmatpush1.msra.mxu1 %v9119_v34 }
 0x378   :  { %1671 = vmatprep.subr.mxu0 %v9122_v18  ;;  %1742 = vmatprep.subr.mxu1 %v9125_v35 }
 0x379   :  { %1672 = vmatpush1.msra.mxu0 %v9128_v33  ;;  %1743 = vmatpush1.msra.mxu1 %v9131_v32 }
 0x37a   :  { %1673 = vmatprep.subr.mxu0 %v9134_v22  ;;  %1744 = vmatprep.subr.mxu1 %v9137_v42 }
 0x37b   :  { %1674 = vmatpush1.msra.mxu0 %v9140_v24  ;;  %1745 = vmatpush1.msra.mxu1 %v9143_v30 }
 0x37c   :  { %1675 = vmatprep.subr.mxu0 %v9146_v31  ;;  %1746 = vmatprep.subr.mxu1 %v9237_v20 }
 0x37d   :  { %1676 = vmatpush1.msra.mxu0 %v9150_v4  ;;  %1747 = vmatpush1.msra.mxu1 %v9241_v21 }
 0x37e   :  { %1677 = vmatprep.subr.mxu0 %v9154_v10  ;;  %1748 = vmatprep.subr.mxu1 %v9245_v8 }
 0x37f   :  { %1678 = vmatpush1.msra.mxu0 %v9158_v28  ;;  %1749 = vmatpush1.msra.mxu1 %v9249_v38 }
 0x380   :  { %1679 = vmatprep.subr.mxu0 %v9252_v40  ;;  %1750 = vmatprep.subr.mxu1 %v9255_v1 }
 0x381   :  { %1680 = vmatpush1.msra.mxu0 %v9258_v44  ;;  %1751 = vmatpush1.msra.mxu1 %v9261_v45 }
 0x382   :  { %1681 = vmatprep.subr.mxu0 %v9264_v48  ;;  %1752 = vmatprep.subr.mxu1 %v9267_v49 }
 0x383   :  { %1682 = vmatpush1.msra.mxu0 %v9270_v50  ;;  %1753 = vmatpush1.msra.mxu1 %v9273_v51 }
 0x384   :  { %1683 = vmatprep.subr.mxu0 %v9276_v53  ;;  %1754 = vmatprep.subr.mxu1 %v9279_v54 }
 0x385   :  { %1684 = vmatpush1.msra.mxu0 %v9282_v55  ;;  %1755 = vmatpush1.msra.mxu1 %v9285_v56 }
 0x386   :  { %1685 = vmatprep.subr.mxu0 %v9288_v58  ;;  %1756 = vmatprep.subr.mxu1 %v9291_v59 }
 0x387   :  { %1686 = vmatpush1.msra.mxu0 %v9294_v60  ;;  %1757 = vmatpush1.msra.mxu1 %v9297_v61 }
 0x388   :  { %1687 = vmatprep.subr.mxu0 %v9300_v63  ;;  %1758 = vmatprep.subr.mxu1 %v9303_v0 }
 0x389   :  { %1688 = vmatpush1.msra.mxu0 %v9306_v3  ;;  %1759 = vmatpush1.msra.mxu1 %v13334_v46 }
 0x38a   :  { %1689 = vmatprep.subr.mxu0 %v13335_v12  ;;  %1760 = vmatprep.subr.mxu1 %v13336_v7 }
 0x38b   :  { %1690 = vmatpush1.msra.mxu0 %v13337_v14  ;;  %1761 = vmatpush1.msra.mxu1 %v13338_v27 }
 0x38c   :  { %1691 = vmatprep.subr.mxu0 %v13339_v9  ;;  %1762 = vmatprep.subr.mxu1 %v13340_v19  ;;  %v13362_v9 = vld [vmem:[#allocation37_spill] sm:$0xff] }
 0x38d   :  { %1692 = vmatpush1.msra.mxu0 %v13341_v15  ;;  %1763 = vmatpush1.msra.mxu1 %v13342_v11  ;;  %v13360_v11 = vld [vmem:[#allocation143_spill] sm:$0xff]  ;;  %v583_v27 = vadd.f32 %v13362_v9, %v9089_v26 }
 0x38e   :  { %1693 = vmatprep.subr.mxu0 %v13343_v13  ;;  %1764 = vmatprep.subr.mxu1 %v13344_v16  ;;  %v13354_v13 = vmov 0.0   ;;  %v13355_v16 = vld [vmem:[#allocation170_spill] sm:$0xff] }
 0x38f   :  { %1694 = vmatpush1.msra.mxu0 %v13345_v52  ;;  %1765 = vmatpush1.msra.mxu1 %v13346_v17  ;;  %v13356_v17 = vld [vmem:[#allocation19_spill] sm:$0xff] }
 0x390   :  { %1695 = vmatprep.subr.mxu0 %v13347_v57  ;;  %1766 = vmatprep.subr.mxu1 %v13348_v47  ;;  %v13357_v57 = vld [vmem:[#allocation22_spill] sm:$0xff]  ;;  %v13358_v47 = vld [vmem:[#allocation145_spill] sm:$0xff] }
 0x391   :  { %1696 = vmatpush1.msra.mxu0 %v13349_v39  ;;  %1767 = vmatpush1.msra.mxu1 %v13350_v41  ;;  %v13359_v39 = vld [vmem:[#allocation21_spill] sm:$0xff] }
 0x392   :  { %1697 = vmatprep.subr.mxu0 %v13351_v5  ;;  %1768 = vmatprep.subr.mxu1 %v13352_v36  ;;  %v302_v52 = vadd.f32 %v13359_v39, %v13358_v47  ;;  %v13361_v5 = vld [vmem:[#allocation24_spill] sm:$0xff]  ;;  %v13363_v39 = vld [vmem:[#allocation39_spill] sm:$0xff] }
 0x393   :  { %1698 = vmatpush1.msra.mxu0 %v13353_v43  ;;  %1731 = vmatprep.mubr.f32.mxu0 %v13354_v13  ;;  %v304_v15 = vadd.f32 %v13361_v5, %v13360_v11  ;;  %v585_v47 = vadd.f32 %v13363_v39, %v9097_v29  ;;  %v13371_v39 = vld [vmem:[#allocation157_spill] sm:$0xff] }
 0x394   :  { %1769 = vmatpush1.msra.mxu1 %v13355_v16  ;;  %1802 = vmatprep.mubr.f32.mxu1 %v13354_v13 }
 0x395   :  { %1836 = vmatprep.subr.mxu0 %v13356_v17  ;;  %1907 = vmatprep.subr.mxu1 %v13357_v57 }
 0x434   :  { %v1564_v41 = vpop.f32.mrf.mxu0  ;;  %v1635_v19 = vpop.f32.mrf.mxu1 }
 0x435   :  { %v1640_v36 = vadd.f32 %v1564_v41, %v302_v52  ;;  %v1642_v13 = vadd.f32 %v1635_v19, %v583_v27 }
 0x436   :  { %v1566_v43 = vpop.f32.mrf.mxu0  ;;  %v1637_v57 = vpop.f32.mrf.mxu1 }
 0x437   :  { %v1644_v16 = vmul.f32 0.5, %v1640_v36  ;;  %v1641_v14 = vadd.f32 %v1566_v43, %v304_v15  ;;  %v1643_v7 = vadd.f32 %v1637_v57, %v585_v47  ;;  %v13368_v57 = vld [vmem:[#allocation154_spill] sm:$0xff]  ;;  %v13369_v47 = vld [vmem:[#allocation155_spill] sm:$0xff]  ;;  %v13370_v43 = vld [vmem:[#allocation156_spill] sm:$0xff] }
 0x439   :  { %7370 = vtanh.f32 %v1644_v16  ;;  %v1648_v17 = vmul.f32 0.5, %v1641_v14  ;;  %v1653_v12 = vmul.f32 0.5, %v1643_v7 }
 0x43b   :  { %7372 = vtanh.f32 %v1648_v17 }
 0x43c   :  { %7374 = vtanh.f32 %v1642_v13 }
 0x43d   :  { %7376 = vtanh.f32 %v1653_v12  ;;  %v13366_v12 = vld [vmem:[#allocation29_spill] sm:$0xff] }
 0x446   :  { %v7371_v5 = vpop.eup %7370 }
 0x447   :  { %v1646_v52 = vmul.f32 0.5, %v7371_v5  ;;  %v13372_v5 = vld [vmem:[#allocation158_spill] sm:$0xff] }
 0x448   :  { %v7373_v41 = vpop.eup %7372 }
 0x449   :  { %v1647_v11 = vadd.f32 0.5, %v1646_v52  ;;  %v1650_v46 = vmul.f32 0.5, %v7373_v41  ;;  %v7375_v9 = vpop.eup %7374  ;;  %v13373_v52 = vld [vmem:[#allocation159_spill] sm:$0xff]  ;;  %v13374_v41 = vld [vmem:[#allocation160_spill] sm:$0xff] }
 0x44a   :  { %v7377_v19 = vpop.eup %7376 }
 0x44b   :  { %v1651_v36 = vadd.f32 0.5, %v1650_v46  ;;  %v1658_v15 = vmul.f32 %v7375_v9, %v1647_v11  ;;  %v1655_v13 = vmul.f32 0.5, %v7377_v19  ;;  %v13365_v46 = vld [vmem:[#allocation14_spill] sm:$0xff]  ;;  %v13367_v11 = vld [vmem:[#allocation31_spill] sm:$0xff]  ;;  %v13375_v9 = vld [vmem:[#allocation161_spill] sm:$0xff] }
 0x44c   :  { %v13379_v19 = vld [vmem:[#allocation165_spill] sm:$0xff] }
 0x44d   :  { %v1657_v27 = vmul.f32 %v1651_v36, %v9385_v37  ;;  %v1656_v16 = vadd.f32 0.5, %v1655_v13  ;;  %v13364_v37 = vld [vmem:[#allocation12_spill] sm:$0xff]  ;;  %v13376_v36 = vld [vmem:[#allocation162_spill] sm:$0xff] }
 0x44e   :  { %v13380_v13 = vld [vmem:[#allocation166_spill] sm:$0xff] }
 0x44f   :  { %v9463_v14 = vadd.f32 %v1658_v15, %v1657_v27  ;;  %v13377_v15 = vld [vmem:[#allocation163_spill] sm:$0xff]  ;;  %v13378_v27 = vld [vmem:[#allocation164_spill] sm:$0xff] }
 0x451   :  { %7378 = vtanh.f32 %v9463_v14 }
 0x45e   :  { %v7379_v17 = vpop.eup %7378 }
 0x45f   :  { %v1661_v7 = vmul.f32 %v7379_v17, %v1656_v16  ;;  %v13381_v16 = vld [vmem:[#allocation167_spill] sm:$0xff]  ;;  %v13382_v17 = vld [vmem:[#allocation168_spill] sm:$0xff] }
 0x461   :  { %1732 = vmatmul.mubr.f32.vlgmr.msra.gmra.mxu0 %v1661_v7  ;;  %1803 = vmatmul.mubr.f32.vlgmr.msra.gmra.mxu1 %v1661_v7  ;;  %v13383_v7 = vld [vmem:[#allocation169_spill] sm:$0xff] }
 0x462   :  { %1837 = vmatpush1.msra.mxu0 %v9104_v25  ;;  %1908 = vmatpush1.msra.mxu1 %v9107_v2 }
 0x463   :  { %1838 = vmatprep.subr.mxu0 %v9110_v6  ;;  %1909 = vmatprep.subr.mxu1 %v9113_v62 }
 0x464   :  { %1839 = vmatpush1.msra.mxu0 %v9116_v23  ;;  %1910 = vmatpush1.msra.mxu1 %v9119_v34 }
 0x465   :  { %1840 = vmatprep.subr.mxu0 %v9122_v18  ;;  %1911 = vmatprep.subr.mxu1 %v9125_v35 }
 0x466   :  { %1841 = vmatpush1.msra.mxu0 %v9128_v33  ;;  %1912 = vmatpush1.msra.mxu1 %v9131_v32 }
 0x467   :  { %1842 = vmatprep.subr.mxu0 %v9134_v22  ;;  %1913 = vmatprep.subr.mxu1 %v9137_v42 }
 0x468   :  { %1843 = vmatpush1.msra.mxu0 %v9140_v24  ;;  %1914 = vmatpush1.msra.mxu1 %v9143_v30 }
 0x469   :  { %1844 = vmatprep.subr.mxu0 %v9146_v31  ;;  %1915 = vmatprep.subr.mxu1 %v9237_v20 }
 0x46a   :  { %1845 = vmatpush1.msra.mxu0 %v9150_v4  ;;  %1916 = vmatpush1.msra.mxu1 %v9241_v21 }
 0x46b   :  { %1846 = vmatprep.subr.mxu0 %v9154_v10  ;;  %1917 = vmatprep.subr.mxu1 %v9245_v8 }
 0x46c   :  { %1847 = vmatpush1.msra.mxu0 %v9158_v28  ;;  %1918 = vmatpush1.msra.mxu1 %v9249_v38 }
 0x46d   :  { %1848 = vmatprep.subr.mxu0 %v9252_v40  ;;  %1919 = vmatprep.subr.mxu1 %v9255_v1 }
 0x46e   :  { %1849 = vmatpush1.msra.mxu0 %v9258_v44  ;;  %1920 = vmatpush1.msra.mxu1 %v9261_v45 }
 0x46f   :  { %1850 = vmatprep.subr.mxu0 %v9264_v48  ;;  %1921 = vmatprep.subr.mxu1 %v9267_v49 }
 0x470   :  { %1851 = vmatpush1.msra.mxu0 %v9270_v50  ;;  %1922 = vmatpush1.msra.mxu1 %v9273_v51 }
 0x471   :  { %1852 = vmatprep.subr.mxu0 %v9276_v53  ;;  %1923 = vmatprep.subr.mxu1 %v9279_v54 }
 0x472   :  { %1853 = vmatpush1.msra.mxu0 %v9282_v55  ;;  %1924 = vmatpush1.msra.mxu1 %v9285_v56 }
 0x473   :  { %1854 = vmatprep.subr.mxu0 %v9288_v58  ;;  %1925 = vmatprep.subr.mxu1 %v9291_v59 }
 0x474   :  { %1855 = vmatpush1.msra.mxu0 %v9294_v60  ;;  %1926 = vmatpush1.msra.mxu1 %v9297_v61 }
 0x475   :  { %1856 = vmatprep.subr.mxu0 %v9300_v63  ;;  %1927 = vmatprep.subr.mxu1 %v9303_v0 }
 0x476   :  { %1857 = vmatpush1.msra.mxu0 %v9306_v3  ;;  %1928 = vmatpush1.msra.mxu1 %v13364_v37 }
 0x477   :  { %1858 = vmatprep.subr.mxu0 %v13365_v46  ;;  %1929 = vmatprep.subr.mxu1 %v13366_v12 }
 0x478   :  { %1859 = vmatpush1.msra.mxu0 %v13367_v11  ;;  %1930 = vmatpush1.msra.mxu1 %v13368_v57 }
 0x479   :  { %1860 = vmatprep.subr.mxu0 %v13369_v47  ;;  %1931 = vmatprep.subr.mxu1 %v13370_v43  ;;  %v13392_v47 = vld [vmem:[#allocation41_spill] sm:$0xff] }
 0x47a   :  { %1861 = vmatpush1.msra.mxu0 %v13371_v39  ;;  %1932 = vmatpush1.msra.mxu1 %v13372_v5  ;;  %v13390_v5 = vld [vmem:[#allocation143_spill] sm:$0xff]  ;;  %v589_v57 = vadd.f32 %v13392_v47, %v9089_v26 }
 0x47b   :  { %1862 = vmatprep.subr.mxu0 %v13373_v52  ;;  %1933 = vmatprep.subr.mxu1 %v13374_v41  ;;  %v13384_v52 = vmov 0.0   ;;  %v13385_v41 = vld [vmem:[#allocation170_spill] sm:$0xff] }
 0x47c   :  { %1863 = vmatpush1.msra.mxu0 %v13375_v9  ;;  %1934 = vmatpush1.msra.mxu1 %v13376_v36  ;;  %v13386_v36 = vld [vmem:[#allocation19_spill] sm:$0xff] }
 0x47d   :  { %1864 = vmatprep.subr.mxu0 %v13377_v15  ;;  %1935 = vmatprep.subr.mxu1 %v13378_v27  ;;  %v13387_v15 = vld [vmem:[#allocation22_spill] sm:$0xff]  ;;  %v13388_v27 = vld [vmem:[#allocation145_spill] sm:$0xff] }
 0x47e   :  { %1865 = vmatpush1.msra.mxu0 %v13379_v19  ;;  %1936 = vmatpush1.msra.mxu1 %v13380_v13  ;;  %v13389_v19 = vld [vmem:[#allocation26_spill] sm:$0xff] }
 0x47f   :  { %1866 = vmatprep.subr.mxu0 %v13381_v16  ;;  %1937 = vmatprep.subr.mxu1 %v13382_v17  ;;  %v308_v9 = vadd.f32 %v13389_v19, %v13388_v27  ;;  %v13391_v16 = vld [vmem:[#allocation27_spill] sm:$0xff] }
 0x480   :  { %1867 = vmatpush1.msra.mxu0 %v13383_v7  ;;  %1900 = vmatprep.mubr.f32.mxu0 %v13384_v52  ;;  %v310_v39 = vadd.f32 %v13391_v16, %v13390_v5  ;;  %v13393_v19 = vld [vmem:[#allocation43_spill] sm:$0xff] }
 0x481   :  { %1938 = vmatpush1.msra.mxu1 %v13385_v41  ;;  %1971 = vmatprep.mubr.f32.mxu1 %v13384_v52  ;;  %v591_v27 = vadd.f32 %v13393_v19, %v9097_v29  ;;  %v13419_v19 = vld [vmem:[#allocation28_spill] sm:$0xff] }
 0x482   :  { %2005 = vmatprep.subr.mxu0 %v13386_v36  ;;  %2076 = vmatprep.subr.mxu1 %v13387_v15 }
 0x521   :  { %v1733_v13 = vpop.f32.mrf.mxu0  ;;  %v1804_v43 = vpop.f32.mrf.mxu1 }
 0x522   :  { %v1809_v17 = vadd.f32 %v1733_v13, %v308_v9  ;;  %v1811_v52 = vadd.f32 %v1804_v43, %v589_v57 }
 0x523   :  { %v1735_v7 = vpop.f32.mrf.mxu0  ;;  %v1806_v15 = vpop.f32.mrf.mxu1 }
 0x524   :  { %v1813_v41 = vmul.f32 0.5, %v1809_v17  ;;  %v1810_v11 = vadd.f32 %v1735_v7, %v310_v39  ;;  %v1812_v12 = vadd.f32 %v1806_v15, %v591_v27  ;;  %v13416_v15 = vld [vmem:[#allocation19_spill] sm:$0xff]  ;;  %v13417_v27 = vld [vmem:[#allocation22_spill] sm:$0xff]  ;;  %v13418_v7 = vld [vmem:[#allocation145_spill] sm:$0xff] }
 0x526   :  { %7380 = vtanh.f32 %v1813_v41  ;;  %v1817_v36 = vmul.f32 0.5, %v1810_v11  ;;  %v1822_v46 = vmul.f32 0.5, %v1812_v12 }
 0x528   :  { %7382 = vtanh.f32 %v1817_v36 }
 0x529   :  { %7384 = vtanh.f32 %v1811_v52 }
 0x52a   :  { %7386 = vtanh.f32 %v1822_v46  ;;  %v13414_v46 = vmov 0.0  }
 0x533   :  { %v7381_v16 = vpop.eup %7380 }
 0x534   :  { %v1815_v9 = vmul.f32 0.5, %v7381_v16  ;;  %v314_v16 = vadd.f32 %v13419_v19, %v13418_v7  ;;  %v13423_v19 = vld [vmem:[#allocation47_spill] sm:$0xff] }
 0x535   :  { %v7383_v13 = vpop.eup %7382  ;;  %v597_v7 = vadd.f32 %v13423_v19, %v9097_v29  ;;  %v9643_v19 = vld [vmem:[#allocation4 + $0x1b8] sm:$0xff] }
 0x536   :  { %v1816_v5 = vadd.f32 0.5, %v1815_v9  ;;  %v1819_v37 = vmul.f32 0.5, %v7383_v13  ;;  %v7385_v47 = vpop.eup %7384  ;;  %v13420_v13 = vld [vmem:[#allocation143_spill] sm:$0xff] }
 0x537   :  { %v7387_v43 = vpop.eup %7386 }
 0x538   :  { %v1820_v17 = vadd.f32 0.5, %v1819_v37  ;;  %v1827_v39 = vmul.f32 %v7385_v47, %v1816_v5  ;;  %v1824_v52 = vmul.f32 0.5, %v7387_v43  ;;  %v13413_v37 = vld [vmem:[#allocation169_spill] sm:$0xff]  ;;  %v13415_v5 = vld [vmem:[#allocation170_spill] sm:$0xff] }
 0x539   :  { %v13421_v47 = vld [vmem:[#allocation30_spill] sm:$0xff] }
 0x53a   :  { %v1826_v57 = vmul.f32 %v1820_v17, %v9463_v14  ;;  %v1825_v41 = vadd.f32 0.5, %v1824_v52  ;;  %v13412_v14 = vld [vmem:[#allocation168_spill] sm:$0xff]  ;;  %v316_v17 = vadd.f32 %v13421_v47, %v13420_v13  ;;  %v13422_v52 = vld [vmem:[#allocation45_spill] sm:$0xff] }
 0x53c   :  { %v9541_v11 = vadd.f32 %v1827_v39, %v1826_v57 }
 0x53e   :  { %7388 = vtanh.f32 %v9541_v11 }
 0x54b   :  { %v7389_v36 = vpop.eup %7388 }
 0x54c   :  { %v1830_v12 = vmul.f32 %v7389_v36, %v1825_v41  ;;  %v595_v41 = vadd.f32 %v13422_v52, %v9089_v26 }
 0x54e   :  { %1901 = vmatmul.mubr.f32.vlgmr.msra.gmra.mxu0 %v1830_v12  ;;  %1972 = vmatmul.mubr.f32.vlgmr.msra.gmra.mxu1 %v1830_v12 }
 0x54f   :  { %2006 = vmatpush1.msra.mxu0 %v9104_v25  ;;  %2077 = vmatpush1.msra.mxu1 %v9107_v2  ;;  %v13395_v25 = vld [vmem:[#allocation14_spill] sm:$0xff]  ;;  %v13396_v2 = vld [vmem:[#allocation29_spill] sm:$0xff] }
 0x550   :  { %2007 = vmatprep.subr.mxu0 %v9110_v6  ;;  %2078 = vmatprep.subr.mxu1 %v9113_v62  ;;  %v13397_v6 = vld [vmem:[#allocation31_spill] sm:$0xff]  ;;  %v13398_v62 = vld [vmem:[#allocation154_spill] sm:$0xff] }
 0x551   :  { %2008 = vmatpush1.msra.mxu0 %v9116_v23  ;;  %2079 = vmatpush1.msra.mxu1 %v9119_v34  ;;  %v13399_v23 = vld [vmem:[#allocation155_spill] sm:$0xff]  ;;  %v13400_v34 = vld [vmem:[#allocation156_spill] sm:$0xff] }
 0x552   :  { %2009 = vmatprep.subr.mxu0 %v9122_v18  ;;  %2080 = vmatprep.subr.mxu1 %v9125_v35  ;;  %v13401_v18 = vld [vmem:[#allocation157_spill] sm:$0xff]  ;;  %v13402_v35 = vld [vmem:[#allocation158_spill] sm:$0xff] }
 0x553   :  { %2010 = vmatpush1.msra.mxu0 %v9128_v33  ;;  %2081 = vmatpush1.msra.mxu1 %v9131_v32  ;;  %v13403_v33 = vld [vmem:[#allocation159_spill] sm:$0xff]  ;;  %v13404_v32 = vld [vmem:[#allocation160_spill] sm:$0xff] }
 0x554   :  { %2011 = vmatprep.subr.mxu0 %v9134_v22  ;;  %2082 = vmatprep.subr.mxu1 %v9137_v42  ;;  %v13405_v22 = vld [vmem:[#allocation161_spill] sm:$0xff]  ;;  %v13406_v42 = vld [vmem:[#allocation162_spill] sm:$0xff] }
 0x555   :  { %2012 = vmatpush1.msra.mxu0 %v9140_v24  ;;  %2083 = vmatpush1.msra.mxu1 %v9143_v30  ;;  %v13407_v24 = vld [vmem:[#allocation163_spill] sm:$0xff]  ;;  %v13408_v30 = vld [vmem:[#allocation164_spill] sm:$0xff] }
 0x556   :  { %2013 = vmatprep.subr.mxu0 %v9146_v31  ;;  %2084 = vmatprep.subr.mxu1 %v9237_v20  ;;  %v13409_v31 = vld [vmem:[#allocation165_spill] sm:$0xff] }
 0x557   :  { %2014 = vmatpush1.msra.mxu0 %v9150_v4  ;;  %2085 = vmatpush1.msra.mxu1 %v9241_v21  ;;  %v13410_v4 = vld [vmem:[#allocation166_spill] sm:$0xff] }
 0x558   :  { %2015 = vmatprep.subr.mxu0 %v9154_v10  ;;  %2086 = vmatprep.subr.mxu1 %v9245_v8  ;;  %v13411_v10 = vld [vmem:[#allocation167_spill] sm:$0xff] }
 0x559   :  { %2016 = vmatpush1.msra.mxu0 %v9158_v28  ;;  %2087 = vmatpush1.msra.mxu1 %v9249_v38  ;;  %v13394_v28 = vld [vmem:[#allocation12_spill] sm:$0xff] }
 0x55a   :  { %2017 = vmatprep.subr.mxu0 %v9252_v40  ;;  %2088 = vmatprep.subr.mxu1 %v9255_v1 }
 0x55b   :  { %2018 = vmatpush1.msra.mxu0 %v9258_v44  ;;  %2089 = vmatpush1.msra.mxu1 %v9261_v45 }
 0x55c   :  { %2019 = vmatprep.subr.mxu0 %v9264_v48  ;;  %2090 = vmatprep.subr.mxu1 %v9267_v49 }
 0x55d   :  { %2020 = vmatpush1.msra.mxu0 %v9270_v50  ;;  %2091 = vmatpush1.msra.mxu1 %v9273_v51 }
 0x55e   :  { %2021 = vmatprep.subr.mxu0 %v9276_v53  ;;  %2092 = vmatprep.subr.mxu1 %v9279_v54 }
 0x55f   :  { %2022 = vmatpush1.msra.mxu0 %v9282_v55  ;;  %2093 = vmatpush1.msra.mxu1 %v9285_v56 }
 0x560   :  { %2023 = vmatprep.subr.mxu0 %v9288_v58  ;;  %2094 = vmatprep.subr.mxu1 %v9291_v59 }
 0x561   :  { %2024 = vmatpush1.msra.mxu0 %v9294_v60  ;;  %2095 = vmatpush1.msra.mxu1 %v9297_v61 }
 0x562   :  { %2025 = vmatprep.subr.mxu0 %v9300_v63  ;;  %2096 = vmatprep.subr.mxu1 %v9303_v0 }
 0x563   :  { %2026 = vmatpush1.msra.mxu0 %v9306_v3  ;;  %2097 = vmatpush1.msra.mxu1 %v13394_v28 }
 0x564   :  { %2027 = vmatprep.subr.mxu0 %v13395_v25  ;;  %2098 = vmatprep.subr.mxu1 %v13396_v2 }
 0x565   :  { %2028 = vmatpush1.msra.mxu0 %v13397_v6  ;;  %2099 = vmatpush1.msra.mxu1 %v13398_v62 }
 0x566   :  { %2029 = vmatprep.subr.mxu0 %v13399_v23  ;;  %2100 = vmatprep.subr.mxu1 %v13400_v34 }
 0x567   :  { %2030 = vmatpush1.msra.mxu0 %v13401_v18  ;;  %2101 = vmatpush1.msra.mxu1 %v13402_v35 }
 0x568   :  { %2031 = vmatprep.subr.mxu0 %v13403_v33  ;;  %2102 = vmatprep.subr.mxu1 %v13404_v32 }
 0x569   :  { %2032 = vmatpush1.msra.mxu0 %v13405_v22  ;;  %2103 = vmatpush1.msra.mxu1 %v13406_v42 }
 0x56a   :  { %2033 = vmatprep.subr.mxu0 %v13407_v24  ;;  %2104 = vmatprep.subr.mxu1 %v13408_v30 }
 0x56b   :  { %2034 = vmatpush1.msra.mxu0 %v13409_v31  ;;  %2105 = vmatpush1.msra.mxu1 %v13410_v4 }
 0x56c   :  { %2035 = vmatprep.subr.mxu0 %v13411_v10  ;;  %2106 = vmatprep.subr.mxu1 %v13412_v14 }
 0x56d   :  { %2036 = vmatpush1.msra.mxu0 %v13413_v37  ;;  %2069 = vmatprep.mubr.f32.mxu0 %v13414_v46 }
 0x56e   :  { %2107 = vmatpush1.msra.mxu1 %v13415_v5  ;;  %2140 = vmatprep.mubr.f32.mxu1 %v13414_v46 }
 0x56f   :  { %2174 = vmatprep.subr.mxu0 %v13416_v15  ;;  %2245 = vmatprep.subr.mxu1 %v13417_v27 }
 0x60e   :  { %v1902_v9 = vpop.f32.mrf.mxu0  ;;  %v1973_v57 = vpop.f32.mrf.mxu1 }
 0x60f   :  { %v1978_v39 = vadd.f32 %v1902_v9, %v314_v16  ;;  %v1980_v5 = vadd.f32 %v1973_v57, %v595_v41 }
 0x610   :  { %v1904_v43 = vpop.f32.mrf.mxu0  ;;  %v1975_v27 = vpop.f32.mrf.mxu1 }
 0x611   :  { %v1982_v36 = vmul.f32 0.5, %v1978_v39  ;;  %v1979_v12 = vadd.f32 %v1904_v43, %v316_v17  ;;  %v1981_v46 = vadd.f32 %v1975_v27, %v597_v7  ;;  %v9640_v27 = vld [vmem:[#allocation4 + $0x1a8] sm:$0xff] }
 0x613   :  { %7390 = vtanh.f32 %v1982_v36  ;;  %v1986_v15 = vmul.f32 0.5, %v1979_v12  ;;  %v1991_v37 = vmul.f32 0.5, %v1981_v46  ;;  %v9622_v12 = vld [vmem:[#allocation4 + $0x1e0] sm:$0xff] }
 0x615   :  { %7392 = vtanh.f32 %v1986_v15  ;;  %v9637_v15 = vld [vmem:[#allocation4 + $0x1d0] sm:$0xff] }
 0x616   :  { %7394 = vtanh.f32 %v1980_v5 }
 0x617   :  { %7396 = vtanh.f32 %v1991_v37  ;;  %v9625_v37 = vld [vmem:[#allocation4 + $0x1f0] sm:$0xff] }
 0x620   :  { %v7391_v47 = vpop.eup %7390 }
 0x621   :  { %v1984_v16 = vmul.f32 0.5, %v7391_v47  ;;  %v9646_v47 = vld [vmem:[#allocation4 + $0x1a0] sm:$0xff] }
 0x622   :  { %v7393_v9 = vpop.eup %7392 }
 0x623   :  { %v1985_v13 = vadd.f32 0.5, %v1984_v16  ;;  %v1988_v14 = vmul.f32 0.5, %v7393_v9  ;;  %v7395_v52 = vpop.eup %7394  ;;  %v9649_v16 = vld [vmem:[#allocation4 + $0x1b0] sm:$0xff]  ;;  %v9652_v9 = vld [vmem:[#allocation4 + $0x188] sm:$0xff] }
 0x624   :  { %v7397_v5 = vpop.eup %7396 }
 0x625   :  { %v1989_v39 = vadd.f32 0.5, %v1988_v14  ;;  %v1996_v17 = vmul.f32 %v7395_v52, %v1985_v13  ;;  %v1993_v41 = vmul.f32 0.5, %v7397_v5  ;;  %v9631_v14 = vld [vmem:[#allocation4 + $0x1d8] sm:$0xff]  ;;  %v9634_v13 = vld [vmem:[#allocation4 + $0x1c0] sm:$0xff] }
 0x626   :  { %v9655_v52 = vld [vmem:[#allocation4 + $0x198] sm:$0xff]  ;;  %v9668_v5 = vld [vmem:[#allocation4 + $0x160] sm:$0xff] }
 0x627   :  { %v1995_v57 = vmul.f32 %v1989_v39, %v9541_v11  ;;  %v1994_v36 = vadd.f32 0.5, %v1993_v41  ;;  %v9628_v11 = vld [vmem:[#allocation4 + $0x1c8] sm:$0xff]  ;;  %v9658_v39 = vld [vmem:[#allocation4 + $0x180] sm:$0xff] }
 0x628   :  { %v9672_v41 = vld [vmem:[#allocation4 + $0x148] sm:$0xff] }
 0x629   :  { %v9619_v43 = vadd.f32 %v1996_v17, %v1995_v57  ;;  %v9661_v17 = vld [vmem:[#allocation4 + $0x190] sm:$0xff]  ;;  %v9664_v57 = vld [vmem:[#allocation4 + $0x168] sm:$0xff] }
 0x62b   :  { %7398 = vtanh.f32 %v9619_v43 }
 0x638   :  { %v7399_v7 = vpop.eup %7398 }
 0x639   :  { %v1999_v46 = vmul.f32 %v7399_v7, %v1994_v36  ;;  %v9676_v36 = vld [vmem:[#allocation4 + $0x140] sm:$0xff] }
 0x63b   :  { %2070 = vmatmul.mubr.f32.vlgmr.msra.gmra.mxu0 %v1999_v46  ;;  %2141 = vmatmul.mubr.f32.vlgmr.msra.gmra.mxu1 %v1999_v46  ;;  %v9759_v46 = vld [vmem:[#allocation4 + $0x170] sm:$0xff] }
 0x63c   :  { %2175 = vmatpush1.msra.mxu0 %v9622_v12  ;;  %2246 = vmatpush1.msra.mxu1 %v9625_v37 }
 0x63d   :  { %2176 = vmatprep.subr.mxu0 %v9628_v11  ;;  %2247 = vmatprep.subr.mxu1 %v9631_v14 }
 0x63e   :  { %2177 = vmatpush1.msra.mxu0 %v9634_v13  ;;  %2248 = vmatpush1.msra.mxu1 %v9637_v15 }
 0x63f   :  { %2178 = vmatprep.subr.mxu0 %v9640_v27  ;;  %2249 = vmatprep.subr.mxu1 %v9643_v19 }
 0x640   :  { %2179 = vmatpush1.msra.mxu0 %v9646_v47  ;;  %2250 = vmatpush1.msra.mxu1 %v9649_v16 }
 0x641   :  { %2180 = vmatprep.subr.mxu0 %v9652_v9  ;;  %2251 = vmatprep.subr.mxu1 %v9655_v52 }
 0x642   :  { %2181 = vmatpush1.msra.mxu0 %v9658_v39  ;;  %2252 = vmatpush1.msra.mxu1 %v9661_v17 }
 0x643   :  { %2182 = vmatprep.subr.mxu0 %v9664_v57  ;;  %2253 = vmatprep.subr.mxu1 %v9237_v20  ;;  %v13424_v20 = vld [vmem:[#allocation168_spill] sm:$0xff] }
 0x644   :  { %2183 = vmatpush1.msra.mxu0 %v9668_v5  ;;  %2254 = vmatpush1.msra.mxu1 %v9241_v21  ;;  %v13425_v21 = vld [vmem:[#allocation169_spill] sm:$0xff] }
 0x645   :  { %2184 = vmatprep.subr.mxu0 %v9672_v41  ;;  %2255 = vmatprep.subr.mxu1 %v9245_v8  ;;  %v13426_v8 = vmov 0.0  }
 0x646   :  { %2185 = vmatpush1.msra.mxu0 %v9676_v36  ;;  %2256 = vmatpush1.msra.mxu1 %v9249_v38  ;;  %v13427_v38 = vld [vmem:[#allocation170_spill] sm:$0xff] }
 0x647   :  { %2186 = vmatprep.subr.mxu0 %v9252_v40  ;;  %2257 = vmatprep.subr.mxu1 %v9255_v1  ;;  %v9722_v40 = vld [vmem:[#allocation4 + $0x1e8] sm:$0xff]  ;;  %v9725_v1 = vld [vmem:[#allocation4 + $0x1f8] sm:$0xff] }
 0x648   :  { %2187 = vmatpush1.msra.mxu0 %v9258_v44  ;;  %2258 = vmatpush1.msra.mxu1 %v9261_v45  ;;  %13428 = vst [vmem:[#allocation16_spill] sm:$0xff] %v9722_v40  ;;  %13429 = vst [vmem:[#allocation18_spill] sm:$0xff] %v9725_v1  ;;  %v13430_v44 = vld [vmem:[#allocation145_spill] sm:$0xff]  ;;  %v13431_v45 = vld [vmem:[#allocation32_spill] sm:$0xff] }
 0x649   :  { %2188 = vmatprep.subr.mxu0 %v9264_v48  ;;  %2259 = vmatprep.subr.mxu1 %v9267_v49  ;;  %v320_v48 = vadd.f32 %v13431_v45, %v13430_v44  ;;  %v9773_v45 = vld [vmem:[#allocation4 + $0x138] sm:$0xff] }
 0x64a   :  { %2189 = vmatpush1.msra.mxu0 %v9270_v50  ;;  %2260 = vmatpush1.msra.mxu1 %v9273_v51  ;;  %v13432_v50 = vld [vmem:[#allocation143_spill] sm:$0xff]  ;;  %v13433_v51 = vld [vmem:[#allocation34_spill] sm:$0xff] }
 0x64b   :  { %2190 = vmatprep.subr.mxu0 %v9276_v53  ;;  %2261 = vmatprep.subr.mxu1 %v9279_v54  ;;  %v322_v53 = vadd.f32 %v13433_v51, %v13432_v50  ;;  %v9782_v51 = vld [vmem:[#allocation4 + $0x108] sm:$0xff] }
 0x64c   :  { %2191 = vmatpush1.msra.mxu0 %v9282_v55  ;;  %2262 = vmatpush1.msra.mxu1 %v9285_v56 }
 0x64d   :  { %2192 = vmatprep.subr.mxu0 %v9288_v58  ;;  %2263 = vmatprep.subr.mxu1 %v9291_v59  ;;  %v13434_v58 = vld [vmem:[#allocation49_spill] sm:$0xff] }
 0x64e   :  { %2193 = vmatpush1.msra.mxu0 %v9294_v60  ;;  %2264 = vmatpush1.msra.mxu1 %v9297_v61  ;;  %v601_v59 = vadd.f32 %v13434_v58, %v9089_v26  ;;  %v9797_v58 = vld [vmem:[#allocation4 + $0xf8] sm:$0xff] }
 0x64f   :  { %2194 = vmatprep.subr.mxu0 %v9300_v63  ;;  %2265 = vmatprep.subr.mxu1 %v9303_v0 }
 0x650   :  { %2195 = vmatpush1.msra.mxu0 %v9306_v3  ;;  %2266 = vmatpush1.msra.mxu1 %v13394_v28  ;;  %v13435_v28 = vld [vmem:[#allocation51_spill] sm:$0xff] }
 0x651   :  { %2196 = vmatprep.subr.mxu0 %v13395_v25  ;;  %2267 = vmatprep.subr.mxu1 %v13396_v2  ;;  %v603_v25 = vadd.f32 %v13435_v28, %v9097_v29  ;;  %v9818_v28 = vld [vmem:[#allocation4 + $0xa8] sm:$0xff] }
 0x652   :  { %2197 = vmatpush1.msra.mxu0 %v13397_v6  ;;  %2268 = vmatpush1.msra.mxu1 %v13398_v62 }
 0x653   :  { %2198 = vmatprep.subr.mxu0 %v13399_v23  ;;  %2269 = vmatprep.subr.mxu1 %v13400_v34 }
 0x654   :  { %2199 = vmatpush1.msra.mxu0 %v13401_v18  ;;  %2270 = vmatpush1.msra.mxu1 %v13402_v35 }
 0x655   :  { %2200 = vmatprep.subr.mxu0 %v13403_v33  ;;  %2271 = vmatprep.subr.mxu1 %v13404_v32 }
 0x656   :  { %2201 = vmatpush1.msra.mxu0 %v13405_v22  ;;  %2272 = vmatpush1.msra.mxu1 %v13406_v42 }
 0x657   :  { %2202 = vmatprep.subr.mxu0 %v13407_v24  ;;  %2273 = vmatprep.subr.mxu1 %v13408_v30 }
 0x658   :  { %2203 = vmatpush1.msra.mxu0 %v13409_v31  ;;  %2274 = vmatpush1.msra.mxu1 %v13410_v4 }
 0x659   :  { %2204 = vmatprep.subr.mxu0 %v13411_v10  ;;  %2275 = vmatprep.subr.mxu1 %v13424_v20  ;;  %v9763_v20 = vld [vmem:[#allocation4 + $0x158] sm:$0xff] }
 0x65a   :  { %2205 = vmatpush1.msra.mxu0 %v13425_v21  ;;  %2238 = vmatprep.mubr.f32.mxu0 %v13426_v8  ;;  %v9767_v21 = vld [vmem:[#allocation4 + $0x150] sm:$0xff] }
 0x65b   :  { %2276 = vmatpush1.msra.mxu1 %v13427_v38  ;;  %2309 = vmatprep.mubr.f32.mxu1 %v13426_v8  ;;  %v9770_v38 = vld [vmem:[#allocation4 + $0x128] sm:$0xff] }
 0x65c   :  { %2343 = vmatprep.subr.mxu0 %v9722_v40  ;;  %2414 = vmatprep.subr.mxu1 %v9725_v1 }
 0x6fb   :  { %v2071_v49 = vpop.f32.mrf.mxu0  ;;  %v2142_v55 = vpop.f32.mrf.mxu1 }
 0x6fc   :  { %v2147_v54 = vadd.f32 %v2071_v49, %v320_v48  ;;  %v2149_v63 = vadd.f32 %v2142_v55, %v601_v59  ;;  %v9776_v48 = vld [vmem:[#allocation4 + $0x120] sm:$0xff]  ;;  %v9779_v49 = vld [vmem:[#allocation4 + $0x130] sm:$0xff] }
 0x6fd   :  { %v2073_v56 = vpop.f32.mrf.mxu0  ;;  %v2144_v3 = vpop.f32.mrf.mxu1  ;;  %v9791_v55 = vld [vmem:[#allocation4 + $0x110] sm:$0xff]  ;;  %v9800_v59 = vld [vmem:[#allocation4 + $0xe0] sm:$0xff] }
 0x6fe   :  { %v2151_v60 = vmul.f32 0.5, %v2147_v54  ;;  %v2148_v61 = vadd.f32 %v2073_v56, %v322_v53  ;;  %v2150_v2 = vadd.f32 %v2144_v3, %v603_v25  ;;  %v9785_v53 = vld [vmem:[#allocation4 + $0x118] sm:$0xff]  ;;  %v9788_v54 = vld [vmem:[#allocation4 + $0x100] sm:$0xff]  ;;  %v9794_v56 = vld [vmem:[#allocation4 + $0xe8] sm:$0xff] }
 0x6ff   :  { %v9815_v3 = vld [vmem:[#allocation4 + $0xd0] sm:$0xff]  ;;  %v9821_v25 = vld [vmem:[#allocation4 + $0xb8] sm:$0xff] }
 0x700   :  { %7400 = vtanh.f32 %v2151_v60  ;;  %v2155_v0 = vmul.f32 0.5, %v2148_v61  ;;  %v2160_v6 = vmul.f32 0.5, %v2150_v2  ;;  %v9803_v60 = vld [vmem:[#allocation4 + $0xf0] sm:$0xff]  ;;  %v9806_v61 = vld [vmem:[#allocation4 + $0xc8] sm:$0xff]  ;;  %v9824_v2 = vld [vmem:[#allocation4 + $0xa0] sm:$0xff] }
 0x702   :  { %7402 = vtanh.f32 %v2155_v0  ;;  %v9812_v0 = vld [vmem:[#allocation4 + $0xc0] sm:$0xff] }
 0x703   :  { %7404 = vtanh.f32 %v2149_v63  ;;  %v9809_v63 = vld [vmem:[#allocation4 + $0xd8] sm:$0xff] }
 0x704   :  { %7406 = vtanh.f32 %v2160_v6  ;;  %v9827_v6 = vld [vmem:[#allocation4 + $0xb0] sm:$0xff] }
 0x705   :  { %13436 = vst [vmem:[#allocation33_spill] sm:$0xff] %v9827_v6 }
 0x70d   :  { %v7401_v62 = vpop.eup %7400 }
 0x70e   :  { %v2153_v23 = vmul.f32 0.5, %v7401_v62  ;;  %v9830_v62 = vld [vmem:[#allocation4 + $0x88] sm:$0xff] }
 0x70f   :  { %v7403_v34 = vpop.eup %7402  ;;  %13437 = vst [vmem:[#allocation35_spill] sm:$0xff] %v9830_v62 }
 0x710   :  { %v2154_v18 = vadd.f32 0.5, %v2153_v23  ;;  %v2157_v35 = vmul.f32 0.5, %v7403_v34  ;;  %v7405_v33 = vpop.eup %7404  ;;  %v9833_v23 = vld [vmem:[#allocation4 + $0x98] sm:$0xff]  ;;  %v9836_v34 = vld [vmem:[#allocation4 + $0x80] sm:$0xff] }
 0x711   :  { %v7407_v30 = vpop.eup %7406  ;;  %13438 = vst [vmem:[#allocation21_spill] sm:$0xff] %v9833_v23  ;;  %13439 = vst [vmem:[#allocation24_spill] sm:$0xff] %v9836_v34 }
 0x712   :  { %v2158_v32 = vadd.f32 0.5, %v2157_v35  ;;  %v2165_v22 = vmul.f32 %v7405_v33, %v2154_v18  ;;  %v2162_v31 = vmul.f32 0.5, %v7407_v30  ;;  %v9839_v18 = vld [vmem:[#allocation4 + $0x90] sm:$0xff]  ;;  %v9842_v35 = vld [vmem:[#allocation4 + $0x68] sm:$0xff]  ;;  %v9845_v33 = vld [vmem:[#allocation4 + $0x78] sm:$0xff] }
 0x713   :  { %13440 = vst [vmem:[#allocation37_spill] sm:$0xff] %v9839_v18  ;;  %13441 = vst [vmem:[#allocation39_spill] sm:$0xff] %v9842_v35  ;;  %v9857_v30 = vld [vmem:[#allocation4 + $0x58] sm:$0xff] }
 0x714   :  { %v2164_v42 = vmul.f32 %v2158_v32, %v9619_v43  ;;  %v2163_v4 = vadd.f32 0.5, %v2162_v31  ;;  %v9755_v43 = vld [vmem:[#allocation4 + $0x178] sm:$0xff]  ;;  %13442 = vst [vmem:[#allocation26_spill] sm:$0xff] %v9845_v33  ;;  %v9848_v32 = vld [vmem:[#allocation4 + $0x60] sm:$0xff]  ;;  %13446 = vst [vmem:[#allocation12_spill] sm:$0xff] %v9857_v30 }
 0x715   :  { %13443 = vst [vmem:[#allocation27_spill] sm:$0xff] %v9848_v32  ;;  %v9860_v31 = vld [vmem:[#allocation4 + $0x40] sm:$0xff] }
 0x716   :  { %v9737_v24 = vadd.f32 %v2165_v22, %v2164_v42  ;;  %v9851_v22 = vld [vmem:[#allocation4 + $0x70] sm:$0xff]  ;;  %v9854_v42 = vld [vmem:[#allocation4 + $0x48] sm:$0xff]  ;;  %13447 = vst [vmem:[#allocation14_spill] sm:$0xff] %v9860_v31 }
 0x717   :  { %13444 = vst [vmem:[#allocation41_spill] sm:$0xff] %v9851_v22  ;;  %13445 = vst [vmem:[#allocation43_spill] sm:$0xff] %v9854_v42 }
 0x718   :  { %7408 = vtanh.f32 %v9737_v24 }
 0x725   :  { %v7409_v10 = vpop.eup %7408 }
 0x726   :  { %v2168_v7 = vmul.f32 %v7409_v10, %v2163_v4  ;;  %v9863_v4 = vld [vmem:[#allocation4 + $0x50] sm:$0xff]  ;;  %v9866_v10 = vld [vmem:[#allocation4 + $0x28] sm:$0xff] }
 0x727   :  { %13448 = vst [vmem:[#allocation29_spill] sm:$0xff] %v9863_v4  ;;  %13449 = vst [vmem:[#allocation31_spill] sm:$0xff] %v9866_v10 }
 0x728   :  { %2239 = vmatmul.mubr.f32.vlgmr.msra.gmra.mxu0 %v2168_v7  ;;  %2310 = vmatmul.mubr.f32.vlgmr.msra.gmra.mxu1 %v2168_v7  ;;  %v9869_v7 = vld [vmem:[#allocation4 + $0x38] sm:$0xff] }
 0x729   :  { %2344 = vmatpush1.msra.mxu0 %v9622_v12  ;;  %2415 = vmatpush1.msra.mxu1 %v9625_v37  ;;  %13450 = vst [vmem:[#allocation154_spill] sm:$0xff] %v9869_v7 }
 0x72a   :  { %2345 = vmatprep.subr.mxu0 %v9628_v11  ;;  %2416 = vmatprep.subr.mxu1 %v9631_v14 }
 0x72b   :  { %2346 = vmatpush1.msra.mxu0 %v9634_v13  ;;  %2417 = vmatpush1.msra.mxu1 %v9637_v15 }
 0x72c   :  { %2347 = vmatprep.subr.mxu0 %v9640_v27  ;;  %2418 = vmatprep.subr.mxu1 %v9643_v19 }
 0x72d   :  { %2348 = vmatpush1.msra.mxu0 %v9646_v47  ;;  %2419 = vmatpush1.msra.mxu1 %v9649_v16 }
 0x72e   :  { %2349 = vmatprep.subr.mxu0 %v9652_v9  ;;  %2420 = vmatprep.subr.mxu1 %v9655_v52 }
 0x72f   :  { %2350 = vmatpush1.msra.mxu0 %v9658_v39  ;;  %2421 = vmatpush1.msra.mxu1 %v9661_v17 }
 0x730   :  { %2351 = vmatprep.subr.mxu0 %v9664_v57  ;;  %2422 = vmatprep.subr.mxu1 %v9755_v43 }
 0x731   :  { %2352 = vmatpush1.msra.mxu0 %v9668_v5  ;;  %2423 = vmatpush1.msra.mxu1 %v9759_v46 }
 0x732   :  { %2353 = vmatprep.subr.mxu0 %v9672_v41  ;;  %2424 = vmatprep.subr.mxu1 %v9763_v20 }
 0x733   :  { %2354 = vmatpush1.msra.mxu0 %v9676_v36  ;;  %2425 = vmatpush1.msra.mxu1 %v9767_v21 }
 0x734   :  { %2355 = vmatprep.subr.mxu0 %v9770_v38  ;;  %2426 = vmatprep.subr.mxu1 %v9773_v45 }
 0x735   :  { %2356 = vmatpush1.msra.mxu0 %v9776_v48  ;;  %2427 = vmatpush1.msra.mxu1 %v9779_v49 }
 0x736   :  { %2357 = vmatprep.subr.mxu0 %v9782_v51  ;;  %2428 = vmatprep.subr.mxu1 %v9785_v53 }
 0x737   :  { %2358 = vmatpush1.msra.mxu0 %v9788_v54  ;;  %2429 = vmatpush1.msra.mxu1 %v9791_v55 }
 0x738   :  { %2359 = vmatprep.subr.mxu0 %v9794_v56  ;;  %2430 = vmatprep.subr.mxu1 %v9797_v58 }
 0x739   :  { %2360 = vmatpush1.msra.mxu0 %v9800_v59  ;;  %2431 = vmatpush1.msra.mxu1 %v9803_v60 }
 0x73a   :  { %2361 = vmatprep.subr.mxu0 %v9806_v61  ;;  %2432 = vmatprep.subr.mxu1 %v9809_v63 }
 0x73b   :  { %2362 = vmatpush1.msra.mxu0 %v9812_v0  ;;  %2433 = vmatpush1.msra.mxu1 %v9815_v3 }
 0x73c   :  { %2363 = vmatprep.subr.mxu0 %v9818_v28  ;;  %2434 = vmatprep.subr.mxu1 %v9821_v25 }
 0x73d   :  { %2364 = vmatpush1.msra.mxu0 %v9824_v2  ;;  %2435 = vmatpush1.msra.mxu1 %v9827_v6 }
 0x73e   :  { %2365 = vmatprep.subr.mxu0 %v9830_v62  ;;  %2436 = vmatprep.subr.mxu1 %v9833_v23 }
 0x73f   :  { %2366 = vmatpush1.msra.mxu0 %v9836_v34  ;;  %2437 = vmatpush1.msra.mxu1 %v9839_v18 }
 0x740   :  { %2367 = vmatprep.subr.mxu0 %v9842_v35  ;;  %2438 = vmatprep.subr.mxu1 %v9845_v33  ;;  %v13459_v35 = vld [vmem:[#allocation53_spill] sm:$0xff] }
 0x741   :  { %2368 = vmatpush1.msra.mxu0 %v9848_v32  ;;  %2439 = vmatpush1.msra.mxu1 %v9851_v22  ;;  %v607_v18 = vadd.f32 %v13459_v35, %v9089_v26 }
 0x742   :  { %2369 = vmatprep.subr.mxu0 %v9854_v42  ;;  %2440 = vmatprep.subr.mxu1 %v9857_v30  ;;  %v9872_v42 = vld [vmem:[#allocation4 + $0x20] sm:$0xff]  ;;  %v9875_v30 = vld [vmem:[#allocation4 + $0x30] sm:$0xff] }
 0x743   :  { %2370 = vmatpush1.msra.mxu0 %v9860_v31  ;;  %2441 = vmatpush1.msra.mxu1 %v9863_v4  ;;  %13451 = vst [vmem:[#allocation155_spill] sm:$0xff] %v9872_v42  ;;  %13452 = vst [vmem:[#allocation156_spill] sm:$0xff] %v9875_v30  ;;  %v9878_v31 = vld [vmem:[#allocation4 + $0x8] sm:$0xff]  ;;  %v9881_v4 = vld [vmem:[#allocation4 + $0x18] sm:$0xff] }
 0x744   :  { %2371 = vmatprep.subr.mxu0 %v9866_v10  ;;  %2442 = vmatprep.subr.mxu1 %v9869_v7  ;;  %13453 = vst [vmem:[#allocation157_spill] sm:$0xff] %v9878_v31  ;;  %13454 = vst [vmem:[#allocation158_spill] sm:$0xff] %v9881_v4  ;;  %v9884_v10 = vld [vmem:[#allocation4] sm:$0xff]  ;;  %v9888_v7 = vld [vmem:[#allocation4 + $0x10] sm:$0xff] }
 0x745   :  { %2372 = vmatpush1.msra.mxu0 %v9872_v42  ;;  %2443 = vmatpush1.msra.mxu1 %v9875_v30  ;;  %13455 = vst [vmem:[#allocation159_spill] sm:$0xff] %v9884_v10  ;;  %13456 = vst [vmem:[#allocation160_spill] sm:$0xff] %v9888_v7  ;;  %v13458_v42 = vld [vmem:[#allocation38_spill] sm:$0xff] }
 0x746   :  { %2373 = vmatprep.subr.mxu0 %v9878_v31  ;;  %2444 = vmatprep.subr.mxu1 %v9881_v4  ;;  %v13457_v31 = vld [vmem:[#allocation36_spill] sm:$0xff]  ;;  %v328_v22 = vadd.f32 %v13458_v42, %v13432_v50 }
 0x747   :  { %2374 = vmatpush1.msra.mxu0 %v9884_v10  ;;  %2407 = vmatprep.mubr.f32.mxu0 %v13426_v8  ;;  %v326_v30 = vadd.f32 %v13457_v31, %v13430_v44  ;;  %v13460_v31 = vld [vmem:[#allocation55_spill] sm:$0xff] }
 0x748   :  { %2445 = vmatpush1.msra.mxu1 %v9888_v7  ;;  %2478 = vmatprep.mubr.f32.mxu1 %v13426_v8  ;;  %v609_v44 = vadd.f32 %v13460_v31, %v9097_v29  ;;  %v13468_v31 = vld [vmem:[#allocation27_spill] sm:$0xff] }
 0x749   :  { %2512 = vmatprep.subr.mxu0 %v9722_v40  ;;  %2583 = vmatprep.subr.mxu1 %v9725_v1 }
 0x7e8   :  { %v2240_v4 = vpop.f32.mrf.mxu0  ;;  %v2311_v32 = vpop.f32.mrf.mxu1 }
 0x7e9   :  { %v2316_v10 = vadd.f32 %v2240_v4, %v326_v30  ;;  %v2318_v8 = vadd.f32 %v2311_v32, %v607_v18 }
 0x7ea   :  { %v2242_v33 = vpop.f32.mrf.mxu0  ;;  %v2313_v1 = vpop.f32.mrf.mxu1 }
 0x7eb   :  { %v2320_v7 = vmul.f32 0.5, %v2316_v10  ;;  %v2317_v34 = vadd.f32 %v2242_v33, %v328_v22  ;;  %v2319_v23 = vadd.f32 %v2313_v1, %v609_v44  ;;  %v13466_v22 = vld [vmem:[#allocation39_spill] sm:$0xff] }
 0x7ed   :  { %7410 = vtanh.f32 %v2320_v7  ;;  %v2324_v40 = vmul.f32 0.5, %v2317_v34  ;;  %v2329_v62 = vmul.f32 0.5, %v2319_v23  ;;  %v13465_v23 = vld [vmem:[#allocation37_spill] sm:$0xff]  ;;  %v13467_v7 = vld [vmem:[#allocation26_spill] sm:$0xff] }
 0x7ef   :  { %7412 = vtanh.f32 %v2324_v40 }
 0x7f0   :  { %7414 = vtanh.f32 %v2318_v8 }
 0x7f1   :  { %7416 = vtanh.f32 %v2329_v62  ;;  %v13464_v62 = vld [vmem:[#allocation24_spill] sm:$0xff] }
 0x7fa   :  { %v7411_v42 = vpop.eup %7410 }
 0x7fb   :  { %v2322_v30 = vmul.f32 0.5, %v7411_v42  ;;  %v13469_v42 = vld [vmem:[#allocation41_spill] sm:$0xff] }
 0x7fc   :  { %v7413_v4 = vpop.eup %7412 }
 0x7fd   :  { %v2323_v50 = vadd.f32 0.5, %v2322_v30  ;;  %v2326_v6 = vmul.f32 0.5, %v7413_v4  ;;  %v7415_v35 = vpop.eup %7414  ;;  %v13470_v30 = vld [vmem:[#allocation43_spill] sm:$0xff]  ;;  %v13471_v4 = vld [vmem:[#allocation12_spill] sm:$0xff] }
 0x7fe   :  { %v7417_v8 = vpop.eup %7416 }
 0x7ff   :  { %v2327_v10 = vadd.f32 0.5, %v2326_v6  ;;  %v2334_v33 = vmul.f32 %v7415_v35, %v2323_v50  ;;  %v2331_v40 = vmul.f32 0.5, %v7417_v8  ;;  %v13461_v50 = vld [vmem:[#allocation33_spill] sm:$0xff]  ;;  %v13472_v35 = vld [vmem:[#allocation14_spill] sm:$0xff]  ;;  %v13476_v8 = vld [vmem:[#allocation155_spill] sm:$0xff] }
 0x800   :  { %v13463_v6 = vld [vmem:[#allocation21_spill] sm:$0xff] }
 0x801   :  { %v2333_v18 = vmul.f32 %v2327_v10, %v9737_v24  ;;  %v2332_v32 = vadd.f32 0.5, %v2331_v40  ;;  %v13462_v24 = vld [vmem:[#allocation35_spill] sm:$0xff]  ;;  %v13473_v10 = vld [vmem:[#allocation29_spill] sm:$0xff]  ;;  %v13477_v40 = vld [vmem:[#allocation156_spill] sm:$0xff] }
 0x803   :  { %v9903_v34 = vadd.f32 %v2334_v33, %v2333_v18  ;;  %v13474_v33 = vld [vmem:[#allocation31_spill] sm:$0xff]  ;;  %v13475_v18 = vld [vmem:[#allocation154_spill] sm:$0xff] }
 0x805   :  { %7418 = vtanh.f32 %v9903_v34 }
 0x812   :  { %v7419_v1 = vpop.eup %7418 }
 0x813   :  { %v2337_v44 = vmul.f32 %v7419_v1, %v2332_v32  ;;  %v13478_v32 = vld [vmem:[#allocation157_spill] sm:$0xff]  ;;  %v13479_v1 = vld [vmem:[#allocation158_spill] sm:$0xff] }
 0x815   :  { %2408 = vmatmul.mubr.f32.vlgmr.msra.gmra.mxu0 %v2337_v44  ;;  %2479 = vmatmul.mubr.f32.vlgmr.msra.gmra.mxu1 %v2337_v44  ;;  %v13480_v44 = vld [vmem:[#allocation159_spill] sm:$0xff] }
 0x816   :  { %2513 = vmatpush1.msra.mxu0 %v9622_v12  ;;  %2584 = vmatpush1.msra.mxu1 %v9625_v37 }
 0x817   :  { %2514 = vmatprep.subr.mxu0 %v9628_v11  ;;  %2585 = vmatprep.subr.mxu1 %v9631_v14 }
 0x818   :  { %2515 = vmatpush1.msra.mxu0 %v9634_v13  ;;  %2586 = vmatpush1.msra.mxu1 %v9637_v15 }
 0x819   :  { %2516 = vmatprep.subr.mxu0 %v9640_v27  ;;  %2587 = vmatprep.subr.mxu1 %v9643_v19 }
 0x81a   :  { %2517 = vmatpush1.msra.mxu0 %v9646_v47  ;;  %2588 = vmatpush1.msra.mxu1 %v9649_v16 }
 0x81b   :  { %2518 = vmatprep.subr.mxu0 %v9652_v9  ;;  %2589 = vmatprep.subr.mxu1 %v9655_v52 }
 0x81c   :  { %2519 = vmatpush1.msra.mxu0 %v9658_v39  ;;  %2590 = vmatpush1.msra.mxu1 %v9661_v17 }
 0x81d   :  { %2520 = vmatprep.subr.mxu0 %v9664_v57  ;;  %2591 = vmatprep.subr.mxu1 %v9755_v43 }
 0x81e   :  { %2521 = vmatpush1.msra.mxu0 %v9668_v5  ;;  %2592 = vmatpush1.msra.mxu1 %v9759_v46 }
 0x81f   :  { %2522 = vmatprep.subr.mxu0 %v9672_v41  ;;  %2593 = vmatprep.subr.mxu1 %v9763_v20 }
 0x820   :  { %2523 = vmatpush1.msra.mxu0 %v9676_v36  ;;  %2594 = vmatpush1.msra.mxu1 %v9767_v21 }
 0x821   :  { %2524 = vmatprep.subr.mxu0 %v9770_v38  ;;  %2595 = vmatprep.subr.mxu1 %v9773_v45 }
 0x822   :  { %2525 = vmatpush1.msra.mxu0 %v9776_v48  ;;  %2596 = vmatpush1.msra.mxu1 %v9779_v49 }
 0x823   :  { %2526 = vmatprep.subr.mxu0 %v9782_v51  ;;  %2597 = vmatprep.subr.mxu1 %v9785_v53 }
 0x824   :  { %2527 = vmatpush1.msra.mxu0 %v9788_v54  ;;  %2598 = vmatpush1.msra.mxu1 %v9791_v55 }
 0x825   :  { %2528 = vmatprep.subr.mxu0 %v9794_v56  ;;  %2599 = vmatprep.subr.mxu1 %v9797_v58 }
 0x826   :  { %2529 = vmatpush1.msra.mxu0 %v9800_v59  ;;  %2600 = vmatpush1.msra.mxu1 %v9803_v60 }
 0x827   :  { %2530 = vmatprep.subr.mxu0 %v9806_v61  ;;  %2601 = vmatprep.subr.mxu1 %v9809_v63 }
 0x828   :  { %2531 = vmatpush1.msra.mxu0 %v9812_v0  ;;  %2602 = vmatpush1.msra.mxu1 %v9815_v3 }
 0x829   :  { %2532 = vmatprep.subr.mxu0 %v9818_v28  ;;  %2603 = vmatprep.subr.mxu1 %v9821_v25 }
 0x82a   :  { %2533 = vmatpush1.msra.mxu0 %v9824_v2  ;;  %2604 = vmatpush1.msra.mxu1 %v13461_v50 }
 0x82b   :  { %2534 = vmatprep.subr.mxu0 %v13462_v24  ;;  %2605 = vmatprep.subr.mxu1 %v13463_v6 }
 0x82c   :  { %2535 = vmatpush1.msra.mxu0 %v13464_v62  ;;  %2606 = vmatpush1.msra.mxu1 %v13465_v23 }
 0x82d   :  { %2536 = vmatprep.subr.mxu0 %v13466_v22  ;;  %2607 = vmatprep.subr.mxu1 %v13467_v7  ;;  %v13489_v22 = vld [vmem:[#allocation57_spill] sm:$0xff] }
 0x82e   :  { %2537 = vmatpush1.msra.mxu0 %v13468_v31  ;;  %2608 = vmatpush1.msra.mxu1 %v13469_v42  ;;  %v13487_v42 = vld [vmem:[#allocation143_spill] sm:$0xff]  ;;  %v613_v23 = vadd.f32 %v13489_v22, %v9089_v26 }
 0x82f   :  { %2538 = vmatprep.subr.mxu0 %v13470_v30  ;;  %2609 = vmatprep.subr.mxu1 %v13471_v4  ;;  %v13481_v30 = vmov 0.0   ;;  %v13482_v4 = vld [vmem:[#allocation160_spill] sm:$0xff] }
 0x830   :  { %2539 = vmatpush1.msra.mxu0 %v13472_v35  ;;  %2610 = vmatpush1.msra.mxu1 %v13473_v10  ;;  %v13483_v10 = vld [vmem:[#allocation16_spill] sm:$0xff] }
 0x831   :  { %2540 = vmatprep.subr.mxu0 %v13474_v33  ;;  %2611 = vmatprep.subr.mxu1 %v13475_v18  ;;  %v13484_v33 = vld [vmem:[#allocation18_spill] sm:$0xff]  ;;  %v13485_v18 = vld [vmem:[#allocation145_spill] sm:$0xff] }
 0x832   :  { %2541 = vmatpush1.msra.mxu0 %v13476_v8  ;;  %2612 = vmatpush1.msra.mxu1 %v13477_v40  ;;  %v13486_v8 = vld [vmem:[#allocation40_spill] sm:$0xff] }
 0x833   :  { %2542 = vmatprep.subr.mxu0 %v13478_v32  ;;  %2613 = vmatprep.subr.mxu1 %v13479_v1  ;;  %v332_v35 = vadd.f32 %v13486_v8, %v13485_v18  ;;  %v13488_v32 = vld [vmem:[#allocation42_spill] sm:$0xff]  ;;  %v13490_v8 = vld [vmem:[#allocation59_spill] sm:$0xff] }
 0x834   :  { %2543 = vmatpush1.msra.mxu0 %v13480_v44  ;;  %2576 = vmatprep.mubr.f32.mxu0 %v13481_v30  ;;  %v334_v31 = vadd.f32 %v13488_v32, %v13487_v42  ;;  %v615_v18 = vadd.f32 %v13490_v8, %v9097_v29  ;;  %v13498_v8 = vld [vmem:[#allocation27_spill] sm:$0xff] }
 0x835   :  { %2614 = vmatpush1.msra.mxu1 %v13482_v4  ;;  %2647 = vmatprep.mubr.f32.mxu1 %v13481_v30 }
 0x836   :  { %2681 = vmatprep.subr.mxu0 %v13483_v10  ;;  %2752 = vmatprep.subr.mxu1 %v13484_v33 }
 0x8d5   :  { %v2409_v40 = vpop.f32.mrf.mxu0  ;;  %v2480_v7 = vpop.f32.mrf.mxu1 }
 0x8d6   :  { %v2485_v1 = vadd.f32 %v2409_v40, %v332_v35  ;;  %v2487_v30 = vadd.f32 %v2480_v7, %v613_v23 }
 0x8d7   :  { %v2411_v44 = vpop.f32.mrf.mxu0  ;;  %v2482_v33 = vpop.f32.mrf.mxu1 }
 0x8d8   :  { %v2489_v4 = vmul.f32 0.5, %v2485_v1  ;;  %v2486_v62 = vadd.f32 %v2411_v44, %v334_v31  ;;  %v2488_v6 = vadd.f32 %v2482_v33, %v615_v18  ;;  %v13495_v33 = vld [vmem:[#allocation37_spill] sm:$0xff]  ;;  %v13496_v18 = vld [vmem:[#allocation39_spill] sm:$0xff]  ;;  %v13497_v44 = vld [vmem:[#allocation26_spill] sm:$0xff] }
 0x8da   :  { %7420 = vtanh.f32 %v2489_v4  ;;  %v2493_v10 = vmul.f32 0.5, %v2486_v62  ;;  %v2498_v24 = vmul.f32 0.5, %v2488_v6 }
 0x8dc   :  { %7422 = vtanh.f32 %v2493_v10 }
 0x8dd   :  { %7424 = vtanh.f32 %v2487_v30 }
 0x8de   :  { %7426 = vtanh.f32 %v2498_v24  ;;  %v13493_v24 = vld [vmem:[#allocation21_spill] sm:$0xff] }
 0x8e7   :  { %v7421_v32 = vpop.eup %7420 }
 0x8e8   :  { %v2491_v35 = vmul.f32 0.5, %v7421_v32  ;;  %v13499_v32 = vld [vmem:[#allocation41_spill] sm:$0xff] }
 0x8e9   :  { %v7423_v40 = vpop.eup %7422 }
 0x8ea   :  { %v2492_v42 = vadd.f32 0.5, %v2491_v35  ;;  %v2495_v50 = vmul.f32 0.5, %v7423_v40  ;;  %v7425_v22 = vpop.eup %7424  ;;  %v13500_v35 = vld [vmem:[#allocation43_spill] sm:$0xff]  ;;  %v13501_v40 = vld [vmem:[#allocation12_spill] sm:$0xff] }
 0x8eb   :  { %v7427_v7 = vpop.eup %7426 }
 0x8ec   :  { %v2496_v1 = vadd.f32 0.5, %v2495_v50  ;;  %v2503_v31 = vmul.f32 %v7425_v22, %v2492_v42  ;;  %v2500_v30 = vmul.f32 0.5, %v7427_v7  ;;  %v13492_v50 = vld [vmem:[#allocation35_spill] sm:$0xff]  ;;  %v13494_v42 = vld [vmem:[#allocation24_spill] sm:$0xff]  ;;  %v13502_v22 = vld [vmem:[#allocation14_spill] sm:$0xff] }
 0x8ed   :  { %v13506_v7 = vld [vmem:[#allocation155_spill] sm:$0xff] }
 0x8ee   :  { %v2502_v23 = vmul.f32 %v2496_v1, %v9903_v34  ;;  %v2501_v4 = vadd.f32 0.5, %v2500_v30  ;;  %v13491_v34 = vld [vmem:[#allocation33_spill] sm:$0xff]  ;;  %v13507_v30 = vld [vmem:[#allocation156_spill] sm:$0xff] }
 0x8ef   :  { %v13503_v1 = vld [vmem:[#allocation29_spill] sm:$0xff] }
 0x8f0   :  { %v9981_v62 = vadd.f32 %v2503_v31, %v2502_v23  ;;  %v13504_v31 = vld [vmem:[#allocation31_spill] sm:$0xff]  ;;  %v13505_v23 = vld [vmem:[#allocation154_spill] sm:$0xff] }
 0x8f2   :  { %7428 = vtanh.f32 %v9981_v62 }
 0x8ff   :  { %v7429_v10 = vpop.eup %7428 }
 0x900   :  { %v2506_v6 = vmul.f32 %v7429_v10, %v2501_v4  ;;  %v13508_v4 = vld [vmem:[#allocation157_spill] sm:$0xff]  ;;  %v13509_v10 = vld [vmem:[#allocation158_spill] sm:$0xff] }
 0x902   :  { %2577 = vmatmul.mubr.f32.vlgmr.msra.gmra.mxu0 %v2506_v6  ;;  %2648 = vmatmul.mubr.f32.vlgmr.msra.gmra.mxu1 %v2506_v6  ;;  %v13510_v6 = vld [vmem:[#allocation159_spill] sm:$0xff] }
 0x903   :  { %2682 = vmatpush1.msra.mxu0 %v9622_v12  ;;  %2753 = vmatpush1.msra.mxu1 %v9625_v37 }
 0x904   :  { %2683 = vmatprep.subr.mxu0 %v9628_v11  ;;  %2754 = vmatprep.subr.mxu1 %v9631_v14 }
 0x905   :  { %2684 = vmatpush1.msra.mxu0 %v9634_v13  ;;  %2755 = vmatpush1.msra.mxu1 %v9637_v15 }
 0x906   :  { %2685 = vmatprep.subr.mxu0 %v9640_v27  ;;  %2756 = vmatprep.subr.mxu1 %v9643_v19 }
 0x907   :  { %2686 = vmatpush1.msra.mxu0 %v9646_v47  ;;  %2757 = vmatpush1.msra.mxu1 %v9649_v16 }
 0x908   :  { %2687 = vmatprep.subr.mxu0 %v9652_v9  ;;  %2758 = vmatprep.subr.mxu1 %v9655_v52 }
 0x909   :  { %2688 = vmatpush1.msra.mxu0 %v9658_v39  ;;  %2759 = vmatpush1.msra.mxu1 %v9661_v17 }
 0x90a   :  { %2689 = vmatprep.subr.mxu0 %v9664_v57  ;;  %2760 = vmatprep.subr.mxu1 %v9755_v43 }
 0x90b   :  { %2690 = vmatpush1.msra.mxu0 %v9668_v5  ;;  %2761 = vmatpush1.msra.mxu1 %v9759_v46 }
 0x90c   :  { %2691 = vmatprep.subr.mxu0 %v9672_v41  ;;  %2762 = vmatprep.subr.mxu1 %v9763_v20 }
 0x90d   :  { %2692 = vmatpush1.msra.mxu0 %v9676_v36  ;;  %2763 = vmatpush1.msra.mxu1 %v9767_v21 }
 0x90e   :  { %2693 = vmatprep.subr.mxu0 %v9770_v38  ;;  %2764 = vmatprep.subr.mxu1 %v9773_v45 }
 0x90f   :  { %2694 = vmatpush1.msra.mxu0 %v9776_v48  ;;  %2765 = vmatpush1.msra.mxu1 %v9779_v49 }
 0x910   :  { %2695 = vmatprep.subr.mxu0 %v9782_v51  ;;  %2766 = vmatprep.subr.mxu1 %v9785_v53 }
 0x911   :  { %2696 = vmatpush1.msra.mxu0 %v9788_v54  ;;  %2767 = vmatpush1.msra.mxu1 %v9791_v55 }
 0x912   :  { %2697 = vmatprep.subr.mxu0 %v9794_v56  ;;  %2768 = vmatprep.subr.mxu1 %v9797_v58 }
 0x913   :  { %2698 = vmatpush1.msra.mxu0 %v9800_v59  ;;  %2769 = vmatpush1.msra.mxu1 %v9803_v60 }
 0x914   :  { %2699 = vmatprep.subr.mxu0 %v9806_v61  ;;  %2770 = vmatprep.subr.mxu1 %v9809_v63 }
 0x915   :  { %2700 = vmatpush1.msra.mxu0 %v9812_v0  ;;  %2771 = vmatpush1.msra.mxu1 %v9815_v3 }
 0x916   :  { %2701 = vmatprep.subr.mxu0 %v9818_v28  ;;  %2772 = vmatprep.subr.mxu1 %v9821_v25 }
 0x917   :  { %2702 = vmatpush1.msra.mxu0 %v9824_v2  ;;  %2773 = vmatpush1.msra.mxu1 %v13491_v34 }
 0x918   :  { %2703 = vmatprep.subr.mxu0 %v13492_v50  ;;  %2774 = vmatprep.subr.mxu1 %v13493_v24 }
 0x919   :  { %2704 = vmatpush1.msra.mxu0 %v13494_v42  ;;  %2775 = vmatpush1.msra.mxu1 %v13495_v33 }
 0x91a   :  { %2705 = vmatprep.subr.mxu0 %v13496_v18  ;;  %2776 = vmatprep.subr.mxu1 %v13497_v44  ;;  %v13519_v18 = vld [vmem:[#allocation61_spill] sm:$0xff] }
 0x91b   :  { %2706 = vmatpush1.msra.mxu0 %v13498_v8  ;;  %2777 = vmatpush1.msra.mxu1 %v13499_v32  ;;  %v13517_v32 = vld [vmem:[#allocation143_spill] sm:$0xff]  ;;  %v619_v33 = vadd.f32 %v13519_v18, %v9089_v26 }
 0x91c   :  { %2707 = vmatprep.subr.mxu0 %v13500_v35  ;;  %2778 = vmatprep.subr.mxu1 %v13501_v40  ;;  %v13511_v35 = vmov 0.0   ;;  %v13512_v40 = vld [vmem:[#allocation160_spill] sm:$0xff] }
 0x91d   :  { %2708 = vmatpush1.msra.mxu0 %v13502_v22  ;;  %2779 = vmatpush1.msra.mxu1 %v13503_v1  ;;  %v13513_v1 = vld [vmem:[#allocation16_spill] sm:$0xff] }
 0x91e   :  { %2709 = vmatprep.subr.mxu0 %v13504_v31  ;;  %2780 = vmatprep.subr.mxu1 %v13505_v23  ;;  %v13514_v31 = vld [vmem:[#allocation18_spill] sm:$0xff]  ;;  %v13515_v23 = vld [vmem:[#allocation145_spill] sm:$0xff] }
 0x91f   :  { %2710 = vmatpush1.msra.mxu0 %v13506_v7  ;;  %2781 = vmatpush1.msra.mxu1 %v13507_v30  ;;  %v13516_v7 = vld [vmem:[#allocation44_spill] sm:$0xff] }
 0x920   :  { %2711 = vmatprep.subr.mxu0 %v13508_v4  ;;  %2782 = vmatprep.subr.mxu1 %v13509_v10  ;;  %v338_v22 = vadd.f32 %v13516_v7, %v13515_v23  ;;  %v13518_v4 = vld [vmem:[#allocation46_spill] sm:$0xff]  ;;  %v13520_v7 = vld [vmem:[#allocation63_spill] sm:$0xff] }
 0x921   :  { %2712 = vmatpush1.msra.mxu0 %v13510_v6  ;;  %2745 = vmatprep.mubr.f32.mxu0 %v13511_v35  ;;  %v340_v8 = vadd.f32 %v13518_v4, %v13517_v32  ;;  %v621_v23 = vadd.f32 %v13520_v7, %v9097_v29  ;;  %v13546_v7 = vld [vmem:[#allocation48_spill] sm:$0xff] }
 0x922   :  { %2783 = vmatpush1.msra.mxu1 %v13512_v40  ;;  %2816 = vmatprep.mubr.f32.mxu1 %v13511_v35 }
 0x923   :  { %2850 = vmatprep.subr.mxu0 %v13513_v1  ;;  %2921 = vmatprep.subr.mxu1 %v13514_v31 }
 0x9c2   :  { %v2578_v30 = vpop.f32.mrf.mxu0  ;;  %v2649_v44 = vpop.f32.mrf.mxu1 }
 0x9c3   :  { %v2654_v10 = vadd.f32 %v2578_v30, %v338_v22  ;;  %v2656_v35 = vadd.f32 %v2649_v44, %v619_v33 }
 0x9c4   :  { %v2580_v6 = vpop.f32.mrf.mxu0  ;;  %v2651_v31 = vpop.f32.mrf.mxu1 }
 0x9c5   :  { %v2658_v40 = vmul.f32 0.5, %v2654_v10  ;;  %v2655_v42 = vadd.f32 %v2580_v6, %v340_v8  ;;  %v2657_v24 = vadd.f32 %v2651_v31, %v621_v23  ;;  %v13543_v31 = vld [vmem:[#allocation16_spill] sm:$0xff]  ;;  %v13544_v23 = vld [vmem:[#allocation18_spill] sm:$0xff]  ;;  %v13545_v6 = vld [vmem:[#allocation145_spill] sm:$0xff] }
 0x9c7   :  { %7430 = vtanh.f32 %v2658_v40  ;;  %v2662_v1 = vmul.f32 0.5, %v2655_v42  ;;  %v2667_v50 = vmul.f32 0.5, %v2657_v24 }
 0x9c9   :  { %7432 = vtanh.f32 %v2662_v1 }
 0x9ca   :  { %7434 = vtanh.f32 %v2656_v35 }
 0x9cb   :  { %7436 = vtanh.f32 %v2667_v50  ;;  %v13541_v50 = vmov 0.0  }
 0x9d4   :  { %v7431_v4 = vpop.eup %7430 }
 0x9d5   :  { %v2660_v22 = vmul.f32 0.5, %v7431_v4  ;;  %v344_v4 = vadd.f32 %v13546_v7, %v13545_v6  ;;  %v13550_v7 = vld [vmem:[#allocation67_spill] sm:$0xff] }
 0x9d6   :  { %v7433_v30 = vpop.eup %7432  ;;  %v627_v6 = vadd.f32 %v13550_v7, %v9097_v29  ;;  %v10161_v7 = vld [vmem:[#allocation4 + $0x1b8] sm:$0xff] }
 0x9d7   :  { %v2661_v32 = vadd.f32 0.5, %v2660_v22  ;;  %v2664_v34 = vmul.f32 0.5, %v7433_v30  ;;  %v7435_v18 = vpop.eup %7434  ;;  %v13547_v30 = vld [vmem:[#allocation143_spill] sm:$0xff] }
 0x9d8   :  { %v7437_v44 = vpop.eup %7436 }
 0x9d9   :  { %v2665_v10 = vadd.f32 0.5, %v2664_v34  ;;  %v2672_v8 = vmul.f32 %v7435_v18, %v2661_v32  ;;  %v2669_v35 = vmul.f32 0.5, %v7437_v44  ;;  %v13540_v34 = vld [vmem:[#allocation159_spill] sm:$0xff]  ;;  %v13542_v32 = vld [vmem:[#allocation160_spill] sm:$0xff]  ;;  %v13548_v18 = vld [vmem:[#allocation50_spill] sm:$0xff] }
 0x9db   :  { %v2671_v33 = vmul.f32 %v2665_v10, %v9981_v62  ;;  %v2670_v40 = vadd.f32 0.5, %v2669_v35  ;;  %v13539_v62 = vld [vmem:[#allocation158_spill] sm:$0xff]  ;;  %v346_v10 = vadd.f32 %v13548_v18, %v13547_v30  ;;  %v13549_v35 = vld [vmem:[#allocation65_spill] sm:$0xff] }
 0x9dd   :  { %v10059_v42 = vadd.f32 %v2672_v8, %v2671_v33 }
 0x9df   :  { %7438 = vtanh.f32 %v10059_v42 }
 0x9ec   :  { %v7439_v1 = vpop.eup %7438 }
 0x9ed   :  { %v2675_v24 = vmul.f32 %v7439_v1, %v2670_v40  ;;  %v625_v40 = vadd.f32 %v13549_v35, %v9089_v26 }
 0x9ef   :  { %2746 = vmatmul.mubr.f32.vlgmr.msra.gmra.mxu0 %v2675_v24  ;;  %2817 = vmatmul.mubr.f32.vlgmr.msra.gmra.mxu1 %v2675_v24 }
 0x9f0   :  { %2851 = vmatpush1.msra.mxu0 %v9622_v12  ;;  %2922 = vmatpush1.msra.mxu1 %v9625_v37  ;;  %v13521_v12 = vld [vmem:[#allocation33_spill] sm:$0xff]  ;;  %v13522_v37 = vld [vmem:[#allocation35_spill] sm:$0xff] }
 0x9f1   :  { %2852 = vmatprep.subr.mxu0 %v9628_v11  ;;  %2923 = vmatprep.subr.mxu1 %v9631_v14  ;;  %v13523_v11 = vld [vmem:[#allocation21_spill] sm:$0xff]  ;;  %v13524_v14 = vld [vmem:[#allocation24_spill] sm:$0xff] }
 0x9f2   :  { %2853 = vmatpush1.msra.mxu0 %v9634_v13  ;;  %2924 = vmatpush1.msra.mxu1 %v9637_v15  ;;  %v13525_v13 = vld [vmem:[#allocation37_spill] sm:$0xff]  ;;  %v13526_v15 = vld [vmem:[#allocation39_spill] sm:$0xff] }
 0x9f3   :  { %2854 = vmatprep.subr.mxu0 %v9640_v27  ;;  %2925 = vmatprep.subr.mxu1 %v9643_v19  ;;  %v13527_v27 = vld [vmem:[#allocation26_spill] sm:$0xff]  ;;  %v13528_v19 = vld [vmem:[#allocation27_spill] sm:$0xff] }
 0x9f4   :  { %2855 = vmatpush1.msra.mxu0 %v9646_v47  ;;  %2926 = vmatpush1.msra.mxu1 %v9649_v16  ;;  %v13529_v47 = vld [vmem:[#allocation41_spill] sm:$0xff]  ;;  %v13530_v16 = vld [vmem:[#allocation43_spill] sm:$0xff] }
 0x9f5   :  { %2856 = vmatprep.subr.mxu0 %v9652_v9  ;;  %2927 = vmatprep.subr.mxu1 %v9655_v52  ;;  %v13531_v9 = vld [vmem:[#allocation12_spill] sm:$0xff]  ;;  %v13532_v52 = vld [vmem:[#allocation14_spill] sm:$0xff] }
 0x9f6   :  { %2857 = vmatpush1.msra.mxu0 %v9658_v39  ;;  %2928 = vmatpush1.msra.mxu1 %v9661_v17  ;;  %v13533_v39 = vld [vmem:[#allocation29_spill] sm:$0xff]  ;;  %v13534_v17 = vld [vmem:[#allocation31_spill] sm:$0xff] }
 0x9f7   :  { %2858 = vmatprep.subr.mxu0 %v9664_v57  ;;  %2929 = vmatprep.subr.mxu1 %v9755_v43  ;;  %v13535_v57 = vld [vmem:[#allocation154_spill] sm:$0xff] }
 0x9f8   :  { %2859 = vmatpush1.msra.mxu0 %v9668_v5  ;;  %2930 = vmatpush1.msra.mxu1 %v9759_v46  ;;  %v13536_v5 = vld [vmem:[#allocation155_spill] sm:$0xff] }
 0x9f9   :  { %2860 = vmatprep.subr.mxu0 %v9672_v41  ;;  %2931 = vmatprep.subr.mxu1 %v9763_v20  ;;  %v13537_v41 = vld [vmem:[#allocation156_spill] sm:$0xff] }
 0x9fa   :  { %2861 = vmatpush1.msra.mxu0 %v9676_v36  ;;  %2932 = vmatpush1.msra.mxu1 %v9767_v21  ;;  %v13538_v36 = vld [vmem:[#allocation157_spill] sm:$0xff] }
 0x9fb   :  { %2862 = vmatprep.subr.mxu0 %v9770_v38  ;;  %2933 = vmatprep.subr.mxu1 %v9773_v45 }
 0x9fc   :  { %2863 = vmatpush1.msra.mxu0 %v9776_v48  ;;  %2934 = vmatpush1.msra.mxu1 %v9779_v49 }
 0x9fd   :  { %2864 = vmatprep.subr.mxu0 %v9782_v51  ;;  %2935 = vmatprep.subr.mxu1 %v9785_v53 }
 0x9fe   :  { %2865 = vmatpush1.msra.mxu0 %v9788_v54  ;;  %2936 = vmatpush1.msra.mxu1 %v9791_v55 }
 0x9ff   :  { %2866 = vmatprep.subr.mxu0 %v9794_v56  ;;  %2937 = vmatprep.subr.mxu1 %v9797_v58 }
 0xa00   :  { %2867 = vmatpush1.msra.mxu0 %v9800_v59  ;;  %2938 = vmatpush1.msra.mxu1 %v9803_v60 }
 0xa01   :  { %2868 = vmatprep.subr.mxu0 %v9806_v61  ;;  %2939 = vmatprep.subr.mxu1 %v9809_v63 }
 0xa02   :  { %2869 = vmatpush1.msra.mxu0 %v9812_v0  ;;  %2940 = vmatpush1.msra.mxu1 %v9815_v3 }
 0xa03   :  { %2870 = vmatprep.subr.mxu0 %v9818_v28  ;;  %2941 = vmatprep.subr.mxu1 %v9821_v25 }
 0xa04   :  { %2871 = vmatpush1.msra.mxu0 %v9824_v2  ;;  %2942 = vmatpush1.msra.mxu1 %v13521_v12 }
 0xa05   :  { %2872 = vmatprep.subr.mxu0 %v13522_v37  ;;  %2943 = vmatprep.subr.mxu1 %v13523_v11 }
 0xa06   :  { %2873 = vmatpush1.msra.mxu0 %v13524_v14  ;;  %2944 = vmatpush1.msra.mxu1 %v13525_v13 }
 0xa07   :  { %2874 = vmatprep.subr.mxu0 %v13526_v15  ;;  %2945 = vmatprep.subr.mxu1 %v13527_v27 }
 0xa08   :  { %2875 = vmatpush1.msra.mxu0 %v13528_v19  ;;  %2946 = vmatpush1.msra.mxu1 %v13529_v47 }
 0xa09   :  { %2876 = vmatprep.subr.mxu0 %v13530_v16  ;;  %2947 = vmatprep.subr.mxu1 %v13531_v9 }
 0xa0a   :  { %2877 = vmatpush1.msra.mxu0 %v13532_v52  ;;  %2948 = vmatpush1.msra.mxu1 %v13533_v39 }
 0xa0b   :  { %2878 = vmatprep.subr.mxu0 %v13534_v17  ;;  %2949 = vmatprep.subr.mxu1 %v13535_v57 }
 0xa0c   :  { %2879 = vmatpush1.msra.mxu0 %v13536_v5  ;;  %2950 = vmatpush1.msra.mxu1 %v13537_v41 }
 0xa0d   :  { %2880 = vmatprep.subr.mxu0 %v13538_v36  ;;  %2951 = vmatprep.subr.mxu1 %v13539_v62 }
 0xa0e   :  { %2881 = vmatpush1.msra.mxu0 %v13540_v34  ;;  %2914 = vmatprep.mubr.f32.mxu0 %v13541_v50 }
 0xa0f   :  { %2952 = vmatpush1.msra.mxu1 %v13542_v32  ;;  %2985 = vmatprep.mubr.f32.mxu1 %v13541_v50 }
 0xa10   :  { %3019 = vmatprep.subr.mxu0 %v13543_v31  ;;  %3090 = vmatprep.subr.mxu1 %v13544_v23 }
 0xaaf   :  { %v2747_v22 = vpop.f32.mrf.mxu0  ;;  %v2818_v33 = vpop.f32.mrf.mxu1 }
 0xab0   :  { %v2823_v8 = vadd.f32 %v2747_v22, %v344_v4  ;;  %v2825_v32 = vadd.f32 %v2818_v33, %v625_v40 }
 0xab1   :  { %v2749_v44 = vpop.f32.mrf.mxu0  ;;  %v2820_v23 = vpop.f32.mrf.mxu1 }
 0xab2   :  { %v2827_v1 = vmul.f32 0.5, %v2823_v8  ;;  %v2824_v24 = vadd.f32 %v2749_v44, %v346_v10  ;;  %v2826_v50 = vadd.f32 %v2820_v23, %v627_v6  ;;  %v10158_v23 = vld [vmem:[#allocation4 + $0x1a8] sm:$0xff] }
 0xab4   :  { %7440 = vtanh.f32 %v2827_v1  ;;  %v2831_v31 = vmul.f32 0.5, %v2824_v24  ;;  %v2836_v34 = vmul.f32 0.5, %v2826_v50  ;;  %v10140_v24 = vld [vmem:[#allocation4 + $0x1e0] sm:$0xff] }
 0xab6   :  { %7442 = vtanh.f32 %v2831_v31  ;;  %v10155_v31 = vld [vmem:[#allocation4 + $0x1d0] sm:$0xff] }
 0xab7   :  { %7444 = vtanh.f32 %v2825_v32 }
 0xab8   :  { %7446 = vtanh.f32 %v2836_v34  ;;  %v10143_v34 = vld [vmem:[#allocation4 + $0x1f0] sm:$0xff] }
 0xac1   :  { %v7441_v18 = vpop.eup %7440 }
 0xac2   :  { %v2829_v4 = vmul.f32 0.5, %v7441_v18  ;;  %v10164_v18 = vld [vmem:[#allocation4 + $0x1a0] sm:$0xff] }
 0xac3   :  { %v7443_v22 = vpop.eup %7442 }
 0xac4   :  { %v2830_v30 = vadd.f32 0.5, %v2829_v4  ;;  %v2833_v62 = vmul.f32 0.5, %v7443_v22  ;;  %v7445_v35 = vpop.eup %7444  ;;  %v10167_v4 = vld [vmem:[#allocation4 + $0x1b0] sm:$0xff]  ;;  %v10170_v22 = vld [vmem:[#allocation4 + $0x188] sm:$0xff] }
 0xac5   :  { %v7447_v32 = vpop.eup %7446 }
 0xac6   :  { %v2834_v8 = vadd.f32 0.5, %v2833_v62  ;;  %v2841_v10 = vmul.f32 %v7445_v35, %v2830_v30  ;;  %v2838_v40 = vmul.f32 0.5, %v7447_v32  ;;  %v10149_v62 = vld [vmem:[#allocation4 + $0x1d8] sm:$0xff]  ;;  %v10152_v30 = vld [vmem:[#allocation4 + $0x1c0] sm:$0xff] }
 0xac7   :  { %v10173_v35 = vld [vmem:[#allocation4 + $0x198] sm:$0xff]  ;;  %v10186_v32 = vld [vmem:[#allocation4 + $0x160] sm:$0xff] }
 0xac8   :  { %v2840_v33 = vmul.f32 %v2834_v8, %v10059_v42  ;;  %v2839_v1 = vadd.f32 0.5, %v2838_v40  ;;  %v10146_v42 = vld [vmem:[#allocation4 + $0x1c8] sm:$0xff]  ;;  %v10176_v8 = vld [vmem:[#allocation4 + $0x180] sm:$0xff] }
 0xac9   :  { %v10190_v40 = vld [vmem:[#allocation4 + $0x148] sm:$0xff] }
 0xaca   :  { %v10137_v44 = vadd.f32 %v2841_v10, %v2840_v33  ;;  %v10179_v10 = vld [vmem:[#allocation4 + $0x190] sm:$0xff]  ;;  %v10182_v33 = vld [vmem:[#allocation4 + $0x168] sm:$0xff] }
 0xacc   :  { %7448 = vtanh.f32 %v10137_v44 }
 0xad9   :  { %v7449_v6 = vpop.eup %7448 }
 0xada   :  { %v2844_v50 = vmul.f32 %v7449_v6, %v2839_v1  ;;  %v10194_v1 = vld [vmem:[#allocation4 + $0x140] sm:$0xff] }
 0xadc   :  { %2915 = vmatmul.mubr.f32.vlgmr.msra.gmra.mxu0 %v2844_v50  ;;  %2986 = vmatmul.mubr.f32.vlgmr.msra.gmra.mxu1 %v2844_v50  ;;  %v10277_v50 = vld [vmem:[#allocation4 + $0x170] sm:$0xff] }
 0xadd   :  { %3020 = vmatpush1.msra.mxu0 %v10140_v24  ;;  %3091 = vmatpush1.msra.mxu1 %v10143_v34 }
 0xade   :  { %3021 = vmatprep.subr.mxu0 %v10146_v42  ;;  %3092 = vmatprep.subr.mxu1 %v10149_v62 }
 0xadf   :  { %3022 = vmatpush1.msra.mxu0 %v10152_v30  ;;  %3093 = vmatpush1.msra.mxu1 %v10155_v31 }
 0xae0   :  { %3023 = vmatprep.subr.mxu0 %v10158_v23  ;;  %3094 = vmatprep.subr.mxu1 %v10161_v7 }
 0xae1   :  { %3024 = vmatpush1.msra.mxu0 %v10164_v18  ;;  %3095 = vmatpush1.msra.mxu1 %v10167_v4 }
 0xae2   :  { %3025 = vmatprep.subr.mxu0 %v10170_v22  ;;  %3096 = vmatprep.subr.mxu1 %v10173_v35 }
 0xae3   :  { %3026 = vmatpush1.msra.mxu0 %v10176_v8  ;;  %3097 = vmatpush1.msra.mxu1 %v10179_v10 }
 0xae4   :  { %3027 = vmatprep.subr.mxu0 %v10182_v33  ;;  %3098 = vmatprep.subr.mxu1 %v9755_v43  ;;  %v13551_v43 = vld [vmem:[#allocation158_spill] sm:$0xff] }
 0xae5   :  { %3028 = vmatpush1.msra.mxu0 %v10186_v32  ;;  %3099 = vmatpush1.msra.mxu1 %v9759_v46  ;;  %v13552_v46 = vld [vmem:[#allocation159_spill] sm:$0xff] }
 0xae6   :  { %3029 = vmatprep.subr.mxu0 %v10190_v40  ;;  %3100 = vmatprep.subr.mxu1 %v9763_v20  ;;  %v13553_v20 = vmov 0.0  }
 0xae7   :  { %3030 = vmatpush1.msra.mxu0 %v10194_v1  ;;  %3101 = vmatpush1.msra.mxu1 %v9767_v21  ;;  %v13554_v21 = vld [vmem:[#allocation160_spill] sm:$0xff] }
 0xae8   :  { %3031 = vmatprep.subr.mxu0 %v9770_v38  ;;  %3102 = vmatprep.subr.mxu1 %v9773_v45  ;;  %v10240_v38 = vld [vmem:[#allocation4 + $0x1e8] sm:$0xff]  ;;  %v10243_v45 = vld [vmem:[#allocation4 + $0x1f8] sm:$0xff] }
 0xae9   :  { %3032 = vmatpush1.msra.mxu0 %v9776_v48  ;;  %3103 = vmatpush1.msra.mxu1 %v9779_v49  ;;  %13555 = vst [vmem:[#allocation161_spill] sm:$0xff] %v10240_v38  ;;  %13556 = vst [vmem:[#allocation162_spill] sm:$0xff] %v10243_v45  ;;  %v13557_v48 = vld [vmem:[#allocation145_spill] sm:$0xff]  ;;  %v13558_v49 = vld [vmem:[#allocation52_spill] sm:$0xff] }
 0xaea   :  { %3033 = vmatprep.subr.mxu0 %v9782_v51  ;;  %3104 = vmatprep.subr.mxu1 %v9785_v53  ;;  %v350_v51 = vadd.f32 %v13558_v49, %v13557_v48  ;;  %v10291_v49 = vld [vmem:[#allocation4 + $0x138] sm:$0xff] }
 0xaeb   :  { %3034 = vmatpush1.msra.mxu0 %v9788_v54  ;;  %3105 = vmatpush1.msra.mxu1 %v9791_v55  ;;  %v13559_v54 = vld [vmem:[#allocation143_spill] sm:$0xff]  ;;  %v13560_v55 = vld [vmem:[#allocation54_spill] sm:$0xff] }
 0xaec   :  { %3035 = vmatprep.subr.mxu0 %v9794_v56  ;;  %3106 = vmatprep.subr.mxu1 %v9797_v58  ;;  %v352_v56 = vadd.f32 %v13560_v55, %v13559_v54  ;;  %v10300_v55 = vld [vmem:[#allocation4 + $0x108] sm:$0xff] }
 0xaed   :  { %3036 = vmatpush1.msra.mxu0 %v9800_v59  ;;  %3107 = vmatpush1.msra.mxu1 %v9803_v60 }
 0xaee   :  { %3037 = vmatprep.subr.mxu0 %v9806_v61  ;;  %3108 = vmatprep.subr.mxu1 %v9809_v63  ;;  %v13561_v61 = vld [vmem:[#allocation69_spill] sm:$0xff] }
 0xaef   :  { %3038 = vmatpush1.msra.mxu0 %v9812_v0  ;;  %3109 = vmatpush1.msra.mxu1 %v9815_v3  ;;  %v631_v63 = vadd.f32 %v13561_v61, %v9089_v26  ;;  %v10315_v61 = vld [vmem:[#allocation4 + $0xf8] sm:$0xff] }
 0xaf0   :  { %3039 = vmatprep.subr.mxu0 %v9818_v28  ;;  %3110 = vmatprep.subr.mxu1 %v9821_v25 }
 0xaf1   :  { %3040 = vmatpush1.msra.mxu0 %v9824_v2  ;;  %3111 = vmatpush1.msra.mxu1 %v13521_v12  ;;  %v13562_v12 = vld [vmem:[#allocation71_spill] sm:$0xff] }
 0xaf2   :  { %3041 = vmatprep.subr.mxu0 %v13522_v37  ;;  %3112 = vmatprep.subr.mxu1 %v13523_v11  ;;  %v633_v37 = vadd.f32 %v13562_v12, %v9097_v29  ;;  %v10336_v12 = vld [vmem:[#allocation4 + $0xa8] sm:$0xff] }
 0xaf3   :  { %3042 = vmatpush1.msra.mxu0 %v13524_v14  ;;  %3113 = vmatpush1.msra.mxu1 %v13525_v13 }
 0xaf4   :  { %3043 = vmatprep.subr.mxu0 %v13526_v15  ;;  %3114 = vmatprep.subr.mxu1 %v13527_v27 }
 0xaf5   :  { %3044 = vmatpush1.msra.mxu0 %v13528_v19  ;;  %3115 = vmatpush1.msra.mxu1 %v13529_v47 }
 0xaf6   :  { %3045 = vmatprep.subr.mxu0 %v13530_v16  ;;  %3116 = vmatprep.subr.mxu1 %v13531_v9 }
 0xaf7   :  { %3046 = vmatpush1.msra.mxu0 %v13532_v52  ;;  %3117 = vmatpush1.msra.mxu1 %v13533_v39 }
 0xaf8   :  { %3047 = vmatprep.subr.mxu0 %v13534_v17  ;;  %3118 = vmatprep.subr.mxu1 %v13535_v57 }
 0xaf9   :  { %3048 = vmatpush1.msra.mxu0 %v13536_v5  ;;  %3119 = vmatpush1.msra.mxu1 %v13537_v41 }
 0xafa   :  { %3049 = vmatprep.subr.mxu0 %v13538_v36  ;;  %3120 = vmatprep.subr.mxu1 %v13551_v43  ;;  %v10281_v43 = vld [vmem:[#allocation4 + $0x158] sm:$0xff] }
 0xafb   :  { %3050 = vmatpush1.msra.mxu0 %v13552_v46  ;;  %3083 = vmatprep.mubr.f32.mxu0 %v13553_v20  ;;  %v10285_v46 = vld [vmem:[#allocation4 + $0x150] sm:$0xff] }
 0xafc   :  { %3121 = vmatpush1.msra.mxu1 %v13554_v21  ;;  %3154 = vmatprep.mubr.f32.mxu1 %v13553_v20  ;;  %v10288_v21 = vld [vmem:[#allocation4 + $0x128] sm:$0xff] }
 0xafd   :  { %3188 = vmatprep.subr.mxu0 %v10240_v38  ;;  %3259 = vmatprep.subr.mxu1 %v10243_v45 }
 0xb9c   :  { %v2916_v53 = vpop.f32.mrf.mxu0  ;;  %v2987_v59 = vpop.f32.mrf.mxu1 }
 0xb9d   :  { %v2992_v58 = vadd.f32 %v2916_v53, %v350_v51  ;;  %v2994_v28 = vadd.f32 %v2987_v59, %v631_v63  ;;  %v10294_v51 = vld [vmem:[#allocation4 + $0x120] sm:$0xff]  ;;  %v10297_v53 = vld [vmem:[#allocation4 + $0x130] sm:$0xff] }
 0xb9e   :  { %v2918_v60 = vpop.f32.mrf.mxu0  ;;  %v2989_v2 = vpop.f32.mrf.mxu1  ;;  %v10309_v59 = vld [vmem:[#allocation4 + $0x110] sm:$0xff]  ;;  %v10318_v63 = vld [vmem:[#allocation4 + $0xe0] sm:$0xff] }
 0xb9f   :  { %v2996_v0 = vmul.f32 0.5, %v2992_v58  ;;  %v2993_v3 = vadd.f32 %v2918_v60, %v352_v56  ;;  %v2995_v11 = vadd.f32 %v2989_v2, %v633_v37  ;;  %v10303_v56 = vld [vmem:[#allocation4 + $0x118] sm:$0xff]  ;;  %v10306_v58 = vld [vmem:[#allocation4 + $0x100] sm:$0xff]  ;;  %v10312_v60 = vld [vmem:[#allocation4 + $0xe8] sm:$0xff] }
 0xba0   :  { %v10333_v2 = vld [vmem:[#allocation4 + $0xd0] sm:$0xff]  ;;  %v10339_v37 = vld [vmem:[#allocation4 + $0xb8] sm:$0xff] }
 0xba1   :  { %7450 = vtanh.f32 %v2996_v0  ;;  %v3000_v25 = vmul.f32 0.5, %v2993_v3  ;;  %v3005_v14 = vmul.f32 0.5, %v2995_v11  ;;  %v10321_v0 = vld [vmem:[#allocation4 + $0xf0] sm:$0xff]  ;;  %v10324_v3 = vld [vmem:[#allocation4 + $0xc8] sm:$0xff]  ;;  %v10342_v11 = vld [vmem:[#allocation4 + $0xa0] sm:$0xff] }
 0xba3   :  { %7452 = vtanh.f32 %v3000_v25  ;;  %v10330_v25 = vld [vmem:[#allocation4 + $0xc0] sm:$0xff] }
 0xba4   :  { %7454 = vtanh.f32 %v2994_v28  ;;  %v10327_v28 = vld [vmem:[#allocation4 + $0xd8] sm:$0xff] }
 0xba5   :  { %7456 = vtanh.f32 %v3005_v14  ;;  %v10345_v14 = vld [vmem:[#allocation4 + $0xb0] sm:$0xff] }
 0xba6   :  { %13563 = vst [vmem:[#allocation163_spill] sm:$0xff] %v10345_v14 }
 0xbae   :  { %v7451_v13 = vpop.eup %7450 }
 0xbaf   :  { %v2998_v15 = vmul.f32 0.5, %v7451_v13  ;;  %v10348_v13 = vld [vmem:[#allocation4 + $0x88] sm:$0xff] }
 0xbb0   :  { %v7453_v27 = vpop.eup %7452  ;;  %13564 = vst [vmem:[#allocation164_spill] sm:$0xff] %v10348_v13 }
 0xbb1   :  { %v2999_v19 = vadd.f32 0.5, %v2998_v15  ;;  %v3002_v47 = vmul.f32 0.5, %v7453_v27  ;;  %v7455_v16 = vpop.eup %7454  ;;  %v10351_v15 = vld [vmem:[#allocation4 + $0x98] sm:$0xff]  ;;  %v10354_v27 = vld [vmem:[#allocation4 + $0x80] sm:$0xff] }
 0xbb2   :  { %v7457_v57 = vpop.eup %7456  ;;  %13565 = vst [vmem:[#allocation165_spill] sm:$0xff] %v10351_v15  ;;  %13566 = vst [vmem:[#allocation166_spill] sm:$0xff] %v10354_v27 }
 0xbb3   :  { %v3003_v9 = vadd.f32 0.5, %v3002_v47  ;;  %v3010_v52 = vmul.f32 %v7455_v16, %v2999_v19  ;;  %v3007_v5 = vmul.f32 0.5, %v7457_v57  ;;  %v10357_v19 = vld [vmem:[#allocation4 + $0x90] sm:$0xff]  ;;  %v10360_v47 = vld [vmem:[#allocation4 + $0x68] sm:$0xff]  ;;  %v10363_v16 = vld [vmem:[#allocation4 + $0x78] sm:$0xff] }
 0xbb4   :  { %13567 = vst [vmem:[#allocation167_spill] sm:$0xff] %v10357_v19  ;;  %13568 = vst [vmem:[#allocation19_spill] sm:$0xff] %v10360_v47  ;;  %v10375_v57 = vld [vmem:[#allocation4 + $0x58] sm:$0xff] }
 0xbb5   :  { %v3009_v39 = vmul.f32 %v3003_v9, %v10137_v44  ;;  %v3008_v41 = vadd.f32 0.5, %v3007_v5  ;;  %v10273_v44 = vld [vmem:[#allocation4 + $0x178] sm:$0xff]  ;;  %13569 = vst [vmem:[#allocation22_spill] sm:$0xff] %v10363_v16  ;;  %v10366_v9 = vld [vmem:[#allocation4 + $0x60] sm:$0xff]  ;;  %13573 = vst [vmem:[#allocation47_spill] sm:$0xff] %v10375_v57 }
 0xbb6   :  { %13570 = vst [vmem:[#allocation28_spill] sm:$0xff] %v10366_v9  ;;  %v10378_v5 = vld [vmem:[#allocation4 + $0x40] sm:$0xff] }
 0xbb7   :  { %v10255_v17 = vadd.f32 %v3010_v52, %v3009_v39  ;;  %v10369_v52 = vld [vmem:[#allocation4 + $0x70] sm:$0xff]  ;;  %v10372_v39 = vld [vmem:[#allocation4 + $0x48] sm:$0xff]  ;;  %13574 = vst [vmem:[#allocation168_spill] sm:$0xff] %v10378_v5 }
 0xbb8   :  { %13571 = vst [vmem:[#allocation30_spill] sm:$0xff] %v10369_v52  ;;  %13572 = vst [vmem:[#allocation45_spill] sm:$0xff] %v10372_v39 }
 0xbb9   :  { %7458 = vtanh.f32 %v10255_v17 }
 0xbc6   :  { %v7459_v36 = vpop.eup %7458 }
 0xbc7   :  { %v3013_v6 = vmul.f32 %v7459_v36, %v3008_v41  ;;  %v10381_v41 = vld [vmem:[#allocation4 + $0x50] sm:$0xff]  ;;  %v10384_v36 = vld [vmem:[#allocation4 + $0x28] sm:$0xff] }
 0xbc8   :  { %13575 = vst [vmem:[#allocation169_spill] sm:$0xff] %v10381_v41  ;;  %13576 = vst [vmem:[#allocation170_spill] sm:$0xff] %v10384_v36 }
 0xbc9   :  { %3084 = vmatmul.mubr.f32.vlgmr.msra.gmra.mxu0 %v3013_v6  ;;  %3155 = vmatmul.mubr.f32.vlgmr.msra.gmra.mxu1 %v3013_v6  ;;  %v10387_v6 = vld [vmem:[#allocation4 + $0x38] sm:$0xff] }
 0xbca   :  { %3189 = vmatpush1.msra.mxu0 %v10140_v24  ;;  %3260 = vmatpush1.msra.mxu1 %v10143_v34  ;;  %13577 = vst [vmem:[#allocation32_spill] sm:$0xff] %v10387_v6 }
 0xbcb   :  { %3190 = vmatprep.subr.mxu0 %v10146_v42  ;;  %3261 = vmatprep.subr.mxu1 %v10149_v62 }
 0xbcc   :  { %3191 = vmatpush1.msra.mxu0 %v10152_v30  ;;  %3262 = vmatpush1.msra.mxu1 %v10155_v31 }
 0xbcd   :  { %3192 = vmatprep.subr.mxu0 %v10158_v23  ;;  %3263 = vmatprep.subr.mxu1 %v10161_v7 }
 0xbce   :  { %3193 = vmatpush1.msra.mxu0 %v10164_v18  ;;  %3264 = vmatpush1.msra.mxu1 %v10167_v4 }
 0xbcf   :  { %3194 = vmatprep.subr.mxu0 %v10170_v22  ;;  %3265 = vmatprep.subr.mxu1 %v10173_v35 }
 0xbd0   :  { %3195 = vmatpush1.msra.mxu0 %v10176_v8  ;;  %3266 = vmatpush1.msra.mxu1 %v10179_v10 }
 0xbd1   :  { %3196 = vmatprep.subr.mxu0 %v10182_v33  ;;  %3267 = vmatprep.subr.mxu1 %v10273_v44 }
 0xbd2   :  { %3197 = vmatpush1.msra.mxu0 %v10186_v32  ;;  %3268 = vmatpush1.msra.mxu1 %v10277_v50 }
 0xbd3   :  { %3198 = vmatprep.subr.mxu0 %v10190_v40  ;;  %3269 = vmatprep.subr.mxu1 %v10281_v43 }
 0xbd4   :  { %3199 = vmatpush1.msra.mxu0 %v10194_v1  ;;  %3270 = vmatpush1.msra.mxu1 %v10285_v46 }
 0xbd5   :  { %3200 = vmatprep.subr.mxu0 %v10288_v21  ;;  %3271 = vmatprep.subr.mxu1 %v10291_v49 }
 0xbd6   :  { %3201 = vmatpush1.msra.mxu0 %v10294_v51  ;;  %3272 = vmatpush1.msra.mxu1 %v10297_v53 }
 0xbd7   :  { %3202 = vmatprep.subr.mxu0 %v10300_v55  ;;  %3273 = vmatprep.subr.mxu1 %v10303_v56 }
 0xbd8   :  { %3203 = vmatpush1.msra.mxu0 %v10306_v58  ;;  %3274 = vmatpush1.msra.mxu1 %v10309_v59 }
 0xbd9   :  { %3204 = vmatprep.subr.mxu0 %v10312_v60  ;;  %3275 = vmatprep.subr.mxu1 %v10315_v61 }
 0xbda   :  { %3205 = vmatpush1.msra.mxu0 %v10318_v63  ;;  %3276 = vmatpush1.msra.mxu1 %v10321_v0 }
 0xbdb   :  { %3206 = vmatprep.subr.mxu0 %v10324_v3  ;;  %3277 = vmatprep.subr.mxu1 %v10327_v28 }
 0xbdc   :  { %3207 = vmatpush1.msra.mxu0 %v10330_v25  ;;  %3278 = vmatpush1.msra.mxu1 %v10333_v2 }
 0xbdd   :  { %3208 = vmatprep.subr.mxu0 %v10336_v12  ;;  %3279 = vmatprep.subr.mxu1 %v10339_v37 }
 0xbde   :  { %3209 = vmatpush1.msra.mxu0 %v10342_v11  ;;  %3280 = vmatpush1.msra.mxu1 %v10345_v14 }
 0xbdf   :  { %3210 = vmatprep.subr.mxu0 %v10348_v13  ;;  %3281 = vmatprep.subr.mxu1 %v10351_v15 }
 0xbe0   :  { %3211 = vmatpush1.msra.mxu0 %v10354_v27  ;;  %3282 = vmatpush1.msra.mxu1 %v10357_v19 }
 0xbe1   :  { %3212 = vmatprep.subr.mxu0 %v10360_v47  ;;  %3283 = vmatprep.subr.mxu1 %v10363_v16  ;;  %v13586_v47 = vld [vmem:[#allocation73_spill] sm:$0xff] }
 0xbe2   :  { %3213 = vmatpush1.msra.mxu0 %v10366_v9  ;;  %3284 = vmatpush1.msra.mxu1 %v10369_v52  ;;  %v637_v19 = vadd.f32 %v13586_v47, %v9089_v26 }
 0xbe3   :  { %3214 = vmatprep.subr.mxu0 %v10372_v39  ;;  %3285 = vmatprep.subr.mxu1 %v10375_v57  ;;  %v10390_v39 = vld [vmem:[#allocation4 + $0x20] sm:$0xff]  ;;  %v10393_v57 = vld [vmem:[#allocation4 + $0x30] sm:$0xff] }
 0xbe4   :  { %3215 = vmatpush1.msra.mxu0 %v10378_v5  ;;  %3286 = vmatpush1.msra.mxu1 %v10381_v41  ;;  %13578 = vst [vmem:[#allocation34_spill] sm:$0xff] %v10390_v39  ;;  %13579 = vst [vmem:[#allocation49_spill] sm:$0xff] %v10393_v57  ;;  %v10396_v5 = vld [vmem:[#allocation4 + $0x8] sm:$0xff]  ;;  %v10399_v41 = vld [vmem:[#allocation4 + $0x18] sm:$0xff] }
 0xbe5   :  { %3216 = vmatprep.subr.mxu0 %v10384_v36  ;;  %3287 = vmatprep.subr.mxu1 %v10387_v6  ;;  %13580 = vst [vmem:[#allocation51_spill] sm:$0xff] %v10396_v5  ;;  %13581 = vst [vmem:[#allocation36_spill] sm:$0xff] %v10399_v41  ;;  %v10402_v36 = vld [vmem:[#allocation4] sm:$0xff]  ;;  %v10406_v6 = vld [vmem:[#allocation4 + $0x10] sm:$0xff] }
 0xbe6   :  { %3217 = vmatpush1.msra.mxu0 %v10390_v39  ;;  %3288 = vmatpush1.msra.mxu1 %v10393_v57  ;;  %13582 = vst [vmem:[#allocation38_spill] sm:$0xff] %v10402_v36  ;;  %13583 = vst [vmem:[#allocation53_spill] sm:$0xff] %v10406_v6  ;;  %v13585_v39 = vld [vmem:[#allocation58_spill] sm:$0xff] }
 0xbe7   :  { %3218 = vmatprep.subr.mxu0 %v10396_v5  ;;  %3289 = vmatprep.subr.mxu1 %v10399_v41  ;;  %v13584_v5 = vld [vmem:[#allocation56_spill] sm:$0xff]  ;;  %v358_v52 = vadd.f32 %v13585_v39, %v13559_v54 }
 0xbe8   :  { %3219 = vmatpush1.msra.mxu0 %v10402_v36  ;;  %3252 = vmatprep.mubr.f32.mxu0 %v13553_v20  ;;  %v356_v57 = vadd.f32 %v13584_v5, %v13557_v48  ;;  %v13587_v5 = vld [vmem:[#allocation75_spill] sm:$0xff] }
 0xbe9   :  { %3290 = vmatpush1.msra.mxu1 %v10406_v6  ;;  %3323 = vmatprep.mubr.f32.mxu1 %v13553_v20  ;;  %v639_v48 = vadd.f32 %v13587_v5, %v9097_v29  ;;  %v13595_v5 = vld [vmem:[#allocation28_spill] sm:$0xff] }
 0xbea   :  { %3357 = vmatprep.subr.mxu0 %v10240_v38  ;;  %3428 = vmatprep.subr.mxu1 %v10243_v45 }
 0xc89   :  { %v3085_v41 = vpop.f32.mrf.mxu0  ;;  %v3156_v9 = vpop.f32.mrf.mxu1 }
 0xc8a   :  { %v3161_v36 = vadd.f32 %v3085_v41, %v356_v57  ;;  %v3163_v20 = vadd.f32 %v3156_v9, %v637_v19 }
 0xc8b   :  { %v3087_v16 = vpop.f32.mrf.mxu0  ;;  %v3158_v45 = vpop.f32.mrf.mxu1 }
 0xc8c   :  { %v3165_v6 = vmul.f32 0.5, %v3161_v36  ;;  %v3162_v27 = vadd.f32 %v3087_v16, %v358_v52  ;;  %v3164_v15 = vadd.f32 %v3158_v45, %v639_v48  ;;  %v13593_v52 = vld [vmem:[#allocation19_spill] sm:$0xff] }
 0xc8e   :  { %7460 = vtanh.f32 %v3165_v6  ;;  %v3169_v38 = vmul.f32 0.5, %v3162_v27  ;;  %v3174_v13 = vmul.f32 0.5, %v3164_v15  ;;  %v13592_v15 = vld [vmem:[#allocation167_spill] sm:$0xff]  ;;  %v13594_v6 = vld [vmem:[#allocation22_spill] sm:$0xff] }
 0xc90   :  { %7462 = vtanh.f32 %v3169_v38 }
 0xc91   :  { %7464 = vtanh.f32 %v3163_v20 }
 0xc92   :  { %7466 = vtanh.f32 %v3174_v13  ;;  %v13591_v13 = vld [vmem:[#allocation166_spill] sm:$0xff] }
 0xc9b   :  { %v7461_v39 = vpop.eup %7460 }
 0xc9c   :  { %v3167_v57 = vmul.f32 0.5, %v7461_v39  ;;  %v13596_v39 = vld [vmem:[#allocation30_spill] sm:$0xff] }
 0xc9d   :  { %v7463_v41 = vpop.eup %7462 }
 0xc9e   :  { %v3168_v54 = vadd.f32 0.5, %v3167_v57  ;;  %v3171_v14 = vmul.f32 0.5, %v7463_v41  ;;  %v7465_v47 = vpop.eup %7464  ;;  %v13597_v57 = vld [vmem:[#allocation45_spill] sm:$0xff]  ;;  %v13598_v41 = vld [vmem:[#allocation47_spill] sm:$0xff] }
 0xc9f   :  { %v7467_v20 = vpop.eup %7466 }
 0xca0   :  { %v3172_v36 = vadd.f32 0.5, %v3171_v14  ;;  %v3179_v16 = vmul.f32 %v7465_v47, %v3168_v54  ;;  %v3176_v38 = vmul.f32 0.5, %v7467_v20  ;;  %v13588_v54 = vld [vmem:[#allocation163_spill] sm:$0xff]  ;;  %v13590_v14 = vld [vmem:[#allocation165_spill] sm:$0xff]  ;;  %v13599_v47 = vld [vmem:[#allocation168_spill] sm:$0xff] }
 0xca1   :  { %v13603_v20 = vld [vmem:[#allocation34_spill] sm:$0xff] }
 0xca2   :  { %v3178_v19 = vmul.f32 %v3172_v36, %v10255_v17  ;;  %v3177_v9 = vadd.f32 0.5, %v3176_v38  ;;  %v13589_v17 = vld [vmem:[#allocation164_spill] sm:$0xff]  ;;  %v13600_v36 = vld [vmem:[#allocation169_spill] sm:$0xff] }
 0xca3   :  { %v13604_v38 = vld [vmem:[#allocation49_spill] sm:$0xff] }
 0xca4   :  { %v10421_v27 = vadd.f32 %v3179_v16, %v3178_v19  ;;  %v13601_v16 = vld [vmem:[#allocation170_spill] sm:$0xff]  ;;  %v13602_v19 = vld [vmem:[#allocation32_spill] sm:$0xff] }
 0xca6   :  { %7468 = vtanh.f32 %v10421_v27 }
 0xcb3   :  { %v7469_v45 = vpop.eup %7468 }
 0xcb4   :  { %v3182_v48 = vmul.f32 %v7469_v45, %v3177_v9  ;;  %v13605_v9 = vld [vmem:[#allocation51_spill] sm:$0xff]  ;;  %v13606_v45 = vld [vmem:[#allocation36_spill] sm:$0xff] }
 0xcb6   :  { %3253 = vmatmul.mubr.f32.vlgmr.msra.gmra.mxu0 %v3182_v48  ;;  %3324 = vmatmul.mubr.f32.vlgmr.msra.gmra.mxu1 %v3182_v48  ;;  %v13607_v48 = vld [vmem:[#allocation38_spill] sm:$0xff] }
 0xcb7   :  { %3358 = vmatpush1.msra.mxu0 %v10140_v24  ;;  %3429 = vmatpush1.msra.mxu1 %v10143_v34 }
 0xcb8   :  { %3359 = vmatprep.subr.mxu0 %v10146_v42  ;;  %3430 = vmatprep.subr.mxu1 %v10149_v62 }
 0xcb9   :  { %3360 = vmatpush1.msra.mxu0 %v10152_v30  ;;  %3431 = vmatpush1.msra.mxu1 %v10155_v31 }
 0xcba   :  { %3361 = vmatprep.subr.mxu0 %v10158_v23  ;;  %3432 = vmatprep.subr.mxu1 %v10161_v7 }
 0xcbb   :  { %3362 = vmatpush1.msra.mxu0 %v10164_v18  ;;  %3433 = vmatpush1.msra.mxu1 %v10167_v4 }
 0xcbc   :  { %3363 = vmatprep.subr.mxu0 %v10170_v22  ;;  %3434 = vmatprep.subr.mxu1 %v10173_v35 }
 0xcbd   :  { %3364 = vmatpush1.msra.mxu0 %v10176_v8  ;;  %3435 = vmatpush1.msra.mxu1 %v10179_v10 }
 0xcbe   :  { %3365 = vmatprep.subr.mxu0 %v10182_v33  ;;  %3436 = vmatprep.subr.mxu1 %v10273_v44 }
 0xcbf   :  { %3366 = vmatpush1.msra.mxu0 %v10186_v32  ;;  %3437 = vmatpush1.msra.mxu1 %v10277_v50 }
 0xcc0   :  { %3367 = vmatprep.subr.mxu0 %v10190_v40  ;;  %3438 = vmatprep.subr.mxu1 %v10281_v43 }
 0xcc1   :  { %3368 = vmatpush1.msra.mxu0 %v10194_v1  ;;  %3439 = vmatpush1.msra.mxu1 %v10285_v46 }
 0xcc2   :  { %3369 = vmatprep.subr.mxu0 %v10288_v21  ;;  %3440 = vmatprep.subr.mxu1 %v10291_v49 }
 0xcc3   :  { %3370 = vmatpush1.msra.mxu0 %v10294_v51  ;;  %3441 = vmatpush1.msra.mxu1 %v10297_v53 }
 0xcc4   :  { %3371 = vmatprep.subr.mxu0 %v10300_v55  ;;  %3442 = vmatprep.subr.mxu1 %v10303_v56 }
 0xcc5   :  { %3372 = vmatpush1.msra.mxu0 %v10306_v58  ;;  %3443 = vmatpush1.msra.mxu1 %v10309_v59 }
 0xcc6   :  { %3373 = vmatprep.subr.mxu0 %v10312_v60  ;;  %3444 = vmatprep.subr.mxu1 %v10315_v61 }
 0xcc7   :  { %3374 = vmatpush1.msra.mxu0 %v10318_v63  ;;  %3445 = vmatpush1.msra.mxu1 %v10321_v0 }
 0xcc8   :  { %3375 = vmatprep.subr.mxu0 %v10324_v3  ;;  %3446 = vmatprep.subr.mxu1 %v10327_v28 }
 0xcc9   :  { %3376 = vmatpush1.msra.mxu0 %v10330_v25  ;;  %3447 = vmatpush1.msra.mxu1 %v10333_v2 }
 0xcca   :  { %3377 = vmatprep.subr.mxu0 %v10336_v12  ;;  %3448 = vmatprep.subr.mxu1 %v10339_v37 }
 0xccb   :  { %3378 = vmatpush1.msra.mxu0 %v10342_v11  ;;  %3449 = vmatpush1.msra.mxu1 %v13588_v54 }
 0xccc   :  { %3379 = vmatprep.subr.mxu0 %v13589_v17  ;;  %3450 = vmatprep.subr.mxu1 %v13590_v14 }
 0xccd   :  { %3380 = vmatpush1.msra.mxu0 %v13591_v13  ;;  %3451 = vmatpush1.msra.mxu1 %v13592_v15 }
 0xcce   :  { %3381 = vmatprep.subr.mxu0 %v13593_v52  ;;  %3452 = vmatprep.subr.mxu1 %v13594_v6  ;;  %v13616_v52 = vld [vmem:[#allocation77_spill] sm:$0xff] }
 0xccf   :  { %3382 = vmatpush1.msra.mxu0 %v13595_v5  ;;  %3453 = vmatpush1.msra.mxu1 %v13596_v39  ;;  %v13614_v39 = vld [vmem:[#allocation143_spill] sm:$0xff]  ;;  %v643_v15 = vadd.f32 %v13616_v52, %v9089_v26 }
 0xcd0   :  { %3383 = vmatprep.subr.mxu0 %v13597_v57  ;;  %3454 = vmatprep.subr.mxu1 %v13598_v41  ;;  %v13608_v57 = vmov 0.0   ;;  %v13609_v41 = vld [vmem:[#allocation53_spill] sm:$0xff] }
 0xcd1   :  { %3384 = vmatpush1.msra.mxu0 %v13599_v47  ;;  %3455 = vmatpush1.msra.mxu1 %v13600_v36  ;;  %v13610_v36 = vld [vmem:[#allocation161_spill] sm:$0xff] }
 0xcd2   :  { %3385 = vmatprep.subr.mxu0 %v13601_v16  ;;  %3456 = vmatprep.subr.mxu1 %v13602_v19  ;;  %v13611_v16 = vld [vmem:[#allocation162_spill] sm:$0xff]  ;;  %v13612_v19 = vld [vmem:[#allocation145_spill] sm:$0xff] }
 0xcd3   :  { %3386 = vmatpush1.msra.mxu0 %v13603_v20  ;;  %3457 = vmatpush1.msra.mxu1 %v13604_v38  ;;  %v13613_v20 = vld [vmem:[#allocation60_spill] sm:$0xff] }
 0xcd4   :  { %3387 = vmatprep.subr.mxu0 %v13605_v9  ;;  %3458 = vmatprep.subr.mxu1 %v13606_v45  ;;  %v362_v47 = vadd.f32 %v13613_v20, %v13612_v19  ;;  %v13615_v9 = vld [vmem:[#allocation62_spill] sm:$0xff]  ;;  %v13617_v20 = vld [vmem:[#allocation79_spill] sm:$0xff] }
 0xcd5   :  { %3388 = vmatpush1.msra.mxu0 %v13607_v48  ;;  %3421 = vmatprep.mubr.f32.mxu0 %v13608_v57  ;;  %v364_v5 = vadd.f32 %v13615_v9, %v13614_v39  ;;  %v645_v19 = vadd.f32 %v13617_v20, %v9097_v29  ;;  %v13625_v20 = vld [vmem:[#allocation28_spill] sm:$0xff] }
 0xcd6   :  { %3459 = vmatpush1.msra.mxu1 %v13609_v41  ;;  %3492 = vmatprep.mubr.f32.mxu1 %v13608_v57 }
 0xcd7   :  { %3526 = vmatprep.subr.mxu0 %v13610_v36  ;;  %3597 = vmatprep.subr.mxu1 %v13611_v16 }
 0xd76   :  { %v3254_v38 = vpop.f32.mrf.mxu0  ;;  %v3325_v6 = vpop.f32.mrf.mxu1 }
 0xd77   :  { %v3330_v45 = vadd.f32 %v3254_v38, %v362_v47  ;;  %v3332_v57 = vadd.f32 %v3325_v6, %v643_v15 }
 0xd78   :  { %v3256_v48 = vpop.f32.mrf.mxu0  ;;  %v3327_v16 = vpop.f32.mrf.mxu1 }
 0xd79   :  { %v3334_v41 = vmul.f32 0.5, %v3330_v45  ;;  %v3331_v13 = vadd.f32 %v3256_v48, %v364_v5  ;;  %v3333_v14 = vadd.f32 %v3327_v16, %v645_v19  ;;  %v13622_v16 = vld [vmem:[#allocation167_spill] sm:$0xff]  ;;  %v13624_v48 = vld [vmem:[#allocation22_spill] sm:$0xff] }
 0xd7a   :  { %v13623_v19 = vld [vmem:[#allocation19_spill] sm:$0xff] }
 0xd7b   :  { %7470 = vtanh.f32 %v3334_v41  ;;  %v3338_v36 = vmul.f32 0.5, %v3331_v13  ;;  %v3343_v17 = vmul.f32 0.5, %v3333_v14 }
 0xd7d   :  { %7472 = vtanh.f32 %v3338_v36 }
 0xd7e   :  { %7474 = vtanh.f32 %v3332_v57 }
 0xd7f   :  { %7476 = vtanh.f32 %v3343_v17  ;;  %v13620_v17 = vld [vmem:[#allocation165_spill] sm:$0xff] }
 0xd88   :  { %v7471_v9 = vpop.eup %7470 }
 0xd89   :  { %v3336_v47 = vmul.f32 0.5, %v7471_v9  ;;  %v13626_v9 = vld [vmem:[#allocation30_spill] sm:$0xff] }
 0xd8a   :  { %v7473_v38 = vpop.eup %7472 }
 0xd8b   :  { %v3337_v39 = vadd.f32 0.5, %v3336_v47  ;;  %v3340_v54 = vmul.f32 0.5, %v7473_v38  ;;  %v7475_v52 = vpop.eup %7474  ;;  %v13627_v47 = vld [vmem:[#allocation45_spill] sm:$0xff]  ;;  %v13628_v38 = vld [vmem:[#allocation47_spill] sm:$0xff] }
 0xd8c   :  { %v7477_v6 = vpop.eup %7476 }
 0xd8d   :  { %v3341_v45 = vadd.f32 0.5, %v3340_v54  ;;  %v3348_v5 = vmul.f32 %v7475_v52, %v3337_v39  ;;  %v3345_v57 = vmul.f32 0.5, %v7477_v6  ;;  %v13619_v54 = vld [vmem:[#allocation164_spill] sm:$0xff]  ;;  %v13621_v39 = vld [vmem:[#allocation166_spill] sm:$0xff] }
 0xd8e   :  { %v13629_v52 = vld [vmem:[#allocation168_spill] sm:$0xff]  ;;  %v13633_v6 = vld [vmem:[#allocation34_spill] sm:$0xff] }
 0xd8f   :  { %v3347_v15 = vmul.f32 %v3341_v45, %v10421_v27  ;;  %v3346_v41 = vadd.f32 0.5, %v3345_v57  ;;  %v13618_v27 = vld [vmem:[#allocation163_spill] sm:$0xff]  ;;  %v13630_v45 = vld [vmem:[#allocation169_spill] sm:$0xff] }
 0xd90   :  { %v13634_v57 = vld [vmem:[#allocation49_spill] sm:$0xff] }
 0xd91   :  { %v10499_v13 = vadd.f32 %v3348_v5, %v3347_v15  ;;  %v13631_v5 = vld [vmem:[#allocation170_spill] sm:$0xff]  ;;  %v13632_v15 = vld [vmem:[#allocation32_spill] sm:$0xff] }
 0xd93   :  { %7478 = vtanh.f32 %v10499_v13 }
 0xda0   :  { %v7479_v36 = vpop.eup %7478 }
 0xda1   :  { %v3351_v14 = vmul.f32 %v7479_v36, %v3346_v41  ;;  %v13635_v41 = vld [vmem:[#allocation51_spill] sm:$0xff]  ;;  %v13636_v36 = vld [vmem:[#allocation36_spill] sm:$0xff] }
 0xda3   :  { %3422 = vmatmul.mubr.f32.vlgmr.msra.gmra.mxu0 %v3351_v14  ;;  %3493 = vmatmul.mubr.f32.vlgmr.msra.gmra.mxu1 %v3351_v14  ;;  %v13637_v14 = vld [vmem:[#allocation38_spill] sm:$0xff] }
 0xda4   :  { %3527 = vmatpush1.msra.mxu0 %v10140_v24  ;;  %3598 = vmatpush1.msra.mxu1 %v10143_v34 }
 0xda5   :  { %3528 = vmatprep.subr.mxu0 %v10146_v42  ;;  %3599 = vmatprep.subr.mxu1 %v10149_v62 }
 0xda6   :  { %3529 = vmatpush1.msra.mxu0 %v10152_v30  ;;  %3600 = vmatpush1.msra.mxu1 %v10155_v31 }
 0xda7   :  { %3530 = vmatprep.subr.mxu0 %v10158_v23  ;;  %3601 = vmatprep.subr.mxu1 %v10161_v7 }
 0xda8   :  { %3531 = vmatpush1.msra.mxu0 %v10164_v18  ;;  %3602 = vmatpush1.msra.mxu1 %v10167_v4 }
 0xda9   :  { %3532 = vmatprep.subr.mxu0 %v10170_v22  ;;  %3603 = vmatprep.subr.mxu1 %v10173_v35 }
 0xdaa   :  { %3533 = vmatpush1.msra.mxu0 %v10176_v8  ;;  %3604 = vmatpush1.msra.mxu1 %v10179_v10 }
 0xdab   :  { %3534 = vmatprep.subr.mxu0 %v10182_v33  ;;  %3605 = vmatprep.subr.mxu1 %v10273_v44 }
 0xdac   :  { %3535 = vmatpush1.msra.mxu0 %v10186_v32  ;;  %3606 = vmatpush1.msra.mxu1 %v10277_v50 }
 0xdad   :  { %3536 = vmatprep.subr.mxu0 %v10190_v40  ;;  %3607 = vmatprep.subr.mxu1 %v10281_v43 }
 0xdae   :  { %3537 = vmatpush1.msra.mxu0 %v10194_v1  ;;  %3608 = vmatpush1.msra.mxu1 %v10285_v46 }
 0xdaf   :  { %3538 = vmatprep.subr.mxu0 %v10288_v21  ;;  %3609 = vmatprep.subr.mxu1 %v10291_v49 }
 0xdb0   :  { %3539 = vmatpush1.msra.mxu0 %v10294_v51  ;;  %3610 = vmatpush1.msra.mxu1 %v10297_v53 }
 0xdb1   :  { %3540 = vmatprep.subr.mxu0 %v10300_v55  ;;  %3611 = vmatprep.subr.mxu1 %v10303_v56 }
 0xdb2   :  { %3541 = vmatpush1.msra.mxu0 %v10306_v58  ;;  %3612 = vmatpush1.msra.mxu1 %v10309_v59 }
 0xdb3   :  { %3542 = vmatprep.subr.mxu0 %v10312_v60  ;;  %3613 = vmatprep.subr.mxu1 %v10315_v61 }
 0xdb4   :  { %3543 = vmatpush1.msra.mxu0 %v10318_v63  ;;  %3614 = vmatpush1.msra.mxu1 %v10321_v0 }
 0xdb5   :  { %3544 = vmatprep.subr.mxu0 %v10324_v3  ;;  %3615 = vmatprep.subr.mxu1 %v10327_v28 }
 0xdb6   :  { %3545 = vmatpush1.msra.mxu0 %v10330_v25  ;;  %3616 = vmatpush1.msra.mxu1 %v10333_v2 }
 0xdb7   :  { %3546 = vmatprep.subr.mxu0 %v10336_v12  ;;  %3617 = vmatprep.subr.mxu1 %v10339_v37 }
 0xdb8   :  { %3547 = vmatpush1.msra.mxu0 %v10342_v11  ;;  %3618 = vmatpush1.msra.mxu1 %v13618_v27 }
 0xdb9   :  { %3548 = vmatprep.subr.mxu0 %v13619_v54  ;;  %3619 = vmatprep.subr.mxu1 %v13620_v17 }
 0xdba   :  { %3549 = vmatpush1.msra.mxu0 %v13621_v39  ;;  %3620 = vmatpush1.msra.mxu1 %v13622_v16 }
 0xdbb   :  { %3550 = vmatprep.subr.mxu0 %v13623_v19  ;;  %3621 = vmatprep.subr.mxu1 %v13624_v48  ;;  %v13646_v19 = vld [vmem:[#allocation81_spill] sm:$0xff] }
 0xdbc   :  { %3551 = vmatpush1.msra.mxu0 %v13625_v20  ;;  %3622 = vmatpush1.msra.mxu1 %v13626_v9  ;;  %v13644_v9 = vld [vmem:[#allocation143_spill] sm:$0xff]  ;;  %v649_v16 = vadd.f32 %v13646_v19, %v9089_v26 }
 0xdbd   :  { %3552 = vmatprep.subr.mxu0 %v13627_v47  ;;  %3623 = vmatprep.subr.mxu1 %v13628_v38  ;;  %v13638_v47 = vmov 0.0   ;;  %v13639_v38 = vld [vmem:[#allocation53_spill] sm:$0xff] }
 0xdbe   :  { %3553 = vmatpush1.msra.mxu0 %v13629_v52  ;;  %3624 = vmatpush1.msra.mxu1 %v13630_v45  ;;  %v13640_v45 = vld [vmem:[#allocation161_spill] sm:$0xff] }
 0xdbf   :  { %3554 = vmatprep.subr.mxu0 %v13631_v5  ;;  %3625 = vmatprep.subr.mxu1 %v13632_v15  ;;  %v13641_v5 = vld [vmem:[#allocation162_spill] sm:$0xff]  ;;  %v13642_v15 = vld [vmem:[#allocation145_spill] sm:$0xff] }
 0xdc0   :  { %3555 = vmatpush1.msra.mxu0 %v13633_v6  ;;  %3626 = vmatpush1.msra.mxu1 %v13634_v57  ;;  %v13643_v6 = vld [vmem:[#allocation64_spill] sm:$0xff] }
 0xdc1   :  { %3556 = vmatprep.subr.mxu0 %v13635_v41  ;;  %3627 = vmatprep.subr.mxu1 %v13636_v36  ;;  %v368_v52 = vadd.f32 %v13643_v6, %v13642_v15  ;;  %v13645_v41 = vld [vmem:[#allocation66_spill] sm:$0xff]  ;;  %v13647_v6 = vld [vmem:[#allocation83_spill] sm:$0xff] }
 0xdc2   :  { %3557 = vmatpush1.msra.mxu0 %v13637_v14  ;;  %3590 = vmatprep.mubr.f32.mxu0 %v13638_v47  ;;  %v370_v20 = vadd.f32 %v13645_v41, %v13644_v9  ;;  %v651_v15 = vadd.f32 %v13647_v6, %v9097_v29  ;;  %v13673_v6 = vld [vmem:[#allocation68_spill] sm:$0xff] }
 0xdc3   :  { %3628 = vmatpush1.msra.mxu1 %v13639_v38  ;;  %3661 = vmatprep.mubr.f32.mxu1 %v13638_v47 }
 0xdc4   :  { %3695 = vmatprep.subr.mxu0 %v13640_v45  ;;  %3766 = vmatprep.subr.mxu1 %v13641_v5 }
 0xe63   :  { %v3423_v57 = vpop.f32.mrf.mxu0  ;;  %v3494_v48 = vpop.f32.mrf.mxu1 }
 0xe64   :  { %v3499_v36 = vadd.f32 %v3423_v57, %v368_v52  ;;  %v3501_v47 = vadd.f32 %v3494_v48, %v649_v16 }
 0xe65   :  { %v3425_v14 = vpop.f32.mrf.mxu0  ;;  %v3496_v5 = vpop.f32.mrf.mxu1 }
 0xe66   :  { %v3503_v38 = vmul.f32 0.5, %v3499_v36  ;;  %v3500_v39 = vadd.f32 %v3425_v14, %v370_v20  ;;  %v3502_v17 = vadd.f32 %v3496_v5, %v651_v15  ;;  %v13670_v5 = vld [vmem:[#allocation161_spill] sm:$0xff]  ;;  %v13671_v15 = vld [vmem:[#allocation162_spill] sm:$0xff] }
 0xe67   :  { %v13672_v14 = vld [vmem:[#allocation145_spill] sm:$0xff] }
 0xe68   :  { %7480 = vtanh.f32 %v3503_v38  ;;  %v3507_v45 = vmul.f32 0.5, %v3500_v39  ;;  %v3512_v54 = vmul.f32 0.5, %v3502_v17 }
 0xe6a   :  { %7482 = vtanh.f32 %v3507_v45 }
 0xe6b   :  { %7484 = vtanh.f32 %v3501_v47 }
 0xe6c   :  { %7486 = vtanh.f32 %v3512_v54  ;;  %v13668_v54 = vmov 0.0  }
 0xe75   :  { %v7481_v41 = vpop.eup %7480 }
 0xe76   :  { %v3505_v52 = vmul.f32 0.5, %v7481_v41  ;;  %v374_v41 = vadd.f32 %v13673_v6, %v13672_v14  ;;  %v13677_v6 = vld [vmem:[#allocation87_spill] sm:$0xff] }
 0xe77   :  { %v7483_v57 = vpop.eup %7482  ;;  %v657_v14 = vadd.f32 %v13677_v6, %v9097_v29  ;;  %v10679_v6 = vld [vmem:[#allocation4 + $0x1b8] sm:$0xff] }
 0xe78   :  { %v3506_v9 = vadd.f32 0.5, %v3505_v52  ;;  %v3509_v27 = vmul.f32 0.5, %v7483_v57  ;;  %v7485_v19 = vpop.eup %7484  ;;  %v13674_v57 = vld [vmem:[#allocation143_spill] sm:$0xff] }
 0xe79   :  { %v7487_v48 = vpop.eup %7486 }
 0xe7a   :  { %v3510_v36 = vadd.f32 0.5, %v3509_v27  ;;  %v3517_v20 = vmul.f32 %v7485_v19, %v3506_v9  ;;  %v3514_v47 = vmul.f32 0.5, %v7487_v48  ;;  %v13667_v27 = vld [vmem:[#allocation38_spill] sm:$0xff]  ;;  %v13669_v9 = vld [vmem:[#allocation53_spill] sm:$0xff] }
 0xe7b   :  { %v13675_v19 = vld [vmem:[#allocation70_spill] sm:$0xff] }
 0xe7c   :  { %v3516_v16 = vmul.f32 %v3510_v36, %v10499_v13  ;;  %v3515_v38 = vadd.f32 0.5, %v3514_v47  ;;  %v13666_v13 = vld [vmem:[#allocation36_spill] sm:$0xff]  ;;  %v376_v36 = vadd.f32 %v13675_v19, %v13674_v57  ;;  %v13676_v47 = vld [vmem:[#allocation85_spill] sm:$0xff] }
 0xe7e   :  { %v10577_v39 = vadd.f32 %v3517_v20, %v3516_v16 }
 0xe80   :  { %7488 = vtanh.f32 %v10577_v39 }
 0xe8d   :  { %v7489_v45 = vpop.eup %7488 }
 0xe8e   :  { %v3520_v17 = vmul.f32 %v7489_v45, %v3515_v38  ;;  %v655_v38 = vadd.f32 %v13676_v47, %v9089_v26 }
 0xe90   :  { %3591 = vmatmul.mubr.f32.vlgmr.msra.gmra.mxu0 %v3520_v17  ;;  %3662 = vmatmul.mubr.f32.vlgmr.msra.gmra.mxu1 %v3520_v17 }
 0xe91   :  { %3696 = vmatpush1.msra.mxu0 %v10140_v24  ;;  %3767 = vmatpush1.msra.mxu1 %v10143_v34  ;;  %v13648_v24 = vld [vmem:[#allocation163_spill] sm:$0xff]  ;;  %v13649_v34 = vld [vmem:[#allocation164_spill] sm:$0xff] }
 0xe92   :  { %3697 = vmatprep.subr.mxu0 %v10146_v42  ;;  %3768 = vmatprep.subr.mxu1 %v10149_v62  ;;  %v13650_v42 = vld [vmem:[#allocation165_spill] sm:$0xff]  ;;  %v13651_v62 = vld [vmem:[#allocation166_spill] sm:$0xff] }
 0xe93   :  { %3698 = vmatpush1.msra.mxu0 %v10152_v30  ;;  %3769 = vmatpush1.msra.mxu1 %v10155_v31  ;;  %v13652_v30 = vld [vmem:[#allocation167_spill] sm:$0xff] }
 0xe94   :  { %3699 = vmatprep.subr.mxu0 %v10158_v23  ;;  %3770 = vmatprep.subr.mxu1 %v10161_v7  ;;  %v13653_v31 = vld [vmem:[#allocation19_spill] sm:$0xff]  ;;  %v13654_v23 = vld [vmem:[#allocation22_spill] sm:$0xff]  ;;  %v13655_v7 = vld [vmem:[#allocation28_spill] sm:$0xff] }
 0xe95   :  { %3700 = vmatpush1.msra.mxu0 %v10164_v18  ;;  %3771 = vmatpush1.msra.mxu1 %v10167_v4  ;;  %v13656_v18 = vld [vmem:[#allocation30_spill] sm:$0xff]  ;;  %v13657_v4 = vld [vmem:[#allocation45_spill] sm:$0xff] }
 0xe96   :  { %3701 = vmatprep.subr.mxu0 %v10170_v22  ;;  %3772 = vmatprep.subr.mxu1 %v10173_v35  ;;  %v13658_v22 = vld [vmem:[#allocation47_spill] sm:$0xff]  ;;  %v13659_v35 = vld [vmem:[#allocation168_spill] sm:$0xff] }
 0xe97   :  { %3702 = vmatpush1.msra.mxu0 %v10176_v8  ;;  %3773 = vmatpush1.msra.mxu1 %v10179_v10  ;;  %v13660_v8 = vld [vmem:[#allocation169_spill] sm:$0xff]  ;;  %v13661_v10 = vld [vmem:[#allocation170_spill] sm:$0xff] }
 0xe98   :  { %3703 = vmatprep.subr.mxu0 %v10182_v33  ;;  %3774 = vmatprep.subr.mxu1 %v10273_v44  ;;  %v13662_v33 = vld [vmem:[#allocation32_spill] sm:$0xff] }
 0xe99   :  { %3704 = vmatpush1.msra.mxu0 %v10186_v32  ;;  %3775 = vmatpush1.msra.mxu1 %v10277_v50  ;;  %v13663_v32 = vld [vmem:[#allocation34_spill] sm:$0xff] }
 0xe9a   :  { %3705 = vmatprep.subr.mxu0 %v10190_v40  ;;  %3776 = vmatprep.subr.mxu1 %v10281_v43  ;;  %v13664_v40 = vld [vmem:[#allocation49_spill] sm:$0xff] }
 0xe9b   :  { %3706 = vmatpush1.msra.mxu0 %v10194_v1  ;;  %3777 = vmatpush1.msra.mxu1 %v10285_v46  ;;  %v13665_v1 = vld [vmem:[#allocation51_spill] sm:$0xff] }
 0xe9c   :  { %3707 = vmatprep.subr.mxu0 %v10288_v21  ;;  %3778 = vmatprep.subr.mxu1 %v10291_v49 }
 0xe9d   :  { %3708 = vmatpush1.msra.mxu0 %v10294_v51  ;;  %3779 = vmatpush1.msra.mxu1 %v10297_v53 }
 0xe9e   :  { %3709 = vmatprep.subr.mxu0 %v10300_v55  ;;  %3780 = vmatprep.subr.mxu1 %v10303_v56 }
 0xe9f   :  { %3710 = vmatpush1.msra.mxu0 %v10306_v58  ;;  %3781 = vmatpush1.msra.mxu1 %v10309_v59 }
 0xea0   :  { %3711 = vmatprep.subr.mxu0 %v10312_v60  ;;  %3782 = vmatprep.subr.mxu1 %v10315_v61 }
 0xea1   :  { %3712 = vmatpush1.msra.mxu0 %v10318_v63  ;;  %3783 = vmatpush1.msra.mxu1 %v10321_v0 }
 0xea2   :  { %3713 = vmatprep.subr.mxu0 %v10324_v3  ;;  %3784 = vmatprep.subr.mxu1 %v10327_v28 }
 0xea3   :  { %3714 = vmatpush1.msra.mxu0 %v10330_v25  ;;  %3785 = vmatpush1.msra.mxu1 %v10333_v2 }
 0xea4   :  { %3715 = vmatprep.subr.mxu0 %v10336_v12  ;;  %3786 = vmatprep.subr.mxu1 %v10339_v37 }
 0xea5   :  { %3716 = vmatpush1.msra.mxu0 %v10342_v11  ;;  %3787 = vmatpush1.msra.mxu1 %v13648_v24 }
 0xea6   :  { %3717 = vmatprep.subr.mxu0 %v13649_v34  ;;  %3788 = vmatprep.subr.mxu1 %v13650_v42 }
 0xea7   :  { %3718 = vmatpush1.msra.mxu0 %v13651_v62  ;;  %3789 = vmatpush1.msra.mxu1 %v13652_v30 }
 0xea8   :  { %3719 = vmatprep.subr.mxu0 %v13653_v31  ;;  %3790 = vmatprep.subr.mxu1 %v13654_v23 }
 0xea9   :  { %3720 = vmatpush1.msra.mxu0 %v13655_v7  ;;  %3791 = vmatpush1.msra.mxu1 %v13656_v18 }
 0xeaa   :  { %3721 = vmatprep.subr.mxu0 %v13657_v4  ;;  %3792 = vmatprep.subr.mxu1 %v13658_v22 }
 0xeab   :  { %3722 = vmatpush1.msra.mxu0 %v13659_v35  ;;  %3793 = vmatpush1.msra.mxu1 %v13660_v8 }
 0xeac   :  { %3723 = vmatprep.subr.mxu0 %v13661_v10  ;;  %3794 = vmatprep.subr.mxu1 %v13662_v33 }
 0xead   :  { %3724 = vmatpush1.msra.mxu0 %v13663_v32  ;;  %3795 = vmatpush1.msra.mxu1 %v13664_v40 }
 0xeae   :  { %3725 = vmatprep.subr.mxu0 %v13665_v1  ;;  %3796 = vmatprep.subr.mxu1 %v13666_v13 }
 0xeaf   :  { %3726 = vmatpush1.msra.mxu0 %v13667_v27  ;;  %3759 = vmatprep.mubr.f32.mxu0 %v13668_v54 }
 0xeb0   :  { %3797 = vmatpush1.msra.mxu1 %v13669_v9  ;;  %3830 = vmatprep.mubr.f32.mxu1 %v13668_v54 }
 0xeb1   :  { %3864 = vmatprep.subr.mxu0 %v13670_v5  ;;  %3935 = vmatprep.subr.mxu1 %v13671_v15 }
 0xf50   :  { %v3592_v52 = vpop.f32.mrf.mxu0  ;;  %v3663_v16 = vpop.f32.mrf.mxu1 }
 0xf51   :  { %v3668_v20 = vadd.f32 %v3592_v52, %v374_v41  ;;  %v3670_v9 = vadd.f32 %v3663_v16, %v655_v38 }
 0xf52   :  { %v3594_v48 = vpop.f32.mrf.mxu0  ;;  %v3665_v15 = vpop.f32.mrf.mxu1 }
 0xf53   :  { %v3672_v45 = vmul.f32 0.5, %v3668_v20  ;;  %v3669_v17 = vadd.f32 %v3594_v48, %v376_v36  ;;  %v3671_v54 = vadd.f32 %v3665_v15, %v657_v14  ;;  %v10676_v15 = vld [vmem:[#allocation4 + $0x1a8] sm:$0xff] }
 0xf55   :  { %7490 = vtanh.f32 %v3672_v45  ;;  %v3676_v5 = vmul.f32 0.5, %v3669_v17  ;;  %v3681_v27 = vmul.f32 0.5, %v3671_v54  ;;  %v10658_v17 = vld [vmem:[#allocation4 + $0x1e0] sm:$0xff] }
 0xf57   :  { %7492 = vtanh.f32 %v3676_v5  ;;  %v10673_v5 = vld [vmem:[#allocation4 + $0x1d0] sm:$0xff] }
 0xf58   :  { %7494 = vtanh.f32 %v3670_v9 }
 0xf59   :  { %7496 = vtanh.f32 %v3681_v27  ;;  %v10661_v27 = vld [vmem:[#allocation4 + $0x1f0] sm:$0xff] }
 0xf62   :  { %v7491_v19 = vpop.eup %7490 }
 0xf63   :  { %v3674_v41 = vmul.f32 0.5, %v7491_v19  ;;  %v10682_v19 = vld [vmem:[#allocation4 + $0x1a0] sm:$0xff] }
 0xf64   :  { %v7493_v52 = vpop.eup %7492 }
 0xf65   :  { %v3675_v57 = vadd.f32 0.5, %v3674_v41  ;;  %v3678_v13 = vmul.f32 0.5, %v7493_v52  ;;  %v7495_v47 = vpop.eup %7494  ;;  %v10685_v41 = vld [vmem:[#allocation4 + $0x1b0] sm:$0xff]  ;;  %v10688_v52 = vld [vmem:[#allocation4 + $0x188] sm:$0xff] }
 0xf66   :  { %v7497_v9 = vpop.eup %7496 }
 0xf67   :  { %v3679_v20 = vadd.f32 0.5, %v3678_v13  ;;  %v3686_v36 = vmul.f32 %v7495_v47, %v3675_v57  ;;  %v3683_v38 = vmul.f32 0.5, %v7497_v9  ;;  %v10667_v13 = vld [vmem:[#allocation4 + $0x1d8] sm:$0xff]  ;;  %v10670_v57 = vld [vmem:[#allocation4 + $0x1c0] sm:$0xff] }
 0xf68   :  { %v10691_v47 = vld [vmem:[#allocation4 + $0x198] sm:$0xff]  ;;  %v10704_v9 = vld [vmem:[#allocation4 + $0x160] sm:$0xff] }
 0xf69   :  { %v3685_v16 = vmul.f32 %v3679_v20, %v10577_v39  ;;  %v3684_v45 = vadd.f32 0.5, %v3683_v38  ;;  %v10664_v39 = vld [vmem:[#allocation4 + $0x1c8] sm:$0xff]  ;;  %v10694_v20 = vld [vmem:[#allocation4 + $0x180] sm:$0xff] }
 0xf6a   :  { %v10708_v38 = vld [vmem:[#allocation4 + $0x148] sm:$0xff] }
 0xf6b   :  { %v10655_v48 = vadd.f32 %v3686_v36, %v3685_v16  ;;  %v10697_v36 = vld [vmem:[#allocation4 + $0x190] sm:$0xff]  ;;  %v10700_v16 = vld [vmem:[#allocation4 + $0x168] sm:$0xff] }
 0xf6d   :  { %7498 = vtanh.f32 %v10655_v48 }
 0xf7a   :  { %v7499_v14 = vpop.eup %7498 }
 0xf7b   :  { %v3689_v54 = vmul.f32 %v7499_v14, %v3684_v45  ;;  %v10712_v45 = vld [vmem:[#allocation4 + $0x140] sm:$0xff] }
 0xf7d   :  { %3760 = vmatmul.mubr.f32.vlgmr.msra.gmra.mxu0 %v3689_v54  ;;  %3831 = vmatmul.mubr.f32.vlgmr.msra.gmra.mxu1 %v3689_v54  ;;  %v10795_v54 = vld [vmem:[#allocation4 + $0x170] sm:$0xff] }
 0xf7e   :  { %3865 = vmatpush1.msra.mxu0 %v10658_v17  ;;  %3936 = vmatpush1.msra.mxu1 %v10661_v27 }
 0xf7f   :  { %3866 = vmatprep.subr.mxu0 %v10664_v39  ;;  %3937 = vmatprep.subr.mxu1 %v10667_v13 }
 0xf80   :  { %3867 = vmatpush1.msra.mxu0 %v10670_v57  ;;  %3938 = vmatpush1.msra.mxu1 %v10673_v5 }
 0xf81   :  { %3868 = vmatprep.subr.mxu0 %v10676_v15  ;;  %3939 = vmatprep.subr.mxu1 %v10679_v6 }
 0xf82   :  { %3869 = vmatpush1.msra.mxu0 %v10682_v19  ;;  %3940 = vmatpush1.msra.mxu1 %v10685_v41 }
 0xf83   :  { %3870 = vmatprep.subr.mxu0 %v10688_v52  ;;  %3941 = vmatprep.subr.mxu1 %v10691_v47 }
 0xf84   :  { %3871 = vmatpush1.msra.mxu0 %v10694_v20  ;;  %3942 = vmatpush1.msra.mxu1 %v10697_v36 }
 0xf85   :  { %3872 = vmatprep.subr.mxu0 %v10700_v16  ;;  %3943 = vmatprep.subr.mxu1 %v10273_v44  ;;  %v13678_v44 = vld [vmem:[#allocation36_spill] sm:$0xff] }
 0xf86   :  { %3873 = vmatpush1.msra.mxu0 %v10704_v9  ;;  %3944 = vmatpush1.msra.mxu1 %v10277_v50  ;;  %v13679_v50 = vld [vmem:[#allocation38_spill] sm:$0xff] }
 0xf87   :  { %3874 = vmatprep.subr.mxu0 %v10708_v38  ;;  %3945 = vmatprep.subr.mxu1 %v10281_v43  ;;  %v13680_v43 = vmov 0.0  }
 0xf88   :  { %3875 = vmatpush1.msra.mxu0 %v10712_v45  ;;  %3946 = vmatpush1.msra.mxu1 %v10285_v46  ;;  %v13681_v46 = vld [vmem:[#allocation53_spill] sm:$0xff] }
 0xf89   :  { %3876 = vmatprep.subr.mxu0 %v10288_v21  ;;  %3947 = vmatprep.subr.mxu1 %v10291_v49  ;;  %v10758_v21 = vld [vmem:[#allocation4 + $0x1e8] sm:$0xff]  ;;  %v10761_v49 = vld [vmem:[#allocation4 + $0x1f8] sm:$0xff] }
 0xf8a   :  { %3877 = vmatpush1.msra.mxu0 %v10294_v51  ;;  %3948 = vmatpush1.msra.mxu1 %v10297_v53  ;;  %13682 = vst [vmem:[#allocation55_spill] sm:$0xff] %v10758_v21  ;;  %13683 = vst [vmem:[#allocation40_spill] sm:$0xff] %v10761_v49  ;;  %v13684_v51 = vld [vmem:[#allocation145_spill] sm:$0xff]  ;;  %v13685_v53 = vld [vmem:[#allocation72_spill] sm:$0xff] }
 0xf8b   :  { %3878 = vmatprep.subr.mxu0 %v10300_v55  ;;  %3949 = vmatprep.subr.mxu1 %v10303_v56  ;;  %v380_v55 = vadd.f32 %v13685_v53, %v13684_v51  ;;  %v10809_v53 = vld [vmem:[#allocation4 + $0x138] sm:$0xff] }
 0xf8c   :  { %3879 = vmatpush1.msra.mxu0 %v10306_v58  ;;  %3950 = vmatpush1.msra.mxu1 %v10309_v59  ;;  %v13686_v58 = vld [vmem:[#allocation143_spill] sm:$0xff]  ;;  %v13687_v59 = vld [vmem:[#allocation74_spill] sm:$0xff] }
 0xf8d   :  { %3880 = vmatprep.subr.mxu0 %v10312_v60  ;;  %3951 = vmatprep.subr.mxu1 %v10315_v61  ;;  %v382_v60 = vadd.f32 %v13687_v59, %v13686_v58  ;;  %v10818_v59 = vld [vmem:[#allocation4 + $0x108] sm:$0xff] }
 0xf8e   :  { %3881 = vmatpush1.msra.mxu0 %v10318_v63  ;;  %3952 = vmatpush1.msra.mxu1 %v10321_v0 }
 0xf8f   :  { %3882 = vmatprep.subr.mxu0 %v10324_v3  ;;  %3953 = vmatprep.subr.mxu1 %v10327_v28  ;;  %v13688_v3 = vld [vmem:[#allocation89_spill] sm:$0xff] }
 0xf90   :  { %3883 = vmatpush1.msra.mxu0 %v10330_v25  ;;  %3954 = vmatpush1.msra.mxu1 %v10333_v2  ;;  %v661_v28 = vadd.f32 %v13688_v3, %v9089_v26  ;;  %v10833_v3 = vld [vmem:[#allocation4 + $0xf8] sm:$0xff] }
 0xf91   :  { %3884 = vmatprep.subr.mxu0 %v10336_v12  ;;  %3955 = vmatprep.subr.mxu1 %v10339_v37 }
 0xf92   :  { %3885 = vmatpush1.msra.mxu0 %v10342_v11  ;;  %3956 = vmatpush1.msra.mxu1 %v13648_v24  ;;  %v13689_v24 = vld [vmem:[#allocation91_spill] sm:$0xff] }
 0xf93   :  { %3886 = vmatprep.subr.mxu0 %v13649_v34  ;;  %3957 = vmatprep.subr.mxu1 %v13650_v42  ;;  %v663_v34 = vadd.f32 %v13689_v24, %v9097_v29  ;;  %v10854_v24 = vld [vmem:[#allocation4 + $0xa8] sm:$0xff] }
 0xf94   :  { %3887 = vmatpush1.msra.mxu0 %v13651_v62  ;;  %3958 = vmatpush1.msra.mxu1 %v13652_v30 }
 0xf95   :  { %3888 = vmatprep.subr.mxu0 %v13653_v31  ;;  %3959 = vmatprep.subr.mxu1 %v13654_v23 }
 0xf96   :  { %3889 = vmatpush1.msra.mxu0 %v13655_v7  ;;  %3960 = vmatpush1.msra.mxu1 %v13656_v18 }
 0xf97   :  { %3890 = vmatprep.subr.mxu0 %v13657_v4  ;;  %3961 = vmatprep.subr.mxu1 %v13658_v22 }
 0xf98   :  { %3891 = vmatpush1.msra.mxu0 %v13659_v35  ;;  %3962 = vmatpush1.msra.mxu1 %v13660_v8 }
 0xf99   :  { %3892 = vmatprep.subr.mxu0 %v13661_v10  ;;  %3963 = vmatprep.subr.mxu1 %v13662_v33 }
 0xf9a   :  { %3893 = vmatpush1.msra.mxu0 %v13663_v32  ;;  %3964 = vmatpush1.msra.mxu1 %v13664_v40 }
 0xf9b   :  { %3894 = vmatprep.subr.mxu0 %v13665_v1  ;;  %3965 = vmatprep.subr.mxu1 %v13678_v44  ;;  %v10799_v44 = vld [vmem:[#allocation4 + $0x158] sm:$0xff] }
 0xf9c   :  { %3895 = vmatpush1.msra.mxu0 %v13679_v50  ;;  %3928 = vmatprep.mubr.f32.mxu0 %v13680_v43  ;;  %v10803_v50 = vld [vmem:[#allocation4 + $0x150] sm:$0xff] }
 0xf9d   :  { %3966 = vmatpush1.msra.mxu1 %v13681_v46  ;;  %3999 = vmatprep.mubr.f32.mxu1 %v13680_v43  ;;  %v10806_v46 = vld [vmem:[#allocation4 + $0x128] sm:$0xff] }
 0xf9e   :  { %4033 = vmatprep.subr.mxu0 %v10758_v21  ;;  %4104 = vmatprep.subr.mxu1 %v10761_v49 }
0x103d   :  { %v3761_v56 = vpop.f32.mrf.mxu0  ;;  %v3832_v63 = vpop.f32.mrf.mxu1 }
0x103e   :  { %v3837_v61 = vadd.f32 %v3761_v56, %v380_v55  ;;  %v3839_v12 = vadd.f32 %v3832_v63, %v661_v28  ;;  %v10812_v55 = vld [vmem:[#allocation4 + $0x120] sm:$0xff]  ;;  %v10815_v56 = vld [vmem:[#allocation4 + $0x130] sm:$0xff] }
0x103f   :  { %v3763_v0 = vpop.f32.mrf.mxu0  ;;  %v3834_v11 = vpop.f32.mrf.mxu1  ;;  %v10827_v63 = vld [vmem:[#allocation4 + $0x110] sm:$0xff]  ;;  %v10836_v28 = vld [vmem:[#allocation4 + $0xe0] sm:$0xff] }
0x1040   :  { %v3841_v25 = vmul.f32 0.5, %v3837_v61  ;;  %v3838_v2 = vadd.f32 %v3763_v0, %v382_v60  ;;  %v3840_v42 = vadd.f32 %v3834_v11, %v663_v34  ;;  %v10821_v60 = vld [vmem:[#allocation4 + $0x118] sm:$0xff]  ;;  %v10824_v61 = vld [vmem:[#allocation4 + $0x100] sm:$0xff]  ;;  %v10830_v0 = vld [vmem:[#allocation4 + $0xe8] sm:$0xff] }
0x1041   :  { %v10851_v11 = vld [vmem:[#allocation4 + $0xd0] sm:$0xff]  ;;  %v10857_v34 = vld [vmem:[#allocation4 + $0xb8] sm:$0xff] }
0x1042   :  { %7500 = vtanh.f32 %v3841_v25  ;;  %v3845_v37 = vmul.f32 0.5, %v3838_v2  ;;  %v3850_v62 = vmul.f32 0.5, %v3840_v42  ;;  %v10839_v25 = vld [vmem:[#allocation4 + $0xf0] sm:$0xff]  ;;  %v10842_v2 = vld [vmem:[#allocation4 + $0xc8] sm:$0xff]  ;;  %v10860_v42 = vld [vmem:[#allocation4 + $0xa0] sm:$0xff] }
0x1044   :  { %7502 = vtanh.f32 %v3845_v37  ;;  %v10848_v37 = vld [vmem:[#allocation4 + $0xc0] sm:$0xff] }
0x1045   :  { %7504 = vtanh.f32 %v3839_v12  ;;  %v10845_v12 = vld [vmem:[#allocation4 + $0xd8] sm:$0xff] }
0x1046   :  { %7506 = vtanh.f32 %v3850_v62  ;;  %v10863_v62 = vld [vmem:[#allocation4 + $0xb0] sm:$0xff] }
0x1047   :  { %13690 = vst [vmem:[#allocation42_spill] sm:$0xff] %v10863_v62 }
0x104f   :  { %v7501_v30 = vpop.eup %7500 }
0x1050   :  { %v3843_v31 = vmul.f32 0.5, %v7501_v30  ;;  %v10866_v30 = vld [vmem:[#allocation4 + $0x88] sm:$0xff] }
0x1051   :  { %v7503_v23 = vpop.eup %7502  ;;  %13691 = vst [vmem:[#allocation57_spill] sm:$0xff] %v10866_v30 }
0x1052   :  { %v3844_v7 = vadd.f32 0.5, %v3843_v31  ;;  %v3847_v18 = vmul.f32 0.5, %v7503_v23  ;;  %v7505_v4 = vpop.eup %7504  ;;  %v10869_v31 = vld [vmem:[#allocation4 + $0x98] sm:$0xff]  ;;  %v10872_v23 = vld [vmem:[#allocation4 + $0x80] sm:$0xff] }
0x1053   :  { %v7507_v33 = vpop.eup %7506  ;;  %13692 = vst [vmem:[#allocation59_spill] sm:$0xff] %v10869_v31  ;;  %13693 = vst [vmem:[#allocation44_spill] sm:$0xff] %v10872_v23 }
0x1054   :  { %v3848_v22 = vadd.f32 0.5, %v3847_v18  ;;  %v3855_v35 = vmul.f32 %v7505_v4, %v3844_v7  ;;  %v3852_v32 = vmul.f32 0.5, %v7507_v33  ;;  %v10875_v7 = vld [vmem:[#allocation4 + $0x90] sm:$0xff]  ;;  %v10878_v18 = vld [vmem:[#allocation4 + $0x68] sm:$0xff]  ;;  %v10881_v4 = vld [vmem:[#allocation4 + $0x78] sm:$0xff] }
0x1055   :  { %13694 = vst [vmem:[#allocation46_spill] sm:$0xff] %v10875_v7  ;;  %13695 = vst [vmem:[#allocation61_spill] sm:$0xff] %v10878_v18  ;;  %v10893_v33 = vld [vmem:[#allocation4 + $0x58] sm:$0xff] }
0x1056   :  { %v3854_v8 = vmul.f32 %v3848_v22, %v10655_v48  ;;  %v3853_v40 = vadd.f32 0.5, %v3852_v32  ;;  %v10791_v48 = vld [vmem:[#allocation4 + $0x178] sm:$0xff]  ;;  %13696 = vst [vmem:[#allocation63_spill] sm:$0xff] %v10881_v4  ;;  %v10884_v22 = vld [vmem:[#allocation4 + $0x60] sm:$0xff]  ;;  %13700 = vst [vmem:[#allocation24_spill] sm:$0xff] %v10893_v33 }
0x1057   :  { %13697 = vst [vmem:[#allocation33_spill] sm:$0xff] %v10884_v22  ;;  %v10896_v32 = vld [vmem:[#allocation4 + $0x40] sm:$0xff] }
0x1058   :  { %v10773_v10 = vadd.f32 %v3855_v35, %v3854_v8  ;;  %v10887_v35 = vld [vmem:[#allocation4 + $0x70] sm:$0xff]  ;;  %v10890_v8 = vld [vmem:[#allocation4 + $0x48] sm:$0xff]  ;;  %13701 = vst [vmem:[#allocation37_spill] sm:$0xff] %v10896_v32 }
0x1059   :  { %13698 = vst [vmem:[#allocation35_spill] sm:$0xff] %v10887_v35  ;;  %13699 = vst [vmem:[#allocation21_spill] sm:$0xff] %v10890_v8 }
0x105a   :  { %7508 = vtanh.f32 %v10773_v10 }
0x1067   :  { %v7509_v1 = vpop.eup %7508 }
0x1068   :  { %v3858_v14 = vmul.f32 %v7509_v1, %v3853_v40  ;;  %v10899_v40 = vld [vmem:[#allocation4 + $0x50] sm:$0xff]  ;;  %v10902_v1 = vld [vmem:[#allocation4 + $0x28] sm:$0xff] }
0x1069   :  { %13702 = vst [vmem:[#allocation39_spill] sm:$0xff] %v10899_v40  ;;  %13703 = vst [vmem:[#allocation26_spill] sm:$0xff] %v10902_v1 }
0x106a   :  { %3929 = vmatmul.mubr.f32.vlgmr.msra.gmra.mxu0 %v3858_v14  ;;  %4000 = vmatmul.mubr.f32.vlgmr.msra.gmra.mxu1 %v3858_v14  ;;  %v10905_v14 = vld [vmem:[#allocation4 + $0x38] sm:$0xff] }
0x106b   :  { %4034 = vmatpush1.msra.mxu0 %v10658_v17  ;;  %4105 = vmatpush1.msra.mxu1 %v10661_v27  ;;  %13704 = vst [vmem:[#allocation27_spill] sm:$0xff] %v10905_v14 }
0x106c   :  { %4035 = vmatprep.subr.mxu0 %v10664_v39  ;;  %4106 = vmatprep.subr.mxu1 %v10667_v13 }
0x106d   :  { %4036 = vmatpush1.msra.mxu0 %v10670_v57  ;;  %4107 = vmatpush1.msra.mxu1 %v10673_v5 }
0x106e   :  { %4037 = vmatprep.subr.mxu0 %v10676_v15  ;;  %4108 = vmatprep.subr.mxu1 %v10679_v6 }
0x106f   :  { %4038 = vmatpush1.msra.mxu0 %v10682_v19  ;;  %4109 = vmatpush1.msra.mxu1 %v10685_v41 }
0x1070   :  { %4039 = vmatprep.subr.mxu0 %v10688_v52  ;;  %4110 = vmatprep.subr.mxu1 %v10691_v47 }
0x1071   :  { %4040 = vmatpush1.msra.mxu0 %v10694_v20  ;;  %4111 = vmatpush1.msra.mxu1 %v10697_v36 }
0x1072   :  { %4041 = vmatprep.subr.mxu0 %v10700_v16  ;;  %4112 = vmatprep.subr.mxu1 %v10791_v48 }
0x1073   :  { %4042 = vmatpush1.msra.mxu0 %v10704_v9  ;;  %4113 = vmatpush1.msra.mxu1 %v10795_v54 }
0x1074   :  { %4043 = vmatprep.subr.mxu0 %v10708_v38  ;;  %4114 = vmatprep.subr.mxu1 %v10799_v44 }
0x1075   :  { %4044 = vmatpush1.msra.mxu0 %v10712_v45  ;;  %4115 = vmatpush1.msra.mxu1 %v10803_v50 }
0x1076   :  { %4045 = vmatprep.subr.mxu0 %v10806_v46  ;;  %4116 = vmatprep.subr.mxu1 %v10809_v53 }
0x1077   :  { %4046 = vmatpush1.msra.mxu0 %v10812_v55  ;;  %4117 = vmatpush1.msra.mxu1 %v10815_v56 }
0x1078   :  { %4047 = vmatprep.subr.mxu0 %v10818_v59  ;;  %4118 = vmatprep.subr.mxu1 %v10821_v60 }
0x1079   :  { %4048 = vmatpush1.msra.mxu0 %v10824_v61  ;;  %4119 = vmatpush1.msra.mxu1 %v10827_v63 }
0x107a   :  { %4049 = vmatprep.subr.mxu0 %v10830_v0  ;;  %4120 = vmatprep.subr.mxu1 %v10833_v3 }
0x107b   :  { %4050 = vmatpush1.msra.mxu0 %v10836_v28  ;;  %4121 = vmatpush1.msra.mxu1 %v10839_v25 }
0x107c   :  { %4051 = vmatprep.subr.mxu0 %v10842_v2  ;;  %4122 = vmatprep.subr.mxu1 %v10845_v12 }
0x107d   :  { %4052 = vmatpush1.msra.mxu0 %v10848_v37  ;;  %4123 = vmatpush1.msra.mxu1 %v10851_v11 }
0x107e   :  { %4053 = vmatprep.subr.mxu0 %v10854_v24  ;;  %4124 = vmatprep.subr.mxu1 %v10857_v34 }
0x107f   :  { %4054 = vmatpush1.msra.mxu0 %v10860_v42  ;;  %4125 = vmatpush1.msra.mxu1 %v10863_v62 }
0x1080   :  { %4055 = vmatprep.subr.mxu0 %v10866_v30  ;;  %4126 = vmatprep.subr.mxu1 %v10869_v31 }
0x1081   :  { %4056 = vmatpush1.msra.mxu0 %v10872_v23  ;;  %4127 = vmatpush1.msra.mxu1 %v10875_v7 }
0x1082   :  { %4057 = vmatprep.subr.mxu0 %v10878_v18  ;;  %4128 = vmatprep.subr.mxu1 %v10881_v4  ;;  %v13713_v18 = vld [vmem:[#allocation93_spill] sm:$0xff] }
0x1083   :  { %4058 = vmatpush1.msra.mxu0 %v10884_v22  ;;  %4129 = vmatpush1.msra.mxu1 %v10887_v35  ;;  %v667_v7 = vadd.f32 %v13713_v18, %v9089_v26 }
0x1084   :  { %4059 = vmatprep.subr.mxu0 %v10890_v8  ;;  %4130 = vmatprep.subr.mxu1 %v10893_v33  ;;  %v10908_v8 = vld [vmem:[#allocation4 + $0x20] sm:$0xff]  ;;  %v10911_v33 = vld [vmem:[#allocation4 + $0x30] sm:$0xff] }
0x1085   :  { %4060 = vmatpush1.msra.mxu0 %v10896_v32  ;;  %4131 = vmatpush1.msra.mxu1 %v10899_v40  ;;  %13705 = vst [vmem:[#allocation41_spill] sm:$0xff] %v10908_v8  ;;  %13706 = vst [vmem:[#allocation43_spill] sm:$0xff] %v10911_v33  ;;  %v10914_v32 = vld [vmem:[#allocation4 + $0x8] sm:$0xff]  ;;  %v10917_v40 = vld [vmem:[#allocation4 + $0x18] sm:$0xff] }
0x1086   :  { %4061 = vmatprep.subr.mxu0 %v10902_v1  ;;  %4132 = vmatprep.subr.mxu1 %v10905_v14  ;;  %13707 = vst [vmem:[#allocation12_spill] sm:$0xff] %v10914_v32  ;;  %13708 = vst [vmem:[#allocation14_spill] sm:$0xff] %v10917_v40  ;;  %v10920_v1 = vld [vmem:[#allocation4] sm:$0xff]  ;;  %v10924_v14 = vld [vmem:[#allocation4 + $0x10] sm:$0xff] }
0x1087   :  { %4062 = vmatpush1.msra.mxu0 %v10908_v8  ;;  %4133 = vmatpush1.msra.mxu1 %v10911_v33  ;;  %13709 = vst [vmem:[#allocation29_spill] sm:$0xff] %v10920_v1  ;;  %13710 = vst [vmem:[#allocation31_spill] sm:$0xff] %v10924_v14  ;;  %v13712_v8 = vld [vmem:[#allocation78_spill] sm:$0xff] }
0x1088   :  { %4063 = vmatprep.subr.mxu0 %v10914_v32  ;;  %4134 = vmatprep.subr.mxu1 %v10917_v40  ;;  %v13711_v32 = vld [vmem:[#allocation76_spill] sm:$0xff]  ;;  %v388_v35 = vadd.f32 %v13712_v8, %v13686_v58 }
0x1089   :  { %4064 = vmatpush1.msra.mxu0 %v10920_v1  ;;  %4097 = vmatprep.mubr.f32.mxu0 %v13680_v43  ;;  %v386_v33 = vadd.f32 %v13711_v32, %v13684_v51  ;;  %v13714_v32 = vld [vmem:[#allocation95_spill] sm:$0xff] }
0x108a   :  { %4135 = vmatpush1.msra.mxu1 %v10924_v14  ;;  %4168 = vmatprep.mubr.f32.mxu1 %v13680_v43  ;;  %v669_v51 = vadd.f32 %v13714_v32, %v9097_v29  ;;  %v13722_v32 = vld [vmem:[#allocation33_spill] sm:$0xff] }
0x108b   :  { %4202 = vmatprep.subr.mxu0 %v10758_v21  ;;  %4273 = vmatprep.subr.mxu1 %v10761_v49 }
0x112a   :  { %v3930_v40 = vpop.f32.mrf.mxu0  ;;  %v4001_v22 = vpop.f32.mrf.mxu1 }
0x112b   :  { %v4006_v1 = vadd.f32 %v3930_v40, %v386_v33  ;;  %v4008_v43 = vadd.f32 %v4001_v22, %v667_v7 }
0x112c   :  { %v3932_v4 = vpop.f32.mrf.mxu0  ;;  %v4003_v49 = vpop.f32.mrf.mxu1 }
0x112d   :  { %v4010_v14 = vmul.f32 0.5, %v4006_v1  ;;  %v4007_v23 = vadd.f32 %v3932_v4, %v388_v35  ;;  %v4009_v31 = vadd.f32 %v4003_v49, %v669_v51  ;;  %v13720_v35 = vld [vmem:[#allocation61_spill] sm:$0xff] }
0x112f   :  { %7510 = vtanh.f32 %v4010_v14  ;;  %v4014_v21 = vmul.f32 0.5, %v4007_v23  ;;  %v4019_v30 = vmul.f32 0.5, %v4009_v31  ;;  %v13719_v31 = vld [vmem:[#allocation46_spill] sm:$0xff]  ;;  %v13721_v14 = vld [vmem:[#allocation63_spill] sm:$0xff] }
0x1131   :  { %7512 = vtanh.f32 %v4014_v21 }
0x1132   :  { %7514 = vtanh.f32 %v4008_v43 }
0x1133   :  { %7516 = vtanh.f32 %v4019_v30  ;;  %v13718_v30 = vld [vmem:[#allocation44_spill] sm:$0xff] }
0x113c   :  { %v7511_v8 = vpop.eup %7510 }
0x113d   :  { %v4012_v33 = vmul.f32 0.5, %v7511_v8  ;;  %v13723_v8 = vld [vmem:[#allocation35_spill] sm:$0xff] }
0x113e   :  { %v7513_v40 = vpop.eup %7512 }
0x113f   :  { %v4013_v58 = vadd.f32 0.5, %v4012_v33  ;;  %v4016_v62 = vmul.f32 0.5, %v7513_v40  ;;  %v7515_v18 = vpop.eup %7514  ;;  %v13724_v33 = vld [vmem:[#allocation21_spill] sm:$0xff]  ;;  %v13725_v40 = vld [vmem:[#allocation24_spill] sm:$0xff] }
0x1140   :  { %v7517_v43 = vpop.eup %7516 }
0x1141   :  { %v4017_v1 = vadd.f32 0.5, %v4016_v62  ;;  %v4024_v4 = vmul.f32 %v7515_v18, %v4013_v58  ;;  %v4021_v21 = vmul.f32 0.5, %v7517_v43  ;;  %v13715_v58 = vld [vmem:[#allocation42_spill] sm:$0xff]  ;;  %v13717_v62 = vld [vmem:[#allocation59_spill] sm:$0xff]  ;;  %v13726_v18 = vld [vmem:[#allocation37_spill] sm:$0xff] }
0x1142   :  { %v13730_v43 = vld [vmem:[#allocation41_spill] sm:$0xff] }
0x1143   :  { %v4023_v7 = vmul.f32 %v4017_v1, %v10773_v10  ;;  %v4022_v22 = vadd.f32 0.5, %v4021_v21  ;;  %v13716_v10 = vld [vmem:[#allocation57_spill] sm:$0xff]  ;;  %v13727_v1 = vld [vmem:[#allocation39_spill] sm:$0xff] }
0x1144   :  { %v13731_v21 = vld [vmem:[#allocation43_spill] sm:$0xff] }
0x1145   :  { %v10939_v23 = vadd.f32 %v4024_v4, %v4023_v7  ;;  %v13728_v4 = vld [vmem:[#allocation26_spill] sm:$0xff]  ;;  %v13729_v7 = vld [vmem:[#allocation27_spill] sm:$0xff] }
0x1147   :  { %7518 = vtanh.f32 %v10939_v23 }
0x1154   :  { %v7519_v49 = vpop.eup %7518 }
0x1155   :  { %v4027_v51 = vmul.f32 %v7519_v49, %v4022_v22  ;;  %v13732_v22 = vld [vmem:[#allocation12_spill] sm:$0xff]  ;;  %v13733_v49 = vld [vmem:[#allocation14_spill] sm:$0xff] }
0x1157   :  { %4098 = vmatmul.mubr.f32.vlgmr.msra.gmra.mxu0 %v4027_v51  ;;  %4169 = vmatmul.mubr.f32.vlgmr.msra.gmra.mxu1 %v4027_v51  ;;  %v13734_v51 = vld [vmem:[#allocation29_spill] sm:$0xff] }
0x1158   :  { %4203 = vmatpush1.msra.mxu0 %v10658_v17  ;;  %4274 = vmatpush1.msra.mxu1 %v10661_v27 }
0x1159   :  { %4204 = vmatprep.subr.mxu0 %v10664_v39  ;;  %4275 = vmatprep.subr.mxu1 %v10667_v13 }
0x115a   :  { %4205 = vmatpush1.msra.mxu0 %v10670_v57  ;;  %4276 = vmatpush1.msra.mxu1 %v10673_v5 }
0x115b   :  { %4206 = vmatprep.subr.mxu0 %v10676_v15  ;;  %4277 = vmatprep.subr.mxu1 %v10679_v6 }
0x115c   :  { %4207 = vmatpush1.msra.mxu0 %v10682_v19  ;;  %4278 = vmatpush1.msra.mxu1 %v10685_v41 }
0x115d   :  { %4208 = vmatprep.subr.mxu0 %v10688_v52  ;;  %4279 = vmatprep.subr.mxu1 %v10691_v47 }
0x115e   :  { %4209 = vmatpush1.msra.mxu0 %v10694_v20  ;;  %4280 = vmatpush1.msra.mxu1 %v10697_v36 }
0x115f   :  { %4210 = vmatprep.subr.mxu0 %v10700_v16  ;;  %4281 = vmatprep.subr.mxu1 %v10791_v48 }
0x1160   :  { %4211 = vmatpush1.msra.mxu0 %v10704_v9  ;;  %4282 = vmatpush1.msra.mxu1 %v10795_v54 }
0x1161   :  { %4212 = vmatprep.subr.mxu0 %v10708_v38  ;;  %4283 = vmatprep.subr.mxu1 %v10799_v44 }
0x1162   :  { %4213 = vmatpush1.msra.mxu0 %v10712_v45  ;;  %4284 = vmatpush1.msra.mxu1 %v10803_v50 }
0x1163   :  { %4214 = vmatprep.subr.mxu0 %v10806_v46  ;;  %4285 = vmatprep.subr.mxu1 %v10809_v53 }
0x1164   :  { %4215 = vmatpush1.msra.mxu0 %v10812_v55  ;;  %4286 = vmatpush1.msra.mxu1 %v10815_v56 }
0x1165   :  { %4216 = vmatprep.subr.mxu0 %v10818_v59  ;;  %4287 = vmatprep.subr.mxu1 %v10821_v60 }
0x1166   :  { %4217 = vmatpush1.msra.mxu0 %v10824_v61  ;;  %4288 = vmatpush1.msra.mxu1 %v10827_v63 }
0x1167   :  { %4218 = vmatprep.subr.mxu0 %v10830_v0  ;;  %4289 = vmatprep.subr.mxu1 %v10833_v3 }
0x1168   :  { %4219 = vmatpush1.msra.mxu0 %v10836_v28  ;;  %4290 = vmatpush1.msra.mxu1 %v10839_v25 }
0x1169   :  { %4220 = vmatprep.subr.mxu0 %v10842_v2  ;;  %4291 = vmatprep.subr.mxu1 %v10845_v12 }
0x116a   :  { %4221 = vmatpush1.msra.mxu0 %v10848_v37  ;;  %4292 = vmatpush1.msra.mxu1 %v10851_v11 }
0x116b   :  { %4222 = vmatprep.subr.mxu0 %v10854_v24  ;;  %4293 = vmatprep.subr.mxu1 %v10857_v34 }
0x116c   :  { %4223 = vmatpush1.msra.mxu0 %v10860_v42  ;;  %4294 = vmatpush1.msra.mxu1 %v13715_v58 }
0x116d   :  { %4224 = vmatprep.subr.mxu0 %v13716_v10  ;;  %4295 = vmatprep.subr.mxu1 %v13717_v62 }
0x116e   :  { %4225 = vmatpush1.msra.mxu0 %v13718_v30  ;;  %4296 = vmatpush1.msra.mxu1 %v13719_v31 }
0x116f   :  { %4226 = vmatprep.subr.mxu0 %v13720_v35  ;;  %4297 = vmatprep.subr.mxu1 %v13721_v14  ;;  %v13743_v35 = vld [vmem:[#allocation97_spill] sm:$0xff] }
0x1170   :  { %4227 = vmatpush1.msra.mxu0 %v13722_v32  ;;  %4298 = vmatpush1.msra.mxu1 %v13723_v8  ;;  %v13741_v8 = vld [vmem:[#allocation143_spill] sm:$0xff]  ;;  %v673_v31 = vadd.f32 %v13743_v35, %v9089_v26 }
0x1171   :  { %4228 = vmatprep.subr.mxu0 %v13724_v33  ;;  %4299 = vmatprep.subr.mxu1 %v13725_v40  ;;  %v13735_v33 = vmov 0.0   ;;  %v13736_v40 = vld [vmem:[#allocation31_spill] sm:$0xff] }
0x1172   :  { %4229 = vmatpush1.msra.mxu0 %v13726_v18  ;;  %4300 = vmatpush1.msra.mxu1 %v13727_v1  ;;  %v13737_v1 = vld [vmem:[#allocation55_spill] sm:$0xff] }
0x1173   :  { %4230 = vmatprep.subr.mxu0 %v13728_v4  ;;  %4301 = vmatprep.subr.mxu1 %v13729_v7  ;;  %v13738_v4 = vld [vmem:[#allocation40_spill] sm:$0xff]  ;;  %v13739_v7 = vld [vmem:[#allocation145_spill] sm:$0xff] }
0x1174   :  { %4231 = vmatpush1.msra.mxu0 %v13730_v43  ;;  %4302 = vmatpush1.msra.mxu1 %v13731_v21  ;;  %v13740_v43 = vld [vmem:[#allocation80_spill] sm:$0xff] }
0x1175   :  { %4232 = vmatprep.subr.mxu0 %v13732_v22  ;;  %4303 = vmatprep.subr.mxu1 %v13733_v49  ;;  %v392_v18 = vadd.f32 %v13740_v43, %v13739_v7  ;;  %v13742_v22 = vld [vmem:[#allocation82_spill] sm:$0xff]  ;;  %v13744_v43 = vld [vmem:[#allocation99_spill] sm:$0xff] }
0x1176   :  { %4233 = vmatpush1.msra.mxu0 %v13734_v51  ;;  %4266 = vmatprep.mubr.f32.mxu0 %v13735_v33  ;;  %v394_v32 = vadd.f32 %v13742_v22, %v13741_v8  ;;  %v675_v7 = vadd.f32 %v13744_v43, %v9097_v29  ;;  %v13752_v43 = vld [vmem:[#allocation33_spill] sm:$0xff] }
0x1177   :  { %4304 = vmatpush1.msra.mxu1 %v13736_v40  ;;  %4337 = vmatprep.mubr.f32.mxu1 %v13735_v33 }
0x1178   :  { %4371 = vmatprep.subr.mxu0 %v13737_v1  ;;  %4442 = vmatprep.subr.mxu1 %v13738_v4 }
0x1217   :  { %v4099_v21 = vpop.f32.mrf.mxu0  ;;  %v4170_v14 = vpop.f32.mrf.mxu1 }
0x1218   :  { %v4175_v49 = vadd.f32 %v4099_v21, %v392_v18  ;;  %v4177_v33 = vadd.f32 %v4170_v14, %v673_v31 }
0x1219   :  { %v4101_v51 = vpop.f32.mrf.mxu0  ;;  %v4172_v4 = vpop.f32.mrf.mxu1 }
0x121a   :  { %v4179_v40 = vmul.f32 0.5, %v4175_v49  ;;  %v4176_v30 = vadd.f32 %v4101_v51, %v394_v32  ;;  %v4178_v62 = vadd.f32 %v4172_v4, %v675_v7  ;;  %v13749_v4 = vld [vmem:[#allocation46_spill] sm:$0xff]  ;;  %v13750_v7 = vld [vmem:[#allocation61_spill] sm:$0xff]  ;;  %v13751_v51 = vld [vmem:[#allocation63_spill] sm:$0xff] }
0x121c   :  { %7520 = vtanh.f32 %v4179_v40  ;;  %v4183_v1 = vmul.f32 0.5, %v4176_v30  ;;  %v4188_v10 = vmul.f32 0.5, %v4178_v62 }
0x121e   :  { %7522 = vtanh.f32 %v4183_v1 }
0x121f   :  { %7524 = vtanh.f32 %v4177_v33 }
0x1220   :  { %7526 = vtanh.f32 %v4188_v10  ;;  %v13747_v10 = vld [vmem:[#allocation59_spill] sm:$0xff] }
0x1229   :  { %v7521_v22 = vpop.eup %7520 }
0x122a   :  { %v4181_v18 = vmul.f32 0.5, %v7521_v22  ;;  %v13753_v22 = vld [vmem:[#allocation35_spill] sm:$0xff] }
0x122b   :  { %v7523_v21 = vpop.eup %7522 }
0x122c   :  { %v4182_v8 = vadd.f32 0.5, %v4181_v18  ;;  %v4185_v58 = vmul.f32 0.5, %v7523_v21  ;;  %v7525_v35 = vpop.eup %7524  ;;  %v13754_v18 = vld [vmem:[#allocation21_spill] sm:$0xff]  ;;  %v13755_v21 = vld [vmem:[#allocation24_spill] sm:$0xff] }
0x122d   :  { %v7527_v14 = vpop.eup %7526 }
0x122e   :  { %v4186_v49 = vadd.f32 0.5, %v4185_v58  ;;  %v4193_v32 = vmul.f32 %v7525_v35, %v4182_v8  ;;  %v4190_v33 = vmul.f32 0.5, %v7527_v14  ;;  %v13746_v58 = vld [vmem:[#allocation57_spill] sm:$0xff]  ;;  %v13748_v8 = vld [vmem:[#allocation44_spill] sm:$0xff] }
0x122f   :  { %v13756_v35 = vld [vmem:[#allocation37_spill] sm:$0xff] }
0x1230   :  { %v4192_v31 = vmul.f32 %v4186_v49, %v10939_v23  ;;  %v4191_v40 = vadd.f32 0.5, %v4190_v33  ;;  %v13745_v23 = vld [vmem:[#allocation42_spill] sm:$0xff]  ;;  %v13757_v49 = vld [vmem:[#allocation39_spill] sm:$0xff]  ;;  %v13760_v14 = vld [vmem:[#allocation41_spill] sm:$0xff] }
0x1231   :  { %v13761_v33 = vld [vmem:[#allocation43_spill] sm:$0xff] }
0x1232   :  { %v11017_v30 = vadd.f32 %v4193_v32, %v4192_v31  ;;  %v13758_v32 = vld [vmem:[#allocation26_spill] sm:$0xff]  ;;  %v13759_v31 = vld [vmem:[#allocation27_spill] sm:$0xff] }
0x1234   :  { %7528 = vtanh.f32 %v11017_v30 }
0x1241   :  { %v7529_v1 = vpop.eup %7528 }
0x1242   :  { %v4196_v62 = vmul.f32 %v7529_v1, %v4191_v40  ;;  %v13762_v40 = vld [vmem:[#allocation12_spill] sm:$0xff]  ;;  %v13763_v1 = vld [vmem:[#allocation14_spill] sm:$0xff] }
0x1244   :  { %4267 = vmatmul.mubr.f32.vlgmr.msra.gmra.mxu0 %v4196_v62  ;;  %4338 = vmatmul.mubr.f32.vlgmr.msra.gmra.mxu1 %v4196_v62  ;;  %v13764_v62 = vld [vmem:[#allocation29_spill] sm:$0xff] }
0x1245   :  { %4372 = vmatpush1.msra.mxu0 %v10658_v17  ;;  %4443 = vmatpush1.msra.mxu1 %v10661_v27 }
0x1246   :  { %4373 = vmatprep.subr.mxu0 %v10664_v39  ;;  %4444 = vmatprep.subr.mxu1 %v10667_v13 }
0x1247   :  { %4374 = vmatpush1.msra.mxu0 %v10670_v57  ;;  %4445 = vmatpush1.msra.mxu1 %v10673_v5 }
0x1248   :  { %4375 = vmatprep.subr.mxu0 %v10676_v15  ;;  %4446 = vmatprep.subr.mxu1 %v10679_v6 }
0x1249   :  { %4376 = vmatpush1.msra.mxu0 %v10682_v19  ;;  %4447 = vmatpush1.msra.mxu1 %v10685_v41 }
0x124a   :  { %4377 = vmatprep.subr.mxu0 %v10688_v52  ;;  %4448 = vmatprep.subr.mxu1 %v10691_v47 }
0x124b   :  { %4378 = vmatpush1.msra.mxu0 %v10694_v20  ;;  %4449 = vmatpush1.msra.mxu1 %v10697_v36 }
0x124c   :  { %4379 = vmatprep.subr.mxu0 %v10700_v16  ;;  %4450 = vmatprep.subr.mxu1 %v10791_v48 }
0x124d   :  { %4380 = vmatpush1.msra.mxu0 %v10704_v9  ;;  %4451 = vmatpush1.msra.mxu1 %v10795_v54 }
0x124e   :  { %4381 = vmatprep.subr.mxu0 %v10708_v38  ;;  %4452 = vmatprep.subr.mxu1 %v10799_v44 }
0x124f   :  { %4382 = vmatpush1.msra.mxu0 %v10712_v45  ;;  %4453 = vmatpush1.msra.mxu1 %v10803_v50 }
0x1250   :  { %4383 = vmatprep.subr.mxu0 %v10806_v46  ;;  %4454 = vmatprep.subr.mxu1 %v10809_v53 }
0x1251   :  { %4384 = vmatpush1.msra.mxu0 %v10812_v55  ;;  %4455 = vmatpush1.msra.mxu1 %v10815_v56 }
0x1252   :  { %4385 = vmatprep.subr.mxu0 %v10818_v59  ;;  %4456 = vmatprep.subr.mxu1 %v10821_v60 }
0x1253   :  { %4386 = vmatpush1.msra.mxu0 %v10824_v61  ;;  %4457 = vmatpush1.msra.mxu1 %v10827_v63 }
0x1254   :  { %4387 = vmatprep.subr.mxu0 %v10830_v0  ;;  %4458 = vmatprep.subr.mxu1 %v10833_v3 }
0x1255   :  { %4388 = vmatpush1.msra.mxu0 %v10836_v28  ;;  %4459 = vmatpush1.msra.mxu1 %v10839_v25 }
0x1256   :  { %4389 = vmatprep.subr.mxu0 %v10842_v2  ;;  %4460 = vmatprep.subr.mxu1 %v10845_v12 }
0x1257   :  { %4390 = vmatpush1.msra.mxu0 %v10848_v37  ;;  %4461 = vmatpush1.msra.mxu1 %v10851_v11 }
0x1258   :  { %4391 = vmatprep.subr.mxu0 %v10854_v24  ;;  %4462 = vmatprep.subr.mxu1 %v10857_v34 }
0x1259   :  { %4392 = vmatpush1.msra.mxu0 %v10860_v42  ;;  %4463 = vmatpush1.msra.mxu1 %v13745_v23 }
0x125a   :  { %4393 = vmatprep.subr.mxu0 %v13746_v58  ;;  %4464 = vmatprep.subr.mxu1 %v13747_v10 }
0x125b   :  { %4394 = vmatpush1.msra.mxu0 %v13748_v8  ;;  %4465 = vmatpush1.msra.mxu1 %v13749_v4 }
0x125c   :  { %4395 = vmatprep.subr.mxu0 %v13750_v7  ;;  %4466 = vmatprep.subr.mxu1 %v13751_v51  ;;  %v13773_v7 = vld [vmem:[#allocation101_spill] sm:$0xff] }
0x125d   :  { %4396 = vmatpush1.msra.mxu0 %v13752_v43  ;;  %4467 = vmatpush1.msra.mxu1 %v13753_v22  ;;  %v13771_v22 = vld [vmem:[#allocation143_spill] sm:$0xff]  ;;  %v679_v4 = vadd.f32 %v13773_v7, %v9089_v26 }
0x125e   :  { %4397 = vmatprep.subr.mxu0 %v13754_v18  ;;  %4468 = vmatprep.subr.mxu1 %v13755_v21  ;;  %v13765_v18 = vmov 0.0   ;;  %v13766_v21 = vld [vmem:[#allocation31_spill] sm:$0xff] }
0x125f   :  { %4398 = vmatpush1.msra.mxu0 %v13756_v35  ;;  %4469 = vmatpush1.msra.mxu1 %v13757_v49  ;;  %v13767_v49 = vld [vmem:[#allocation55_spill] sm:$0xff] }
0x1260   :  { %4399 = vmatprep.subr.mxu0 %v13758_v32  ;;  %4470 = vmatprep.subr.mxu1 %v13759_v31  ;;  %v13768_v32 = vld [vmem:[#allocation40_spill] sm:$0xff]  ;;  %v13769_v31 = vld [vmem:[#allocation145_spill] sm:$0xff] }
0x1261   :  { %4400 = vmatpush1.msra.mxu0 %v13760_v14  ;;  %4471 = vmatpush1.msra.mxu1 %v13761_v33  ;;  %v13770_v14 = vld [vmem:[#allocation84_spill] sm:$0xff] }
0x1262   :  { %4401 = vmatprep.subr.mxu0 %v13762_v40  ;;  %4472 = vmatprep.subr.mxu1 %v13763_v1  ;;  %v398_v35 = vadd.f32 %v13770_v14, %v13769_v31  ;;  %v13772_v40 = vld [vmem:[#allocation86_spill] sm:$0xff]  ;;  %v13774_v14 = vld [vmem:[#allocation103_spill] sm:$0xff] }
0x1263   :  { %4402 = vmatpush1.msra.mxu0 %v13764_v62  ;;  %4435 = vmatprep.mubr.f32.mxu0 %v13765_v18  ;;  %v400_v43 = vadd.f32 %v13772_v40, %v13771_v22  ;;  %v681_v31 = vadd.f32 %v13774_v14, %v9097_v29  ;;  %v13800_v14 = vld [vmem:[#allocation88_spill] sm:$0xff] }
0x1264   :  { %4473 = vmatpush1.msra.mxu1 %v13766_v21  ;;  %4506 = vmatprep.mubr.f32.mxu1 %v13765_v18 }
0x1265   :  { %4540 = vmatprep.subr.mxu0 %v13767_v49  ;;  %4611 = vmatprep.subr.mxu1 %v13768_v32 }
0x1304   :  { %v4268_v33 = vpop.f32.mrf.mxu0  ;;  %v4339_v51 = vpop.f32.mrf.mxu1 }
0x1305   :  { %v4344_v1 = vadd.f32 %v4268_v33, %v398_v35  ;;  %v4346_v18 = vadd.f32 %v4339_v51, %v679_v4 }
0x1306   :  { %v4270_v62 = vpop.f32.mrf.mxu0  ;;  %v4341_v32 = vpop.f32.mrf.mxu1 }
0x1307   :  { %v4348_v21 = vmul.f32 0.5, %v4344_v1  ;;  %v4345_v8 = vadd.f32 %v4270_v62, %v400_v43  ;;  %v4347_v10 = vadd.f32 %v4341_v32, %v681_v31  ;;  %v13797_v32 = vld [vmem:[#allocation55_spill] sm:$0xff]  ;;  %v13798_v31 = vld [vmem:[#allocation40_spill] sm:$0xff]  ;;  %v13799_v62 = vld [vmem:[#allocation145_spill] sm:$0xff] }
0x1309   :  { %7530 = vtanh.f32 %v4348_v21  ;;  %v4352_v49 = vmul.f32 0.5, %v4345_v8  ;;  %v4357_v58 = vmul.f32 0.5, %v4347_v10 }
0x130b   :  { %7532 = vtanh.f32 %v4352_v49 }
0x130c   :  { %7534 = vtanh.f32 %v4346_v18 }
0x130d   :  { %7536 = vtanh.f32 %v4357_v58  ;;  %v13795_v58 = vmov 0.0  }
0x1316   :  { %v7531_v40 = vpop.eup %7530 }
0x1317   :  { %v4350_v35 = vmul.f32 0.5, %v7531_v40  ;;  %v404_v40 = vadd.f32 %v13800_v14, %v13799_v62  ;;  %v13804_v14 = vld [vmem:[#allocation107_spill] sm:$0xff] }
0x1318   :  { %v7533_v33 = vpop.eup %7532  ;;  %v687_v62 = vadd.f32 %v13804_v14, %v9097_v29  ;;  %v11197_v14 = vld [vmem:[#allocation4 + $0x1b8] sm:$0xff] }
0x1319   :  { %v4351_v22 = vadd.f32 0.5, %v4350_v35  ;;  %v4354_v23 = vmul.f32 0.5, %v7533_v33  ;;  %v7535_v7 = vpop.eup %7534  ;;  %v13801_v33 = vld [vmem:[#allocation143_spill] sm:$0xff] }
0x131a   :  { %v7537_v51 = vpop.eup %7536 }
0x131b   :  { %v4355_v1 = vadd.f32 0.5, %v4354_v23  ;;  %v4362_v43 = vmul.f32 %v7535_v7, %v4351_v22  ;;  %v4359_v18 = vmul.f32 0.5, %v7537_v51  ;;  %v13794_v23 = vld [vmem:[#allocation29_spill] sm:$0xff]  ;;  %v13796_v22 = vld [vmem:[#allocation31_spill] sm:$0xff]  ;;  %v13802_v7 = vld [vmem:[#allocation90_spill] sm:$0xff] }
0x131d   :  { %v4361_v4 = vmul.f32 %v4355_v1, %v11017_v30  ;;  %v4360_v21 = vadd.f32 0.5, %v4359_v18  ;;  %v13793_v30 = vld [vmem:[#allocation14_spill] sm:$0xff]  ;;  %v406_v1 = vadd.f32 %v13802_v7, %v13801_v33  ;;  %v13803_v18 = vld [vmem:[#allocation105_spill] sm:$0xff] }
0x131f   :  { %v11095_v8 = vadd.f32 %v4362_v43, %v4361_v4 }
0x1321   :  { %7538 = vtanh.f32 %v11095_v8 }
0x132e   :  { %v7539_v49 = vpop.eup %7538 }
0x132f   :  { %v4365_v10 = vmul.f32 %v7539_v49, %v4360_v21  ;;  %v685_v21 = vadd.f32 %v13803_v18, %v9089_v26 }
0x1331   :  { %4436 = vmatmul.mubr.f32.vlgmr.msra.gmra.mxu0 %v4365_v10  ;;  %4507 = vmatmul.mubr.f32.vlgmr.msra.gmra.mxu1 %v4365_v10 }
0x1332   :  { %4541 = vmatpush1.msra.mxu0 %v10658_v17  ;;  %4612 = vmatpush1.msra.mxu1 %v10661_v27  ;;  %v13775_v17 = vld [vmem:[#allocation42_spill] sm:$0xff]  ;;  %v13776_v27 = vld [vmem:[#allocation57_spill] sm:$0xff] }
0x1333   :  { %4542 = vmatprep.subr.mxu0 %v10664_v39  ;;  %4613 = vmatprep.subr.mxu1 %v10667_v13  ;;  %v13777_v39 = vld [vmem:[#allocation59_spill] sm:$0xff]  ;;  %v13778_v13 = vld [vmem:[#allocation44_spill] sm:$0xff] }
0x1334   :  { %4543 = vmatpush1.msra.mxu0 %v10670_v57  ;;  %4614 = vmatpush1.msra.mxu1 %v10673_v5  ;;  %v13779_v57 = vld [vmem:[#allocation46_spill] sm:$0xff]  ;;  %v13780_v5 = vld [vmem:[#allocation61_spill] sm:$0xff] }
0x1335   :  { %4544 = vmatprep.subr.mxu0 %v10676_v15  ;;  %4615 = vmatprep.subr.mxu1 %v10679_v6  ;;  %v13781_v15 = vld [vmem:[#allocation63_spill] sm:$0xff]  ;;  %v13782_v6 = vld [vmem:[#allocation33_spill] sm:$0xff] }
0x1336   :  { %4545 = vmatpush1.msra.mxu0 %v10682_v19  ;;  %4616 = vmatpush1.msra.mxu1 %v10685_v41  ;;  %v13783_v19 = vld [vmem:[#allocation35_spill] sm:$0xff]  ;;  %v13784_v41 = vld [vmem:[#allocation21_spill] sm:$0xff] }
0x1337   :  { %4546 = vmatprep.subr.mxu0 %v10688_v52  ;;  %4617 = vmatprep.subr.mxu1 %v10691_v47  ;;  %v13785_v52 = vld [vmem:[#allocation24_spill] sm:$0xff]  ;;  %v13786_v47 = vld [vmem:[#allocation37_spill] sm:$0xff] }
0x1338   :  { %4547 = vmatpush1.msra.mxu0 %v10694_v20  ;;  %4618 = vmatpush1.msra.mxu1 %v10697_v36  ;;  %v13787_v20 = vld [vmem:[#allocation39_spill] sm:$0xff]  ;;  %v13788_v36 = vld [vmem:[#allocation26_spill] sm:$0xff] }
0x1339   :  { %4548 = vmatprep.subr.mxu0 %v10700_v16  ;;  %4619 = vmatprep.subr.mxu1 %v10791_v48  ;;  %v13789_v16 = vld [vmem:[#allocation27_spill] sm:$0xff] }
0x133a   :  { %4549 = vmatpush1.msra.mxu0 %v10704_v9  ;;  %4620 = vmatpush1.msra.mxu1 %v10795_v54  ;;  %v13790_v9 = vld [vmem:[#allocation41_spill] sm:$0xff] }
0x133b   :  { %4550 = vmatprep.subr.mxu0 %v10708_v38  ;;  %4621 = vmatprep.subr.mxu1 %v10799_v44  ;;  %v13791_v38 = vld [vmem:[#allocation43_spill] sm:$0xff] }
0x133c   :  { %4551 = vmatpush1.msra.mxu0 %v10712_v45  ;;  %4622 = vmatpush1.msra.mxu1 %v10803_v50  ;;  %v13792_v45 = vld [vmem:[#allocation12_spill] sm:$0xff] }
0x133d   :  { %4552 = vmatprep.subr.mxu0 %v10806_v46  ;;  %4623 = vmatprep.subr.mxu1 %v10809_v53 }
0x133e   :  { %4553 = vmatpush1.msra.mxu0 %v10812_v55  ;;  %4624 = vmatpush1.msra.mxu1 %v10815_v56 }
0x133f   :  { %4554 = vmatprep.subr.mxu0 %v10818_v59  ;;  %4625 = vmatprep.subr.mxu1 %v10821_v60 }
0x1340   :  { %4555 = vmatpush1.msra.mxu0 %v10824_v61  ;;  %4626 = vmatpush1.msra.mxu1 %v10827_v63 }
0x1341   :  { %4556 = vmatprep.subr.mxu0 %v10830_v0  ;;  %4627 = vmatprep.subr.mxu1 %v10833_v3 }
0x1342   :  { %4557 = vmatpush1.msra.mxu0 %v10836_v28  ;;  %4628 = vmatpush1.msra.mxu1 %v10839_v25 }
0x1343   :  { %4558 = vmatprep.subr.mxu0 %v10842_v2  ;;  %4629 = vmatprep.subr.mxu1 %v10845_v12 }
0x1344   :  { %4559 = vmatpush1.msra.mxu0 %v10848_v37  ;;  %4630 = vmatpush1.msra.mxu1 %v10851_v11 }
0x1345   :  { %4560 = vmatprep.subr.mxu0 %v10854_v24  ;;  %4631 = vmatprep.subr.mxu1 %v10857_v34 }
0x1346   :  { %4561 = vmatpush1.msra.mxu0 %v10860_v42  ;;  %4632 = vmatpush1.msra.mxu1 %v13775_v17 }
0x1347   :  { %4562 = vmatprep.subr.mxu0 %v13776_v27  ;;  %4633 = vmatprep.subr.mxu1 %v13777_v39 }
0x1348   :  { %4563 = vmatpush1.msra.mxu0 %v13778_v13  ;;  %4634 = vmatpush1.msra.mxu1 %v13779_v57 }
0x1349   :  { %4564 = vmatprep.subr.mxu0 %v13780_v5  ;;  %4635 = vmatprep.subr.mxu1 %v13781_v15 }
0x134a   :  { %4565 = vmatpush1.msra.mxu0 %v13782_v6  ;;  %4636 = vmatpush1.msra.mxu1 %v13783_v19 }
0x134b   :  { %4566 = vmatprep.subr.mxu0 %v13784_v41  ;;  %4637 = vmatprep.subr.mxu1 %v13785_v52 }
0x134c   :  { %4567 = vmatpush1.msra.mxu0 %v13786_v47  ;;  %4638 = vmatpush1.msra.mxu1 %v13787_v20 }
0x134d   :  { %4568 = vmatprep.subr.mxu0 %v13788_v36  ;;  %4639 = vmatprep.subr.mxu1 %v13789_v16 }
0x134e   :  { %4569 = vmatpush1.msra.mxu0 %v13790_v9  ;;  %4640 = vmatpush1.msra.mxu1 %v13791_v38 }
0x134f   :  { %4570 = vmatprep.subr.mxu0 %v13792_v45  ;;  %4641 = vmatprep.subr.mxu1 %v13793_v30 }
0x1350   :  { %4571 = vmatpush1.msra.mxu0 %v13794_v23  ;;  %4604 = vmatprep.mubr.f32.mxu0 %v13795_v58 }
0x1351   :  { %4642 = vmatpush1.msra.mxu1 %v13796_v22  ;;  %4675 = vmatprep.mubr.f32.mxu1 %v13795_v58 }
0x1352   :  { %4709 = vmatprep.subr.mxu0 %v13797_v32  ;;  %4780 = vmatprep.subr.mxu1 %v13798_v31 }
0x13f1   :  { %v4437_v35 = vpop.f32.mrf.mxu0  ;;  %v4508_v4 = vpop.f32.mrf.mxu1 }
0x13f2   :  { %v4513_v43 = vadd.f32 %v4437_v35, %v404_v40  ;;  %v4515_v22 = vadd.f32 %v4508_v4, %v685_v21 }
0x13f3   :  { %v4439_v51 = vpop.f32.mrf.mxu0  ;;  %v4510_v31 = vpop.f32.mrf.mxu1 }
0x13f4   :  { %v4517_v49 = vmul.f32 0.5, %v4513_v43  ;;  %v4514_v10 = vadd.f32 %v4439_v51, %v406_v1  ;;  %v4516_v58 = vadd.f32 %v4510_v31, %v687_v62  ;;  %v11194_v31 = vld [vmem:[#allocation4 + $0x1a8] sm:$0xff] }
0x13f6   :  { %7540 = vtanh.f32 %v4517_v49  ;;  %v4521_v32 = vmul.f32 0.5, %v4514_v10  ;;  %v4526_v23 = vmul.f32 0.5, %v4516_v58  ;;  %v11176_v10 = vld [vmem:[#allocation4 + $0x1e0] sm:$0xff] }
0x13f8   :  { %7542 = vtanh.f32 %v4521_v32  ;;  %v11191_v32 = vld [vmem:[#allocation4 + $0x1d0] sm:$0xff] }
0x13f9   :  { %7544 = vtanh.f32 %v4515_v22 }
0x13fa   :  { %7546 = vtanh.f32 %v4526_v23  ;;  %v11179_v23 = vld [vmem:[#allocation4 + $0x1f0] sm:$0xff] }
0x1403   :  { %v7541_v7 = vpop.eup %7540 }
0x1404   :  { %v4519_v40 = vmul.f32 0.5, %v7541_v7  ;;  %v11200_v7 = vld [vmem:[#allocation4 + $0x1a0] sm:$0xff] }
0x1405   :  { %v7543_v35 = vpop.eup %7542 }
0x1406   :  { %v4520_v33 = vadd.f32 0.5, %v4519_v40  ;;  %v4523_v30 = vmul.f32 0.5, %v7543_v35  ;;  %v7545_v18 = vpop.eup %7544  ;;  %v11203_v40 = vld [vmem:[#allocation4 + $0x1b0] sm:$0xff]  ;;  %v11206_v35 = vld [vmem:[#allocation4 + $0x188] sm:$0xff] }
0x1407   :  { %v7547_v22 = vpop.eup %7546 }
0x1408   :  { %v4524_v43 = vadd.f32 0.5, %v4523_v30  ;;  %v4531_v1 = vmul.f32 %v7545_v18, %v4520_v33  ;;  %v4528_v21 = vmul.f32 0.5, %v7547_v22  ;;  %v11185_v30 = vld [vmem:[#allocation4 + $0x1d8] sm:$0xff]  ;;  %v11188_v33 = vld [vmem:[#allocation4 + $0x1c0] sm:$0xff] }
0x1409   :  { %v11209_v18 = vld [vmem:[#allocation4 + $0x198] sm:$0xff]  ;;  %v11222_v22 = vld [vmem:[#allocation4 + $0x160] sm:$0xff] }
0x140a   :  { %v4530_v4 = vmul.f32 %v4524_v43, %v11095_v8  ;;  %v4529_v49 = vadd.f32 0.5, %v4528_v21  ;;  %v11182_v8 = vld [vmem:[#allocation4 + $0x1c8] sm:$0xff]  ;;  %v11212_v43 = vld [vmem:[#allocation4 + $0x180] sm:$0xff] }
0x140b   :  { %v11226_v21 = vld [vmem:[#allocation4 + $0x148] sm:$0xff] }
0x140c   :  { %v11173_v51 = vadd.f32 %v4531_v1, %v4530_v4  ;;  %v11215_v1 = vld [vmem:[#allocation4 + $0x190] sm:$0xff]  ;;  %v11218_v4 = vld [vmem:[#allocation4 + $0x168] sm:$0xff] }
0x140e   :  { %7548 = vtanh.f32 %v11173_v51 }
0x141b   :  { %v7549_v62 = vpop.eup %7548 }
0x141c   :  { %v4534_v58 = vmul.f32 %v7549_v62, %v4529_v49  ;;  %v11230_v49 = vld [vmem:[#allocation4 + $0x140] sm:$0xff] }
0x141e   :  { %4605 = vmatmul.mubr.f32.vlgmr.msra.gmra.mxu0 %v4534_v58  ;;  %4676 = vmatmul.mubr.f32.vlgmr.msra.gmra.mxu1 %v4534_v58  ;;  %v11313_v58 = vld [vmem:[#allocation4 + $0x170] sm:$0xff] }
0x141f   :  { %4710 = vmatpush1.msra.mxu0 %v11176_v10  ;;  %4781 = vmatpush1.msra.mxu1 %v11179_v23 }
0x1420   :  { %4711 = vmatprep.subr.mxu0 %v11182_v8  ;;  %4782 = vmatprep.subr.mxu1 %v11185_v30 }
0x1421   :  { %4712 = vmatpush1.msra.mxu0 %v11188_v33  ;;  %4783 = vmatpush1.msra.mxu1 %v11191_v32 }
0x1422   :  { %4713 = vmatprep.subr.mxu0 %v11194_v31  ;;  %4784 = vmatprep.subr.mxu1 %v11197_v14 }
0x1423   :  { %4714 = vmatpush1.msra.mxu0 %v11200_v7  ;;  %4785 = vmatpush1.msra.mxu1 %v11203_v40 }
0x1424   :  { %4715 = vmatprep.subr.mxu0 %v11206_v35  ;;  %4786 = vmatprep.subr.mxu1 %v11209_v18 }
0x1425   :  { %4716 = vmatpush1.msra.mxu0 %v11212_v43  ;;  %4787 = vmatpush1.msra.mxu1 %v11215_v1 }
0x1426   :  { %4717 = vmatprep.subr.mxu0 %v11218_v4  ;;  %4788 = vmatprep.subr.mxu1 %v10791_v48  ;;  %v13805_v48 = vld [vmem:[#allocation14_spill] sm:$0xff] }
0x1427   :  { %4718 = vmatpush1.msra.mxu0 %v11222_v22  ;;  %4789 = vmatpush1.msra.mxu1 %v10795_v54  ;;  %v13806_v54 = vld [vmem:[#allocation29_spill] sm:$0xff] }
0x1428   :  { %4719 = vmatprep.subr.mxu0 %v11226_v21  ;;  %4790 = vmatprep.subr.mxu1 %v10799_v44  ;;  %v13807_v44 = vmov 0.0  }
0x1429   :  { %4720 = vmatpush1.msra.mxu0 %v11230_v49  ;;  %4791 = vmatpush1.msra.mxu1 %v10803_v50  ;;  %v13808_v50 = vld [vmem:[#allocation31_spill] sm:$0xff] }
0x142a   :  { %4721 = vmatprep.subr.mxu0 %v10806_v46  ;;  %4792 = vmatprep.subr.mxu1 %v10809_v53  ;;  %v11276_v46 = vld [vmem:[#allocation4 + $0x1e8] sm:$0xff]  ;;  %v11279_v53 = vld [vmem:[#allocation4 + $0x1f8] sm:$0xff] }
0x142b   :  { %4722 = vmatpush1.msra.mxu0 %v10812_v55  ;;  %4793 = vmatpush1.msra.mxu1 %v10815_v56  ;;  %13809 = vst [vmem:[#allocation154_spill] sm:$0xff] %v11276_v46  ;;  %13810 = vst [vmem:[#allocation155_spill] sm:$0xff] %v11279_v53  ;;  %v13811_v55 = vld [vmem:[#allocation145_spill] sm:$0xff]  ;;  %v13812_v56 = vld [vmem:[#allocation92_spill] sm:$0xff] }
0x142c   :  { %4723 = vmatprep.subr.mxu0 %v10818_v59  ;;  %4794 = vmatprep.subr.mxu1 %v10821_v60  ;;  %v410_v59 = vadd.f32 %v13812_v56, %v13811_v55  ;;  %v11327_v56 = vld [vmem:[#allocation4 + $0x138] sm:$0xff] }
0x142d   :  { %4724 = vmatpush1.msra.mxu0 %v10824_v61  ;;  %4795 = vmatpush1.msra.mxu1 %v10827_v63  ;;  %v13813_v61 = vld [vmem:[#allocation143_spill] sm:$0xff]  ;;  %v13814_v63 = vld [vmem:[#allocation94_spill] sm:$0xff] }
0x142e   :  { %4725 = vmatprep.subr.mxu0 %v10830_v0  ;;  %4796 = vmatprep.subr.mxu1 %v10833_v3  ;;  %v412_v0 = vadd.f32 %v13814_v63, %v13813_v61  ;;  %v11336_v63 = vld [vmem:[#allocation4 + $0x108] sm:$0xff] }
0x142f   :  { %4726 = vmatpush1.msra.mxu0 %v10836_v28  ;;  %4797 = vmatpush1.msra.mxu1 %v10839_v25 }
0x1430   :  { %4727 = vmatprep.subr.mxu0 %v10842_v2  ;;  %4798 = vmatprep.subr.mxu1 %v10845_v12  ;;  %v13815_v2 = vld [vmem:[#allocation109_spill] sm:$0xff] }
0x1431   :  { %4728 = vmatpush1.msra.mxu0 %v10848_v37  ;;  %4799 = vmatpush1.msra.mxu1 %v10851_v11  ;;  %v691_v12 = vadd.f32 %v13815_v2, %v9089_v26  ;;  %v11351_v2 = vld [vmem:[#allocation4 + $0xf8] sm:$0xff] }
0x1432   :  { %4729 = vmatprep.subr.mxu0 %v10854_v24  ;;  %4800 = vmatprep.subr.mxu1 %v10857_v34 }
0x1433   :  { %4730 = vmatpush1.msra.mxu0 %v10860_v42  ;;  %4801 = vmatpush1.msra.mxu1 %v13775_v17  ;;  %v13816_v17 = vld [vmem:[#allocation111_spill] sm:$0xff] }
0x1434   :  { %4731 = vmatprep.subr.mxu0 %v13776_v27  ;;  %4802 = vmatprep.subr.mxu1 %v13777_v39  ;;  %v693_v27 = vadd.f32 %v13816_v17, %v9097_v29  ;;  %v11372_v17 = vld [vmem:[#allocation4 + $0xa8] sm:$0xff] }
0x1435   :  { %4732 = vmatpush1.msra.mxu0 %v13778_v13  ;;  %4803 = vmatpush1.msra.mxu1 %v13779_v57 }
0x1436   :  { %4733 = vmatprep.subr.mxu0 %v13780_v5  ;;  %4804 = vmatprep.subr.mxu1 %v13781_v15 }
0x1437   :  { %4734 = vmatpush1.msra.mxu0 %v13782_v6  ;;  %4805 = vmatpush1.msra.mxu1 %v13783_v19 }
0x1438   :  { %4735 = vmatprep.subr.mxu0 %v13784_v41  ;;  %4806 = vmatprep.subr.mxu1 %v13785_v52 }
0x1439   :  { %4736 = vmatpush1.msra.mxu0 %v13786_v47  ;;  %4807 = vmatpush1.msra.mxu1 %v13787_v20 }
0x143a   :  { %4737 = vmatprep.subr.mxu0 %v13788_v36  ;;  %4808 = vmatprep.subr.mxu1 %v13789_v16 }
0x143b   :  { %4738 = vmatpush1.msra.mxu0 %v13790_v9  ;;  %4809 = vmatpush1.msra.mxu1 %v13791_v38 }
0x143c   :  { %4739 = vmatprep.subr.mxu0 %v13792_v45  ;;  %4810 = vmatprep.subr.mxu1 %v13805_v48  ;;  %v11317_v48 = vld [vmem:[#allocation4 + $0x158] sm:$0xff] }
0x143d   :  { %4740 = vmatpush1.msra.mxu0 %v13806_v54  ;;  %4773 = vmatprep.mubr.f32.mxu0 %v13807_v44  ;;  %v11321_v54 = vld [vmem:[#allocation4 + $0x150] sm:$0xff] }
0x143e   :  { %4811 = vmatpush1.msra.mxu1 %v13808_v50  ;;  %4844 = vmatprep.mubr.f32.mxu1 %v13807_v44  ;;  %v11324_v50 = vld [vmem:[#allocation4 + $0x128] sm:$0xff] }
0x143f   :  { %4878 = vmatprep.subr.mxu0 %v11276_v46  ;;  %4949 = vmatprep.subr.mxu1 %v11279_v53 }
0x14de   :  { %v4606_v60 = vpop.f32.mrf.mxu0  ;;  %v4677_v28 = vpop.f32.mrf.mxu1 }
0x14df   :  { %v4682_v3 = vadd.f32 %v4606_v60, %v410_v59  ;;  %v4684_v24 = vadd.f32 %v4677_v28, %v691_v12  ;;  %v11330_v59 = vld [vmem:[#allocation4 + $0x120] sm:$0xff]  ;;  %v11333_v60 = vld [vmem:[#allocation4 + $0x130] sm:$0xff] }
0x14e0   :  { %v4608_v25 = vpop.f32.mrf.mxu0  ;;  %v4679_v42 = vpop.f32.mrf.mxu1  ;;  %v11345_v28 = vld [vmem:[#allocation4 + $0x110] sm:$0xff]  ;;  %v11354_v12 = vld [vmem:[#allocation4 + $0xe0] sm:$0xff] }
0x14e1   :  { %v4686_v37 = vmul.f32 0.5, %v4682_v3  ;;  %v4683_v11 = vadd.f32 %v4608_v25, %v412_v0  ;;  %v4685_v39 = vadd.f32 %v4679_v42, %v693_v27  ;;  %v11339_v0 = vld [vmem:[#allocation4 + $0x118] sm:$0xff]  ;;  %v11342_v3 = vld [vmem:[#allocation4 + $0x100] sm:$0xff]  ;;  %v11348_v25 = vld [vmem:[#allocation4 + $0xe8] sm:$0xff] }
0x14e2   :  { %v11369_v42 = vld [vmem:[#allocation4 + $0xd0] sm:$0xff]  ;;  %v11375_v27 = vld [vmem:[#allocation4 + $0xb8] sm:$0xff] }
0x14e3   :  { %7550 = vtanh.f32 %v4686_v37  ;;  %v4690_v34 = vmul.f32 0.5, %v4683_v11  ;;  %v4695_v13 = vmul.f32 0.5, %v4685_v39  ;;  %v11357_v37 = vld [vmem:[#allocation4 + $0xf0] sm:$0xff]  ;;  %v11360_v11 = vld [vmem:[#allocation4 + $0xc8] sm:$0xff]  ;;  %v11378_v39 = vld [vmem:[#allocation4 + $0xa0] sm:$0xff] }
0x14e5   :  { %7552 = vtanh.f32 %v4690_v34  ;;  %v11366_v34 = vld [vmem:[#allocation4 + $0xc0] sm:$0xff] }
0x14e6   :  { %7554 = vtanh.f32 %v4684_v24  ;;  %v11363_v24 = vld [vmem:[#allocation4 + $0xd8] sm:$0xff] }
0x14e7   :  { %7556 = vtanh.f32 %v4695_v13  ;;  %v11381_v13 = vld [vmem:[#allocation4 + $0xb0] sm:$0xff] }
0x14e8   :  { %13817 = vst [vmem:[#allocation156_spill] sm:$0xff] %v11381_v13 }
0x14f0   :  { %v7551_v57 = vpop.eup %7550 }
0x14f1   :  { %v4688_v5 = vmul.f32 0.5, %v7551_v57  ;;  %v11384_v57 = vld [vmem:[#allocation4 + $0x88] sm:$0xff] }
0x14f2   :  { %v7553_v15 = vpop.eup %7552  ;;  %13818 = vst [vmem:[#allocation157_spill] sm:$0xff] %v11384_v57 }
0x14f3   :  { %v4689_v6 = vadd.f32 0.5, %v4688_v5  ;;  %v4692_v19 = vmul.f32 0.5, %v7553_v15  ;;  %v7555_v41 = vpop.eup %7554  ;;  %v11387_v5 = vld [vmem:[#allocation4 + $0x98] sm:$0xff]  ;;  %v11390_v15 = vld [vmem:[#allocation4 + $0x80] sm:$0xff] }
0x14f4   :  { %v7557_v16 = vpop.eup %7556  ;;  %13819 = vst [vmem:[#allocation16_spill] sm:$0xff] %v11387_v5  ;;  %13820 = vst [vmem:[#allocation18_spill] sm:$0xff] %v11390_v15 }
0x14f5   :  { %v4693_v52 = vadd.f32 0.5, %v4692_v19  ;;  %v4700_v47 = vmul.f32 %v7555_v41, %v4689_v6  ;;  %v4697_v9 = vmul.f32 0.5, %v7557_v16  ;;  %v11393_v6 = vld [vmem:[#allocation4 + $0x90] sm:$0xff]  ;;  %v11396_v19 = vld [vmem:[#allocation4 + $0x68] sm:$0xff]  ;;  %v11399_v41 = vld [vmem:[#allocation4 + $0x78] sm:$0xff] }
0x14f6   :  { %13821 = vst [vmem:[#allocation48_spill] sm:$0xff] %v11393_v6  ;;  %13822 = vst [vmem:[#allocation50_spill] sm:$0xff] %v11396_v19  ;;  %v11411_v16 = vld [vmem:[#allocation4 + $0x58] sm:$0xff] }
0x14f7   :  { %v4699_v20 = vmul.f32 %v4693_v52, %v11173_v51  ;;  %v4698_v38 = vadd.f32 0.5, %v4697_v9  ;;  %v11309_v51 = vld [vmem:[#allocation4 + $0x178] sm:$0xff]  ;;  %13823 = vst [vmem:[#allocation65_spill] sm:$0xff] %v11399_v41  ;;  %v11402_v52 = vld [vmem:[#allocation4 + $0x60] sm:$0xff]  ;;  %13827 = vst [vmem:[#allocation160_spill] sm:$0xff] %v11411_v16 }
0x14f8   :  { %13824 = vst [vmem:[#allocation67_spill] sm:$0xff] %v11402_v52  ;;  %v11414_v9 = vld [vmem:[#allocation4 + $0x40] sm:$0xff] }
0x14f9   :  { %v11291_v36 = vadd.f32 %v4700_v47, %v4699_v20  ;;  %v11405_v47 = vld [vmem:[#allocation4 + $0x70] sm:$0xff]  ;;  %v11408_v20 = vld [vmem:[#allocation4 + $0x48] sm:$0xff]  ;;  %13828 = vst [vmem:[#allocation52_spill] sm:$0xff] %v11414_v9 }
0x14fa   :  { %13825 = vst [vmem:[#allocation158_spill] sm:$0xff] %v11405_v47  ;;  %13826 = vst [vmem:[#allocation159_spill] sm:$0xff] %v11408_v20 }
0x14fb   :  { %7558 = vtanh.f32 %v11291_v36 }
0x1508   :  { %v7559_v45 = vpop.eup %7558 }
0x1509   :  { %v4703_v62 = vmul.f32 %v7559_v45, %v4698_v38  ;;  %v11417_v38 = vld [vmem:[#allocation4 + $0x50] sm:$0xff]  ;;  %v11420_v45 = vld [vmem:[#allocation4 + $0x28] sm:$0xff] }
0x150a   :  { %13829 = vst [vmem:[#allocation54_spill] sm:$0xff] %v11417_v38  ;;  %13830 = vst [vmem:[#allocation69_spill] sm:$0xff] %v11420_v45 }
0x150b   :  { %4774 = vmatmul.mubr.f32.vlgmr.msra.gmra.mxu0 %v4703_v62  ;;  %4845 = vmatmul.mubr.f32.vlgmr.msra.gmra.mxu1 %v4703_v62  ;;  %v11423_v62 = vld [vmem:[#allocation4 + $0x38] sm:$0xff] }
0x150c   :  { %4879 = vmatpush1.msra.mxu0 %v11176_v10  ;;  %4950 = vmatpush1.msra.mxu1 %v11179_v23  ;;  %13831 = vst [vmem:[#allocation71_spill] sm:$0xff] %v11423_v62 }
0x150d   :  { %4880 = vmatprep.subr.mxu0 %v11182_v8  ;;  %4951 = vmatprep.subr.mxu1 %v11185_v30 }
0x150e   :  { %4881 = vmatpush1.msra.mxu0 %v11188_v33  ;;  %4952 = vmatpush1.msra.mxu1 %v11191_v32 }
0x150f   :  { %4882 = vmatprep.subr.mxu0 %v11194_v31  ;;  %4953 = vmatprep.subr.mxu1 %v11197_v14 }
0x1510   :  { %4883 = vmatpush1.msra.mxu0 %v11200_v7  ;;  %4954 = vmatpush1.msra.mxu1 %v11203_v40 }
0x1511   :  { %4884 = vmatprep.subr.mxu0 %v11206_v35  ;;  %4955 = vmatprep.subr.mxu1 %v11209_v18 }
0x1512   :  { %4885 = vmatpush1.msra.mxu0 %v11212_v43  ;;  %4956 = vmatpush1.msra.mxu1 %v11215_v1 }
0x1513   :  { %4886 = vmatprep.subr.mxu0 %v11218_v4  ;;  %4957 = vmatprep.subr.mxu1 %v11309_v51 }
0x1514   :  { %4887 = vmatpush1.msra.mxu0 %v11222_v22  ;;  %4958 = vmatpush1.msra.mxu1 %v11313_v58 }
0x1515   :  { %4888 = vmatprep.subr.mxu0 %v11226_v21  ;;  %4959 = vmatprep.subr.mxu1 %v11317_v48 }
0x1516   :  { %4889 = vmatpush1.msra.mxu0 %v11230_v49  ;;  %4960 = vmatpush1.msra.mxu1 %v11321_v54 }
0x1517   :  { %4890 = vmatprep.subr.mxu0 %v11324_v50  ;;  %4961 = vmatprep.subr.mxu1 %v11327_v56 }
0x1518   :  { %4891 = vmatpush1.msra.mxu0 %v11330_v59  ;;  %4962 = vmatpush1.msra.mxu1 %v11333_v60 }
0x1519   :  { %4892 = vmatprep.subr.mxu0 %v11336_v63  ;;  %4963 = vmatprep.subr.mxu1 %v11339_v0 }
0x151a   :  { %4893 = vmatpush1.msra.mxu0 %v11342_v3  ;;  %4964 = vmatpush1.msra.mxu1 %v11345_v28 }
0x151b   :  { %4894 = vmatprep.subr.mxu0 %v11348_v25  ;;  %4965 = vmatprep.subr.mxu1 %v11351_v2 }
0x151c   :  { %4895 = vmatpush1.msra.mxu0 %v11354_v12  ;;  %4966 = vmatpush1.msra.mxu1 %v11357_v37 }
0x151d   :  { %4896 = vmatprep.subr.mxu0 %v11360_v11  ;;  %4967 = vmatprep.subr.mxu1 %v11363_v24 }
0x151e   :  { %4897 = vmatpush1.msra.mxu0 %v11366_v34  ;;  %4968 = vmatpush1.msra.mxu1 %v11369_v42 }
0x151f   :  { %4898 = vmatprep.subr.mxu0 %v11372_v17  ;;  %4969 = vmatprep.subr.mxu1 %v11375_v27 }
0x1520   :  { %4899 = vmatpush1.msra.mxu0 %v11378_v39  ;;  %4970 = vmatpush1.msra.mxu1 %v11381_v13 }
0x1521   :  { %4900 = vmatprep.subr.mxu0 %v11384_v57  ;;  %4971 = vmatprep.subr.mxu1 %v11387_v5 }
0x1522   :  { %4901 = vmatpush1.msra.mxu0 %v11390_v15  ;;  %4972 = vmatpush1.msra.mxu1 %v11393_v6 }
0x1523   :  { %4902 = vmatprep.subr.mxu0 %v11396_v19  ;;  %4973 = vmatprep.subr.mxu1 %v11399_v41  ;;  %v13840_v19 = vld [vmem:[#allocation113_spill] sm:$0xff] }
0x1524   :  { %4903 = vmatpush1.msra.mxu0 %v11402_v52  ;;  %4974 = vmatpush1.msra.mxu1 %v11405_v47  ;;  %v697_v6 = vadd.f32 %v13840_v19, %v9089_v26 }
0x1525   :  { %4904 = vmatprep.subr.mxu0 %v11408_v20  ;;  %4975 = vmatprep.subr.mxu1 %v11411_v16  ;;  %v11426_v20 = vld [vmem:[#allocation4 + $0x20] sm:$0xff]  ;;  %v11429_v16 = vld [vmem:[#allocation4 + $0x30] sm:$0xff] }
0x1526   :  { %4905 = vmatpush1.msra.mxu0 %v11414_v9  ;;  %4976 = vmatpush1.msra.mxu1 %v11417_v38  ;;  %13832 = vst [vmem:[#allocation56_spill] sm:$0xff] %v11426_v20  ;;  %13833 = vst [vmem:[#allocation58_spill] sm:$0xff] %v11429_v16  ;;  %v11432_v9 = vld [vmem:[#allocation4 + $0x8] sm:$0xff]  ;;  %v11435_v38 = vld [vmem:[#allocation4 + $0x18] sm:$0xff] }
0x1527   :  { %4906 = vmatprep.subr.mxu0 %v11420_v45  ;;  %4977 = vmatprep.subr.mxu1 %v11423_v62  ;;  %13834 = vst [vmem:[#allocation73_spill] sm:$0xff] %v11432_v9  ;;  %13835 = vst [vmem:[#allocation75_spill] sm:$0xff] %v11435_v38  ;;  %v11438_v45 = vld [vmem:[#allocation4] sm:$0xff]  ;;  %v11442_v62 = vld [vmem:[#allocation4 + $0x10] sm:$0xff] }
0x1528   :  { %4907 = vmatpush1.msra.mxu0 %v11426_v20  ;;  %4978 = vmatpush1.msra.mxu1 %v11429_v16  ;;  %13836 = vst [vmem:[#allocation60_spill] sm:$0xff] %v11438_v45  ;;  %13837 = vst [vmem:[#allocation62_spill] sm:$0xff] %v11442_v62  ;;  %v13839_v20 = vld [vmem:[#allocation98_spill] sm:$0xff] }
0x1529   :  { %4908 = vmatprep.subr.mxu0 %v11432_v9  ;;  %4979 = vmatprep.subr.mxu1 %v11435_v38  ;;  %v13838_v9 = vld [vmem:[#allocation96_spill] sm:$0xff]  ;;  %v418_v47 = vadd.f32 %v13839_v20, %v13813_v61 }
0x152a   :  { %4909 = vmatpush1.msra.mxu0 %v11438_v45  ;;  %4942 = vmatprep.mubr.f32.mxu0 %v13807_v44  ;;  %v416_v16 = vadd.f32 %v13838_v9, %v13811_v55  ;;  %v13841_v9 = vld [vmem:[#allocation115_spill] sm:$0xff] }
0x152b   :  { %4980 = vmatpush1.msra.mxu1 %v11442_v62  ;;  %5013 = vmatprep.mubr.f32.mxu1 %v13807_v44  ;;  %v699_v55 = vadd.f32 %v13841_v9, %v9097_v29  ;;  %v13849_v9 = vld [vmem:[#allocation67_spill] sm:$0xff] }
0x152c   :  { %5047 = vmatprep.subr.mxu0 %v11276_v46  ;;  %5118 = vmatprep.subr.mxu1 %v11279_v53 }
0x15cb   :  { %v4775_v38 = vpop.f32.mrf.mxu0  ;;  %v4846_v52 = vpop.f32.mrf.mxu1 }
0x15cc   :  { %v4851_v45 = vadd.f32 %v4775_v38, %v416_v16  ;;  %v4853_v44 = vadd.f32 %v4846_v52, %v697_v6 }
0x15cd   :  { %v4777_v41 = vpop.f32.mrf.mxu0  ;;  %v4848_v53 = vpop.f32.mrf.mxu1 }
0x15ce   :  { %v4855_v62 = vmul.f32 0.5, %v4851_v45  ;;  %v4852_v15 = vadd.f32 %v4777_v41, %v418_v47  ;;  %v4854_v5 = vadd.f32 %v4848_v53, %v699_v55  ;;  %v13847_v47 = vld [vmem:[#allocation50_spill] sm:$0xff] }
0x15d0   :  { %7560 = vtanh.f32 %v4855_v62  ;;  %v4859_v46 = vmul.f32 0.5, %v4852_v15  ;;  %v4864_v57 = vmul.f32 0.5, %v4854_v5  ;;  %v13846_v5 = vld [vmem:[#allocation48_spill] sm:$0xff]  ;;  %v13848_v62 = vld [vmem:[#allocation65_spill] sm:$0xff] }
0x15d2   :  { %7562 = vtanh.f32 %v4859_v46 }
0x15d3   :  { %7564 = vtanh.f32 %v4853_v44 }
0x15d4   :  { %7566 = vtanh.f32 %v4864_v57  ;;  %v13845_v57 = vld [vmem:[#allocation18_spill] sm:$0xff] }
0x15dd   :  { %v7561_v20 = vpop.eup %7560 }
0x15de   :  { %v4857_v16 = vmul.f32 0.5, %v7561_v20  ;;  %v13850_v20 = vld [vmem:[#allocation158_spill] sm:$0xff] }
0x15df   :  { %v7563_v38 = vpop.eup %7562 }
0x15e0   :  { %v4858_v61 = vadd.f32 0.5, %v4857_v16  ;;  %v4861_v13 = vmul.f32 0.5, %v7563_v38  ;;  %v7565_v19 = vpop.eup %7564  ;;  %v13851_v16 = vld [vmem:[#allocation159_spill] sm:$0xff]  ;;  %v13852_v38 = vld [vmem:[#allocation160_spill] sm:$0xff] }
0x15e1   :  { %v7567_v44 = vpop.eup %7566 }
0x15e2   :  { %v4862_v45 = vadd.f32 0.5, %v4861_v13  ;;  %v4869_v41 = vmul.f32 %v7565_v19, %v4858_v61  ;;  %v4866_v46 = vmul.f32 0.5, %v7567_v44  ;;  %v13842_v61 = vld [vmem:[#allocation156_spill] sm:$0xff] }
0x15e3   :  { %v13844_v13 = vld [vmem:[#allocation16_spill] sm:$0xff] }
0x15e4   :  { %v4868_v6 = vmul.f32 %v4862_v45, %v11291_v36  ;;  %v4867_v52 = vadd.f32 0.5, %v4866_v46  ;;  %v13843_v36 = vld [vmem:[#allocation157_spill] sm:$0xff]  ;;  %v13853_v19 = vld [vmem:[#allocation52_spill] sm:$0xff]  ;;  %v13854_v45 = vld [vmem:[#allocation54_spill] sm:$0xff] }
0x15e5   :  { %v13857_v44 = vld [vmem:[#allocation56_spill] sm:$0xff]  ;;  %v13858_v46 = vld [vmem:[#allocation58_spill] sm:$0xff] }
0x15e6   :  { %v11457_v15 = vadd.f32 %v4869_v41, %v4868_v6  ;;  %v13855_v41 = vld [vmem:[#allocation69_spill] sm:$0xff]  ;;  %v13856_v6 = vld [vmem:[#allocation71_spill] sm:$0xff] }
0x15e8   :  { %7568 = vtanh.f32 %v11457_v15 }
0x15f5   :  { %v7569_v53 = vpop.eup %7568 }
0x15f6   :  { %v4872_v55 = vmul.f32 %v7569_v53, %v4867_v52  ;;  %v13859_v52 = vld [vmem:[#allocation73_spill] sm:$0xff]  ;;  %v13860_v53 = vld [vmem:[#allocation75_spill] sm:$0xff] }
0x15f8   :  { %4943 = vmatmul.mubr.f32.vlgmr.msra.gmra.mxu0 %v4872_v55  ;;  %5014 = vmatmul.mubr.f32.vlgmr.msra.gmra.mxu1 %v4872_v55  ;;  %v13861_v55 = vld [vmem:[#allocation60_spill] sm:$0xff] }
0x15f9   :  { %5048 = vmatpush1.msra.mxu0 %v11176_v10  ;;  %5119 = vmatpush1.msra.mxu1 %v11179_v23 }
0x15fa   :  { %5049 = vmatprep.subr.mxu0 %v11182_v8  ;;  %5120 = vmatprep.subr.mxu1 %v11185_v30 }
0x15fb   :  { %5050 = vmatpush1.msra.mxu0 %v11188_v33  ;;  %5121 = vmatpush1.msra.mxu1 %v11191_v32 }
0x15fc   :  { %5051 = vmatprep.subr.mxu0 %v11194_v31  ;;  %5122 = vmatprep.subr.mxu1 %v11197_v14 }
0x15fd   :  { %5052 = vmatpush1.msra.mxu0 %v11200_v7  ;;  %5123 = vmatpush1.msra.mxu1 %v11203_v40 }
0x15fe   :  { %5053 = vmatprep.subr.mxu0 %v11206_v35  ;;  %5124 = vmatprep.subr.mxu1 %v11209_v18 }
0x15ff   :  { %5054 = vmatpush1.msra.mxu0 %v11212_v43  ;;  %5125 = vmatpush1.msra.mxu1 %v11215_v1 }
0x1600   :  { %5055 = vmatprep.subr.mxu0 %v11218_v4  ;;  %5126 = vmatprep.subr.mxu1 %v11309_v51 }
0x1601   :  { %5056 = vmatpush1.msra.mxu0 %v11222_v22  ;;  %5127 = vmatpush1.msra.mxu1 %v11313_v58 }
0x1602   :  { %5057 = vmatprep.subr.mxu0 %v11226_v21  ;;  %5128 = vmatprep.subr.mxu1 %v11317_v48 }
0x1603   :  { %5058 = vmatpush1.msra.mxu0 %v11230_v49  ;;  %5129 = vmatpush1.msra.mxu1 %v11321_v54 }
0x1604   :  { %5059 = vmatprep.subr.mxu0 %v11324_v50  ;;  %5130 = vmatprep.subr.mxu1 %v11327_v56 }
0x1605   :  { %5060 = vmatpush1.msra.mxu0 %v11330_v59  ;;  %5131 = vmatpush1.msra.mxu1 %v11333_v60 }
0x1606   :  { %5061 = vmatprep.subr.mxu0 %v11336_v63  ;;  %5132 = vmatprep.subr.mxu1 %v11339_v0 }
0x1607   :  { %5062 = vmatpush1.msra.mxu0 %v11342_v3  ;;  %5133 = vmatpush1.msra.mxu1 %v11345_v28 }
0x1608   :  { %5063 = vmatprep.subr.mxu0 %v11348_v25  ;;  %5134 = vmatprep.subr.mxu1 %v11351_v2 }
0x1609   :  { %5064 = vmatpush1.msra.mxu0 %v11354_v12  ;;  %5135 = vmatpush1.msra.mxu1 %v11357_v37 }
0x160a   :  { %5065 = vmatprep.subr.mxu0 %v11360_v11  ;;  %5136 = vmatprep.subr.mxu1 %v11363_v24 }
0x160b   :  { %5066 = vmatpush1.msra.mxu0 %v11366_v34  ;;  %5137 = vmatpush1.msra.mxu1 %v11369_v42 }
0x160c   :  { %5067 = vmatprep.subr.mxu0 %v11372_v17  ;;  %5138 = vmatprep.subr.mxu1 %v11375_v27 }
0x160d   :  { %5068 = vmatpush1.msra.mxu0 %v11378_v39  ;;  %5139 = vmatpush1.msra.mxu1 %v13842_v61 }
0x160e   :  { %5069 = vmatprep.subr.mxu0 %v13843_v36  ;;  %5140 = vmatprep.subr.mxu1 %v13844_v13 }
0x160f   :  { %5070 = vmatpush1.msra.mxu0 %v13845_v57  ;;  %5141 = vmatpush1.msra.mxu1 %v13846_v5 }
0x1610   :  { %5071 = vmatprep.subr.mxu0 %v13847_v47  ;;  %5142 = vmatprep.subr.mxu1 %v13848_v62  ;;  %v13870_v47 = vld [vmem:[#allocation117_spill] sm:$0xff] }
0x1611   :  { %5072 = vmatpush1.msra.mxu0 %v13849_v9  ;;  %5143 = vmatpush1.msra.mxu1 %v13850_v20  ;;  %v13868_v20 = vld [vmem:[#allocation143_spill] sm:$0xff]  ;;  %v703_v5 = vadd.f32 %v13870_v47, %v9089_v26 }
0x1612   :  { %5073 = vmatprep.subr.mxu0 %v13851_v16  ;;  %5144 = vmatprep.subr.mxu1 %v13852_v38  ;;  %v13862_v16 = vmov 0.0   ;;  %v13863_v38 = vld [vmem:[#allocation62_spill] sm:$0xff] }
0x1613   :  { %5074 = vmatpush1.msra.mxu0 %v13853_v19  ;;  %5145 = vmatpush1.msra.mxu1 %v13854_v45  ;;  %v13864_v45 = vld [vmem:[#allocation154_spill] sm:$0xff] }
0x1614   :  { %5075 = vmatprep.subr.mxu0 %v13855_v41  ;;  %5146 = vmatprep.subr.mxu1 %v13856_v6  ;;  %v13865_v41 = vld [vmem:[#allocation155_spill] sm:$0xff]  ;;  %v13866_v6 = vld [vmem:[#allocation145_spill] sm:$0xff] }
0x1615   :  { %5076 = vmatpush1.msra.mxu0 %v13857_v44  ;;  %5147 = vmatpush1.msra.mxu1 %v13858_v46  ;;  %v13867_v44 = vld [vmem:[#allocation100_spill] sm:$0xff] }
0x1616   :  { %5077 = vmatprep.subr.mxu0 %v13859_v52  ;;  %5148 = vmatprep.subr.mxu1 %v13860_v53  ;;  %v422_v19 = vadd.f32 %v13867_v44, %v13866_v6  ;;  %v13869_v52 = vld [vmem:[#allocation102_spill] sm:$0xff]  ;;  %v13871_v44 = vld [vmem:[#allocation119_spill] sm:$0xff] }
0x1617   :  { %5078 = vmatpush1.msra.mxu0 %v13861_v55  ;;  %5111 = vmatprep.mubr.f32.mxu0 %v13862_v16  ;;  %v424_v9 = vadd.f32 %v13869_v52, %v13868_v20  ;;  %v705_v6 = vadd.f32 %v13871_v44, %v9097_v29  ;;  %v13879_v44 = vld [vmem:[#allocation67_spill] sm:$0xff] }
0x1618   :  { %5149 = vmatpush1.msra.mxu1 %v13863_v38  ;;  %5182 = vmatprep.mubr.f32.mxu1 %v13862_v16 }
0x1619   :  { %5216 = vmatprep.subr.mxu0 %v13864_v45  ;;  %5287 = vmatprep.subr.mxu1 %v13865_v41 }
0x16b8   :  { %v4944_v46 = vpop.f32.mrf.mxu0  ;;  %v5015_v62 = vpop.f32.mrf.mxu1 }
0x16b9   :  { %v5020_v53 = vadd.f32 %v4944_v46, %v422_v19  ;;  %v5022_v16 = vadd.f32 %v5015_v62, %v703_v5 }
0x16ba   :  { %v4946_v55 = vpop.f32.mrf.mxu0  ;;  %v5017_v41 = vpop.f32.mrf.mxu1 }
0x16bb   :  { %v5024_v38 = vmul.f32 0.5, %v5020_v53  ;;  %v5021_v57 = vadd.f32 %v4946_v55, %v424_v9  ;;  %v5023_v13 = vadd.f32 %v5017_v41, %v705_v6  ;;  %v13876_v41 = vld [vmem:[#allocation48_spill] sm:$0xff]  ;;  %v13877_v6 = vld [vmem:[#allocation50_spill] sm:$0xff]  ;;  %v13878_v55 = vld [vmem:[#allocation65_spill] sm:$0xff] }
0x16bd   :  { %7570 = vtanh.f32 %v5024_v38  ;;  %v5028_v45 = vmul.f32 0.5, %v5021_v57  ;;  %v5033_v36 = vmul.f32 0.5, %v5023_v13 }
0x16bf   :  { %7572 = vtanh.f32 %v5028_v45 }
0x16c0   :  { %7574 = vtanh.f32 %v5022_v16 }
0x16c1   :  { %7576 = vtanh.f32 %v5033_v36  ;;  %v13874_v36 = vld [vmem:[#allocation16_spill] sm:$0xff] }
0x16ca   :  { %v7571_v52 = vpop.eup %7570 }
0x16cb   :  { %v5026_v19 = vmul.f32 0.5, %v7571_v52  ;;  %v13880_v52 = vld [vmem:[#allocation158_spill] sm:$0xff] }
0x16cc   :  { %v7573_v46 = vpop.eup %7572 }
0x16cd   :  { %v5027_v20 = vadd.f32 0.5, %v5026_v19  ;;  %v5030_v61 = vmul.f32 0.5, %v7573_v46  ;;  %v7575_v47 = vpop.eup %7574  ;;  %v13881_v19 = vld [vmem:[#allocation159_spill] sm:$0xff]  ;;  %v13882_v46 = vld [vmem:[#allocation160_spill] sm:$0xff] }
0x16ce   :  { %v7577_v62 = vpop.eup %7576 }
0x16cf   :  { %v5031_v53 = vadd.f32 0.5, %v5030_v61  ;;  %v5038_v9 = vmul.f32 %v7575_v47, %v5027_v20  ;;  %v5035_v16 = vmul.f32 0.5, %v7577_v62  ;;  %v13873_v61 = vld [vmem:[#allocation157_spill] sm:$0xff]  ;;  %v13875_v20 = vld [vmem:[#allocation18_spill] sm:$0xff]  ;;  %v13883_v47 = vld [vmem:[#allocation52_spill] sm:$0xff] }
0x16d0   :  { %v13887_v62 = vld [vmem:[#allocation56_spill] sm:$0xff] }
0x16d1   :  { %v5037_v5 = vmul.f32 %v5031_v53, %v11457_v15  ;;  %v5036_v38 = vadd.f32 0.5, %v5035_v16  ;;  %v13872_v15 = vld [vmem:[#allocation156_spill] sm:$0xff]  ;;  %v13884_v53 = vld [vmem:[#allocation54_spill] sm:$0xff] }
0x16d2   :  { %v13888_v16 = vld [vmem:[#allocation58_spill] sm:$0xff] }
0x16d3   :  { %v11535_v57 = vadd.f32 %v5038_v9, %v5037_v5  ;;  %v13885_v9 = vld [vmem:[#allocation69_spill] sm:$0xff]  ;;  %v13886_v5 = vld [vmem:[#allocation71_spill] sm:$0xff] }
0x16d5   :  { %7578 = vtanh.f32 %v11535_v57 }
0x16e2   :  { %v7579_v45 = vpop.eup %7578 }
0x16e3   :  { %v5041_v13 = vmul.f32 %v7579_v45, %v5036_v38  ;;  %v13889_v38 = vld [vmem:[#allocation73_spill] sm:$0xff]  ;;  %v13890_v45 = vld [vmem:[#allocation75_spill] sm:$0xff] }
0x16e5   :  { %5112 = vmatmul.mubr.f32.vlgmr.msra.gmra.mxu0 %v5041_v13  ;;  %5183 = vmatmul.mubr.f32.vlgmr.msra.gmra.mxu1 %v5041_v13  ;;  %v13891_v13 = vld [vmem:[#allocation60_spill] sm:$0xff] }
0x16e6   :  { %5217 = vmatpush1.msra.mxu0 %v11176_v10  ;;  %5288 = vmatpush1.msra.mxu1 %v11179_v23 }
0x16e7   :  { %5218 = vmatprep.subr.mxu0 %v11182_v8  ;;  %5289 = vmatprep.subr.mxu1 %v11185_v30 }
0x16e8   :  { %5219 = vmatpush1.msra.mxu0 %v11188_v33  ;;  %5290 = vmatpush1.msra.mxu1 %v11191_v32 }
0x16e9   :  { %5220 = vmatprep.subr.mxu0 %v11194_v31  ;;  %5291 = vmatprep.subr.mxu1 %v11197_v14 }
0x16ea   :  { %5221 = vmatpush1.msra.mxu0 %v11200_v7  ;;  %5292 = vmatpush1.msra.mxu1 %v11203_v40 }
0x16eb   :  { %5222 = vmatprep.subr.mxu0 %v11206_v35  ;;  %5293 = vmatprep.subr.mxu1 %v11209_v18 }
0x16ec   :  { %5223 = vmatpush1.msra.mxu0 %v11212_v43  ;;  %5294 = vmatpush1.msra.mxu1 %v11215_v1 }
0x16ed   :  { %5224 = vmatprep.subr.mxu0 %v11218_v4  ;;  %5295 = vmatprep.subr.mxu1 %v11309_v51 }
0x16ee   :  { %5225 = vmatpush1.msra.mxu0 %v11222_v22  ;;  %5296 = vmatpush1.msra.mxu1 %v11313_v58 }
0x16ef   :  { %5226 = vmatprep.subr.mxu0 %v11226_v21  ;;  %5297 = vmatprep.subr.mxu1 %v11317_v48 }
0x16f0   :  { %5227 = vmatpush1.msra.mxu0 %v11230_v49  ;;  %5298 = vmatpush1.msra.mxu1 %v11321_v54 }
0x16f1   :  { %5228 = vmatprep.subr.mxu0 %v11324_v50  ;;  %5299 = vmatprep.subr.mxu1 %v11327_v56 }
0x16f2   :  { %5229 = vmatpush1.msra.mxu0 %v11330_v59  ;;  %5300 = vmatpush1.msra.mxu1 %v11333_v60 }
0x16f3   :  { %5230 = vmatprep.subr.mxu0 %v11336_v63  ;;  %5301 = vmatprep.subr.mxu1 %v11339_v0 }
0x16f4   :  { %5231 = vmatpush1.msra.mxu0 %v11342_v3  ;;  %5302 = vmatpush1.msra.mxu1 %v11345_v28 }
0x16f5   :  { %5232 = vmatprep.subr.mxu0 %v11348_v25  ;;  %5303 = vmatprep.subr.mxu1 %v11351_v2 }
0x16f6   :  { %5233 = vmatpush1.msra.mxu0 %v11354_v12  ;;  %5304 = vmatpush1.msra.mxu1 %v11357_v37 }
0x16f7   :  { %5234 = vmatprep.subr.mxu0 %v11360_v11  ;;  %5305 = vmatprep.subr.mxu1 %v11363_v24 }
0x16f8   :  { %5235 = vmatpush1.msra.mxu0 %v11366_v34  ;;  %5306 = vmatpush1.msra.mxu1 %v11369_v42 }
0x16f9   :  { %5236 = vmatprep.subr.mxu0 %v11372_v17  ;;  %5307 = vmatprep.subr.mxu1 %v11375_v27 }
0x16fa   :  { %5237 = vmatpush1.msra.mxu0 %v11378_v39  ;;  %5308 = vmatpush1.msra.mxu1 %v13872_v15 }
0x16fb   :  { %5238 = vmatprep.subr.mxu0 %v13873_v61  ;;  %5309 = vmatprep.subr.mxu1 %v13874_v36 }
0x16fc   :  { %5239 = vmatpush1.msra.mxu0 %v13875_v20  ;;  %5310 = vmatpush1.msra.mxu1 %v13876_v41 }
0x16fd   :  { %5240 = vmatprep.subr.mxu0 %v13877_v6  ;;  %5311 = vmatprep.subr.mxu1 %v13878_v55  ;;  %v13900_v6 = vld [vmem:[#allocation121_spill] sm:$0xff] }
0x16fe   :  { %5241 = vmatpush1.msra.mxu0 %v13879_v44  ;;  %5312 = vmatpush1.msra.mxu1 %v13880_v52  ;;  %v13898_v52 = vld [vmem:[#allocation143_spill] sm:$0xff]  ;;  %v709_v41 = vadd.f32 %v13900_v6, %v9089_v26 }
0x16ff   :  { %5242 = vmatprep.subr.mxu0 %v13881_v19  ;;  %5313 = vmatprep.subr.mxu1 %v13882_v46  ;;  %v13892_v19 = vmov 0.0   ;;  %v13893_v46 = vld [vmem:[#allocation62_spill] sm:$0xff] }
0x1700   :  { %5243 = vmatpush1.msra.mxu0 %v13883_v47  ;;  %5314 = vmatpush1.msra.mxu1 %v13884_v53  ;;  %v13894_v53 = vld [vmem:[#allocation154_spill] sm:$0xff] }
0x1701   :  { %5244 = vmatprep.subr.mxu0 %v13885_v9  ;;  %5315 = vmatprep.subr.mxu1 %v13886_v5  ;;  %v13895_v9 = vld [vmem:[#allocation155_spill] sm:$0xff]  ;;  %v13896_v5 = vld [vmem:[#allocation145_spill] sm:$0xff] }
0x1702   :  { %5245 = vmatpush1.msra.mxu0 %v13887_v62  ;;  %5316 = vmatpush1.msra.mxu1 %v13888_v16  ;;  %v13897_v62 = vld [vmem:[#allocation104_spill] sm:$0xff] }
0x1703   :  { %5246 = vmatprep.subr.mxu0 %v13889_v38  ;;  %5317 = vmatprep.subr.mxu1 %v13890_v45  ;;  %v428_v47 = vadd.f32 %v13897_v62, %v13896_v5  ;;  %v13899_v38 = vld [vmem:[#allocation106_spill] sm:$0xff]  ;;  %v13901_v62 = vld [vmem:[#allocation123_spill] sm:$0xff] }
0x1704   :  { %5247 = vmatpush1.msra.mxu0 %v13891_v13  ;;  %5280 = vmatprep.mubr.f32.mxu0 %v13892_v19  ;;  %v430_v44 = vadd.f32 %v13899_v38, %v13898_v52  ;;  %v711_v5 = vadd.f32 %v13901_v62, %v9097_v29  ;;  %v13927_v62 = vld [vmem:[#allocation108_spill] sm:$0xff] }
0x1705   :  { %5318 = vmatpush1.msra.mxu1 %v13893_v46  ;;  %5351 = vmatprep.mubr.f32.mxu1 %v13892_v19 }
0x1706   :  { %5385 = vmatprep.subr.mxu0 %v13894_v53  ;;  %5456 = vmatprep.subr.mxu1 %v13895_v9 }
0x17a5   :  { %v5113_v16 = vpop.f32.mrf.mxu0  ;;  %v5184_v55 = vpop.f32.mrf.mxu1 }
0x17a6   :  { %v5189_v45 = vadd.f32 %v5113_v16, %v428_v47  ;;  %v5191_v19 = vadd.f32 %v5184_v55, %v709_v41 }
0x17a7   :  { %v5115_v13 = vpop.f32.mrf.mxu0  ;;  %v5186_v9 = vpop.f32.mrf.mxu1 }
0x17a8   :  { %v5193_v46 = vmul.f32 0.5, %v5189_v45  ;;  %v5190_v20 = vadd.f32 %v5115_v13, %v430_v44  ;;  %v5192_v36 = vadd.f32 %v5186_v9, %v711_v5  ;;  %v13924_v9 = vld [vmem:[#allocation154_spill] sm:$0xff]  ;;  %v13925_v5 = vld [vmem:[#allocation155_spill] sm:$0xff]  ;;  %v13926_v13 = vld [vmem:[#allocation145_spill] sm:$0xff] }
0x17aa   :  { %7580 = vtanh.f32 %v5193_v46  ;;  %v5197_v53 = vmul.f32 0.5, %v5190_v20  ;;  %v5202_v61 = vmul.f32 0.5, %v5192_v36 }
0x17ac   :  { %7582 = vtanh.f32 %v5197_v53 }
0x17ad   :  { %7584 = vtanh.f32 %v5191_v19 }
0x17ae   :  { %7586 = vtanh.f32 %v5202_v61  ;;  %v13922_v61 = vmov 0.0  }
0x17b7   :  { %v7581_v38 = vpop.eup %7580 }
0x17b8   :  { %v5195_v47 = vmul.f32 0.5, %v7581_v38  ;;  %v434_v38 = vadd.f32 %v13927_v62, %v13926_v13  ;;  %v13931_v62 = vld [vmem:[#allocation127_spill] sm:$0xff] }
0x17b9   :  { %v7583_v16 = vpop.eup %7582  ;;  %v717_v13 = vadd.f32 %v13931_v62, %v9097_v29  ;;  %v11715_v62 = vld [vmem:[#allocation4 + $0x1b8] sm:$0xff] }
0x17ba   :  { %v5196_v52 = vadd.f32 0.5, %v5195_v47  ;;  %v5199_v15 = vmul.f32 0.5, %v7583_v16  ;;  %v7585_v6 = vpop.eup %7584  ;;  %v13928_v16 = vld [vmem:[#allocation143_spill] sm:$0xff] }
0x17bb   :  { %v7587_v55 = vpop.eup %7586 }
0x17bc   :  { %v5200_v45 = vadd.f32 0.5, %v5199_v15  ;;  %v5207_v44 = vmul.f32 %v7585_v6, %v5196_v52  ;;  %v5204_v19 = vmul.f32 0.5, %v7587_v55  ;;  %v13921_v15 = vld [vmem:[#allocation60_spill] sm:$0xff]  ;;  %v13923_v52 = vld [vmem:[#allocation62_spill] sm:$0xff] }
0x17bd   :  { %v13929_v6 = vld [vmem:[#allocation110_spill] sm:$0xff] }
0x17be   :  { %v5206_v41 = vmul.f32 %v5200_v45, %v11535_v57  ;;  %v5205_v46 = vadd.f32 0.5, %v5204_v19  ;;  %v13920_v57 = vld [vmem:[#allocation75_spill] sm:$0xff]  ;;  %v436_v45 = vadd.f32 %v13929_v6, %v13928_v16  ;;  %v13930_v19 = vld [vmem:[#allocation125_spill] sm:$0xff] }
0x17c0   :  { %v11613_v20 = vadd.f32 %v5207_v44, %v5206_v41 }
0x17c2   :  { %7588 = vtanh.f32 %v11613_v20 }
0x17cf   :  { %v7589_v53 = vpop.eup %7588 }
0x17d0   :  { %v5210_v36 = vmul.f32 %v7589_v53, %v5205_v46  ;;  %v715_v46 = vadd.f32 %v13930_v19, %v9089_v26 }
0x17d2   :  { %5281 = vmatmul.mubr.f32.vlgmr.msra.gmra.mxu0 %v5210_v36  ;;  %5352 = vmatmul.mubr.f32.vlgmr.msra.gmra.mxu1 %v5210_v36 }
0x17d3   :  { %5386 = vmatpush1.msra.mxu0 %v11176_v10  ;;  %5457 = vmatpush1.msra.mxu1 %v11179_v23  ;;  %v13902_v10 = vld [vmem:[#allocation156_spill] sm:$0xff]  ;;  %v13903_v23 = vld [vmem:[#allocation157_spill] sm:$0xff] }
0x17d4   :  { %5387 = vmatprep.subr.mxu0 %v11182_v8  ;;  %5458 = vmatprep.subr.mxu1 %v11185_v30  ;;  %v13904_v8 = vld [vmem:[#allocation16_spill] sm:$0xff]  ;;  %v13905_v30 = vld [vmem:[#allocation18_spill] sm:$0xff] }
0x17d5   :  { %5388 = vmatpush1.msra.mxu0 %v11188_v33  ;;  %5459 = vmatpush1.msra.mxu1 %v11191_v32  ;;  %v13906_v33 = vld [vmem:[#allocation48_spill] sm:$0xff]  ;;  %v13907_v32 = vld [vmem:[#allocation50_spill] sm:$0xff] }
0x17d6   :  { %5389 = vmatprep.subr.mxu0 %v11194_v31  ;;  %5460 = vmatprep.subr.mxu1 %v11197_v14  ;;  %v13908_v31 = vld [vmem:[#allocation65_spill] sm:$0xff]  ;;  %v13909_v14 = vld [vmem:[#allocation67_spill] sm:$0xff] }
0x17d7   :  { %5390 = vmatpush1.msra.mxu0 %v11200_v7  ;;  %5461 = vmatpush1.msra.mxu1 %v11203_v40  ;;  %v13910_v7 = vld [vmem:[#allocation158_spill] sm:$0xff]  ;;  %v13911_v40 = vld [vmem:[#allocation159_spill] sm:$0xff] }
0x17d8   :  { %5391 = vmatprep.subr.mxu0 %v11206_v35  ;;  %5462 = vmatprep.subr.mxu1 %v11209_v18  ;;  %v13912_v35 = vld [vmem:[#allocation160_spill] sm:$0xff] }
0x17d9   :  { %5392 = vmatpush1.msra.mxu0 %v11212_v43  ;;  %5463 = vmatpush1.msra.mxu1 %v11215_v1  ;;  %v13913_v18 = vld [vmem:[#allocation52_spill] sm:$0xff]  ;;  %v13914_v43 = vld [vmem:[#allocation54_spill] sm:$0xff]  ;;  %v13915_v1 = vld [vmem:[#allocation69_spill] sm:$0xff] }
0x17da   :  { %5393 = vmatprep.subr.mxu0 %v11218_v4  ;;  %5464 = vmatprep.subr.mxu1 %v11309_v51  ;;  %v13916_v4 = vld [vmem:[#allocation71_spill] sm:$0xff] }
0x17db   :  { %5394 = vmatpush1.msra.mxu0 %v11222_v22  ;;  %5465 = vmatpush1.msra.mxu1 %v11313_v58  ;;  %v13917_v22 = vld [vmem:[#allocation56_spill] sm:$0xff] }
0x17dc   :  { %5395 = vmatprep.subr.mxu0 %v11226_v21  ;;  %5466 = vmatprep.subr.mxu1 %v11317_v48  ;;  %v13918_v21 = vld [vmem:[#allocation58_spill] sm:$0xff] }
0x17dd   :  { %5396 = vmatpush1.msra.mxu0 %v11230_v49  ;;  %5467 = vmatpush1.msra.mxu1 %v11321_v54  ;;  %v13919_v49 = vld [vmem:[#allocation73_spill] sm:$0xff] }
0x17de   :  { %5397 = vmatprep.subr.mxu0 %v11324_v50  ;;  %5468 = vmatprep.subr.mxu1 %v11327_v56 }
0x17df   :  { %5398 = vmatpush1.msra.mxu0 %v11330_v59  ;;  %5469 = vmatpush1.msra.mxu1 %v11333_v60 }
0x17e0   :  { %5399 = vmatprep.subr.mxu0 %v11336_v63  ;;  %5470 = vmatprep.subr.mxu1 %v11339_v0 }
0x17e1   :  { %5400 = vmatpush1.msra.mxu0 %v11342_v3  ;;  %5471 = vmatpush1.msra.mxu1 %v11345_v28 }
0x17e2   :  { %5401 = vmatprep.subr.mxu0 %v11348_v25  ;;  %5472 = vmatprep.subr.mxu1 %v11351_v2 }
0x17e3   :  { %5402 = vmatpush1.msra.mxu0 %v11354_v12  ;;  %5473 = vmatpush1.msra.mxu1 %v11357_v37 }
0x17e4   :  { %5403 = vmatprep.subr.mxu0 %v11360_v11  ;;  %5474 = vmatprep.subr.mxu1 %v11363_v24 }
0x17e5   :  { %5404 = vmatpush1.msra.mxu0 %v11366_v34  ;;  %5475 = vmatpush1.msra.mxu1 %v11369_v42 }
0x17e6   :  { %5405 = vmatprep.subr.mxu0 %v11372_v17  ;;  %5476 = vmatprep.subr.mxu1 %v11375_v27 }
0x17e7   :  { %5406 = vmatpush1.msra.mxu0 %v11378_v39  ;;  %5477 = vmatpush1.msra.mxu1 %v13902_v10 }
0x17e8   :  { %5407 = vmatprep.subr.mxu0 %v13903_v23  ;;  %5478 = vmatprep.subr.mxu1 %v13904_v8 }
0x17e9   :  { %5408 = vmatpush1.msra.mxu0 %v13905_v30  ;;  %5479 = vmatpush1.msra.mxu1 %v13906_v33 }
0x17ea   :  { %5409 = vmatprep.subr.mxu0 %v13907_v32  ;;  %5480 = vmatprep.subr.mxu1 %v13908_v31 }
0x17eb   :  { %5410 = vmatpush1.msra.mxu0 %v13909_v14  ;;  %5481 = vmatpush1.msra.mxu1 %v13910_v7 }
0x17ec   :  { %5411 = vmatprep.subr.mxu0 %v13911_v40  ;;  %5482 = vmatprep.subr.mxu1 %v13912_v35 }
0x17ed   :  { %5412 = vmatpush1.msra.mxu0 %v13913_v18  ;;  %5483 = vmatpush1.msra.mxu1 %v13914_v43 }
0x17ee   :  { %5413 = vmatprep.subr.mxu0 %v13915_v1  ;;  %5484 = vmatprep.subr.mxu1 %v13916_v4 }
0x17ef   :  { %5414 = vmatpush1.msra.mxu0 %v13917_v22  ;;  %5485 = vmatpush1.msra.mxu1 %v13918_v21 }
0x17f0   :  { %5415 = vmatprep.subr.mxu0 %v13919_v49  ;;  %5486 = vmatprep.subr.mxu1 %v13920_v57 }
0x17f1   :  { %5416 = vmatpush1.msra.mxu0 %v13921_v15  ;;  %5449 = vmatprep.mubr.f32.mxu0 %v13922_v61 }
0x17f2   :  { %5487 = vmatpush1.msra.mxu1 %v13923_v52  ;;  %5520 = vmatprep.mubr.f32.mxu1 %v13922_v61 }
0x17f3   :  { %5554 = vmatprep.subr.mxu0 %v13924_v9  ;;  %5625 = vmatprep.subr.mxu1 %v13925_v5 }
0x1892   :  { %v5282_v47 = vpop.f32.mrf.mxu0  ;;  %v5353_v41 = vpop.f32.mrf.mxu1 }
0x1893   :  { %v5358_v44 = vadd.f32 %v5282_v47, %v434_v38  ;;  %v5360_v52 = vadd.f32 %v5353_v41, %v715_v46 }
0x1894   :  { %v5284_v55 = vpop.f32.mrf.mxu0  ;;  %v5355_v5 = vpop.f32.mrf.mxu1 }
0x1895   :  { %v5362_v53 = vmul.f32 0.5, %v5358_v44  ;;  %v5359_v36 = vadd.f32 %v5284_v55, %v436_v45  ;;  %v5361_v61 = vadd.f32 %v5355_v5, %v717_v13  ;;  %v11712_v5 = vld [vmem:[#allocation4 + $0x1a8] sm:$0xff] }
0x1897   :  { %7590 = vtanh.f32 %v5362_v53  ;;  %v5366_v9 = vmul.f32 0.5, %v5359_v36  ;;  %v5371_v15 = vmul.f32 0.5, %v5361_v61  ;;  %v11694_v36 = vld [vmem:[#allocation4 + $0x1e0] sm:$0xff] }
0x1899   :  { %7592 = vtanh.f32 %v5366_v9  ;;  %v11709_v9 = vld [vmem:[#allocation4 + $0x1d0] sm:$0xff] }
0x189a   :  { %7594 = vtanh.f32 %v5360_v52 }
0x189b   :  { %7596 = vtanh.f32 %v5371_v15  ;;  %v11697_v15 = vld [vmem:[#allocation4 + $0x1f0] sm:$0xff] }
0x18a4   :  { %v7591_v6 = vpop.eup %7590 }
0x18a5   :  { %v5364_v38 = vmul.f32 0.5, %v7591_v6  ;;  %v11718_v6 = vld [vmem:[#allocation4 + $0x1a0] sm:$0xff] }
0x18a6   :  { %v7593_v47 = vpop.eup %7592 }
0x18a7   :  { %v5365_v16 = vadd.f32 0.5, %v5364_v38  ;;  %v5368_v57 = vmul.f32 0.5, %v7593_v47  ;;  %v7595_v19 = vpop.eup %7594  ;;  %v11721_v38 = vld [vmem:[#allocation4 + $0x1b0] sm:$0xff]  ;;  %v11724_v47 = vld [vmem:[#allocation4 + $0x188] sm:$0xff] }
0x18a8   :  { %v7597_v52 = vpop.eup %7596 }
0x18a9   :  { %v5369_v44 = vadd.f32 0.5, %v5368_v57  ;;  %v5376_v45 = vmul.f32 %v7595_v19, %v5365_v16  ;;  %v5373_v46 = vmul.f32 0.5, %v7597_v52  ;;  %v11703_v57 = vld [vmem:[#allocation4 + $0x1d8] sm:$0xff]  ;;  %v11706_v16 = vld [vmem:[#allocation4 + $0x1c0] sm:$0xff] }
0x18aa   :  { %v11727_v19 = vld [vmem:[#allocation4 + $0x198] sm:$0xff]  ;;  %v11740_v52 = vld [vmem:[#allocation4 + $0x160] sm:$0xff] }
0x18ab   :  { %v5375_v41 = vmul.f32 %v5369_v44, %v11613_v20  ;;  %v5374_v53 = vadd.f32 0.5, %v5373_v46  ;;  %v11700_v20 = vld [vmem:[#allocation4 + $0x1c8] sm:$0xff]  ;;  %v11730_v44 = vld [vmem:[#allocation4 + $0x180] sm:$0xff] }
0x18ac   :  { %v11744_v46 = vld [vmem:[#allocation4 + $0x148] sm:$0xff] }
0x18ad   :  { %v11691_v55 = vadd.f32 %v5376_v45, %v5375_v41  ;;  %v11733_v45 = vld [vmem:[#allocation4 + $0x190] sm:$0xff]  ;;  %v11736_v41 = vld [vmem:[#allocation4 + $0x168] sm:$0xff] }
0x18af   :  { %7598 = vtanh.f32 %v11691_v55 }
0x18bc   :  { %v7599_v13 = vpop.eup %7598 }
0x18bd   :  { %v5379_v61 = vmul.f32 %v7599_v13, %v5374_v53  ;;  %v11748_v53 = vld [vmem:[#allocation4 + $0x140] sm:$0xff] }
0x18bf   :  { %5450 = vmatmul.mubr.f32.vlgmr.msra.gmra.mxu0 %v5379_v61  ;;  %5521 = vmatmul.mubr.f32.vlgmr.msra.gmra.mxu1 %v5379_v61  ;;  %v11831_v61 = vld [vmem:[#allocation4 + $0x170] sm:$0xff] }
0x18c0   :  { %5555 = vmatpush1.msra.mxu0 %v11694_v36  ;;  %5626 = vmatpush1.msra.mxu1 %v11697_v15 }
0x18c1   :  { %5556 = vmatprep.subr.mxu0 %v11700_v20  ;;  %5627 = vmatprep.subr.mxu1 %v11703_v57 }
0x18c2   :  { %5557 = vmatpush1.msra.mxu0 %v11706_v16  ;;  %5628 = vmatpush1.msra.mxu1 %v11709_v9 }
0x18c3   :  { %5558 = vmatprep.subr.mxu0 %v11712_v5  ;;  %5629 = vmatprep.subr.mxu1 %v11715_v62 }
0x18c4   :  { %5559 = vmatpush1.msra.mxu0 %v11718_v6  ;;  %5630 = vmatpush1.msra.mxu1 %v11721_v38 }
0x18c5   :  { %5560 = vmatprep.subr.mxu0 %v11724_v47  ;;  %5631 = vmatprep.subr.mxu1 %v11727_v19 }
0x18c6   :  { %5561 = vmatpush1.msra.mxu0 %v11730_v44  ;;  %5632 = vmatpush1.msra.mxu1 %v11733_v45 }
0x18c7   :  { %5562 = vmatprep.subr.mxu0 %v11736_v41  ;;  %5633 = vmatprep.subr.mxu1 %v11309_v51  ;;  %v13932_v51 = vld [vmem:[#allocation75_spill] sm:$0xff] }
0x18c8   :  { %5563 = vmatpush1.msra.mxu0 %v11740_v52  ;;  %5634 = vmatpush1.msra.mxu1 %v11313_v58  ;;  %v13933_v58 = vld [vmem:[#allocation60_spill] sm:$0xff] }
0x18c9   :  { %5564 = vmatprep.subr.mxu0 %v11744_v46  ;;  %5635 = vmatprep.subr.mxu1 %v11317_v48  ;;  %v13934_v48 = vmov 0.0  }
0x18ca   :  { %5565 = vmatpush1.msra.mxu0 %v11748_v53  ;;  %5636 = vmatpush1.msra.mxu1 %v11321_v54  ;;  %v13935_v54 = vld [vmem:[#allocation62_spill] sm:$0xff] }
0x18cb   :  { %5566 = vmatprep.subr.mxu0 %v11324_v50  ;;  %5637 = vmatprep.subr.mxu1 %v11327_v56  ;;  %v11794_v50 = vld [vmem:[#allocation4 + $0x1e8] sm:$0xff]  ;;  %v11797_v56 = vld [vmem:[#allocation4 + $0x1f8] sm:$0xff] }
0x18cc   :  { %5567 = vmatpush1.msra.mxu0 %v11330_v59  ;;  %5638 = vmatpush1.msra.mxu1 %v11333_v60  ;;  %13936 = vst [vmem:[#allocation77_spill] sm:$0xff] %v11794_v50  ;;  %13937 = vst [vmem:[#allocation79_spill] sm:$0xff] %v11797_v56  ;;  %v13938_v59 = vld [vmem:[#allocation145_spill] sm:$0xff]  ;;  %v13939_v60 = vld [vmem:[#allocation112_spill] sm:$0xff] }
0x18cd   :  { %5568 = vmatprep.subr.mxu0 %v11336_v63  ;;  %5639 = vmatprep.subr.mxu1 %v11339_v0  ;;  %v440_v63 = vadd.f32 %v13939_v60, %v13938_v59  ;;  %v11845_v60 = vld [vmem:[#allocation4 + $0x138] sm:$0xff] }
0x18ce   :  { %5569 = vmatpush1.msra.mxu0 %v11342_v3  ;;  %5640 = vmatpush1.msra.mxu1 %v11345_v28  ;;  %v13940_v3 = vld [vmem:[#allocation143_spill] sm:$0xff]  ;;  %v13941_v28 = vld [vmem:[#allocation114_spill] sm:$0xff] }
0x18cf   :  { %5570 = vmatprep.subr.mxu0 %v11348_v25  ;;  %5641 = vmatprep.subr.mxu1 %v11351_v2  ;;  %v442_v25 = vadd.f32 %v13941_v28, %v13940_v3  ;;  %v11854_v28 = vld [vmem:[#allocation4 + $0x108] sm:$0xff] }
0x18d0   :  { %5571 = vmatpush1.msra.mxu0 %v11354_v12  ;;  %5642 = vmatpush1.msra.mxu1 %v11357_v37 }
0x18d1   :  { %5572 = vmatprep.subr.mxu0 %v11360_v11  ;;  %5643 = vmatprep.subr.mxu1 %v11363_v24  ;;  %v13942_v11 = vld [vmem:[#allocation128_spill] sm:$0xff] }
0x18d2   :  { %5573 = vmatpush1.msra.mxu0 %v11366_v34  ;;  %5644 = vmatpush1.msra.mxu1 %v11369_v42  ;;  %v721_v24 = vadd.f32 %v13942_v11, %v9089_v26  ;;  %v11869_v11 = vld [vmem:[#allocation4 + $0xf8] sm:$0xff] }
0x18d3   :  { %5574 = vmatprep.subr.mxu0 %v11372_v17  ;;  %5645 = vmatprep.subr.mxu1 %v11375_v27 }
0x18d4   :  { %5575 = vmatpush1.msra.mxu0 %v11378_v39  ;;  %5646 = vmatpush1.msra.mxu1 %v13902_v10  ;;  %v13943_v10 = vld [vmem:[#allocation130_spill] sm:$0xff] }
0x18d5   :  { %5576 = vmatprep.subr.mxu0 %v13903_v23  ;;  %5647 = vmatprep.subr.mxu1 %v13904_v8  ;;  %v723_v23 = vadd.f32 %v13943_v10, %v9097_v29  ;;  %v11890_v10 = vld [vmem:[#allocation4 + $0xa8] sm:$0xff] }
0x18d6   :  { %5577 = vmatpush1.msra.mxu0 %v13905_v30  ;;  %5648 = vmatpush1.msra.mxu1 %v13906_v33 }
0x18d7   :  { %5578 = vmatprep.subr.mxu0 %v13907_v32  ;;  %5649 = vmatprep.subr.mxu1 %v13908_v31 }
0x18d8   :  { %5579 = vmatpush1.msra.mxu0 %v13909_v14  ;;  %5650 = vmatpush1.msra.mxu1 %v13910_v7 }
0x18d9   :  { %5580 = vmatprep.subr.mxu0 %v13911_v40  ;;  %5651 = vmatprep.subr.mxu1 %v13912_v35 }
0x18da   :  { %5581 = vmatpush1.msra.mxu0 %v13913_v18  ;;  %5652 = vmatpush1.msra.mxu1 %v13914_v43 }
0x18db   :  { %5582 = vmatprep.subr.mxu0 %v13915_v1  ;;  %5653 = vmatprep.subr.mxu1 %v13916_v4 }
0x18dc   :  { %5583 = vmatpush1.msra.mxu0 %v13917_v22  ;;  %5654 = vmatpush1.msra.mxu1 %v13918_v21 }
0x18dd   :  { %5584 = vmatprep.subr.mxu0 %v13919_v49  ;;  %5655 = vmatprep.subr.mxu1 %v13932_v51  ;;  %v11835_v51 = vld [vmem:[#allocation4 + $0x158] sm:$0xff] }
0x18de   :  { %5585 = vmatpush1.msra.mxu0 %v13933_v58  ;;  %5618 = vmatprep.mubr.f32.mxu0 %v13934_v48  ;;  %v11839_v58 = vld [vmem:[#allocation4 + $0x150] sm:$0xff] }
0x18df   :  { %5656 = vmatpush1.msra.mxu1 %v13935_v54  ;;  %5689 = vmatprep.mubr.f32.mxu1 %v13934_v48  ;;  %v11842_v54 = vld [vmem:[#allocation4 + $0x128] sm:$0xff] }
0x18e0   :  { %5723 = vmatprep.subr.mxu0 %v11794_v50  ;;  %5794 = vmatprep.subr.mxu1 %v11797_v56 }
0x197f   :  { %v5451_v0 = vpop.f32.mrf.mxu0  ;;  %v5522_v12 = vpop.f32.mrf.mxu1 }
0x1980   :  { %v5527_v2 = vadd.f32 %v5451_v0, %v440_v63  ;;  %v5529_v17 = vadd.f32 %v5522_v12, %v721_v24  ;;  %v11848_v63 = vld [vmem:[#allocation4 + $0x120] sm:$0xff]  ;;  %v11851_v0 = vld [vmem:[#allocation4 + $0x130] sm:$0xff] }
0x1981   :  { %v5453_v37 = vpop.f32.mrf.mxu0  ;;  %v5524_v39 = vpop.f32.mrf.mxu1  ;;  %v11863_v12 = vld [vmem:[#allocation4 + $0x110] sm:$0xff]  ;;  %v11872_v24 = vld [vmem:[#allocation4 + $0xe0] sm:$0xff] }
0x1982   :  { %v5531_v34 = vmul.f32 0.5, %v5527_v2  ;;  %v5528_v42 = vadd.f32 %v5453_v37, %v442_v25  ;;  %v5530_v8 = vadd.f32 %v5524_v39, %v723_v23  ;;  %v11857_v25 = vld [vmem:[#allocation4 + $0x118] sm:$0xff]  ;;  %v11860_v2 = vld [vmem:[#allocation4 + $0x100] sm:$0xff]  ;;  %v11866_v37 = vld [vmem:[#allocation4 + $0xe8] sm:$0xff] }
0x1983   :  { %v11887_v39 = vld [vmem:[#allocation4 + $0xd0] sm:$0xff]  ;;  %v11893_v23 = vld [vmem:[#allocation4 + $0xb8] sm:$0xff] }
0x1984   :  { %7600 = vtanh.f32 %v5531_v34  ;;  %v5535_v27 = vmul.f32 0.5, %v5528_v42  ;;  %v5540_v30 = vmul.f32 0.5, %v5530_v8  ;;  %v11875_v34 = vld [vmem:[#allocation4 + $0xf0] sm:$0xff]  ;;  %v11878_v42 = vld [vmem:[#allocation4 + $0xc8] sm:$0xff]  ;;  %v11896_v8 = vld [vmem:[#allocation4 + $0xa0] sm:$0xff] }
0x1986   :  { %7602 = vtanh.f32 %v5535_v27  ;;  %v11884_v27 = vld [vmem:[#allocation4 + $0xc0] sm:$0xff] }
0x1987   :  { %7604 = vtanh.f32 %v5529_v17  ;;  %v11881_v17 = vld [vmem:[#allocation4 + $0xd8] sm:$0xff] }
0x1988   :  { %7606 = vtanh.f32 %v5540_v30  ;;  %v11899_v30 = vld [vmem:[#allocation4 + $0xb0] sm:$0xff] }
0x1989   :  { %13944 = vst [vmem:[#allocation64_spill] sm:$0xff] %v11899_v30 }
0x1991   :  { %v7601_v33 = vpop.eup %7600 }
0x1992   :  { %v5533_v32 = vmul.f32 0.5, %v7601_v33  ;;  %v11902_v33 = vld [vmem:[#allocation4 + $0x88] sm:$0xff] }
0x1993   :  { %v7603_v31 = vpop.eup %7602  ;;  %13945 = vst [vmem:[#allocation66_spill] sm:$0xff] %v11902_v33 }
0x1994   :  { %v5534_v14 = vadd.f32 0.5, %v5533_v32  ;;  %v5537_v7 = vmul.f32 0.5, %v7603_v31  ;;  %v7605_v40 = vpop.eup %7604  ;;  %v11905_v32 = vld [vmem:[#allocation4 + $0x98] sm:$0xff]  ;;  %v11908_v31 = vld [vmem:[#allocation4 + $0x80] sm:$0xff] }
0x1995   :  { %v7607_v4 = vpop.eup %7606  ;;  %13946 = vst [vmem:[#allocation81_spill] sm:$0xff] %v11905_v32  ;;  %13947 = vst [vmem:[#allocation83_spill] sm:$0xff] %v11908_v31 }
0x1996   :  { %v5538_v35 = vadd.f32 0.5, %v5537_v7  ;;  %v5545_v18 = vmul.f32 %v7605_v40, %v5534_v14  ;;  %v5542_v22 = vmul.f32 0.5, %v7607_v4  ;;  %v11911_v14 = vld [vmem:[#allocation4 + $0x90] sm:$0xff]  ;;  %v11914_v7 = vld [vmem:[#allocation4 + $0x68] sm:$0xff]  ;;  %v11917_v40 = vld [vmem:[#allocation4 + $0x78] sm:$0xff] }
0x1997   :  { %13948 = vst [vmem:[#allocation163_spill] sm:$0xff] %v11911_v14  ;;  %13949 = vst [vmem:[#allocation164_spill] sm:$0xff] %v11914_v7  ;;  %v11929_v4 = vld [vmem:[#allocation4 + $0x58] sm:$0xff] }
0x1998   :  { %v5544_v43 = vmul.f32 %v5538_v35, %v11691_v55  ;;  %v5543_v21 = vadd.f32 0.5, %v5542_v22  ;;  %v11827_v55 = vld [vmem:[#allocation4 + $0x178] sm:$0xff]  ;;  %13950 = vst [vmem:[#allocation165_spill] sm:$0xff] %v11917_v40  ;;  %v11920_v35 = vld [vmem:[#allocation4 + $0x60] sm:$0xff]  ;;  %13954 = vst [vmem:[#allocation22_spill] sm:$0xff] %v11929_v4 }
0x1999   :  { %13951 = vst [vmem:[#allocation166_spill] sm:$0xff] %v11920_v35  ;;  %v11932_v22 = vld [vmem:[#allocation4 + $0x40] sm:$0xff] }
0x199a   :  { %v11809_v1 = vadd.f32 %v5545_v18, %v5544_v43  ;;  %v11923_v18 = vld [vmem:[#allocation4 + $0x70] sm:$0xff]  ;;  %v11926_v43 = vld [vmem:[#allocation4 + $0x48] sm:$0xff]  ;;  %13955 = vst [vmem:[#allocation28_spill] sm:$0xff] %v11932_v22 }
0x199b   :  { %13952 = vst [vmem:[#allocation167_spill] sm:$0xff] %v11923_v18  ;;  %13953 = vst [vmem:[#allocation19_spill] sm:$0xff] %v11926_v43 }
0x199c   :  { %7608 = vtanh.f32 %v11809_v1 }
0x19a9   :  { %v7609_v49 = vpop.eup %7608 }
0x19aa   :  { %v5548_v13 = vmul.f32 %v7609_v49, %v5543_v21  ;;  %v11935_v21 = vld [vmem:[#allocation4 + $0x50] sm:$0xff]  ;;  %v11938_v49 = vld [vmem:[#allocation4 + $0x28] sm:$0xff] }
0x19ab   :  { %13956 = vst [vmem:[#allocation30_spill] sm:$0xff] %v11935_v21  ;;  %13957 = vst [vmem:[#allocation45_spill] sm:$0xff] %v11938_v49 }
0x19ac   :  { %5619 = vmatmul.mubr.f32.vlgmr.msra.gmra.mxu0 %v5548_v13  ;;  %5690 = vmatmul.mubr.f32.vlgmr.msra.gmra.mxu1 %v5548_v13  ;;  %v11941_v13 = vld [vmem:[#allocation4 + $0x38] sm:$0xff] }
0x19ad   :  { %5724 = vmatpush1.msra.mxu0 %v11694_v36  ;;  %5795 = vmatpush1.msra.mxu1 %v11697_v15  ;;  %13958 = vst [vmem:[#allocation47_spill] sm:$0xff] %v11941_v13 }
0x19ae   :  { %5725 = vmatprep.subr.mxu0 %v11700_v20  ;;  %5796 = vmatprep.subr.mxu1 %v11703_v57 }
0x19af   :  { %5726 = vmatpush1.msra.mxu0 %v11706_v16  ;;  %5797 = vmatpush1.msra.mxu1 %v11709_v9 }
0x19b0   :  { %5727 = vmatprep.subr.mxu0 %v11712_v5  ;;  %5798 = vmatprep.subr.mxu1 %v11715_v62 }
0x19b1   :  { %5728 = vmatpush1.msra.mxu0 %v11718_v6  ;;  %5799 = vmatpush1.msra.mxu1 %v11721_v38 }
0x19b2   :  { %5729 = vmatprep.subr.mxu0 %v11724_v47  ;;  %5800 = vmatprep.subr.mxu1 %v11727_v19 }
0x19b3   :  { %5730 = vmatpush1.msra.mxu0 %v11730_v44  ;;  %5801 = vmatpush1.msra.mxu1 %v11733_v45 }
0x19b4   :  { %5731 = vmatprep.subr.mxu0 %v11736_v41  ;;  %5802 = vmatprep.subr.mxu1 %v11827_v55 }
0x19b5   :  { %5732 = vmatpush1.msra.mxu0 %v11740_v52  ;;  %5803 = vmatpush1.msra.mxu1 %v11831_v61 }
0x19b6   :  { %5733 = vmatprep.subr.mxu0 %v11744_v46  ;;  %5804 = vmatprep.subr.mxu1 %v11835_v51 }
0x19b7   :  { %5734 = vmatpush1.msra.mxu0 %v11748_v53  ;;  %5805 = vmatpush1.msra.mxu1 %v11839_v58 }
0x19b8   :  { %5735 = vmatprep.subr.mxu0 %v11842_v54  ;;  %5806 = vmatprep.subr.mxu1 %v11845_v60 }
0x19b9   :  { %5736 = vmatpush1.msra.mxu0 %v11848_v63  ;;  %5807 = vmatpush1.msra.mxu1 %v11851_v0 }
0x19ba   :  { %5737 = vmatprep.subr.mxu0 %v11854_v28  ;;  %5808 = vmatprep.subr.mxu1 %v11857_v25 }
0x19bb   :  { %5738 = vmatpush1.msra.mxu0 %v11860_v2  ;;  %5809 = vmatpush1.msra.mxu1 %v11863_v12 }
0x19bc   :  { %5739 = vmatprep.subr.mxu0 %v11866_v37  ;;  %5810 = vmatprep.subr.mxu1 %v11869_v11 }
0x19bd   :  { %5740 = vmatpush1.msra.mxu0 %v11872_v24  ;;  %5811 = vmatpush1.msra.mxu1 %v11875_v34 }
0x19be   :  { %5741 = vmatprep.subr.mxu0 %v11878_v42  ;;  %5812 = vmatprep.subr.mxu1 %v11881_v17 }
0x19bf   :  { %5742 = vmatpush1.msra.mxu0 %v11884_v27  ;;  %5813 = vmatpush1.msra.mxu1 %v11887_v39 }
0x19c0   :  { %5743 = vmatprep.subr.mxu0 %v11890_v10  ;;  %5814 = vmatprep.subr.mxu1 %v11893_v23 }
0x19c1   :  { %5744 = vmatpush1.msra.mxu0 %v11896_v8  ;;  %5815 = vmatpush1.msra.mxu1 %v11899_v30 }
0x19c2   :  { %5745 = vmatprep.subr.mxu0 %v11902_v33  ;;  %5816 = vmatprep.subr.mxu1 %v11905_v32 }
0x19c3   :  { %5746 = vmatpush1.msra.mxu0 %v11908_v31  ;;  %5817 = vmatpush1.msra.mxu1 %v11911_v14 }
0x19c4   :  { %5747 = vmatprep.subr.mxu0 %v11914_v7  ;;  %5818 = vmatprep.subr.mxu1 %v11917_v40  ;;  %v13967_v7 = vld [vmem:[#allocation131_spill] sm:$0xff] }
0x19c5   :  { %5748 = vmatpush1.msra.mxu0 %v11920_v35  ;;  %5819 = vmatpush1.msra.mxu1 %v11923_v18  ;;  %v727_v14 = vadd.f32 %v13967_v7, %v9089_v26 }
0x19c6   :  { %5749 = vmatprep.subr.mxu0 %v11926_v43  ;;  %5820 = vmatprep.subr.mxu1 %v11929_v4  ;;  %v11944_v43 = vld [vmem:[#allocation4 + $0x20] sm:$0xff]  ;;  %v11947_v4 = vld [vmem:[#allocation4 + $0x30] sm:$0xff] }
0x19c7   :  { %5750 = vmatpush1.msra.mxu0 %v11932_v22  ;;  %5821 = vmatpush1.msra.mxu1 %v11935_v21  ;;  %13959 = vst [vmem:[#allocation168_spill] sm:$0xff] %v11944_v43  ;;  %13960 = vst [vmem:[#allocation169_spill] sm:$0xff] %v11947_v4  ;;  %v11950_v22 = vld [vmem:[#allocation4 + $0x8] sm:$0xff]  ;;  %v11953_v21 = vld [vmem:[#allocation4 + $0x18] sm:$0xff] }
0x19c8   :  { %5751 = vmatprep.subr.mxu0 %v11938_v49  ;;  %5822 = vmatprep.subr.mxu1 %v11941_v13  ;;  %13961 = vst [vmem:[#allocation170_spill] sm:$0xff] %v11950_v22  ;;  %13962 = vst [vmem:[#allocation32_spill] sm:$0xff] %v11953_v21  ;;  %v11956_v49 = vld [vmem:[#allocation4] sm:$0xff]  ;;  %v11960_v13 = vld [vmem:[#allocation4 + $0x10] sm:$0xff] }
0x19c9   :  { %5752 = vmatpush1.msra.mxu0 %v11944_v43  ;;  %5823 = vmatpush1.msra.mxu1 %v11947_v4  ;;  %13963 = vst [vmem:[#allocation34_spill] sm:$0xff] %v11956_v49  ;;  %13964 = vst [vmem:[#allocation49_spill] sm:$0xff] %v11960_v13  ;;  %v13966_v43 = vld [vmem:[#allocation118_spill] sm:$0xff] }
0x19ca   :  { %5753 = vmatprep.subr.mxu0 %v11950_v22  ;;  %5824 = vmatprep.subr.mxu1 %v11953_v21  ;;  %v13965_v22 = vld [vmem:[#allocation116_spill] sm:$0xff]  ;;  %v448_v18 = vadd.f32 %v13966_v43, %v13940_v3 }
0x19cb   :  { %5754 = vmatpush1.msra.mxu0 %v11956_v49  ;;  %5787 = vmatprep.mubr.f32.mxu0 %v13934_v48  ;;  %v446_v4 = vadd.f32 %v13965_v22, %v13938_v59  ;;  %v13968_v22 = vld [vmem:[#allocation133_spill] sm:$0xff] }
0x19cc   :  { %5825 = vmatpush1.msra.mxu1 %v11960_v13  ;;  %5858 = vmatprep.mubr.f32.mxu1 %v13934_v48  ;;  %v729_v59 = vadd.f32 %v13968_v22, %v9097_v29  ;;  %v13976_v22 = vld [vmem:[#allocation166_spill] sm:$0xff] }
0x19cd   :  { %5892 = vmatprep.subr.mxu0 %v11794_v50  ;;  %5963 = vmatprep.subr.mxu1 %v11797_v56 }
0x1a6c   :  { %v5620_v21 = vpop.f32.mrf.mxu0  ;;  %v5691_v35 = vpop.f32.mrf.mxu1 }
0x1a6d   :  { %v5696_v49 = vadd.f32 %v5620_v21, %v446_v4  ;;  %v5698_v48 = vadd.f32 %v5691_v35, %v727_v14 }
0x1a6e   :  { %v5622_v40 = vpop.f32.mrf.mxu0  ;;  %v5693_v56 = vpop.f32.mrf.mxu1 }
0x1a6f   :  { %v5700_v13 = vmul.f32 0.5, %v5696_v49  ;;  %v5697_v31 = vadd.f32 %v5622_v40, %v448_v18  ;;  %v5699_v32 = vadd.f32 %v5693_v56, %v729_v59  ;;  %v13974_v18 = vld [vmem:[#allocation164_spill] sm:$0xff] }
0x1a71   :  { %7610 = vtanh.f32 %v5700_v13  ;;  %v5704_v50 = vmul.f32 0.5, %v5697_v31  ;;  %v5709_v33 = vmul.f32 0.5, %v5699_v32  ;;  %v13973_v32 = vld [vmem:[#allocation163_spill] sm:$0xff]  ;;  %v13975_v13 = vld [vmem:[#allocation165_spill] sm:$0xff] }
0x1a73   :  { %7612 = vtanh.f32 %v5704_v50 }
0x1a74   :  { %7614 = vtanh.f32 %v5698_v48 }
0x1a75   :  { %7616 = vtanh.f32 %v5709_v33  ;;  %v13972_v33 = vld [vmem:[#allocation83_spill] sm:$0xff] }
0x1a7e   :  { %v7611_v43 = vpop.eup %7610 }
0x1a7f   :  { %v5702_v4 = vmul.f32 0.5, %v7611_v43  ;;  %v13977_v43 = vld [vmem:[#allocation167_spill] sm:$0xff] }
0x1a80   :  { %v7613_v21 = vpop.eup %7612 }
0x1a81   :  { %v5703_v3 = vadd.f32 0.5, %v5702_v4  ;;  %v5706_v30 = vmul.f32 0.5, %v7613_v21  ;;  %v7615_v7 = vpop.eup %7614  ;;  %v13978_v4 = vld [vmem:[#allocation19_spill] sm:$0xff]  ;;  %v13979_v21 = vld [vmem:[#allocation22_spill] sm:$0xff] }
0x1a82   :  { %v7617_v48 = vpop.eup %7616 }
0x1a83   :  { %v5707_v49 = vadd.f32 0.5, %v5706_v30  ;;  %v5714_v40 = vmul.f32 %v7615_v7, %v5703_v3  ;;  %v5711_v50 = vmul.f32 0.5, %v7617_v48  ;;  %v13969_v3 = vld [vmem:[#allocation64_spill] sm:$0xff]  ;;  %v13971_v30 = vld [vmem:[#allocation81_spill] sm:$0xff] }
0x1a84   :  { %v13980_v7 = vld [vmem:[#allocation28_spill] sm:$0xff] }
0x1a85   :  { %v5713_v14 = vmul.f32 %v5707_v49, %v11809_v1  ;;  %v5712_v35 = vadd.f32 0.5, %v5711_v50  ;;  %v13970_v1 = vld [vmem:[#allocation66_spill] sm:$0xff]  ;;  %v13984_v48 = vld [vmem:[#allocation168_spill] sm:$0xff]  ;;  %v13985_v50 = vld [vmem:[#allocation169_spill] sm:$0xff] }
0x1a86   :  { %v13981_v49 = vld [vmem:[#allocation30_spill] sm:$0xff] }
0x1a87   :  { %v11975_v31 = vadd.f32 %v5714_v40, %v5713_v14  ;;  %v13982_v40 = vld [vmem:[#allocation45_spill] sm:$0xff]  ;;  %v13983_v14 = vld [vmem:[#allocation47_spill] sm:$0xff] }
0x1a89   :  { %7618 = vtanh.f32 %v11975_v31 }
0x1a96   :  { %v7619_v56 = vpop.eup %7618 }
0x1a97   :  { %v5717_v59 = vmul.f32 %v7619_v56, %v5712_v35  ;;  %v13986_v35 = vld [vmem:[#allocation170_spill] sm:$0xff]  ;;  %v13987_v56 = vld [vmem:[#allocation32_spill] sm:$0xff] }
0x1a99   :  { %5788 = vmatmul.mubr.f32.vlgmr.msra.gmra.mxu0 %v5717_v59  ;;  %5859 = vmatmul.mubr.f32.vlgmr.msra.gmra.mxu1 %v5717_v59  ;;  %v13988_v59 = vld [vmem:[#allocation34_spill] sm:$0xff] }
0x1a9a   :  { %5893 = vmatpush1.msra.mxu0 %v11694_v36  ;;  %5964 = vmatpush1.msra.mxu1 %v11697_v15 }
0x1a9b   :  { %5894 = vmatprep.subr.mxu0 %v11700_v20  ;;  %5965 = vmatprep.subr.mxu1 %v11703_v57 }
0x1a9c   :  { %5895 = vmatpush1.msra.mxu0 %v11706_v16  ;;  %5966 = vmatpush1.msra.mxu1 %v11709_v9 }
0x1a9d   :  { %5896 = vmatprep.subr.mxu0 %v11712_v5  ;;  %5967 = vmatprep.subr.mxu1 %v11715_v62 }
0x1a9e   :  { %5897 = vmatpush1.msra.mxu0 %v11718_v6  ;;  %5968 = vmatpush1.msra.mxu1 %v11721_v38 }
0x1a9f   :  { %5898 = vmatprep.subr.mxu0 %v11724_v47  ;;  %5969 = vmatprep.subr.mxu1 %v11727_v19 }
0x1aa0   :  { %5899 = vmatpush1.msra.mxu0 %v11730_v44  ;;  %5970 = vmatpush1.msra.mxu1 %v11733_v45 }
0x1aa1   :  { %5900 = vmatprep.subr.mxu0 %v11736_v41  ;;  %5971 = vmatprep.subr.mxu1 %v11827_v55 }
0x1aa2   :  { %5901 = vmatpush1.msra.mxu0 %v11740_v52  ;;  %5972 = vmatpush1.msra.mxu1 %v11831_v61 }
0x1aa3   :  { %5902 = vmatprep.subr.mxu0 %v11744_v46  ;;  %5973 = vmatprep.subr.mxu1 %v11835_v51 }
0x1aa4   :  { %5903 = vmatpush1.msra.mxu0 %v11748_v53  ;;  %5974 = vmatpush1.msra.mxu1 %v11839_v58 }
0x1aa5   :  { %5904 = vmatprep.subr.mxu0 %v11842_v54  ;;  %5975 = vmatprep.subr.mxu1 %v11845_v60 }
0x1aa6   :  { %5905 = vmatpush1.msra.mxu0 %v11848_v63  ;;  %5976 = vmatpush1.msra.mxu1 %v11851_v0 }
0x1aa7   :  { %5906 = vmatprep.subr.mxu0 %v11854_v28  ;;  %5977 = vmatprep.subr.mxu1 %v11857_v25 }
0x1aa8   :  { %5907 = vmatpush1.msra.mxu0 %v11860_v2  ;;  %5978 = vmatpush1.msra.mxu1 %v11863_v12 }
0x1aa9   :  { %5908 = vmatprep.subr.mxu0 %v11866_v37  ;;  %5979 = vmatprep.subr.mxu1 %v11869_v11 }
0x1aaa   :  { %5909 = vmatpush1.msra.mxu0 %v11872_v24  ;;  %5980 = vmatpush1.msra.mxu1 %v11875_v34 }
0x1aab   :  { %5910 = vmatprep.subr.mxu0 %v11878_v42  ;;  %5981 = vmatprep.subr.mxu1 %v11881_v17 }
0x1aac   :  { %5911 = vmatpush1.msra.mxu0 %v11884_v27  ;;  %5982 = vmatpush1.msra.mxu1 %v11887_v39 }
0x1aad   :  { %5912 = vmatprep.subr.mxu0 %v11890_v10  ;;  %5983 = vmatprep.subr.mxu1 %v11893_v23 }
0x1aae   :  { %5913 = vmatpush1.msra.mxu0 %v11896_v8  ;;  %5984 = vmatpush1.msra.mxu1 %v13969_v3 }
0x1aaf   :  { %5914 = vmatprep.subr.mxu0 %v13970_v1  ;;  %5985 = vmatprep.subr.mxu1 %v13971_v30 }
0x1ab0   :  { %5915 = vmatpush1.msra.mxu0 %v13972_v33  ;;  %5986 = vmatpush1.msra.mxu1 %v13973_v32 }
0x1ab1   :  { %5916 = vmatprep.subr.mxu0 %v13974_v18  ;;  %5987 = vmatprep.subr.mxu1 %v13975_v13  ;;  %v13997_v18 = vld [vmem:[#allocation134_spill] sm:$0xff] }
0x1ab2   :  { %5917 = vmatpush1.msra.mxu0 %v13976_v22  ;;  %5988 = vmatpush1.msra.mxu1 %v13977_v43  ;;  %v13995_v43 = vld [vmem:[#allocation143_spill] sm:$0xff]  ;;  %v733_v32 = vadd.f32 %v13997_v18, %v9089_v26 }
0x1ab3   :  { %5918 = vmatprep.subr.mxu0 %v13978_v4  ;;  %5989 = vmatprep.subr.mxu1 %v13979_v21  ;;  %v13989_v4 = vmov 0.0   ;;  %v13990_v21 = vld [vmem:[#allocation49_spill] sm:$0xff] }
0x1ab4   :  { %5919 = vmatpush1.msra.mxu0 %v13980_v7  ;;  %5990 = vmatpush1.msra.mxu1 %v13981_v49  ;;  %v13991_v49 = vld [vmem:[#allocation77_spill] sm:$0xff] }
0x1ab5   :  { %5920 = vmatprep.subr.mxu0 %v13982_v40  ;;  %5991 = vmatprep.subr.mxu1 %v13983_v14  ;;  %v13992_v40 = vld [vmem:[#allocation79_spill] sm:$0xff]  ;;  %v13993_v14 = vld [vmem:[#allocation145_spill] sm:$0xff] }
0x1ab6   :  { %5921 = vmatpush1.msra.mxu0 %v13984_v48  ;;  %5992 = vmatpush1.msra.mxu1 %v13985_v50  ;;  %v13994_v48 = vld [vmem:[#allocation120_spill] sm:$0xff] }
0x1ab7   :  { %5922 = vmatprep.subr.mxu0 %v13986_v35  ;;  %5993 = vmatprep.subr.mxu1 %v13987_v56  ;;  %v452_v7 = vadd.f32 %v13994_v48, %v13993_v14  ;;  %v13996_v35 = vld [vmem:[#allocation122_spill] sm:$0xff]  ;;  %v13998_v48 = vld [vmem:[#allocation136_spill] sm:$0xff] }
0x1ab8   :  { %5923 = vmatpush1.msra.mxu0 %v13988_v59  ;;  %5956 = vmatprep.mubr.f32.mxu0 %v13989_v4  ;;  %v454_v22 = vadd.f32 %v13996_v35, %v13995_v43  ;;  %v735_v14 = vadd.f32 %v13998_v48, %v9097_v29  ;;  %v14006_v48 = vld [vmem:[#allocation166_spill] sm:$0xff] }
0x1ab9   :  { %5994 = vmatpush1.msra.mxu1 %v13990_v21  ;;  %6027 = vmatprep.mubr.f32.mxu1 %v13989_v4 }
0x1aba   :  { %6061 = vmatprep.subr.mxu0 %v13991_v49  ;;  %6132 = vmatprep.subr.mxu1 %v13992_v40 }
0x1b59   :  { %v5789_v50 = vpop.f32.mrf.mxu0  ;;  %v5860_v13 = vpop.f32.mrf.mxu1 }
0x1b5a   :  { %v5865_v56 = vadd.f32 %v5789_v50, %v452_v7  ;;  %v5867_v4 = vadd.f32 %v5860_v13, %v733_v32 }
0x1b5b   :  { %v5791_v59 = vpop.f32.mrf.mxu0  ;;  %v5862_v40 = vpop.f32.mrf.mxu1 }
0x1b5c   :  { %v5869_v21 = vmul.f32 0.5, %v5865_v56  ;;  %v5866_v33 = vadd.f32 %v5791_v59, %v454_v22  ;;  %v5868_v30 = vadd.f32 %v5862_v40, %v735_v14  ;;  %v14003_v40 = vld [vmem:[#allocation163_spill] sm:$0xff]  ;;  %v14004_v14 = vld [vmem:[#allocation164_spill] sm:$0xff]  ;;  %v14005_v59 = vld [vmem:[#allocation165_spill] sm:$0xff] }
0x1b5e   :  { %7620 = vtanh.f32 %v5869_v21  ;;  %v5873_v49 = vmul.f32 0.5, %v5866_v33  ;;  %v5878_v1 = vmul.f32 0.5, %v5868_v30 }
0x1b60   :  { %7622 = vtanh.f32 %v5873_v49 }
0x1b61   :  { %7624 = vtanh.f32 %v5867_v4 }
0x1b62   :  { %7626 = vtanh.f32 %v5878_v1  ;;  %v14001_v1 = vld [vmem:[#allocation81_spill] sm:$0xff] }
0x1b6b   :  { %v7621_v35 = vpop.eup %7620 }
0x1b6c   :  { %v5871_v7 = vmul.f32 0.5, %v7621_v35  ;;  %v14007_v35 = vld [vmem:[#allocation167_spill] sm:$0xff] }
0x1b6d   :  { %v7623_v50 = vpop.eup %7622 }
0x1b6e   :  { %v5872_v43 = vadd.f32 0.5, %v5871_v7  ;;  %v5875_v3 = vmul.f32 0.5, %v7623_v50  ;;  %v7625_v18 = vpop.eup %7624  ;;  %v14008_v7 = vld [vmem:[#allocation19_spill] sm:$0xff]  ;;  %v14009_v50 = vld [vmem:[#allocation22_spill] sm:$0xff] }
0x1b6f   :  { %v7627_v13 = vpop.eup %7626 }
0x1b70   :  { %v5876_v56 = vadd.f32 0.5, %v5875_v3  ;;  %v5883_v22 = vmul.f32 %v7625_v18, %v5872_v43  ;;  %v5880_v4 = vmul.f32 0.5, %v7627_v13  ;;  %v14000_v3 = vld [vmem:[#allocation66_spill] sm:$0xff]  ;;  %v14002_v43 = vld [vmem:[#allocation83_spill] sm:$0xff]  ;;  %v14010_v18 = vld [vmem:[#allocation28_spill] sm:$0xff] }
0x1b71   :  { %v14014_v13 = vld [vmem:[#allocation168_spill] sm:$0xff] }
0x1b72   :  { %v5882_v32 = vmul.f32 %v5876_v56, %v11975_v31  ;;  %v5881_v21 = vadd.f32 0.5, %v5880_v4  ;;  %v13999_v31 = vld [vmem:[#allocation64_spill] sm:$0xff]  ;;  %v14011_v56 = vld [vmem:[#allocation30_spill] sm:$0xff]  ;;  %v14015_v4 = vld [vmem:[#allocation169_spill] sm:$0xff] }
0x1b74   :  { %v12053_v33 = vadd.f32 %v5883_v22, %v5882_v32  ;;  %v14012_v22 = vld [vmem:[#allocation45_spill] sm:$0xff]  ;;  %v14013_v32 = vld [vmem:[#allocation47_spill] sm:$0xff] }
0x1b76   :  { %7628 = vtanh.f32 %v12053_v33 }
0x1b83   :  { %v7629_v49 = vpop.eup %7628 }
0x1b84   :  { %v5886_v30 = vmul.f32 %v7629_v49, %v5881_v21  ;;  %v14016_v21 = vld [vmem:[#allocation170_spill] sm:$0xff]  ;;  %v14017_v49 = vld [vmem:[#allocation32_spill] sm:$0xff] }
0x1b86   :  { %5957 = vmatmul.mubr.f32.vlgmr.msra.gmra.mxu0 %v5886_v30  ;;  %6028 = vmatmul.mubr.f32.vlgmr.msra.gmra.mxu1 %v5886_v30  ;;  %v14018_v30 = vld [vmem:[#allocation34_spill] sm:$0xff] }
0x1b87   :  { %6062 = vmatpush1.msra.mxu0 %v11694_v36  ;;  %6133 = vmatpush1.msra.mxu1 %v11697_v15 }
0x1b88   :  { %6063 = vmatprep.subr.mxu0 %v11700_v20  ;;  %6134 = vmatprep.subr.mxu1 %v11703_v57 }
0x1b89   :  { %6064 = vmatpush1.msra.mxu0 %v11706_v16  ;;  %6135 = vmatpush1.msra.mxu1 %v11709_v9 }
0x1b8a   :  { %6065 = vmatprep.subr.mxu0 %v11712_v5  ;;  %6136 = vmatprep.subr.mxu1 %v11715_v62 }
0x1b8b   :  { %6066 = vmatpush1.msra.mxu0 %v11718_v6  ;;  %6137 = vmatpush1.msra.mxu1 %v11721_v38 }
0x1b8c   :  { %6067 = vmatprep.subr.mxu0 %v11724_v47  ;;  %6138 = vmatprep.subr.mxu1 %v11727_v19 }
0x1b8d   :  { %6068 = vmatpush1.msra.mxu0 %v11730_v44  ;;  %6139 = vmatpush1.msra.mxu1 %v11733_v45 }
0x1b8e   :  { %6069 = vmatprep.subr.mxu0 %v11736_v41  ;;  %6140 = vmatprep.subr.mxu1 %v11827_v55 }
0x1b8f   :  { %6070 = vmatpush1.msra.mxu0 %v11740_v52  ;;  %6141 = vmatpush1.msra.mxu1 %v11831_v61 }
0x1b90   :  { %6071 = vmatprep.subr.mxu0 %v11744_v46  ;;  %6142 = vmatprep.subr.mxu1 %v11835_v51 }
0x1b91   :  { %6072 = vmatpush1.msra.mxu0 %v11748_v53  ;;  %6143 = vmatpush1.msra.mxu1 %v11839_v58 }
0x1b92   :  { %6073 = vmatprep.subr.mxu0 %v11842_v54  ;;  %6144 = vmatprep.subr.mxu1 %v11845_v60 }
0x1b93   :  { %6074 = vmatpush1.msra.mxu0 %v11848_v63  ;;  %6145 = vmatpush1.msra.mxu1 %v11851_v0 }
0x1b94   :  { %6075 = vmatprep.subr.mxu0 %v11854_v28  ;;  %6146 = vmatprep.subr.mxu1 %v11857_v25 }
0x1b95   :  { %6076 = vmatpush1.msra.mxu0 %v11860_v2  ;;  %6147 = vmatpush1.msra.mxu1 %v11863_v12 }
0x1b96   :  { %6077 = vmatprep.subr.mxu0 %v11866_v37  ;;  %6148 = vmatprep.subr.mxu1 %v11869_v11 }
0x1b97   :  { %6078 = vmatpush1.msra.mxu0 %v11872_v24  ;;  %6149 = vmatpush1.msra.mxu1 %v11875_v34 }
0x1b98   :  { %6079 = vmatprep.subr.mxu0 %v11878_v42  ;;  %6150 = vmatprep.subr.mxu1 %v11881_v17 }
0x1b99   :  { %6080 = vmatpush1.msra.mxu0 %v11884_v27  ;;  %6151 = vmatpush1.msra.mxu1 %v11887_v39 }
0x1b9a   :  { %6081 = vmatprep.subr.mxu0 %v11890_v10  ;;  %6152 = vmatprep.subr.mxu1 %v11893_v23 }
0x1b9b   :  { %6082 = vmatpush1.msra.mxu0 %v11896_v8  ;;  %6153 = vmatpush1.msra.mxu1 %v13999_v31 }
0x1b9c   :  { %6083 = vmatprep.subr.mxu0 %v14000_v3  ;;  %6154 = vmatprep.subr.mxu1 %v14001_v1 }
0x1b9d   :  { %6084 = vmatpush1.msra.mxu0 %v14002_v43  ;;  %6155 = vmatpush1.msra.mxu1 %v14003_v40 }
0x1b9e   :  { %6085 = vmatprep.subr.mxu0 %v14004_v14  ;;  %6156 = vmatprep.subr.mxu1 %v14005_v59  ;;  %v14027_v14 = vld [vmem:[#allocation137_spill] sm:$0xff] }
0x1b9f   :  { %6086 = vmatpush1.msra.mxu0 %v14006_v48  ;;  %6157 = vmatpush1.msra.mxu1 %v14007_v35  ;;  %v14025_v35 = vld [vmem:[#allocation143_spill] sm:$0xff]  ;;  %v739_v40 = vadd.f32 %v14027_v14, %v9089_v26 }
0x1ba0   :  { %6087 = vmatprep.subr.mxu0 %v14008_v7  ;;  %6158 = vmatprep.subr.mxu1 %v14009_v50  ;;  %v14019_v7 = vmov 0.0   ;;  %v14020_v50 = vld [vmem:[#allocation49_spill] sm:$0xff] }
0x1ba1   :  { %6088 = vmatpush1.msra.mxu0 %v14010_v18  ;;  %6159 = vmatpush1.msra.mxu1 %v14011_v56  ;;  %v14021_v56 = vld [vmem:[#allocation77_spill] sm:$0xff] }
0x1ba2   :  { %6089 = vmatprep.subr.mxu0 %v14012_v22  ;;  %6160 = vmatprep.subr.mxu1 %v14013_v32  ;;  %v14022_v22 = vld [vmem:[#allocation79_spill] sm:$0xff]  ;;  %v14023_v32 = vld [vmem:[#allocation145_spill] sm:$0xff] }
0x1ba3   :  { %6090 = vmatpush1.msra.mxu0 %v14014_v13  ;;  %6161 = vmatpush1.msra.mxu1 %v14015_v4  ;;  %v14024_v13 = vld [vmem:[#allocation124_spill] sm:$0xff] }
0x1ba4   :  { %6091 = vmatprep.subr.mxu0 %v14016_v21  ;;  %6162 = vmatprep.subr.mxu1 %v14017_v49  ;;  %v458_v18 = vadd.f32 %v14024_v13, %v14023_v32  ;;  %v14026_v21 = vld [vmem:[#allocation126_spill] sm:$0xff]  ;;  %v14028_v13 = vld [vmem:[#allocation139_spill] sm:$0xff] }
0x1ba5   :  { %6092 = vmatpush1.msra.mxu0 %v14018_v30  ;;  %6125 = vmatprep.mubr.f32.mxu0 %v14019_v7  ;;  %v460_v48 = vadd.f32 %v14026_v21, %v14025_v35  ;;  %v741_v32 = vadd.f32 %v14028_v13, %v9097_v29  ;;  %v14054_v13 = vld [vmem:[#allocation129_spill] sm:$0xff] }
0x1ba6   :  { %6163 = vmatpush1.msra.mxu1 %v14020_v50  ;;  %6196 = vmatprep.mubr.f32.mxu1 %v14019_v7 }
0x1ba7   :  { %6230 = vmatprep.subr.mxu0 %v14021_v56  ;;  %6301 = vmatprep.subr.mxu1 %v14022_v22 }
0x1c46   :  { %v5958_v4 = vpop.f32.mrf.mxu0  ;;  %v6029_v59 = vpop.f32.mrf.mxu1 }
0x1c47   :  { %v6034_v49 = vadd.f32 %v5958_v4, %v458_v18  ;;  %v6036_v7 = vadd.f32 %v6029_v59, %v739_v40 }
0x1c48   :  { %v5960_v30 = vpop.f32.mrf.mxu0  ;;  %v6031_v22 = vpop.f32.mrf.mxu1 }
0x1c49   :  { %v6038_v50 = vmul.f32 0.5, %v6034_v49  ;;  %v6035_v43 = vadd.f32 %v5960_v30, %v460_v48  ;;  %v6037_v1 = vadd.f32 %v6031_v22, %v741_v32  ;;  %v14051_v22 = vld [vmem:[#allocation77_spill] sm:$0xff]  ;;  %v14052_v32 = vld [vmem:[#allocation79_spill] sm:$0xff] }
0x1c4a   :  { %v14053_v30 = vld [vmem:[#allocation145_spill] sm:$0xff] }
0x1c4b   :  { %7630 = vtanh.f32 %v6038_v50  ;;  %v6042_v56 = vmul.f32 0.5, %v6035_v43  ;;  %v6047_v3 = vmul.f32 0.5, %v6037_v1 }
0x1c4d   :  { %7632 = vtanh.f32 %v6042_v56 }
0x1c4e   :  { %7634 = vtanh.f32 %v6036_v7 }
0x1c4f   :  { %7636 = vtanh.f32 %v6047_v3  ;;  %v14049_v3 = vmov 0.0  }
0x1c58   :  { %v7631_v21 = vpop.eup %7630 }
0x1c59   :  { %v6040_v18 = vmul.f32 0.5, %v7631_v21  ;;  %v464_v21 = vadd.f32 %v14054_v13, %v14053_v30  ;;  %v14058_v13 = vld [vmem:[#allocation141_spill] sm:$0xff] }
0x1c5a   :  { %v7633_v4 = vpop.eup %7632  ;;  %v747_v30 = vadd.f32 %v14058_v13, %v9097_v29  ;;  %v12233_v13 = vld [vmem:[#allocation4 + $0x1b8] sm:$0xff] }
0x1c5b   :  { %v6041_v35 = vadd.f32 0.5, %v6040_v18  ;;  %v6044_v31 = vmul.f32 0.5, %v7633_v4  ;;  %v7635_v14 = vpop.eup %7634  ;;  %v14055_v4 = vld [vmem:[#allocation143_spill] sm:$0xff] }
0x1c5c   :  { %v7637_v59 = vpop.eup %7636 }
0x1c5d   :  { %v6045_v49 = vadd.f32 0.5, %v6044_v31  ;;  %v6052_v48 = vmul.f32 %v7635_v14, %v6041_v35  ;;  %v6049_v7 = vmul.f32 0.5, %v7637_v59  ;;  %v14048_v31 = vld [vmem:[#allocation34_spill] sm:$0xff]  ;;  %v14050_v35 = vld [vmem:[#allocation49_spill] sm:$0xff]  ;;  %v14056_v14 = vld [vmem:[#allocation132_spill] sm:$0xff] }
0x1c5f   :  { %v6051_v40 = vmul.f32 %v6045_v49, %v12053_v33  ;;  %v6050_v50 = vadd.f32 0.5, %v6049_v7  ;;  %v14047_v33 = vld [vmem:[#allocation32_spill] sm:$0xff]  ;;  %v466_v49 = vadd.f32 %v14056_v14, %v14055_v4 }
0x1c60   :  { %v14057_v7 = vld [vmem:[#allocation140_spill] sm:$0xff] }
0x1c61   :  { %v12131_v43 = vadd.f32 %v6052_v48, %v6051_v40 }
0x1c63   :  { %7638 = vtanh.f32 %v12131_v43 }
0x1c70   :  { %v7639_v56 = vpop.eup %7638 }
0x1c71   :  { %v6055_v1 = vmul.f32 %v7639_v56, %v6050_v50  ;;  %v745_v50 = vadd.f32 %v14057_v7, %v9089_v26 }
0x1c73   :  { %6126 = vmatmul.mubr.f32.vlgmr.msra.gmra.mxu0 %v6055_v1  ;;  %6197 = vmatmul.mubr.f32.vlgmr.msra.gmra.mxu1 %v6055_v1 }
0x1c74   :  { %6231 = vmatpush1.msra.mxu0 %v11694_v36  ;;  %6302 = vmatpush1.msra.mxu1 %v11697_v15  ;;  %v14029_v36 = vld [vmem:[#allocation64_spill] sm:$0xff]  ;;  %v14030_v15 = vld [vmem:[#allocation66_spill] sm:$0xff] }
0x1c75   :  { %6232 = vmatprep.subr.mxu0 %v11700_v20  ;;  %6303 = vmatprep.subr.mxu1 %v11703_v57  ;;  %v14031_v20 = vld [vmem:[#allocation81_spill] sm:$0xff]  ;;  %v14032_v57 = vld [vmem:[#allocation83_spill] sm:$0xff] }
0x1c76   :  { %6233 = vmatpush1.msra.mxu0 %v11706_v16  ;;  %6304 = vmatpush1.msra.mxu1 %v11709_v9  ;;  %v14033_v16 = vld [vmem:[#allocation163_spill] sm:$0xff]  ;;  %v14034_v9 = vld [vmem:[#allocation164_spill] sm:$0xff] }
0x1c77   :  { %6234 = vmatprep.subr.mxu0 %v11712_v5  ;;  %6305 = vmatprep.subr.mxu1 %v11715_v62  ;;  %v14035_v5 = vld [vmem:[#allocation165_spill] sm:$0xff]  ;;  %v14036_v62 = vld [vmem:[#allocation166_spill] sm:$0xff] }
0x1c78   :  { %6235 = vmatpush1.msra.mxu0 %v11718_v6  ;;  %6306 = vmatpush1.msra.mxu1 %v11721_v38  ;;  %v14037_v6 = vld [vmem:[#allocation167_spill] sm:$0xff] }
0x1c79   :  { %6236 = vmatprep.subr.mxu0 %v11724_v47  ;;  %6307 = vmatprep.subr.mxu1 %v11727_v19  ;;  %v14038_v38 = vld [vmem:[#allocation19_spill] sm:$0xff]  ;;  %v14039_v47 = vld [vmem:[#allocation22_spill] sm:$0xff]  ;;  %v14040_v19 = vld [vmem:[#allocation28_spill] sm:$0xff] }
0x1c7a   :  { %6237 = vmatpush1.msra.mxu0 %v11730_v44  ;;  %6308 = vmatpush1.msra.mxu1 %v11733_v45  ;;  %v14041_v44 = vld [vmem:[#allocation30_spill] sm:$0xff]  ;;  %v14042_v45 = vld [vmem:[#allocation45_spill] sm:$0xff] }
0x1c7b   :  { %6238 = vmatprep.subr.mxu0 %v11736_v41  ;;  %6309 = vmatprep.subr.mxu1 %v11827_v55  ;;  %v14043_v41 = vld [vmem:[#allocation47_spill] sm:$0xff] }
0x1c7c   :  { %6239 = vmatpush1.msra.mxu0 %v11740_v52  ;;  %6310 = vmatpush1.msra.mxu1 %v11831_v61  ;;  %v14044_v52 = vld [vmem:[#allocation168_spill] sm:$0xff] }
0x1c7d   :  { %6240 = vmatprep.subr.mxu0 %v11744_v46  ;;  %6311 = vmatprep.subr.mxu1 %v11835_v51  ;;  %v14045_v46 = vld [vmem:[#allocation169_spill] sm:$0xff] }
0x1c7e   :  { %6241 = vmatpush1.msra.mxu0 %v11748_v53  ;;  %6312 = vmatpush1.msra.mxu1 %v11839_v58  ;;  %v14046_v53 = vld [vmem:[#allocation170_spill] sm:$0xff] }
0x1c7f   :  { %6242 = vmatprep.subr.mxu0 %v11842_v54  ;;  %6313 = vmatprep.subr.mxu1 %v11845_v60 }
0x1c80   :  { %6243 = vmatpush1.msra.mxu0 %v11848_v63  ;;  %6314 = vmatpush1.msra.mxu1 %v11851_v0 }
0x1c81   :  { %6244 = vmatprep.subr.mxu0 %v11854_v28  ;;  %6315 = vmatprep.subr.mxu1 %v11857_v25 }
0x1c82   :  { %6245 = vmatpush1.msra.mxu0 %v11860_v2  ;;  %6316 = vmatpush1.msra.mxu1 %v11863_v12 }
0x1c83   :  { %6246 = vmatprep.subr.mxu0 %v11866_v37  ;;  %6317 = vmatprep.subr.mxu1 %v11869_v11 }
0x1c84   :  { %6247 = vmatpush1.msra.mxu0 %v11872_v24  ;;  %6318 = vmatpush1.msra.mxu1 %v11875_v34 }
0x1c85   :  { %6248 = vmatprep.subr.mxu0 %v11878_v42  ;;  %6319 = vmatprep.subr.mxu1 %v11881_v17 }
0x1c86   :  { %6249 = vmatpush1.msra.mxu0 %v11884_v27  ;;  %6320 = vmatpush1.msra.mxu1 %v11887_v39 }
0x1c87   :  { %6250 = vmatprep.subr.mxu0 %v11890_v10  ;;  %6321 = vmatprep.subr.mxu1 %v11893_v23 }
0x1c88   :  { %6251 = vmatpush1.msra.mxu0 %v11896_v8  ;;  %6322 = vmatpush1.msra.mxu1 %v14029_v36 }
0x1c89   :  { %6252 = vmatprep.subr.mxu0 %v14030_v15  ;;  %6323 = vmatprep.subr.mxu1 %v14031_v20 }
0x1c8a   :  { %6253 = vmatpush1.msra.mxu0 %v14032_v57  ;;  %6324 = vmatpush1.msra.mxu1 %v14033_v16 }
0x1c8b   :  { %6254 = vmatprep.subr.mxu0 %v14034_v9  ;;  %6325 = vmatprep.subr.mxu1 %v14035_v5 }
0x1c8c   :  { %6255 = vmatpush1.msra.mxu0 %v14036_v62  ;;  %6326 = vmatpush1.msra.mxu1 %v14037_v6 }
0x1c8d   :  { %6256 = vmatprep.subr.mxu0 %v14038_v38  ;;  %6327 = vmatprep.subr.mxu1 %v14039_v47 }
0x1c8e   :  { %6257 = vmatpush1.msra.mxu0 %v14040_v19  ;;  %6328 = vmatpush1.msra.mxu1 %v14041_v44 }
0x1c8f   :  { %6258 = vmatprep.subr.mxu0 %v14042_v45  ;;  %6329 = vmatprep.subr.mxu1 %v14043_v41 }
0x1c90   :  { %6259 = vmatpush1.msra.mxu0 %v14044_v52  ;;  %6330 = vmatpush1.msra.mxu1 %v14045_v46 }
0x1c91   :  { %6260 = vmatprep.subr.mxu0 %v14046_v53  ;;  %6331 = vmatprep.subr.mxu1 %v14047_v33 }
0x1c92   :  { %6261 = vmatpush1.msra.mxu0 %v14048_v31  ;;  %6294 = vmatprep.mubr.f32.mxu0 %v14049_v3 }
0x1c93   :  { %6332 = vmatpush1.msra.mxu1 %v14050_v35  ;;  %6365 = vmatprep.mubr.f32.mxu1 %v14049_v3 }
0x1c94   :  { %6399 = vmatprep.subr.mxu0 %v14051_v22  ;;  %6470 = vmatprep.subr.mxu1 %v14052_v32 }
0x1d33   :  { %v6127_v18 = vpop.f32.mrf.mxu0  ;;  %v6198_v40 = vpop.f32.mrf.mxu1 }
0x1d34   :  { %v6203_v48 = vadd.f32 %v6127_v18, %v464_v21  ;;  %v6205_v35 = vadd.f32 %v6198_v40, %v745_v50 }
0x1d35   :  { %v6129_v59 = vpop.f32.mrf.mxu0  ;;  %v6200_v32 = vpop.f32.mrf.mxu1 }
0x1d36   :  { %v6207_v56 = vmul.f32 0.5, %v6203_v48  ;;  %v6204_v1 = vadd.f32 %v6129_v59, %v466_v49  ;;  %v6206_v3 = vadd.f32 %v6200_v32, %v747_v30  ;;  %v12230_v32 = vld [vmem:[#allocation4 + $0x1a8] sm:$0xff] }
0x1d38   :  { %7640 = vtanh.f32 %v6207_v56  ;;  %v6211_v22 = vmul.f32 0.5, %v6204_v1  ;;  %v6216_v31 = vmul.f32 0.5, %v6206_v3  ;;  %v12212_v1 = vld [vmem:[#allocation4 + $0x1e0] sm:$0xff] }
0x1d3a   :  { %7642 = vtanh.f32 %v6211_v22  ;;  %v12227_v22 = vld [vmem:[#allocation4 + $0x1d0] sm:$0xff] }
0x1d3b   :  { %7644 = vtanh.f32 %v6205_v35 }
0x1d3c   :  { %7646 = vtanh.f32 %v6216_v31  ;;  %v12215_v31 = vld [vmem:[#allocation4 + $0x1f0] sm:$0xff] }
0x1d45   :  { %v7641_v14 = vpop.eup %7640 }
0x1d46   :  { %v6209_v21 = vmul.f32 0.5, %v7641_v14  ;;  %v12236_v14 = vld [vmem:[#allocation4 + $0x1a0] sm:$0xff] }
0x1d47   :  { %v7643_v18 = vpop.eup %7642 }
0x1d48   :  { %v6210_v4 = vadd.f32 0.5, %v6209_v21  ;;  %v6213_v33 = vmul.f32 0.5, %v7643_v18  ;;  %v7645_v7 = vpop.eup %7644  ;;  %v12239_v21 = vld [vmem:[#allocation4 + $0x1b0] sm:$0xff]  ;;  %v12242_v18 = vld [vmem:[#allocation4 + $0x188] sm:$0xff] }
0x1d49   :  { %v7647_v35 = vpop.eup %7646 }
0x1d4a   :  { %v6214_v48 = vadd.f32 0.5, %v6213_v33  ;;  %v6221_v49 = vmul.f32 %v7645_v7, %v6210_v4  ;;  %v6218_v50 = vmul.f32 0.5, %v7647_v35  ;;  %v12221_v33 = vld [vmem:[#allocation4 + $0x1d8] sm:$0xff]  ;;  %v12224_v4 = vld [vmem:[#allocation4 + $0x1c0] sm:$0xff] }
0x1d4b   :  { %v12245_v7 = vld [vmem:[#allocation4 + $0x198] sm:$0xff]  ;;  %v12258_v35 = vld [vmem:[#allocation4 + $0x160] sm:$0xff] }
0x1d4c   :  { %v6220_v40 = vmul.f32 %v6214_v48, %v12131_v43  ;;  %v6219_v56 = vadd.f32 0.5, %v6218_v50  ;;  %v12218_v43 = vld [vmem:[#allocation4 + $0x1c8] sm:$0xff]  ;;  %v12248_v48 = vld [vmem:[#allocation4 + $0x180] sm:$0xff] }
0x1d4d   :  { %v12262_v50 = vld [vmem:[#allocation4 + $0x148] sm:$0xff] }
0x1d4e   :  { %v12209_v59 = vadd.f32 %v6221_v49, %v6220_v40  ;;  %v12251_v49 = vld [vmem:[#allocation4 + $0x190] sm:$0xff]  ;;  %v12254_v40 = vld [vmem:[#allocation4 + $0x168] sm:$0xff] }
0x1d50   :  { %7648 = vtanh.f32 %v12209_v59 }
0x1d5d   :  { %v7649_v30 = vpop.eup %7648 }
0x1d5e   :  { %v6224_v3 = vmul.f32 %v7649_v30, %v6219_v56  ;;  %v12266_v56 = vld [vmem:[#allocation4 + $0x140] sm:$0xff] }
0x1d60   :  { %6295 = vmatmul.mubr.f32.vlgmr.msra.gmra.mxu0 %v6224_v3  ;;  %6366 = vmatmul.mubr.f32.vlgmr.msra.gmra.mxu1 %v6224_v3  ;;  %v12349_v3 = vld [vmem:[#allocation4 + $0x170] sm:$0xff] }
0x1d61   :  { %6400 = vmatpush1.msra.mxu0 %v12212_v1  ;;  %6471 = vmatpush1.msra.mxu1 %v12215_v31 }
0x1d62   :  { %6401 = vmatprep.subr.mxu0 %v12218_v43  ;;  %6472 = vmatprep.subr.mxu1 %v12221_v33 }
0x1d63   :  { %6402 = vmatpush1.msra.mxu0 %v12224_v4  ;;  %6473 = vmatpush1.msra.mxu1 %v12227_v22 }
0x1d64   :  { %6403 = vmatprep.subr.mxu0 %v12230_v32  ;;  %6474 = vmatprep.subr.mxu1 %v12233_v13 }
0x1d65   :  { %6404 = vmatpush1.msra.mxu0 %v12236_v14  ;;  %6475 = vmatpush1.msra.mxu1 %v12239_v21 }
0x1d66   :  { %6405 = vmatprep.subr.mxu0 %v12242_v18  ;;  %6476 = vmatprep.subr.mxu1 %v12245_v7 }
0x1d67   :  { %6406 = vmatpush1.msra.mxu0 %v12248_v48  ;;  %6477 = vmatpush1.msra.mxu1 %v12251_v49 }
0x1d68   :  { %6407 = vmatprep.subr.mxu0 %v12254_v40  ;;  %6478 = vmatprep.subr.mxu1 %v11827_v55  ;;  %v14059_v55 = vld [vmem:[#allocation32_spill] sm:$0xff] }
0x1d69   :  { %6408 = vmatpush1.msra.mxu0 %v12258_v35  ;;  %6479 = vmatpush1.msra.mxu1 %v11831_v61  ;;  %v14060_v61 = vld [vmem:[#allocation34_spill] sm:$0xff] }
0x1d6a   :  { %6409 = vmatprep.subr.mxu0 %v12262_v50  ;;  %6480 = vmatprep.subr.mxu1 %v11835_v51  ;;  %v14061_v51 = vmov 0.0  }
0x1d6b   :  { %6410 = vmatpush1.msra.mxu0 %v12266_v56  ;;  %6481 = vmatpush1.msra.mxu1 %v11839_v58  ;;  %v14062_v58 = vld [vmem:[#allocation49_spill] sm:$0xff] }
0x1d6c   :  { %6411 = vmatprep.subr.mxu0 %v11842_v54  ;;  %6482 = vmatprep.subr.mxu1 %v11845_v60  ;;  %v12312_v54 = vld [vmem:[#allocation4 + $0x1e8] sm:$0xff]  ;;  %v12315_v60 = vld [vmem:[#allocation4 + $0x1f8] sm:$0xff] }
0x1d6d   :  { %6412 = vmatpush1.msra.mxu0 %v11848_v63  ;;  %6483 = vmatpush1.msra.mxu1 %v11851_v0  ;;  %14063 = vst [vmem:[#allocation51_spill] sm:$0xff] %v12312_v54  ;;  %14064 = vst [vmem:[#allocation161_spill] sm:$0xff] %v12315_v60  ;;  %v14065_v63 = vld [vmem:[#allocation145_spill] sm:$0xff]  ;;  %v14066_v0 = vld [vmem:[#allocation135_spill] sm:$0xff] }
0x1d6e   :  { %6413 = vmatprep.subr.mxu0 %v11854_v28  ;;  %6484 = vmatprep.subr.mxu1 %v11857_v25  ;;  %v470_v28 = vadd.f32 %v14066_v0, %v14065_v63  ;;  %v12363_v0 = vld [vmem:[#allocation4 + $0x138] sm:$0xff] }
0x1d6f   :  { %6414 = vmatpush1.msra.mxu0 %v11860_v2  ;;  %6485 = vmatpush1.msra.mxu1 %v11863_v12  ;;  %v14067_v2 = vld [vmem:[#allocation143_spill] sm:$0xff]  ;;  %v14068_v12 = vld [vmem:[#allocation138_spill] sm:$0xff] }
0x1d70   :  { %6415 = vmatprep.subr.mxu0 %v11866_v37  ;;  %6486 = vmatprep.subr.mxu1 %v11869_v11  ;;  %v472_v37 = vadd.f32 %v14068_v12, %v14067_v2  ;;  %v12372_v12 = vld [vmem:[#allocation4 + $0x108] sm:$0xff] }
0x1d71   :  { %6416 = vmatpush1.msra.mxu0 %v11872_v24  ;;  %6487 = vmatpush1.msra.mxu1 %v11875_v34 }
0x1d72   :  { %6417 = vmatprep.subr.mxu0 %v11878_v42  ;;  %6488 = vmatprep.subr.mxu1 %v11881_v17  ;;  %v14069_v42 = vld [vmem:[#allocation142_spill] sm:$0xff] }
0x1d73   :  { %6418 = vmatpush1.msra.mxu0 %v11884_v27  ;;  %6489 = vmatpush1.msra.mxu1 %v11887_v39  ;;  %v751_v17 = vadd.f32 %v14069_v42, %v9089_v26  ;;  %v12387_v42 = vld [vmem:[#allocation4 + $0xf8] sm:$0xff] }
0x1d74   :  { %6419 = vmatprep.subr.mxu0 %v11890_v10  ;;  %6490 = vmatprep.subr.mxu1 %v11893_v23 }
0x1d75   :  { %6420 = vmatpush1.msra.mxu0 %v11896_v8  ;;  %6491 = vmatpush1.msra.mxu1 %v14029_v36  ;;  %v14070_v36 = vld [vmem:[#allocation144_spill] sm:$0xff] }
0x1d76   :  { %6421 = vmatprep.subr.mxu0 %v14030_v15  ;;  %6492 = vmatprep.subr.mxu1 %v14031_v20  ;;  %v753_v15 = vadd.f32 %v14070_v36, %v9097_v29  ;;  %v12408_v36 = vld [vmem:[#allocation4 + $0xa8] sm:$0xff] }
0x1d77   :  { %6422 = vmatpush1.msra.mxu0 %v14032_v57  ;;  %6493 = vmatpush1.msra.mxu1 %v14033_v16 }
0x1d78   :  { %6423 = vmatprep.subr.mxu0 %v14034_v9  ;;  %6494 = vmatprep.subr.mxu1 %v14035_v5 }
0x1d79   :  { %6424 = vmatpush1.msra.mxu0 %v14036_v62  ;;  %6495 = vmatpush1.msra.mxu1 %v14037_v6 }
0x1d7a   :  { %6425 = vmatprep.subr.mxu0 %v14038_v38  ;;  %6496 = vmatprep.subr.mxu1 %v14039_v47 }
0x1d7b   :  { %6426 = vmatpush1.msra.mxu0 %v14040_v19  ;;  %6497 = vmatpush1.msra.mxu1 %v14041_v44 }
0x1d7c   :  { %6427 = vmatprep.subr.mxu0 %v14042_v45  ;;  %6498 = vmatprep.subr.mxu1 %v14043_v41 }
0x1d7d   :  { %6428 = vmatpush1.msra.mxu0 %v14044_v52  ;;  %6499 = vmatpush1.msra.mxu1 %v14045_v46 }
0x1d7e   :  { %6429 = vmatprep.subr.mxu0 %v14046_v53  ;;  %6500 = vmatprep.subr.mxu1 %v14059_v55  ;;  %v12353_v55 = vld [vmem:[#allocation4 + $0x158] sm:$0xff] }
0x1d7f   :  { %6430 = vmatpush1.msra.mxu0 %v14060_v61  ;;  %6463 = vmatprep.mubr.f32.mxu0 %v14061_v51  ;;  %v12357_v61 = vld [vmem:[#allocation4 + $0x150] sm:$0xff] }
0x1d80   :  { %6501 = vmatpush1.msra.mxu1 %v14062_v58  ;;  %6534 = vmatprep.mubr.f32.mxu1 %v14061_v51  ;;  %v12360_v58 = vld [vmem:[#allocation4 + $0x128] sm:$0xff] }
0x1d81   :  { %6568 = vmatprep.subr.mxu0 %v12312_v54  ;;  %6639 = vmatprep.subr.mxu1 %v12315_v60 }
0x1e20   :  { %v6296_v25 = vpop.f32.mrf.mxu0  ;;  %v6367_v24 = vpop.f32.mrf.mxu1 }
0x1e21   :  { %v6372_v11 = vadd.f32 %v6296_v25, %v470_v28  ;;  %v6374_v10 = vadd.f32 %v6367_v24, %v751_v17  ;;  %v12366_v28 = vld [vmem:[#allocation4 + $0x120] sm:$0xff]  ;;  %v12369_v25 = vld [vmem:[#allocation4 + $0x130] sm:$0xff] }
0x1e22   :  { %v6298_v34 = vpop.f32.mrf.mxu0  ;;  %v6369_v8 = vpop.f32.mrf.mxu1  ;;  %v12381_v24 = vld [vmem:[#allocation4 + $0x110] sm:$0xff]  ;;  %v12390_v17 = vld [vmem:[#allocation4 + $0xe0] sm:$0xff] }
0x1e23   :  { %v6376_v27 = vmul.f32 0.5, %v6372_v11  ;;  %v6373_v39 = vadd.f32 %v6298_v34, %v472_v37  ;;  %v6375_v20 = vadd.f32 %v6369_v8, %v753_v15  ;;  %v12375_v37 = vld [vmem:[#allocation4 + $0x118] sm:$0xff]  ;;  %v12378_v11 = vld [vmem:[#allocation4 + $0x100] sm:$0xff]  ;;  %v12384_v34 = vld [vmem:[#allocation4 + $0xe8] sm:$0xff] }
0x1e24   :  { %v12405_v8 = vld [vmem:[#allocation4 + $0xd0] sm:$0xff]  ;;  %v12411_v15 = vld [vmem:[#allocation4 + $0xb8] sm:$0xff] }
0x1e25   :  { %7650 = vtanh.f32 %v6376_v27  ;;  %v6380_v23 = vmul.f32 0.5, %v6373_v39  ;;  %v6385_v57 = vmul.f32 0.5, %v6375_v20  ;;  %v12393_v27 = vld [vmem:[#allocation4 + $0xf0] sm:$0xff]  ;;  %v12396_v39 = vld [vmem:[#allocation4 + $0xc8] sm:$0xff]  ;;  %v12414_v20 = vld [vmem:[#allocation4 + $0xa0] sm:$0xff] }
0x1e27   :  { %7652 = vtanh.f32 %v6380_v23  ;;  %v12402_v23 = vld [vmem:[#allocation4 + $0xc0] sm:$0xff] }
0x1e28   :  { %7654 = vtanh.f32 %v6374_v10  ;;  %v12399_v10 = vld [vmem:[#allocation4 + $0xd8] sm:$0xff] }
0x1e29   :  { %7656 = vtanh.f32 %v6385_v57  ;;  %v12417_v57 = vld [vmem:[#allocation4 + $0xb0] sm:$0xff] }
0x1e2a   :  { %14071 = vst [vmem:[#allocation162_spill] sm:$0xff] %v12417_v57 }
0x1e32   :  { %v7651_v16 = vpop.eup %7650 }
0x1e33   :  { %v6378_v9 = vmul.f32 0.5, %v7651_v16  ;;  %v12420_v16 = vld [vmem:[#allocation4 + $0x88] sm:$0xff] }
0x1e34   :  { %v7653_v5 = vpop.eup %7652  ;;  %14072 = vst [vmem:[#allocation68_spill] sm:$0xff] %v12420_v16 }
0x1e35   :  { %v6379_v62 = vadd.f32 0.5, %v6378_v9  ;;  %v6382_v6 = vmul.f32 0.5, %v7653_v5  ;;  %v7655_v38 = vpop.eup %7654  ;;  %v12423_v9 = vld [vmem:[#allocation4 + $0x98] sm:$0xff]  ;;  %v12426_v5 = vld [vmem:[#allocation4 + $0x80] sm:$0xff] }
0x1e36   :  { %v7657_v41 = vpop.eup %7656  ;;  %14073 = vst [vmem:[#allocation70_spill] sm:$0xff] %v12423_v9  ;;  %14074 = vst [vmem:[#allocation85_spill] sm:$0xff] %v12426_v5 }
0x1e37   :  { %v6383_v47 = vadd.f32 0.5, %v6382_v6  ;;  %v6390_v19 = vmul.f32 %v7655_v38, %v6379_v62  ;;  %v6387_v52 = vmul.f32 0.5, %v7657_v41  ;;  %v12429_v62 = vld [vmem:[#allocation4 + $0x90] sm:$0xff]  ;;  %v12432_v6 = vld [vmem:[#allocation4 + $0x68] sm:$0xff]  ;;  %v12435_v38 = vld [vmem:[#allocation4 + $0x78] sm:$0xff] }
0x1e38   :  { %14075 = vst [vmem:[#allocation87_spill] sm:$0xff] %v12429_v62  ;;  %14076 = vst [vmem:[#allocation36_spill] sm:$0xff] %v12432_v6  ;;  %v12447_v41 = vld [vmem:[#allocation4 + $0x58] sm:$0xff] }
0x1e39   :  { %v6389_v44 = vmul.f32 %v6383_v47, %v12209_v59  ;;  %v6388_v46 = vadd.f32 0.5, %v6387_v52  ;;  %v12345_v59 = vld [vmem:[#allocation4 + $0x178] sm:$0xff]  ;;  %14077 = vst [vmem:[#allocation38_spill] sm:$0xff] %v12435_v38  ;;  %v12438_v47 = vld [vmem:[#allocation4 + $0x60] sm:$0xff]  ;;  %14081 = vst [vmem:[#allocation89_spill] sm:$0xff] %v12447_v41 }
0x1e3a   :  { %14078 = vst [vmem:[#allocation53_spill] sm:$0xff] %v12438_v47  ;;  %v12450_v52 = vld [vmem:[#allocation4 + $0x40] sm:$0xff] }
0x1e3b   :  { %v12327_v45 = vadd.f32 %v6390_v19, %v6389_v44  ;;  %v12441_v19 = vld [vmem:[#allocation4 + $0x70] sm:$0xff]  ;;  %v12444_v44 = vld [vmem:[#allocation4 + $0x48] sm:$0xff]  ;;  %14082 = vst [vmem:[#allocation91_spill] sm:$0xff] %v12450_v52 }
0x1e3c   :  { %14079 = vst [vmem:[#allocation72_spill] sm:$0xff] %v12441_v19  ;;  %14080 = vst [vmem:[#allocation74_spill] sm:$0xff] %v12444_v44 }
0x1e3d   :  { %7658 = vtanh.f32 %v12327_v45 }
0x1e4a   :  { %v7659_v53 = vpop.eup %7658 }
0x1e4b   :  { %v6393_v30 = vmul.f32 %v7659_v53, %v6388_v46  ;;  %v12453_v46 = vld [vmem:[#allocation4 + $0x50] sm:$0xff]  ;;  %v12456_v53 = vld [vmem:[#allocation4 + $0x28] sm:$0xff] }
0x1e4c   :  { %14083 = vst [vmem:[#allocation76_spill] sm:$0xff] %v12453_v46  ;;  %14084 = vst [vmem:[#allocation78_spill] sm:$0xff] %v12456_v53 }
0x1e4d   :  { %6464 = vmatmul.mubr.f32.vlgmr.msra.gmra.mxu0 %v6393_v30  ;;  %6535 = vmatmul.mubr.f32.vlgmr.msra.gmra.mxu1 %v6393_v30  ;;  %v12459_v30 = vld [vmem:[#allocation4 + $0x38] sm:$0xff] }
0x1e4e   :  { %6569 = vmatpush1.msra.mxu0 %v12212_v1  ;;  %6640 = vmatpush1.msra.mxu1 %v12215_v31  ;;  %14085 = vst [vmem:[#allocation93_spill] sm:$0xff] %v12459_v30 }
0x1e4f   :  { %6570 = vmatprep.subr.mxu0 %v12218_v43  ;;  %6641 = vmatprep.subr.mxu1 %v12221_v33 }
0x1e50   :  { %6571 = vmatpush1.msra.mxu0 %v12224_v4  ;;  %6642 = vmatpush1.msra.mxu1 %v12227_v22 }
0x1e51   :  { %6572 = vmatprep.subr.mxu0 %v12230_v32  ;;  %6643 = vmatprep.subr.mxu1 %v12233_v13 }
0x1e52   :  { %6573 = vmatpush1.msra.mxu0 %v12236_v14  ;;  %6644 = vmatpush1.msra.mxu1 %v12239_v21 }
0x1e53   :  { %6574 = vmatprep.subr.mxu0 %v12242_v18  ;;  %6645 = vmatprep.subr.mxu1 %v12245_v7 }
0x1e54   :  { %6575 = vmatpush1.msra.mxu0 %v12248_v48  ;;  %6646 = vmatpush1.msra.mxu1 %v12251_v49 }
0x1e55   :  { %6576 = vmatprep.subr.mxu0 %v12254_v40  ;;  %6647 = vmatprep.subr.mxu1 %v12345_v59 }
0x1e56   :  { %6577 = vmatpush1.msra.mxu0 %v12258_v35  ;;  %6648 = vmatpush1.msra.mxu1 %v12349_v3 }
0x1e57   :  { %6578 = vmatprep.subr.mxu0 %v12262_v50  ;;  %6649 = vmatprep.subr.mxu1 %v12353_v55 }
0x1e58   :  { %6579 = vmatpush1.msra.mxu0 %v12266_v56  ;;  %6650 = vmatpush1.msra.mxu1 %v12357_v61 }
0x1e59   :  { %6580 = vmatprep.subr.mxu0 %v12360_v58  ;;  %6651 = vmatprep.subr.mxu1 %v12363_v0 }
0x1e5a   :  { %6581 = vmatpush1.msra.mxu0 %v12366_v28  ;;  %6652 = vmatpush1.msra.mxu1 %v12369_v25 }
0x1e5b   :  { %6582 = vmatprep.subr.mxu0 %v12372_v12  ;;  %6653 = vmatprep.subr.mxu1 %v12375_v37 }
0x1e5c   :  { %6583 = vmatpush1.msra.mxu0 %v12378_v11  ;;  %6654 = vmatpush1.msra.mxu1 %v12381_v24 }
0x1e5d   :  { %6584 = vmatprep.subr.mxu0 %v12384_v34  ;;  %6655 = vmatprep.subr.mxu1 %v12387_v42 }
0x1e5e   :  { %6585 = vmatpush1.msra.mxu0 %v12390_v17  ;;  %6656 = vmatpush1.msra.mxu1 %v12393_v27 }
0x1e5f   :  { %6586 = vmatprep.subr.mxu0 %v12396_v39  ;;  %6657 = vmatprep.subr.mxu1 %v12399_v10 }
0x1e60   :  { %6587 = vmatpush1.msra.mxu0 %v12402_v23  ;;  %6658 = vmatpush1.msra.mxu1 %v12405_v8 }
0x1e61   :  { %6588 = vmatprep.subr.mxu0 %v12408_v36  ;;  %6659 = vmatprep.subr.mxu1 %v12411_v15 }
0x1e62   :  { %6589 = vmatpush1.msra.mxu0 %v12414_v20  ;;  %6660 = vmatpush1.msra.mxu1 %v12417_v57 }
0x1e63   :  { %6590 = vmatprep.subr.mxu0 %v12420_v16  ;;  %6661 = vmatprep.subr.mxu1 %v12423_v9 }
0x1e64   :  { %6591 = vmatpush1.msra.mxu0 %v12426_v5  ;;  %6662 = vmatpush1.msra.mxu1 %v12429_v62 }
0x1e65   :  { %6592 = vmatprep.subr.mxu0 %v12432_v6  ;;  %6663 = vmatprep.subr.mxu1 %v12435_v38  ;;  %v14094_v6 = vld [vmem:[#allocation146_spill] sm:$0xff] }
0x1e66   :  { %6593 = vmatpush1.msra.mxu0 %v12438_v47  ;;  %6664 = vmatpush1.msra.mxu1 %v12441_v19  ;;  %v757_v62 = vadd.f32 %v14094_v6, %v9089_v26 }
0x1e67   :  { %6594 = vmatprep.subr.mxu0 %v12444_v44  ;;  %6665 = vmatprep.subr.mxu1 %v12447_v41  ;;  %v12462_v44 = vld [vmem:[#allocation4 + $0x20] sm:$0xff]  ;;  %v12465_v41 = vld [vmem:[#allocation4 + $0x30] sm:$0xff] }
0x1e68   :  { %6595 = vmatpush1.msra.mxu0 %v12450_v52  ;;  %6666 = vmatpush1.msra.mxu1 %v12453_v46  ;;  %14086 = vst [vmem:[#allocation95_spill] sm:$0xff] %v12462_v44  ;;  %14087 = vst [vmem:[#allocation80_spill] sm:$0xff] %v12465_v41  ;;  %v12468_v52 = vld [vmem:[#allocation4 + $0x8] sm:$0xff]  ;;  %v12471_v46 = vld [vmem:[#allocation4 + $0x18] sm:$0xff] }
0x1e69   :  { %6596 = vmatprep.subr.mxu0 %v12456_v53  ;;  %6667 = vmatprep.subr.mxu1 %v12459_v30  ;;  %14088 = vst [vmem:[#allocation82_spill] sm:$0xff] %v12468_v52  ;;  %14089 = vst [vmem:[#allocation97_spill] sm:$0xff] %v12471_v46  ;;  %v12474_v53 = vld [vmem:[#allocation4] sm:$0xff]  ;;  %v12478_v30 = vld [vmem:[#allocation4 + $0x10] sm:$0xff] }
0x1e6a   :  { %6597 = vmatpush1.msra.mxu0 %v12462_v44  ;;  %6668 = vmatpush1.msra.mxu1 %v12465_v41  ;;  %14090 = vst [vmem:[#allocation99_spill] sm:$0xff] %v12474_v53  ;;  %14091 = vst [vmem:[#allocation84_spill] sm:$0xff] %v12478_v30  ;;  %v14093_v44 = vld [vmem:[#allocation11_spill] sm:$0xff] }
0x1e6b   :  { %6598 = vmatprep.subr.mxu0 %v12468_v52  ;;  %6669 = vmatprep.subr.mxu1 %v12471_v46  ;;  %v14092_v52 = vld [vmem:[#allocation10_spill] sm:$0xff]  ;;  %v478_v19 = vadd.f32 %v14093_v44, %v14067_v2 }
0x1e6c   :  { %6599 = vmatpush1.msra.mxu0 %v12474_v53  ;;  %6632 = vmatprep.mubr.f32.mxu0 %v14061_v51  ;;  %v476_v41 = vadd.f32 %v14092_v52, %v14065_v63  ;;  %v14095_v52 = vld [vmem:[#allocation147_spill] sm:$0xff] }
0x1e6d   :  { %6670 = vmatpush1.msra.mxu1 %v12478_v30  ;;  %6703 = vmatprep.mubr.f32.mxu1 %v14061_v51  ;;  %v759_v63 = vadd.f32 %v14095_v52, %v9097_v29  ;;  %v14103_v52 = vld [vmem:[#allocation53_spill] sm:$0xff] }
0x1e6e   :  { %6737 = vmatprep.subr.mxu0 %v12312_v54  ;;  %6808 = vmatprep.subr.mxu1 %v12315_v60 }
0x1f0d   :  { %v6465_v46 = vpop.f32.mrf.mxu0  ;;  %v6536_v47 = vpop.f32.mrf.mxu1 }
0x1f0e   :  { %v6541_v53 = vadd.f32 %v6465_v46, %v476_v41  ;;  %v6543_v51 = vadd.f32 %v6536_v47, %v757_v62 }
0x1f0f   :  { %v6467_v38 = vpop.f32.mrf.mxu0  ;;  %v6538_v60 = vpop.f32.mrf.mxu1 }
0x1f10   :  { %v6545_v30 = vmul.f32 0.5, %v6541_v53  ;;  %v6542_v5 = vadd.f32 %v6467_v38, %v478_v19  ;;  %v6544_v9 = vadd.f32 %v6538_v60, %v759_v63  ;;  %v14101_v19 = vld [vmem:[#allocation36_spill] sm:$0xff] }
0x1f12   :  { %7660 = vtanh.f32 %v6545_v30  ;;  %v6549_v54 = vmul.f32 0.5, %v6542_v5  ;;  %v6554_v16 = vmul.f32 0.5, %v6544_v9  ;;  %v14100_v9 = vld [vmem:[#allocation87_spill] sm:$0xff]  ;;  %v14102_v30 = vld [vmem:[#allocation38_spill] sm:$0xff] }
0x1f14   :  { %7662 = vtanh.f32 %v6549_v54 }
0x1f15   :  { %7664 = vtanh.f32 %v6543_v51 }
0x1f16   :  { %7666 = vtanh.f32 %v6554_v16  ;;  %v14099_v16 = vld [vmem:[#allocation85_spill] sm:$0xff] }
0x1f1f   :  { %v7661_v44 = vpop.eup %7660 }
0x1f20   :  { %v6547_v41 = vmul.f32 0.5, %v7661_v44  ;;  %v14104_v44 = vld [vmem:[#allocation72_spill] sm:$0xff] }
0x1f21   :  { %v7663_v46 = vpop.eup %7662 }
0x1f22   :  { %v6548_v2 = vadd.f32 0.5, %v6547_v41  ;;  %v6551_v57 = vmul.f32 0.5, %v7663_v46  ;;  %v7665_v6 = vpop.eup %7664  ;;  %v14105_v41 = vld [vmem:[#allocation74_spill] sm:$0xff]  ;;  %v14106_v46 = vld [vmem:[#allocation89_spill] sm:$0xff] }
0x1f23   :  { %v7667_v51 = vpop.eup %7666 }
0x1f24   :  { %v6552_v53 = vadd.f32 0.5, %v6551_v57  ;;  %v6559_v38 = vmul.f32 %v7665_v6, %v6548_v2  ;;  %v6556_v54 = vmul.f32 0.5, %v7667_v51  ;;  %v14096_v2 = vld [vmem:[#allocation162_spill] sm:$0xff]  ;;  %v14107_v6 = vld [vmem:[#allocation91_spill] sm:$0xff] }
0x1f25   :  { %v14098_v57 = vld [vmem:[#allocation70_spill] sm:$0xff]  ;;  %v14111_v51 = vld [vmem:[#allocation95_spill] sm:$0xff] }
0x1f26   :  { %v6558_v62 = vmul.f32 %v6552_v53, %v12327_v45  ;;  %v6557_v47 = vadd.f32 0.5, %v6556_v54  ;;  %v14097_v45 = vld [vmem:[#allocation68_spill] sm:$0xff] }
0x1f27   :  { %v14108_v53 = vld [vmem:[#allocation76_spill] sm:$0xff] }
0x1f28   :  { %v12493_v5 = vadd.f32 %v6559_v38, %v6558_v62  ;;  %v14109_v38 = vld [vmem:[#allocation78_spill] sm:$0xff]  ;;  %v14110_v62 = vld [vmem:[#allocation93_spill] sm:$0xff]  ;;  %v14112_v54 = vld [vmem:[#allocation80_spill] sm:$0xff] }
0x1f2a   :  { %7668 = vtanh.f32 %v12493_v5 }
0x1f37   :  { %v7669_v60 = vpop.eup %7668 }
0x1f38   :  { %v6562_v63 = vmul.f32 %v7669_v60, %v6557_v47  ;;  %v14113_v47 = vld [vmem:[#allocation82_spill] sm:$0xff]  ;;  %v14114_v60 = vld [vmem:[#allocation97_spill] sm:$0xff] }
0x1f3a   :  { %6633 = vmatmul.mubr.f32.vlgmr.msra.gmra.mxu0 %v6562_v63  ;;  %6704 = vmatmul.mubr.f32.vlgmr.msra.gmra.mxu1 %v6562_v63  ;;  %v14115_v63 = vld [vmem:[#allocation99_spill] sm:$0xff] }
0x1f3b   :  { %6738 = vmatpush1.msra.mxu0 %v12212_v1  ;;  %6809 = vmatpush1.msra.mxu1 %v12215_v31 }
0x1f3c   :  { %6739 = vmatprep.subr.mxu0 %v12218_v43  ;;  %6810 = vmatprep.subr.mxu1 %v12221_v33 }
0x1f3d   :  { %6740 = vmatpush1.msra.mxu0 %v12224_v4  ;;  %6811 = vmatpush1.msra.mxu1 %v12227_v22 }
0x1f3e   :  { %6741 = vmatprep.subr.mxu0 %v12230_v32  ;;  %6812 = vmatprep.subr.mxu1 %v12233_v13 }
0x1f3f   :  { %6742 = vmatpush1.msra.mxu0 %v12236_v14  ;;  %6813 = vmatpush1.msra.mxu1 %v12239_v21 }
0x1f40   :  { %6743 = vmatprep.subr.mxu0 %v12242_v18  ;;  %6814 = vmatprep.subr.mxu1 %v12245_v7 }
0x1f41   :  { %6744 = vmatpush1.msra.mxu0 %v12248_v48  ;;  %6815 = vmatpush1.msra.mxu1 %v12251_v49 }
0x1f42   :  { %6745 = vmatprep.subr.mxu0 %v12254_v40  ;;  %6816 = vmatprep.subr.mxu1 %v12345_v59 }
0x1f43   :  { %6746 = vmatpush1.msra.mxu0 %v12258_v35  ;;  %6817 = vmatpush1.msra.mxu1 %v12349_v3 }
0x1f44   :  { %6747 = vmatprep.subr.mxu0 %v12262_v50  ;;  %6818 = vmatprep.subr.mxu1 %v12353_v55 }
0x1f45   :  { %6748 = vmatpush1.msra.mxu0 %v12266_v56  ;;  %6819 = vmatpush1.msra.mxu1 %v12357_v61 }
0x1f46   :  { %6749 = vmatprep.subr.mxu0 %v12360_v58  ;;  %6820 = vmatprep.subr.mxu1 %v12363_v0 }
0x1f47   :  { %6750 = vmatpush1.msra.mxu0 %v12366_v28  ;;  %6821 = vmatpush1.msra.mxu1 %v12369_v25 }
0x1f48   :  { %6751 = vmatprep.subr.mxu0 %v12372_v12  ;;  %6822 = vmatprep.subr.mxu1 %v12375_v37 }
0x1f49   :  { %6752 = vmatpush1.msra.mxu0 %v12378_v11  ;;  %6823 = vmatpush1.msra.mxu1 %v12381_v24 }
0x1f4a   :  { %6753 = vmatprep.subr.mxu0 %v12384_v34  ;;  %6824 = vmatprep.subr.mxu1 %v12387_v42 }
0x1f4b   :  { %6754 = vmatpush1.msra.mxu0 %v12390_v17  ;;  %6825 = vmatpush1.msra.mxu1 %v12393_v27 }
0x1f4c   :  { %6755 = vmatprep.subr.mxu0 %v12396_v39  ;;  %6826 = vmatprep.subr.mxu1 %v12399_v10 }
0x1f4d   :  { %6756 = vmatpush1.msra.mxu0 %v12402_v23  ;;  %6827 = vmatpush1.msra.mxu1 %v12405_v8 }
0x1f4e   :  { %6757 = vmatprep.subr.mxu0 %v12408_v36  ;;  %6828 = vmatprep.subr.mxu1 %v12411_v15 }
0x1f4f   :  { %6758 = vmatpush1.msra.mxu0 %v12414_v20  ;;  %6829 = vmatpush1.msra.mxu1 %v14096_v2 }
0x1f50   :  { %6759 = vmatprep.subr.mxu0 %v14097_v45  ;;  %6830 = vmatprep.subr.mxu1 %v14098_v57 }
0x1f51   :  { %6760 = vmatpush1.msra.mxu0 %v14099_v16  ;;  %6831 = vmatpush1.msra.mxu1 %v14100_v9 }
0x1f52   :  { %6761 = vmatprep.subr.mxu0 %v14101_v19  ;;  %6832 = vmatprep.subr.mxu1 %v14102_v30  ;;  %v14124_v19 = vld [vmem:[#allocation148_spill] sm:$0xff] }
0x1f53   :  { %6762 = vmatpush1.msra.mxu0 %v14103_v52  ;;  %6833 = vmatpush1.msra.mxu1 %v14104_v44  ;;  %v14122_v44 = vld [vmem:[#allocation143_spill] sm:$0xff]  ;;  %v763_v9 = vadd.f32 %v14124_v19, %v9089_v26 }
0x1f54   :  { %6763 = vmatprep.subr.mxu0 %v14105_v41  ;;  %6834 = vmatprep.subr.mxu1 %v14106_v46  ;;  %v14116_v41 = vmov 0.0   ;;  %v14117_v46 = vld [vmem:[#allocation84_spill] sm:$0xff] }
0x1f55   :  { %6764 = vmatpush1.msra.mxu0 %v14107_v6  ;;  %6835 = vmatpush1.msra.mxu1 %v14108_v53  ;;  %v14118_v53 = vld [vmem:[#allocation51_spill] sm:$0xff] }
0x1f56   :  { %6765 = vmatprep.subr.mxu0 %v14109_v38  ;;  %6836 = vmatprep.subr.mxu1 %v14110_v62  ;;  %v14119_v38 = vld [vmem:[#allocation161_spill] sm:$0xff] }
0x1f57   :  { %6766 = vmatpush1.msra.mxu0 %v14111_v51  ;;  %6837 = vmatpush1.msra.mxu1 %v14112_v54  ;;  %v14120_v62 = vld [vmem:[#allocation145_spill] sm:$0xff] }
0x1f58   :  { %6767 = vmatprep.subr.mxu0 %v14113_v47  ;;  %6838 = vmatprep.subr.mxu1 %v14114_v60  ;;  %v14121_v51 = vld [vmem:[#allocation13_spill] sm:$0xff]  ;;  %v14123_v47 = vld [vmem:[#allocation15_spill] sm:$0xff] }
0x1f59   :  { %6768 = vmatpush1.msra.mxu0 %v14115_v63  ;;  %6801 = vmatprep.mubr.f32.mxu0 %v14116_v41  ;;  %v482_v6 = vadd.f32 %v14121_v51, %v14120_v62  ;;  %v484_v52 = vadd.f32 %v14123_v47, %v14122_v44  ;;  %v14125_v51 = vld [vmem:[#allocation149_spill] sm:$0xff] }
0x1f5a   :  { %6839 = vmatpush1.msra.mxu1 %v14117_v46  ;;  %6872 = vmatprep.mubr.f32.mxu1 %v14116_v41  ;;  %v765_v62 = vadd.f32 %v14125_v51, %v9097_v29 }
0x1f5b   :  { %6906 = vmatprep.subr.mxu0 %v14118_v53  ;;  %6977 = vmatprep.subr.mxu1 %v14119_v38 }
0x1ffa   :  { %v6634_v54 = vpop.f32.mrf.mxu0  ;;  %v6705_v30 = vpop.f32.mrf.mxu1 }
0x1ffb   :  { %v6710_v60 = vadd.f32 %v6634_v54, %v482_v6  ;;  %v6712_v41 = vadd.f32 %v6705_v30, %v763_v9 }
0x1ffc   :  { %v6636_v63 = vpop.f32.mrf.mxu0  ;;  %v6707_v38 = vpop.f32.mrf.mxu1 }
0x1ffd   :  { %v6714_v46 = vmul.f32 0.5, %v6710_v60  ;;  %v6711_v16 = vadd.f32 %v6636_v63, %v484_v52  ;;  %v6713_v57 = vadd.f32 %v6707_v38, %v765_v62 }
0x1fff   :  { %7670 = vtanh.f32 %v6714_v46  ;;  %v6718_v53 = vmul.f32 0.5, %v6711_v16  ;;  %v6723_v45 = vmul.f32 0.5, %v6713_v57 }
0x2001   :  { %7672 = vtanh.f32 %v6718_v53 }
0x2002   :  { %7674 = vtanh.f32 %v6712_v41 }
0x2003   :  { %7676 = vtanh.f32 %v6723_v45 }
0x200c   :  { %v7671_v47 = vpop.eup %7670 }
0x200d   :  { %v6716_v6 = vmul.f32 0.5, %v7671_v47 }
0x200e   :  { %v7673_v54 = vpop.eup %7672 }
0x200f   :  { %v6717_v44 = vadd.f32 0.5, %v6716_v6  ;;  %v6720_v2 = vmul.f32 0.5, %v7673_v54  ;;  %v7675_v19 = vpop.eup %7674 }
0x2010   :  { %v7677_v30 = vpop.eup %7676 }
0x2011   :  { %v6721_v60 = vadd.f32 0.5, %v6720_v2  ;;  %v6728_v52 = vmul.f32 %v7675_v19, %v6717_v44  ;;  %v6725_v41 = vmul.f32 0.5, %v7677_v30 }
0x2013   :  { %v6727_v9 = vmul.f32 %v6721_v60, %v12493_v5  ;;  %v6726_v46 = vadd.f32 0.5, %v6725_v41 }
0x2015   :  { %v12571_v16 = vadd.f32 %v6728_v52, %v6727_v9 }
0x2017   :  { %7678 = vtanh.f32 %v12571_v16 }
0x2024   :  { %v7679_v62 = vpop.eup %7678 }
0x2025   :  { %v6731_v57 = vmul.f32 %v7679_v62, %v6726_v46  ;;  %v7085_v46 = vld [vmem:[%s12737_s4 + $0x78] sm:$0xff]  ;;  %v7083_v62 = vld [vmem:[%s12737_s4 + $0x68] sm:$0xff] }
0x2027   :  { %6802 = vmatmul.mubr.f32.vlgmr.msra.gmra.mxu0 %v6731_v57  ;;  %6873 = vmatmul.mubr.f32.vlgmr.msra.gmra.mxu1 %v6731_v57  ;;  %v7082_v57 = vld [vmem:[%s12737_s4 + $0x60] sm:$0xff] }
0x2028   :  { %6907 = vmatpush1.msra.mxu0 %v12212_v1  ;;  %6978 = vmatpush1.msra.mxu1 %v12215_v31  ;;  %v14126_v1 = vld [vmem:[#allocation162_spill] sm:$0xff]  ;;  %v14127_v31 = vld [vmem:[#allocation68_spill] sm:$0xff] }
0x2029   :  { %6908 = vmatprep.subr.mxu0 %v12218_v43  ;;  %6979 = vmatprep.subr.mxu1 %v12221_v33  ;;  %v14128_v43 = vld [vmem:[#allocation70_spill] sm:$0xff]  ;;  %v14129_v33 = vld [vmem:[#allocation85_spill] sm:$0xff] }
0x202a   :  { %6909 = vmatpush1.msra.mxu0 %v12224_v4  ;;  %6980 = vmatpush1.msra.mxu1 %v12227_v22  ;;  %v14130_v4 = vld [vmem:[#allocation87_spill] sm:$0xff]  ;;  %v14131_v22 = vld [vmem:[#allocation36_spill] sm:$0xff] }
0x202b   :  { %6910 = vmatprep.subr.mxu0 %v12230_v32  ;;  %6981 = vmatprep.subr.mxu1 %v12233_v13  ;;  %v14132_v32 = vld [vmem:[#allocation38_spill] sm:$0xff]  ;;  %v14133_v13 = vld [vmem:[#allocation53_spill] sm:$0xff] }
0x202c   :  { %6911 = vmatpush1.msra.mxu0 %v12236_v14  ;;  %6982 = vmatpush1.msra.mxu1 %v12239_v21  ;;  %v14134_v14 = vld [vmem:[#allocation72_spill] sm:$0xff]  ;;  %v14135_v21 = vld [vmem:[#allocation74_spill] sm:$0xff] }
0x202d   :  { %6912 = vmatprep.subr.mxu0 %v12242_v18  ;;  %6983 = vmatprep.subr.mxu1 %v12245_v7  ;;  %v14136_v18 = vld [vmem:[#allocation89_spill] sm:$0xff]  ;;  %v14137_v7 = vld [vmem:[#allocation91_spill] sm:$0xff] }
0x202e   :  { %6913 = vmatpush1.msra.mxu0 %v12248_v48  ;;  %6984 = vmatpush1.msra.mxu1 %v12251_v49  ;;  %v14138_v48 = vld [vmem:[#allocation76_spill] sm:$0xff]  ;;  %v14139_v49 = vld [vmem:[#allocation78_spill] sm:$0xff] }
0x202f   :  { %6914 = vmatprep.subr.mxu0 %v12254_v40  ;;  %6985 = vmatprep.subr.mxu1 %v12345_v59  ;;  %v14140_v40 = vld [vmem:[#allocation93_spill] sm:$0xff] }
0x2030   :  { %6915 = vmatpush1.msra.mxu0 %v12258_v35  ;;  %6986 = vmatpush1.msra.mxu1 %v12349_v3  ;;  %v14141_v35 = vld [vmem:[#allocation95_spill] sm:$0xff]  ;;  %v14144_v59 = vld [vmem:[#allocation97_spill] sm:$0xff] }
0x2031   :  { %6916 = vmatprep.subr.mxu0 %v12262_v50  ;;  %6987 = vmatprep.subr.mxu1 %v12353_v55  ;;  %v14142_v50 = vld [vmem:[#allocation80_spill] sm:$0xff]  ;;  %v14145_v3 = vld [vmem:[#allocation99_spill] sm:$0xff]  ;;  %v14146_v55 = vmov 0.0  }
0x2032   :  { %6917 = vmatpush1.msra.mxu0 %v12266_v56  ;;  %6988 = vmatpush1.msra.mxu1 %v12357_v61  ;;  %v14143_v56 = vld [vmem:[#allocation82_spill] sm:$0xff]  ;;  %v14147_v61 = vld [vmem:[#allocation84_spill] sm:$0xff] }
0x2033   :  { %6918 = vmatprep.subr.mxu0 %v12360_v58  ;;  %6989 = vmatprep.subr.mxu1 %v12363_v0  ;;  %v14148_v58 = vld [vmem:[#allocation145_spill] sm:$0xff] }
0x2034   :  { %6919 = vmatpush1.msra.mxu0 %v12366_v28  ;;  %6990 = vmatpush1.msra.mxu1 %v12369_v25  ;;  %v14149_v0 = vld [vmem:[#allocation17_spill] sm:$0xff] }
0x2035   :  { %6920 = vmatprep.subr.mxu0 %v12372_v12  ;;  %6991 = vmatprep.subr.mxu1 %v12375_v37  ;;  %v488_v28 = vadd.f32 %v14149_v0, %v14148_v58  ;;  %v14150_v12 = vld [vmem:[#allocation143_spill] sm:$0xff]  ;;  %v14151_v37 = vld [vmem:[#allocation20_spill] sm:$0xff] }
0x2036   :  { %6921 = vmatpush1.msra.mxu0 %v12378_v11  ;;  %6992 = vmatpush1.msra.mxu1 %v12381_v24  ;;  %v490_v11 = vadd.f32 %v14151_v37, %v14150_v12 }
0x2037   :  { %6922 = vmatprep.subr.mxu0 %v12384_v34  ;;  %6993 = vmatprep.subr.mxu1 %v12387_v42 }
0x2038   :  { %6923 = vmatpush1.msra.mxu0 %v12390_v17  ;;  %6994 = vmatpush1.msra.mxu1 %v12393_v27  ;;  %v14152_v17 = vld [vmem:[#allocation150_spill] sm:$0xff] }
0x2039   :  { %6924 = vmatprep.subr.mxu0 %v12396_v39  ;;  %6995 = vmatprep.subr.mxu1 %v12399_v10  ;;  %v769_v27 = vadd.f32 %v14152_v17, %v9089_v26 }
0x203a   :  { %6925 = vmatpush1.msra.mxu0 %v12402_v23  ;;  %6996 = vmatpush1.msra.mxu1 %v12405_v8 }
0x203b   :  { %6926 = vmatprep.subr.mxu0 %v12408_v36  ;;  %6997 = vmatprep.subr.mxu1 %v12411_v15  ;;  %v14153_v15 = vld [vmem:[#allocation151_spill] sm:$0xff] }
0x203c   :  { %6927 = vmatpush1.msra.mxu0 %v12414_v20  ;;  %6998 = vmatpush1.msra.mxu1 %v14126_v1  ;;  %v771_v20 = vadd.f32 %v14153_v15, %v9097_v29  ;;  %v7081_v1 = vld [vmem:[%s12737_s4 + $0x58] sm:$0xff] }
0x203d   :  { %6928 = vmatprep.subr.mxu0 %v14127_v31  ;;  %6999 = vmatprep.subr.mxu1 %v14128_v43  ;;  %v7080_v31 = vld [vmem:[%s12737_s4 + $0x50] sm:$0xff]  ;;  %v7079_v43 = vld [vmem:[%s12737_s4 + $0x48] sm:$0xff] }
0x203e   :  { %6929 = vmatpush1.msra.mxu0 %v14129_v33  ;;  %7000 = vmatpush1.msra.mxu1 %v14130_v4  ;;  %v7078_v33 = vld [vmem:[%s12737_s4 + $0x40] sm:$0xff]  ;;  %v7077_v4 = vld [vmem:[%s12737_s4 + $0x38] sm:$0xff] }
0x203f   :  { %6930 = vmatprep.subr.mxu0 %v14131_v22  ;;  %7001 = vmatprep.subr.mxu1 %v14132_v32  ;;  %v7076_v22 = vld [vmem:[%s12737_s4 + $0x30] sm:$0xff]  ;;  %v7075_v32 = vld [vmem:[%s12737_s4 + $0x28] sm:$0xff] }
0x2040   :  { %6931 = vmatpush1.msra.mxu0 %v14133_v13  ;;  %7002 = vmatpush1.msra.mxu1 %v14134_v14  ;;  %v7074_v13 = vld [vmem:[%s12737_s4 + $0x20] sm:$0xff]  ;;  %v7073_v14 = vld [vmem:[%s12737_s4 + $0x18] sm:$0xff] }
0x2041   :  { %6932 = vmatprep.subr.mxu0 %v14135_v21  ;;  %7003 = vmatprep.subr.mxu1 %v14136_v18  ;;  %v7072_v21 = vld [vmem:[%s12737_s4 + $0x10] sm:$0xff]  ;;  %v7071_v18 = vld [vmem:[%s12737_s4 + $0x8] sm:$0xff] }
0x2042   :  { %6933 = vmatpush1.msra.mxu0 %v14137_v7  ;;  %7004 = vmatpush1.msra.mxu1 %v14138_v48  ;;  %v7070_v7 = vld [vmem:[%s12737_s4] sm:$0xff]  ;;  %v14154_v48 = vld [vmem:[#allocation23_spill] sm:$0xff] }
0x2043   :  { %6934 = vmatprep.subr.mxu0 %v14139_v49  ;;  %7005 = vmatprep.subr.mxu1 %v14140_v40  ;;  %v494_v49 = vadd.f32 %v14154_v48, %v14148_v58  ;;  %v14157_v58 = vld [vmem:[#allocation153_spill] sm:$0xff] }
0x2044   :  { %6935 = vmatpush1.msra.mxu0 %v14141_v35  ;;  %7006 = vmatpush1.msra.mxu1 %v14142_v50  ;;  %v14155_v35 = vld [vmem:[#allocation25_spill] sm:$0xff] }
0x2045   :  { %6936 = vmatprep.subr.mxu0 %v14143_v56  ;;  %7007 = vmatprep.subr.mxu1 %v14144_v59  ;;  %v496_v50 = vadd.f32 %v14155_v35, %v14150_v12 }
0x2046   :  { %6937 = vmatpush1.msra.mxu0 %v14145_v3  ;;  %6970 = vmatprep.mubr.f32.mxu0 %v14146_v55 }
0x2047   :  { %7008 = vmatpush1.msra.mxu1 %v14147_v61  ;;  %7041 = vmatprep.mubr.f32.mxu1 %v14146_v55  ;;  %v14156_v61 = vld [vmem:[#allocation152_spill] sm:$0xff] }
0x2048   :  { %7295 = vmatprep.subr.mxu0 %v14146_v55  ;;  %v775_v0 = vadd.f32 %v14156_v61, %v9089_v26 }
0x20e7   :  { %v6803_v25 = vpop.f32.mrf.mxu0  ;;  %v6874_v34 = vpop.f32.mrf.mxu1 }
0x20e8   :  { %v6879_v24 = vadd.f32 %v6803_v25, %v488_v28  ;;  %v6881_v23 = vadd.f32 %v6874_v34, %v769_v27 }
0x20e9   :  { %v6805_v42 = vpop.f32.mrf.mxu0  ;;  %v6876_v36 = vpop.f32.mrf.mxu1 }
0x20ea   :  { %v6883_v39 = vmul.f32 0.5, %v6879_v24  ;;  %v6880_v10 = vadd.f32 %v6805_v42, %v490_v11  ;;  %v6882_v5 = vadd.f32 %v6876_v36, %v771_v20  ;;  %v777_v24 = vadd.f32 %v14157_v58, %v9097_v29 }
0x20ec   :  { %7680 = vtanh.f32 %v6883_v39  ;;  %v6887_v8 = vmul.f32 0.5, %v6880_v10  ;;  %v6892_v2 = vmul.f32 0.5, %v6882_v5 }
0x20ee   :  { %7682 = vtanh.f32 %v6887_v8 }
0x20ef   :  { %7684 = vtanh.f32 %v6881_v23 }
0x20f0   :  { %7686 = vtanh.f32 %v6892_v2 }
0x20f9   :  { %v7681_v45 = vpop.eup %7680 }
0x20fa   :  { %v6885_v44 = vmul.f32 0.5, %v7681_v45 }
0x20fb   :  { %v7683_v63 = vpop.eup %7682 }
0x20fc   :  { %v6886_v53 = vadd.f32 0.5, %v6885_v44  ;;  %v6889_v38 = vmul.f32 0.5, %v7683_v63  ;;  %v7685_v51 = vpop.eup %7684  ;;  %v7275_v44 = vld [vmem:[%s12738_s5] ss:$0 sm:$0xff]  ;;  %s8168_s5 = scalar_lea.vmem %s7195_s26, 128 }
0x20fd   :  { %v7687_v60 = vpop.eup %7686  ;;  %p8169_p5 = scmp.ne.s32.totalorder %s7195_s26, %s8168_s5  ;;  %p8174_p7 = scmp.lt.s32.totalorder %s8168_s5, %s8168_s5 }
0x20fe   :  { %v6890_v47 = vadd.f32 0.5, %v6889_v38  ;;  %v6897_v6 = vmul.f32 %v7685_v51, %v6886_v53  ;;  %v6894_v52 = vmul.f32 0.5, %v7687_v60  ;;  %v7276_v51 = vld [vmem:[%s12739_s6] ss:$0 sm:$0xff] }
0x20ff   :  { %p8175_p8 = por %p8174_p7, %p8173_p6 }
0x2100   :  { %v6896_v54 = vmul.f32 %v6890_v47, %v12571_v16  ;;  %v6895_v9 = vadd.f32 0.5, %v6894_v52  ;;  %v7084_v16 = vld [vmem:[%s12737_s4 + $0x70] sm:$0xff] }
0x2101   :  { %p8176_p9 = pnand %p8175_p8, %p8169_p5 }
0x2102   :  { %v12648_v19 = vadd.f32 %v6897_v6, %v6896_v54  ;;  %v8197_v54 = vmov 0  }
0x2103   :  { %7339 = vset.pattern.permute.xlu0 %v8197_v54 }
0x2104   :  { %7688 = vtanh.f32 %v12648_v19 }
0x2111   :  { %v7689_v30 = vpop.eup %7688 }
0x2112   :  { %v6900_v41 = vmul.f32 %v7689_v30, %v6895_v9 }
0x2114   :  { %6971 = vmatmul.mubr.f32.vlgmr.msra.gmra.mxu0 %v6900_v41  ;;  %7042 = vmatmul.mubr.f32.vlgmr.msra.gmra.mxu1 %v6900_v41 }
0x2115   :  { %7296 = vmatpush3.msra.mxu0 %v7085_v46  ;;  %7327 = vmatprep.mubr.msk.f32.mxu0 %vm8196_vm1, %v14146_v55 }
0x2116   :  { %7297 = vmatprep.subr.mxu0 %v14146_v55 }
0x2117   :  { %7298 = vmatpush3.msra.mxu0 %v7084_v16 }
0x2118   :  { %7299 = vmatprep.subr.mxu0 %v14146_v55 }
0x2119   :  { %7300 = vmatpush3.msra.mxu0 %v7083_v62 }
0x211a   :  { %7301 = vmatprep.subr.mxu0 %v14146_v55 }
0x211b   :  { %7302 = vmatpush3.msra.mxu0 %v7082_v57 }
0x211c   :  { %7303 = vmatprep.subr.mxu0 %v14146_v55 }
0x211d   :  { %7304 = vmatpush3.msra.mxu0 %v7081_v1 }
0x211e   :  { %7305 = vmatprep.subr.mxu0 %v14146_v55 }
0x211f   :  { %7306 = vmatpush3.msra.mxu0 %v7080_v31 }
0x2120   :  { %7307 = vmatprep.subr.mxu0 %v14146_v55 }
0x2121   :  { %7308 = vmatpush3.msra.mxu0 %v7079_v43 }
0x2122   :  { %7309 = vmatprep.subr.mxu0 %v14146_v55 }
0x2123   :  { %7310 = vmatpush3.msra.mxu0 %v7078_v33 }
0x2124   :  { %7311 = vmatprep.subr.mxu0 %v14146_v55 }
0x2125   :  { %7312 = vmatpush3.msra.mxu0 %v7077_v4 }
0x2126   :  { %7313 = vmatprep.subr.mxu0 %v14146_v55 }
0x2127   :  { %7314 = vmatpush3.msra.mxu0 %v7076_v22 }
0x2128   :  { %7315 = vmatprep.subr.mxu0 %v14146_v55 }
0x2129   :  { %7316 = vmatpush3.msra.mxu0 %v7075_v32 }
0x212a   :  { %7317 = vmatprep.subr.mxu0 %v14146_v55 }
0x212b   :  { %7318 = vmatpush3.msra.mxu0 %v7074_v13 }
0x212c   :  { %7319 = vmatprep.subr.mxu0 %v14146_v55 }
0x212d   :  { %7320 = vmatpush3.msra.mxu0 %v7073_v14 }
0x212e   :  { %7321 = vmatprep.subr.mxu0 %v14146_v55 }
0x212f   :  { %7322 = vmatpush3.msra.mxu0 %v7072_v21 }
0x2130   :  { %7323 = vmatprep.subr.mxu0 %v14146_v55 }
0x2131   :  { %7324 = vmatpush3.msra.mxu0 %v7071_v18 }
0x2132   :  { %7325 = vmatprep.subr.mxu0 %v14146_v55 }
0x2133   :  { %7326 = vmatpush3.msra.mxu0 %v7070_v7 }
0x21d4   :  { %v6972_v40 = vpop.f32.mrf.mxu0  ;;  %v7043_v59 = vpop.f32.mrf.mxu1 }
0x21d5   :  { %v7048_v56 = vadd.f32 %v6972_v40, %v494_v49  ;;  %v7050_v37 = vadd.f32 %v7043_v59, %v775_v0 }
0x21d6   :  { %v6974_v3 = vpop.f32.mrf.mxu0  ;;  %v7045_v55 = vpop.f32.mrf.mxu1 }
0x21d7   :  { %v7052_v28 = vmul.f32 0.5, %v7048_v56  ;;  %v7049_v25 = vadd.f32 %v6974_v3, %v496_v50  ;;  %v7051_v34 = vadd.f32 %v7045_v55, %v777_v24 }
0x21d9   :  { %7690 = vtanh.f32 %v7052_v28  ;;  %v7056_v11 = vmul.f32 0.5, %v7049_v25  ;;  %v7061_v42 = vmul.f32 0.5, %v7051_v34 }
0x21db   :  { %7692 = vtanh.f32 %v7056_v11 }
0x21dc   :  { %7694 = vtanh.f32 %v7050_v37 }
0x21dd   :  { %7696 = vtanh.f32 %v7061_v42 }
0x21e6   :  { %v7691_v12 = vpop.eup %7690 }
0x21e7   :  { %v7054_v17 = vmul.f32 0.5, %v7691_v12 }
0x21e8   :  { %v7693_v27 = vpop.eup %7692 }
0x21e9   :  { %v7055_v39 = vadd.f32 0.5, %v7054_v17  ;;  %v7058_v10 = vmul.f32 0.5, %v7693_v27  ;;  %v7695_v26 = vpop.eup %7694 }
0x21ea   :  { %v7697_v20 = vpop.eup %7696 }
0x21eb   :  { %v7059_v23 = vadd.f32 0.5, %v7058_v10  ;;  %v7066_v8 = vmul.f32 %v7695_v26, %v7055_v39  ;;  %v7063_v5 = vmul.f32 0.5, %v7697_v20 }
0x21ed   :  { %v7065_v36 = vmul.f32 %v7059_v23, %v12648_v19  ;;  %v7064_v2 = vadd.f32 0.5, %v7063_v5  ;;  %v7277_v19 = vld [vmem:[#allocation3] ss:$0 sm:$0xff] }
0x21ef   :  { %v7067_v15 = vadd.f32 %v7066_v8, %v7065_v36 }
0x21f1   :  { %7698 = vtanh.f32 %v7067_v15 }
0x21fe   :  { %v7699_v45 = vpop.eup %7698 }
0x21ff   :  { %v7069_v29 = vmul.f32 %v7699_v45, %v7064_v2 }
0x2201   :  { %7328 = vmatmul.mubr.f32.vlgmr.msra.gmra.mxu0 %v7069_v29 }
0x22c1   :  { %v7159_v63 = vpop.f32.mrf.mxu0 }
0x22c2   :  { %v7160_v53 = vadd.f32 %v7275_v44, %v7159_v63 }
0x22c3   :  { %v7329_v38 = vpop.f32.mrf.mxu0 }
0x22c4   :  { %v7163_v47 = vmax.f32 %v7160_v53, 0.0 }
0x22c6   :  { %v7171_v6 = vmul.f32 %v7276_v51, %v7163_v47 }
0x22c8   :  { %7172 = vadd.xlane.f32.xlu0 %v7171_v6 }
0x2351   :  { %v7173_v60 = vpop.xlane.xlu0 %7172 }
0x2352   :  { %v7181_v52 = vadd.f32 %v7277_v19, %v7173_v60 }
0x2354   :  { %7184 = vperm.xlu0 %7339, %v7181_v52  }
0x23cf   :  { %v7185_v9 = vpop.permute.xlu0 %7184 }
0x23d0   :  { %7187 = vst [vmem:[#allocation7] sm:$0xff] %v7185_v9 }
0x23d1   :  { %8179 = shalt.err (!%p8176_p9)
}
0x23d2   :  { %7197 = dma.vmem_to_hbm [thread:$0]  %s7195_s26, 128, %s12741_s8, [#allocation6]  }
0x23d3   :  { %8190 = dma.done.wait [#allocation6], 128  }
0x23d4   :  { %8191 = vsyncadd [#allocation6], 4294967168 }
0x23d5   :  { %7201 = vsyncpa [#allocation5], 1 }
0x23d6   :  { %7202 = vsyncpa [#allocation6], 1 }

</bundles_post_ra>
